<compile_context>
chip_gen: v7x
topology: tpu7x:2x2x1
jax: 0.10.0
libtpu: 0.0.40
codegen_flags: <defaults>
</compile_context>

<pallas_src>
import numpy as np

import jax
import jax.numpy as jnp
from jax.experimental import pallas as pl
from jax.experimental.pallas import tpu as pltpu

_BF16 = jnp.bfloat16
_VMEM_LIMIT = 32 * 1024 * 1024  # safe on every generation (v7x physical VMEM = 64 MiB)


def _const_spec(shape):
    # Whole-array block with a constant block index: the Pallas pipeline detects the
    # unchanged index and does not re-DMA the block on later grid steps.
    return pl.BlockSpec(shape, lambda k: (0,) * len(shape))


# ---------------------------------------------------------------------------
# Host-side (trace-time) helpers for the mask encoder
# ---------------------------------------------------------------------------
def _im2col_first_layer(x_nhwc):
    """Host-side im2col for the Cin=1 first conv (3x3, s=2, p=1).  Tiny."""
    B, H, W, C = x_nhwc.shape
    xp = jnp.pad(x_nhwc, ((0, 0), (1, 1), (1, 1), (0, 0)))
    Ho = (H - 1) // 2 + 1
    Wo = (W - 1) // 2 + 1
    cols = [xp[:, i:i + 2 * Ho:2, j:j + 2 * Wo:2, :]
            for i in range(3) for j in range(3)]
    patches = jnp.concatenate(cols, axis=-1)            # [B, Ho, Wo, 9*C]
    return patches.reshape(B * Ho * Wo, 9 * C), Ho, Wo


def _tap_selectors(B, H, W):
    """0/1 selector matrices G[t] (t = 3*di + dj): a 3x3/stride-2/pad-1 spatial
    gather over the flat [B*H*W, .] activation layout, y_t = G_t @ x."""
    Ho = (H - 1) // 2 + 1
    Wo = (W - 1) // 2 + 1
    G = np.zeros((9, B * Ho * Wo, B * H * W), np.float32)
    for t in range(9):
        di, dj = t // 3, t % 3
        for b in range(B):
            for oh in range(Ho):
                ih = 2 * oh + di - 1
                if not (0 <= ih < H):
                    continue
                for ow in range(Wo):
                    iw = 2 * ow + dj - 1
                    if not (0 <= iw < W):
                        continue
                    G[t, b * Ho * Wo + oh * Wo + ow, b * H * W + ih * W + iw] = 1.0
    return G, Ho, Wo


def _pool_matrix(B, Ho, Wo):
    """AdaptiveAvgPool2d((1,1)) over the flat [B*Ho*Wo, C] layout as a matmul."""
    P = np.zeros((B, B * Ho * Wo), np.float32)
    for b in range(B):
        P[b, b * Ho * Wo:(b + 1) * Ho * Wo] = 1.0 / float(Ho * Wo)
    return P


# ---------------------------------------------------------------------------
# Fused kernel: mask encoder (k==0) + K-tiled attention fusion + classifier
# ---------------------------------------------------------------------------
def _fused_kernel(img_ref, wia1_ref, wf1i_ref,
                  p1_ref, w1_ref, b1_ref,
                  g2_ref, w2_ref, b2_ref,
                  g3_ref, w3_ref, b3_ref,
                  g4_ref, w4_ref, b4_ref,
                  pool_ref, fcw_ref, fcb_ref,
                  wma1_ref, bma1_ref, wma2r_ref, wf1m_ref,
                  bia1_ref, wia2r_ref, att_b2_ref,
                  bf1_ref, wf2_ref, bf2_ref,
                  wc1_ref, bc1_ref, wc2_ref, bc2_ref,
                  out_ref,
                  acc_ia, acc_f, fm_sc, ma_sc):
    f32 = jnp.float32
    k = pl.program_id(0)

    @pl.when(k == 0)
    def _prologue():
        # ---- init the K-reduction accumulators -------------------------------
        acc_ia[...] = jnp.zeros_like(acc_ia)
        acc_f[...] = jnp.zeros_like(acc_f)

        # ---- SimpleMaskEncoder (runs once; overlaps remaining weight DMA) ----
        # Layer 1: host-side im2col patches @ folded weight -> BN+ReLU.
        x = jnp.dot(p1_ref[...], w1_ref[...], preferred_element_type=f32)
        x = jnp.maximum(x + b1_ref[...], 0.0)                    # [B*H1*W1, 32]

        # Layers 2-4 (3x3, stride 2, pad 1, BN folded, ReLU), "weights-first":
        #   z = x @ W_wide  ([Min, 9*Cout], one bf16 matmul per layer)
        #   y = sum_t  G_t @ z[:, t*Cout:(t+1)*Cout]   (exact f32 0/1 gathers)
        for g_ref, w_ref, b_ref in ((g2_ref, w2_ref, b2_ref),
                                    (g3_ref, w3_ref, b3_ref),
                                    (g4_ref, w4_ref, b4_ref)):
            cout = b_ref.shape[-1]
            z = jnp.dot(x.astype(w_ref.dtype), w_ref[...],
                        preferred_element_type=f32)              # [Min, 9*Cout]
            acc = None
            for t in range(9):                                   # unrolled taps
                y_t = jnp.dot(g_ref[t], z[:, t * cout:(t + 1) * cout],
                              preferred_element_type=f32)        # [Mo, Cout]
                acc = y_t if acc is None else acc + y_t
            x = jnp.maximum(acc + b_ref[...], 0.0)

        # AdaptiveAvgPool(1,1) as a matmul, then Linear(256->256)+ReLU (Dropout=id).
        pooled = jnp.dot(pool_ref[...], x, preferred_element_type=f32)    # [B, 256]
        mf = jnp.maximum(
            jnp.dot(pooled.astype(fcw_ref.dtype), fcw_ref[...],
                    preferred_element_type=f32) + fcb_ref[...], 0.0)      # [B, 256]

        # ---- mask-side head work, hoisted off the last-step critical path ----
        mfb = mf.astype(wma1_ref.dtype)
        h_m = jnp.maximum(
            jnp.dot(mfb, wma1_ref[...], preferred_element_type=f32)
            + bma1_ref[...], 0.0)
        # Linear(512->1) as a VPU lane reduction against the (1,512) weight row.
        ma_sc[...] = jax.nn.sigmoid(
            jnp.sum(h_m * wma2r_ref[...], axis=-1, keepdims=True) + att_b2_ref[1])
        fm_sc[...] = jnp.dot(mfb, wf1m_ref[...], preferred_element_type=f32)

    # ---- K-tiled contractions over image_dim (every grid step) ---------------
    img_blk = img_ref[...]                                       # bf16 (pre-cast)
    acc_ia[...] += jnp.dot(img_blk, wia1_ref[...], preferred_element_type=jnp.float32)
    acc_f[...] += jnp.dot(img_blk, wf1i_ref[...], preferred_element_type=jnp.float32)

    @pl.when(k == pl.num_programs(0) - 1)
    def _epilogue():
        # Image attention branch.
        h_i = jnp.maximum(acc_ia[...] + bia1_ref[...], 0.0)
        ia = jax.nn.sigmoid(
            jnp.sum(h_i * wia2r_ref[...], axis=-1, keepdims=True) + att_b2_ref[0])
        ma = ma_sc[...]
        total = ia + ma + 1e-8
        ia = ia / total
        ma = ma / total

        # fusion_layer on cat([img*ia, msk*ma]):
        #   (img*ia)@Wf_img + (msk*ma)@Wf_msk = ia*(img@Wf_img) + ma*(msk@Wf_msk)
        h = jnp.maximum(ia * acc_f[...] + ma * fm_sc[...] + bf1_ref[...], 0.0)
        fused = jnp.dot(h.astype(wf2_ref.dtype), wf2_ref[...],
                        preferred_element_type=jnp.float32) + bf2_ref[...]

        # Classifier: Linear -> ReLU -> Dropout(identity) -> Linear.
        c = jnp.maximum(
            jnp.dot(fused.astype(wc1_ref.dtype), wc1_ref[...],
                    preferred_element_type=jnp.float32) + bc1_ref[...], 0.0)
        logits = jnp.dot(c.astype(wc2_ref.dtype), wc2_ref[...],
                         preferred_element_type=jnp.float32) + bc2_ref[...]
        out_ref[...] = logits.astype(out_ref.dtype)


# ---------------------------------------------------------------------------
# Full forward (use_masks=True, mask_fusion='attention', backbone=resnet50)
# ---------------------------------------------------------------------------
def dual_input_forward(params, image_features, masks, *, kt=1024, eps=1e-5):
    me, hp = params["mask_encoder"], params["fusion_head"]

    # ---------------- mask-encoder host-side prep ----------------
    x = jnp.transpose(masks, (0, 2, 3, 1))                       # NCHW -> NHWC
    B, H, W, _ = x.shape

    # Fold eval-mode BatchNorm into the conv weights / biases.
    w_eff, b_eff = [], []
    for (w, b, gamma, beta, mean, var) in me["convs"]:
        scale = gamma / jnp.sqrt(var + eps)
        w_eff.append(w * scale)                                  # [3,3,Cin,Cout]
        b_eff.append(((b - mean) * scale + beta).reshape(1, -1).astype(jnp.float32))

    # Layer 1 (Cin=1): plain [9, 32] weight for the host-side im2col patches.
    w1 = w_eff[0].reshape(9, -1).astype(_BF16)
    # Layers 2-4: "weights-first" layout [Cin, 9*Cout] (tap index t = 3*di + dj).
    wide = []
    for we in w_eff[1:]:
        cin, cout = we.shape[2], we.shape[3]
        wide.append(jnp.transpose(we, (2, 0, 1, 3)).reshape(cin, 9 * cout).astype(_BF16))
    w2, w3, w4 = wide
    b1, b2, b3, b4 = b_eff

    patches1, h_cur, w_cur = _im2col_first_layer(x)              # layer-1 im2col
    patches1 = patches1.astype(_BF16)

    # Static 0/1 tap selectors for layers 2-4 + pooling matrix (trace-time numpy).
    sels = []
    for _ in range(3):
        G, h_cur, w_cur = _tap_selectors(B, h_cur, w_cur)
        sels.append(jnp.asarray(G, jnp.float32))
    pool = jnp.asarray(_pool_matrix(B, h_cur, w_cur), jnp.float32)

    fc_w = me["fc_w"].astype(_BF16)
    fc_b = me["fc_b"]

    # ---------------- fusion-head prep ----------------
    _, image_dim = image_features.shape
    fusion_dim = hp["wf2"].shape[0]
    num_classes = hp["wc2"].shape[1]
    if image_dim % kt != 0:          # fallback: disables K-tiling for odd image_dims
        kt = image_dim
    kn = image_dim // kt

    img = image_features.astype(_BF16)                           # pre-cast (halves DMA)
    att_b2 = jnp.concatenate([hp["bia2"].reshape(1),
                              hp["bma2"].reshape(1)]).astype(jnp.float32)   # (2,) SMEM

    args = (img,
            hp["wia1"].astype(_BF16),
            hp["wf1_img"].astype(_BF16),
            patches1, w1, b1,
            sels[0], w2, b2,
            sels[1], w3, b3,
            sels[2], w4, b4,
            pool, fc_w, fc_b,
            hp["wma1"].astype(_BF16), hp["bma1"], hp["wma2_row"],
            hp["wf1_msk"].astype(_BF16),
            hp["bia1"], hp["wia2_row"], att_b2,
            hp["bf1"], hp["wf2"].astype(_BF16), hp["bf2"],
            hp["wc1"].astype(_BF16), hp["bc1"],
            hp["wc2"].astype(_BF16), hp["bc2"])

    in_specs = [
        pl.BlockSpec((B, kt), lambda k: (0, k)),                 # image_features
        pl.BlockSpec((kt, fusion_dim), lambda k: (k, 0)),        # wia1   (K-tiled)
        pl.BlockSpec((kt, fusion_dim), lambda k: (k, 0)),        # wf1_img(K-tiled)
    ]
    # args[3:24]: all mask-encoder + constant head operands (whole-array blocks).
    for a in args[3:24]:
        in_specs.append(_const_spec(a.shape))
    # att_b2 -> tiny scalar operand lives in SMEM, not a padded VMEM tile.
    in_specs.append(pl.BlockSpec(memory_space=pltpu.MemorySpace.SMEM))
    for a in args[25:]:
        in_specs.append(_const_spec(a.shape))
    assert len(in_specs) == len(args)

    grid_spec = pltpu.PrefetchScalarGridSpec(
        num_scalar_prefetch=0,
        grid=(kn,),
        in_specs=in_specs,
        out_specs=pl.BlockSpec((B, num_classes), lambda k: (0, 0)),
        scratch_shapes=[pltpu.VMEM((B, fusion_dim), jnp.float32),   # acc_ia
                        pltpu.VMEM((B, fusion_dim), jnp.float32),   # acc_f
                        pltpu.VMEM((B, fusion_dim), jnp.float32),   # fm_sc
                        pltpu.VMEM((B, 1), jnp.float32)])           # ma_sc

    return pl.pallas_call(
        _fused_kernel,
        grid_spec=grid_spec,
        out_shape=jax.ShapeDtypeStruct((B, num_classes), jnp.float32),
        compiler_params=pltpu.CompilerParams(
            dimension_semantics=("arbitrary",),
            vmem_limit_bytes=_VMEM_LIMIT),
    )(*args)


# ---------------------------------------------------------------------------
# Deterministic parameter init (Kaiming-normal fan_out, zero bias, BN=1/0)
# ---------------------------------------------------------------------------
def _kaiming(key, shape, fan_out):
    return (jnp.sqrt(2.0 / fan_out) * jax.random.normal(key, shape)).astype(jnp.float32)


def init_params(key, image_dim=2048, mask_dim=256, fusion_dim=512,
                hidden=512, num_classes=3):
    keys = iter(jax.random.split(key, 32))
    nk = lambda: next(keys)

    # SimpleMaskEncoder convs: 1->32->64->128->256, k=3, s=2, p=1, each + BN.
    convs = []
    cin = 1
    for cout in (32, 64, 128, 256):
        w = _kaiming(nk(), (3, 3, cin, cout), fan_out=3 * 3 * cout)   # [kh,kw,Cin,Cout]
        b = jnp.zeros((cout,), jnp.float32)
        gamma = jnp.ones((cout,), jnp.float32)
        beta = jnp.zeros((cout,), jnp.float32)
        mean = jnp.zeros((cout,), jnp.float32)
        var = jnp.ones((cout,), jnp.float32)
        convs.append((w, b, gamma, beta, mean, var))
        cin = cout
    mask_enc = {
        "convs": convs,
        "fc_w": _kaiming(nk(), (256, mask_dim), fan_out=mask_dim),
        "fc_b": jnp.zeros((1, mask_dim), jnp.float32),
    }

    head = dict(
        wia1=_kaiming(nk(), (image_dim, fusion_dim), fusion_dim),
        bia1=jnp.zeros((1, fusion_dim), jnp.float32),
        wia2_row=_kaiming(nk(), (1, fusion_dim), 1),      # Linear(512->1) weight row
        bia2=jnp.zeros((1, 1), jnp.float32),
        wma1=_kaiming(nk(), (mask_dim, fusion_dim), fusion_dim),
        bma1=jnp.zeros((1, fusion_dim), jnp.float32),
        wma2_row=_kaiming(nk(), (1, fusion_dim), 1),
        bma2=jnp.zeros((1, 1), jnp.float32),
    )
    wf1 = _kaiming(nk(), (image_dim + mask_dim, fusion_dim), fusion_dim)
    head["wf1_img"] = wf1[:image_dim]
    head["wf1_msk"] = wf1[image_dim:]
    head["bf1"] = jnp.zeros((1, fusion_dim), jnp.float32)
    head["wf2"] = _kaiming(nk(), (fusion_dim, fusion_dim), fusion_dim)
    head["bf2"] = jnp.zeros((1, fusion_dim), jnp.float32)
    head["wc1"] = _kaiming(nk(), (fusion_dim, hidden), hidden)
    head["bc1"] = jnp.zeros((1, hidden), jnp.float32)
    head["wc2"] = _kaiming(nk(), (hidden, num_classes), num_classes)
    head["bc2"] = jnp.zeros((1, num_classes), jnp.float32)

    return {"mask_encoder": mask_enc, "fusion_head": head}


if __name__ == "__main__":
    key = jax.random.PRNGKey(0)
    k_param, k_img, k_mask = jax.random.split(key, 3)

    params = init_params(k_param)

    B, H, W = 2, 16, 16
    # image_features: output of the (external) ResNet50 backbone, flattened [B, 2048].
    image_features = jax.random.normal(k_img, (B, 2048), jnp.float32)
    # masks: road masks in PyTorch NCHW layout [B, 1, H, W].
    masks = (jax.random.uniform(k_mask, (B, 1, H, W), jnp.float32) > 0.5).astype(jnp.float32)

    fwd = jax.jit(dual_input_forward)
    logits = fwd(params, image_features, masks)
    jax.block_until_ready(logits)

    assert logits.shape == (B, 3) and logits.dtype == jnp.float32
    print("KERNEL_OK")
</pallas_src>

<mosaic_0001>
module attributes {stable_mosaic.version = 11 : i64} {
  func.func @_fused_kernel(%arg0: i32, %arg1: memref<2x1024xbf16, #tpu.memory_space<vmem>>, %arg2: memref<1024x512xbf16, #tpu.memory_space<vmem>>, %arg3: memref<1024x512xbf16, #tpu.memory_space<vmem>>, %arg4: memref<128x9xbf16, #tpu.memory_space<vmem>>, %arg5: memref<9x32xbf16, #tpu.memory_space<vmem>>, %arg6: memref<1x32xf32, #tpu.memory_space<vmem>>, %arg7: memref<9x32x128xf32, #tpu.memory_space<vmem>>, %arg8: memref<32x576xbf16, #tpu.memory_space<vmem>>, %arg9: memref<1x64xf32, #tpu.memory_space<vmem>>, %arg10: memref<9x8x32xf32, #tpu.memory_space<vmem>>, %arg11: memref<64x1152xbf16, #tpu.memory_space<vmem>>, %arg12: memref<1x128xf32, #tpu.memory_space<vmem>>, %arg13: memref<9x2x8xf32, #tpu.memory_space<vmem>>, %arg14: memref<128x2304xbf16, #tpu.memory_space<vmem>>, %arg15: memref<1x256xf32, #tpu.memory_space<vmem>>, %arg16: memref<2x2xf32, #tpu.memory_space<vmem>>, %arg17: memref<256x256xbf16, #tpu.memory_space<vmem>>, %arg18: memref<1x256xf32, #tpu.memory_space<vmem>>, %arg19: memref<256x512xbf16, #tpu.memory_space<vmem>>, %arg20: memref<1x512xf32, #tpu.memory_space<vmem>>, %arg21: memref<1x512xf32, #tpu.memory_space<vmem>>, %arg22: memref<256x512xbf16, #tpu.memory_space<vmem>>, %arg23: memref<1x512xf32, #tpu.memory_space<vmem>>, %arg24: memref<1x512xf32, #tpu.memory_space<vmem>>, %arg25: memref<2xf32, #tpu.memory_space<smem>>, %arg26: memref<1x512xf32, #tpu.memory_space<vmem>>, %arg27: memref<512x512xbf16, #tpu.memory_space<vmem>>, %arg28: memref<1x512xf32, #tpu.memory_space<vmem>>, %arg29: memref<512x512xbf16, #tpu.memory_space<vmem>>, %arg30: memref<1x512xf32, #tpu.memory_space<vmem>>, %arg31: memref<512x3xbf16, #tpu.memory_space<vmem>>, %arg32: memref<1x3xf32, #tpu.memory_space<vmem>>, %arg33: memref<2x3xf32, #tpu.memory_space<vmem>>, %arg34: memref<2x512xf32, #tpu.memory_space<vmem>>, %arg35: memref<2x512xf32, #tpu.memory_space<vmem>>, %arg36: memref<2x512xf32, #tpu.memory_space<vmem>>, %arg37: memref<2x1xf32, #tpu.memory_space<vmem>>) attributes {dimension_semantics = [#tpu.dimension_semantics<arbitrary>], iteration_bounds = array<i64: 2>, scalar_prefetch = 0 : i64, scratch_operands = 4 : i64, tpu.core_type = #tpu.core_type<tc>, window_params = [{transform_indices = @transform_0, window_bounds = array<i64: 2, 1024>}, {transform_indices = @transform_1, window_bounds = array<i64: 1024, 512>}, {transform_indices = @transform_2, window_bounds = array<i64: 1024, 512>}, {pipeline_mode = #tpu.pipeline_mode<synchronous>, transform_indices = @transform_3, window_bounds = array<i64: 128, 9>}, {pipeline_mode = #tpu.pipeline_mode<synchronous>, transform_indices = @transform_4, window_bounds = array<i64: 9, 32>}, {pipeline_mode = #tpu.pipeline_mode<synchronous>, transform_indices = @transform_5, window_bounds = array<i64: 1, 32>}, {pipeline_mode = #tpu.pipeline_mode<synchronous>, transform_indices = @transform_6, window_bounds = array<i64: 9, 32, 128>}, {pipeline_mode = #tpu.pipeline_mode<synchronous>, transform_indices = @transform_7, window_bounds = array<i64: 32, 576>}, {pipeline_mode = #tpu.pipeline_mode<synchronous>, transform_indices = @transform_8, window_bounds = array<i64: 1, 64>}, {pipeline_mode = #tpu.pipeline_mode<synchronous>, transform_indices = @transform_9, window_bounds = array<i64: 9, 8, 32>}, {pipeline_mode = #tpu.pipeline_mode<synchronous>, transform_indices = @transform_10, window_bounds = array<i64: 64, 1152>}, {pipeline_mode = #tpu.pipeline_mode<synchronous>, transform_indices = @transform_11, window_bounds = array<i64: 1, 128>}, {pipeline_mode = #tpu.pipeline_mode<synchronous>, transform_indices = @transform_12, window_bounds = array<i64: 9, 2, 8>}, {pipeline_mode = #tpu.pipeline_mode<synchronous>, transform_indices = @transform_13, window_bounds = array<i64: 128, 2304>}, {pipeline_mode = #tpu.pipeline_mode<synchronous>, transform_indices = @transform_14, window_bounds = array<i64: 1, 256>}, {pipeline_mode = #tpu.pipeline_mode<synchronous>, transform_indices = @transform_15, window_bounds = array<i64: 2, 2>}, {pipeline_mode = #tpu.pipeline_mode<synchronous>, transform_indices = @transform_16, window_bounds = array<i64: 256, 256>}, {pipeline_mode = #tpu.pipeline_mode<synchronous>, transform_indices = @transform_17, window_bounds = array<i64: 1, 256>}, {pipeline_mode = #tpu.pipeline_mode<synchronous>, transform_indices = @transform_18, window_bounds = array<i64: 256, 512>}, {pipeline_mode = #tpu.pipeline_mode<synchronous>, transform_indices = @transform_19, window_bounds = array<i64: 1, 512>}, {pipeline_mode = #tpu.pipeline_mode<synchronous>, transform_indices = @transform_20, window_bounds = array<i64: 1, 512>}, {pipeline_mode = #tpu.pipeline_mode<synchronous>, transform_indices = @transform_21, window_bounds = array<i64: 256, 512>}, {pipeline_mode = #tpu.pipeline_mode<synchronous>, transform_indices = @transform_22, window_bounds = array<i64: 1, 512>}, {pipeline_mode = #tpu.pipeline_mode<synchronous>, transform_indices = @transform_23, window_bounds = array<i64: 1, 512>}, {transform_indices = @transform_24, window_bounds = array<i64: 2>}, {pipeline_mode = #tpu.pipeline_mode<synchronous>, transform_indices = @transform_25, window_bounds = array<i64: 1, 512>}, {pipeline_mode = #tpu.pipeline_mode<synchronous>, transform_indices = @transform_26, window_bounds = array<i64: 512, 512>}, {pipeline_mode = #tpu.pipeline_mode<synchronous>, transform_indices = @transform_27, window_bounds = array<i64: 1, 512>}, {pipeline_mode = #tpu.pipeline_mode<synchronous>, transform_indices = @transform_28, window_bounds = array<i64: 512, 512>}, {pipeline_mode = #tpu.pipeline_mode<synchronous>, transform_indices = @transform_29, window_bounds = array<i64: 1, 512>}, {pipeline_mode = #tpu.pipeline_mode<synchronous>, transform_indices = @transform_30, window_bounds = array<i64: 512, 3>}, {pipeline_mode = #tpu.pipeline_mode<synchronous>, transform_indices = @transform_31, window_bounds = array<i64: 1, 3>}, {pipeline_mode = #tpu.pipeline_mode<synchronous>, transform_indices = @transform_32, window_bounds = array<i64: 2, 3>}]} {
    %c0_i32 = arith.constant 0 : i32
    %0 = arith.cmpi eq, %arg0, %c0_i32 : i32
    %1 = arith.extui %0 : i1 to i32
    %c0_i32_0 = arith.constant 0 : i32
    %2 = arith.cmpi ne, %1, %c0_i32_0 : i32
    scf.if %2 {
      %cst_16 = arith.constant 0.000000e+00 : f32
      %17 = vector.broadcast %cst_16 : f32 to vector<2x512xf32>
      %c0_17 = arith.constant 0 : index
      %c0_18 = arith.constant 0 : index
      %18 = vector.load %arg34[%c0_17, %c0_18] : memref<2x512xf32, #tpu.memory_space<vmem>>, vector<2x512xf32>
      tpu.vector_store %arg34[%c0_17, %c0_18], %17 {strides = array<i32>} : memref<2x512xf32, #tpu.memory_space<vmem>>, vector<2x512xf32>,
      %cst_19 = arith.constant 0.000000e+00 : f32
      %19 = vector.broadcast %cst_19 : f32 to vector<2x512xf32>
      %c0_20 = arith.constant 0 : index
      %c0_21 = arith.constant 0 : index
      %20 = vector.load %arg35[%c0_20, %c0_21] : memref<2x512xf32, #tpu.memory_space<vmem>>, vector<2x512xf32>
      tpu.vector_store %arg35[%c0_20, %c0_21], %19 {strides = array<i32>} : memref<2x512xf32, #tpu.memory_space<vmem>>, vector<2x512xf32>,
      %c0_22 = arith.constant 0 : index
      %c0_23 = arith.constant 0 : index
      %21 = vector.load %arg4[%c0_22, %c0_23] : memref<128x9xbf16, #tpu.memory_space<vmem>>, vector<128x9xbf16>
      %c0_24 = arith.constant 0 : index
      %c0_25 = arith.constant 0 : index
      %22 = vector.load %arg5[%c0_24, %c0_25] : memref<9x32xbf16, #tpu.memory_space<vmem>>, vector<9x32xbf16>
      %cst_26 = arith.constant dense<0.000000e+00> : vector<128x32xf32>
      %23 = tpu.matmul %21, %22, %cst_26 {dimension_numbers = #tpu.dot_dimension_numbers<[1], [0], [0], [1], [0, 0, 1, 1], [], []>} : vector<128x9xbf16>, vector<9x32xbf16>, vector<128x32xf32> -> vector<128x32xf32>
      %c0_27 = arith.constant 0 : index
      %c0_28 = arith.constant 0 : index
      %24 = vector.load %arg6[%c0_27, %c0_28] : memref<1x32xf32, #tpu.memory_space<vmem>>, vector<1x32xf32>
      %25 = vector.broadcast %24 : vector<1x32xf32> to vector<128x32xf32>
      %26 = arith.addf %23, %25 : vector<128x32xf32>
      %cst_29 = arith.constant 0.000000e+00 : f32
      %27 = vector.broadcast %cst_29 : f32 to vector<128x32xf32>
      %28 = arith.maximumf %26, %27 : vector<128x32xf32>
      %29 = arith.truncf %28 : vector<128x32xf32> to vector<128x32xbf16>
      %c0_30 = arith.constant 0 : index
      %c0_31 = arith.constant 0 : index
      %30 = vector.load %arg8[%c0_30, %c0_31] : memref<32x576xbf16, #tpu.memory_space<vmem>>, vector<32x576xbf16>
      %cst_32 = arith.constant dense<0.000000e+00> : vector<128x576xf32>
      %31 = tpu.matmul %29, %30, %cst_32 {dimension_numbers = #tpu.dot_dimension_numbers<[1], [0], [0], [1], [0, 0, 1, 1], [], []>} : vector<128x32xbf16>, vector<32x576xbf16>, vector<128x576xf32> -> vector<128x576xf32>
      %c0_33 = arith.constant 0 : index
      %c0_34 = arith.constant 0 : index
      %c0_35 = arith.constant 0 : index
      %32 = vector.load %arg7[%c0_33, %c0_34, %c0_35] : memref<9x32x128xf32, #tpu.memory_space<vmem>>, vector<1x32x128xf32>
      %33 = vector.shape_cast %32 : vector<1x32x128xf32> to vector<32x128xf32>
      %34 = vector.extract_strided_slice %31 {offsets = [0, 0], sizes = [128, 64], strides = [1, 1]} : vector<128x576xf32> to vector<128x64xf32>
      %cst_36 = arith.constant dense<0.000000e+00> : vector<32x64xf32>
      %35 = tpu.matmul %33, %34, %cst_36 {dimension_numbers = #tpu.dot_dimension_numbers<[1], [0], [0], [1], [0, 0, 1, 1], [], []>} : vector<32x128xf32>, vector<128x64xf32>, vector<32x64xf32> -> vector<32x64xf32>
      %c1 = arith.constant 1 : index
      %c0_37 = arith.constant 0 : index
      %c0_38 = arith.constant 0 : index
      %36 = vector.load %arg7[%c1, %c0_37, %c0_38] : memref<9x32x128xf32, #tpu.memory_space<vmem>>, vector<1x32x128xf32>
      %37 = vector.shape_cast %36 : vector<1x32x128xf32> to vector<32x128xf32>
      %38 = vector.extract_strided_slice %31 {offsets = [0, 64], sizes = [128, 64], strides = [1, 1]} : vector<128x576xf32> to vector<128x64xf32>
      %cst_39 = arith.constant dense<0.000000e+00> : vector<32x64xf32>
      %39 = tpu.matmul %37, %38, %cst_39 {dimension_numbers = #tpu.dot_dimension_numbers<[1], [0], [0], [1], [0, 0, 1, 1], [], []>} : vector<32x128xf32>, vector<128x64xf32>, vector<32x64xf32> -> vector<32x64xf32>
      %40 = arith.addf %35, %39 : vector<32x64xf32>
      %c2 = arith.constant 2 : index
      %c0_40 = arith.constant 0 : index
      %c0_41 = arith.constant 0 : index
      %41 = vector.load %arg7[%c2, %c0_40, %c0_41] : memref<9x32x128xf32, #tpu.memory_space<vmem>>, vector<1x32x128xf32>
      %42 = vector.shape_cast %41 : vector<1x32x128xf32> to vector<32x128xf32>
      %43 = vector.extract_strided_slice %31 {offsets = [0, 128], sizes = [128, 64], strides = [1, 1]} : vector<128x576xf32> to vector<128x64xf32>
      %cst_42 = arith.constant dense<0.000000e+00> : vector<32x64xf32>
      %44 = tpu.matmul %42, %43, %cst_42 {dimension_numbers = #tpu.dot_dimension_numbers<[1], [0], [0], [1], [0, 0, 1, 1], [], []>} : vector<32x128xf32>, vector<128x64xf32>, vector<32x64xf32> -> vector<32x64xf32>
      %45 = arith.addf %40, %44 : vector<32x64xf32>
      %c3 = arith.constant 3 : index
      %c0_43 = arith.constant 0 : index
      %c0_44 = arith.constant 0 : index
      %46 = vector.load %arg7[%c3, %c0_43, %c0_44] : memref<9x32x128xf32, #tpu.memory_space<vmem>>, vector<1x32x128xf32>
      %47 = vector.shape_cast %46 : vector<1x32x128xf32> to vector<32x128xf32>
      %48 = vector.extract_strided_slice %31 {offsets = [0, 192], sizes = [128, 64], strides = [1, 1]} : vector<128x576xf32> to vector<128x64xf32>
      %cst_45 = arith.constant dense<0.000000e+00> : vector<32x64xf32>
      %49 = tpu.matmul %47, %48, %cst_45 {dimension_numbers = #tpu.dot_dimension_numbers<[1], [0], [0], [1], [0, 0, 1, 1], [], []>} : vector<32x128xf32>, vector<128x64xf32>, vector<32x64xf32> -> vector<32x64xf32>
      %50 = arith.addf %45, %49 : vector<32x64xf32>
      %c4 = arith.constant 4 : index
      %c0_46 = arith.constant 0 : index
      %c0_47 = arith.constant 0 : index
      %51 = vector.load %arg7[%c4, %c0_46, %c0_47] : memref<9x32x128xf32, #tpu.memory_space<vmem>>, vector<1x32x128xf32>
      %52 = vector.shape_cast %51 : vector<1x32x128xf32> to vector<32x128xf32>
      %53 = vector.extract_strided_slice %31 {offsets = [0, 256], sizes = [128, 64], strides = [1, 1]} : vector<128x576xf32> to vector<128x64xf32>
      %cst_48 = arith.constant dense<0.000000e+00> : vector<32x64xf32>
      %54 = tpu.matmul %52, %53, %cst_48 {dimension_numbers = #tpu.dot_dimension_numbers<[1], [0], [0], [1], [0, 0, 1, 1], [], []>} : vector<32x128xf32>, vector<128x64xf32>, vector<32x64xf32> -> vector<32x64xf32>
      %55 = arith.addf %50, %54 : vector<32x64xf32>
      %c5 = arith.constant 5 : index
      %c0_49 = arith.constant 0 : index
      %c0_50 = arith.constant 0 : index
      %56 = vector.load %arg7[%c5, %c0_49, %c0_50] : memref<9x32x128xf32, #tpu.memory_space<vmem>>, vector<1x32x128xf32>
      %57 = vector.shape_cast %56 : vector<1x32x128xf32> to vector<32x128xf32>
      %58 = vector.extract_strided_slice %31 {offsets = [0, 320], sizes = [128, 64], strides = [1, 1]} : vector<128x576xf32> to vector<128x64xf32>
      %cst_51 = arith.constant dense<0.000000e+00> : vector<32x64xf32>
      %59 = tpu.matmul %57, %58, %cst_51 {dimension_numbers = #tpu.dot_dimension_numbers<[1], [0], [0], [1], [0, 0, 1, 1], [], []>} : vector<32x128xf32>, vector<128x64xf32>, vector<32x64xf32> -> vector<32x64xf32>
      %60 = arith.addf %55, %59 : vector<32x64xf32>
      %c6 = arith.constant 6 : index
      %c0_52 = arith.constant 0 : index
      %c0_53 = arith.constant 0 : index
      %61 = vector.load %arg7[%c6, %c0_52, %c0_53] : memref<9x32x128xf32, #tpu.memory_space<vmem>>, vector<1x32x128xf32>
      %62 = vector.shape_cast %61 : vector<1x32x128xf32> to vector<32x128xf32>
      %63 = vector.extract_strided_slice %31 {offsets = [0, 384], sizes = [128, 64], strides = [1, 1]} : vector<128x576xf32> to vector<128x64xf32>
      %cst_54 = arith.constant dense<0.000000e+00> : vector<32x64xf32>
      %64 = tpu.matmul %62, %63, %cst_54 {dimension_numbers = #tpu.dot_dimension_numbers<[1], [0], [0], [1], [0, 0, 1, 1], [], []>} : vector<32x128xf32>, vector<128x64xf32>, vector<32x64xf32> -> vector<32x64xf32>
      %65 = arith.addf %60, %64 : vector<32x64xf32>
      %c7 = arith.constant 7 : index
      %c0_55 = arith.constant 0 : index
      %c0_56 = arith.constant 0 : index
      %66 = vector.load %arg7[%c7, %c0_55, %c0_56] : memref<9x32x128xf32, #tpu.memory_space<vmem>>, vector<1x32x128xf32>
      %67 = vector.shape_cast %66 : vector<1x32x128xf32> to vector<32x128xf32>
      %68 = vector.extract_strided_slice %31 {offsets = [0, 448], sizes = [128, 64], strides = [1, 1]} : vector<128x576xf32> to vector<128x64xf32>
      %cst_57 = arith.constant dense<0.000000e+00> : vector<32x64xf32>
      %69 = tpu.matmul %67, %68, %cst_57 {dimension_numbers = #tpu.dot_dimension_numbers<[1], [0], [0], [1], [0, 0, 1, 1], [], []>} : vector<32x128xf32>, vector<128x64xf32>, vector<32x64xf32> -> vector<32x64xf32>
      %70 = arith.addf %65, %69 : vector<32x64xf32>
      %c8 = arith.constant 8 : index
      %c0_58 = arith.constant 0 : index
      %c0_59 = arith.constant 0 : index
      %71 = vector.load %arg7[%c8, %c0_58, %c0_59] : memref<9x32x128xf32, #tpu.memory_space<vmem>>, vector<1x32x128xf32>
      %72 = vector.shape_cast %71 : vector<1x32x128xf32> to vector<32x128xf32>
      %73 = vector.extract_strided_slice %31 {offsets = [0, 512], sizes = [128, 64], strides = [1, 1]} : vector<128x576xf32> to vector<128x64xf32>
      %cst_60 = arith.constant dense<0.000000e+00> : vector<32x64xf32>
      %74 = tpu.matmul %72, %73, %cst_60 {dimension_numbers = #tpu.dot_dimension_numbers<[1], [0], [0], [1], [0, 0, 1, 1], [], []>} : vector<32x128xf32>, vector<128x64xf32>, vector<32x64xf32> -> vector<32x64xf32>
      %75 = arith.addf %70, %74 : vector<32x64xf32>
      %c0_61 = arith.constant 0 : index
      %c0_62 = arith.constant 0 : index
      %76 = vector.load %arg9[%c0_61, %c0_62] : memref<1x64xf32, #tpu.memory_space<vmem>>, vector<1x64xf32>
      %77 = vector.broadcast %76 : vector<1x64xf32> to vector<32x64xf32>
      %78 = arith.addf %75, %77 : vector<32x64xf32>
      %cst_63 = arith.constant 0.000000e+00 : f32
      %79 = vector.broadcast %cst_63 : f32 to vector<32x64xf32>
      %80 = arith.maximumf %78, %79 : vector<32x64xf32>
      %81 = arith.truncf %80 : vector<32x64xf32> to vector<32x64xbf16>
      %c0_64 = arith.constant 0 : index
      %c0_65 = arith.constant 0 : index
      %82 = vector.load %arg11[%c0_64, %c0_65] : memref<64x1152xbf16, #tpu.memory_space<vmem>>, vector<64x1152xbf16>
      %cst_66 = arith.constant dense<0.000000e+00> : vector<32x1152xf32>
      %83 = tpu.matmul %81, %82, %cst_66 {dimension_numbers = #tpu.dot_dimension_numbers<[1], [0], [0], [1], [0, 0, 1, 1], [], []>} : vector<32x64xbf16>, vector<64x1152xbf16>, vector<32x1152xf32> -> vector<32x1152xf32>
      %c0_67 = arith.constant 0 : index
      %c0_68 = arith.constant 0 : index
      %c0_69 = arith.constant 0 : index
      %84 = vector.load %arg10[%c0_67, %c0_68, %c0_69] : memref<9x8x32xf32, #tpu.memory_space<vmem>>, vector<1x8x32xf32>
      %85 = vector.shape_cast %84 : vector<1x8x32xf32> to vector<8x32xf32>
      %86 = vector.extract_strided_slice %83 {offsets = [0, 0], sizes = [32, 128], strides = [1, 1]} : vector<32x1152xf32> to vector<32x128xf32>
      %cst_70 = arith.constant dense<0.000000e+00> : vector<8x128xf32>
      %87 = tpu.matmul %85, %86, %cst_70 {dimension_numbers = #tpu.dot_dimension_numbers<[1], [0], [0], [1], [0, 0, 1, 1], [], []>} : vector<8x32xf32>, vector<32x128xf32>, vector<8x128xf32> -> vector<8x128xf32>
      %c1_71 = arith.constant 1 : index
      %c0_72 = arith.constant 0 : index
      %c0_73 = arith.constant 0 : index
      %88 = vector.load %arg10[%c1_71, %c0_72, %c0_73] : memref<9x8x32xf32, #tpu.memory_space<vmem>>, vector<1x8x32xf32>
      %89 = vector.shape_cast %88 : vector<1x8x32xf32> to vector<8x32xf32>
      %90 = vector.extract_strided_slice %83 {offsets = [0, 128], sizes = [32, 128], strides = [1, 1]} : vector<32x1152xf32> to vector<32x128xf32>
      %cst_74 = arith.constant dense<0.000000e+00> : vector<8x128xf32>
      %91 = tpu.matmul %89, %90, %cst_74 {dimension_numbers = #tpu.dot_dimension_numbers<[1], [0], [0], [1], [0, 0, 1, 1], [], []>} : vector<8x32xf32>, vector<32x128xf32>, vector<8x128xf32> -> vector<8x128xf32>
      %92 = arith.addf %87, %91 : vector<8x128xf32>
      %c2_75 = arith.constant 2 : index
      %c0_76 = arith.constant 0 : index
      %c0_77 = arith.constant 0 : index
      %93 = vector.load %arg10[%c2_75, %c0_76, %c0_77] : memref<9x8x32xf32, #tpu.memory_space<vmem>>, vector<1x8x32xf32>
      %94 = vector.shape_cast %93 : vector<1x8x32xf32> to vector<8x32xf32>
      %95 = vector.extract_strided_slice %83 {offsets = [0, 256], sizes = [32, 128], strides = [1, 1]} : vector<32x1152xf32> to vector<32x128xf32>
      %cst_78 = arith.constant dense<0.000000e+00> : vector<8x128xf32>
      %96 = tpu.matmul %94, %95, %cst_78 {dimension_numbers = #tpu.dot_dimension_numbers<[1], [0], [0], [1], [0, 0, 1, 1], [], []>} : vector<8x32xf32>, vector<32x128xf32>, vector<8x128xf32> -> vector<8x128xf32>
      %97 = arith.addf %92, %96 : vector<8x128xf32>
      %c3_79 = arith.constant 3 : index
      %c0_80 = arith.constant 0 : index
      %c0_81 = arith.constant 0 : index
      %98 = vector.load %arg10[%c3_79, %c0_80, %c0_81] : memref<9x8x32xf32, #tpu.memory_space<vmem>>, vector<1x8x32xf32>
      %99 = vector.shape_cast %98 : vector<1x8x32xf32> to vector<8x32xf32>
      %100 = vector.extract_strided_slice %83 {offsets = [0, 384], sizes = [32, 128], strides = [1, 1]} : vector<32x1152xf32> to vector<32x128xf32>
      %cst_82 = arith.constant dense<0.000000e+00> : vector<8x128xf32>
      %101 = tpu.matmul %99, %100, %cst_82 {dimension_numbers = #tpu.dot_dimension_numbers<[1], [0], [0], [1], [0, 0, 1, 1], [], []>} : vector<8x32xf32>, vector<32x128xf32>, vector<8x128xf32> -> vector<8x128xf32>
      %102 = arith.addf %97, %101 : vector<8x128xf32>
      %c4_83 = arith.constant 4 : index
      %c0_84 = arith.constant 0 : index
      %c0_85 = arith.constant 0 : index
      %103 = vector.load %arg10[%c4_83, %c0_84, %c0_85] : memref<9x8x32xf32, #tpu.memory_space<vmem>>, vector<1x8x32xf32>
      %104 = vector.shape_cast %103 : vector<1x8x32xf32> to vector<8x32xf32>
      %105 = vector.extract_strided_slice %83 {offsets = [0, 512], sizes = [32, 128], strides = [1, 1]} : vector<32x1152xf32> to vector<32x128xf32>
      %cst_86 = arith.constant dense<0.000000e+00> : vector<8x128xf32>
      %106 = tpu.matmul %104, %105, %cst_86 {dimension_numbers = #tpu.dot_dimension_numbers<[1], [0], [0], [1], [0, 0, 1, 1], [], []>} : vector<8x32xf32>, vector<32x128xf32>, vector<8x128xf32> -> vector<8x128xf32>
      %107 = arith.addf %102, %106 : vector<8x128xf32>
      %c5_87 = arith.constant 5 : index
      %c0_88 = arith.constant 0 : index
      %c0_89 = arith.constant 0 : index
      %108 = vector.load %arg10[%c5_87, %c0_88, %c0_89] : memref<9x8x32xf32, #tpu.memory_space<vmem>>, vector<1x8x32xf32>
      %109 = vector.shape_cast %108 : vector<1x8x32xf32> to vector<8x32xf32>
      %110 = vector.extract_strided_slice %83 {offsets = [0, 640], sizes = [32, 128], strides = [1, 1]} : vector<32x1152xf32> to vector<32x128xf32>
      %cst_90 = arith.constant dense<0.000000e+00> : vector<8x128xf32>
      %111 = tpu.matmul %109, %110, %cst_90 {dimension_numbers = #tpu.dot_dimension_numbers<[1], [0], [0], [1], [0, 0, 1, 1], [], []>} : vector<8x32xf32>, vector<32x128xf32>, vector<8x128xf32> -> vector<8x128xf32>
      %112 = arith.addf %107, %111 : vector<8x128xf32>
      %c6_91 = arith.constant 6 : index
      %c0_92 = arith.constant 0 : index
      %c0_93 = arith.constant 0 : index
      %113 = vector.load %arg10[%c6_91, %c0_92, %c0_93] : memref<9x8x32xf32, #tpu.memory_space<vmem>>, vector<1x8x32xf32>
      %114 = vector.shape_cast %113 : vector<1x8x32xf32> to vector<8x32xf32>
      %115 = vector.extract_strided_slice %83 {offsets = [0, 768], sizes = [32, 128], strides = [1, 1]} : vector<32x1152xf32> to vector<32x128xf32>
      %cst_94 = arith.constant dense<0.000000e+00> : vector<8x128xf32>
      %116 = tpu.matmul %114, %115, %cst_94 {dimension_numbers = #tpu.dot_dimension_numbers<[1], [0], [0], [1], [0, 0, 1, 1], [], []>} : vector<8x32xf32>, vector<32x128xf32>, vector<8x128xf32> -> vector<8x128xf32>
      %117 = arith.addf %112, %116 : vector<8x128xf32>
      %c7_95 = arith.constant 7 : index
      %c0_96 = arith.constant 0 : index
      %c0_97 = arith.constant 0 : index
      %118 = vector.load %arg10[%c7_95, %c0_96, %c0_97] : memref<9x8x32xf32, #tpu.memory_space<vmem>>, vector<1x8x32xf32>
      %119 = vector.shape_cast %118 : vector<1x8x32xf32> to vector<8x32xf32>
      %120 = vector.extract_strided_slice %83 {offsets = [0, 896], sizes = [32, 128], strides = [1, 1]} : vector<32x1152xf32> to vector<32x128xf32>
      %cst_98 = arith.constant dense<0.000000e+00> : vector<8x128xf32>
      %121 = tpu.matmul %119, %120, %cst_98 {dimension_numbers = #tpu.dot_dimension_numbers<[1], [0], [0], [1], [0, 0, 1, 1], [], []>} : vector<8x32xf32>, vector<32x128xf32>, vector<8x128xf32> -> vector<8x128xf32>
      %122 = arith.addf %117, %121 : vector<8x128xf32>
      %c8_99 = arith.constant 8 : index
      %c0_100 = arith.constant 0 : index
      %c0_101 = arith.constant 0 : index
      %123 = vector.load %arg10[%c8_99, %c0_100, %c0_101] : memref<9x8x32xf32, #tpu.memory_space<vmem>>, vector<1x8x32xf32>
      %124 = vector.shape_cast %123 : vector<1x8x32xf32> to vector<8x32xf32>
      %125 = vector.extract_strided_slice %83 {offsets = [0, 1024], sizes = [32, 128], strides = [1, 1]} : vector<32x1152xf32> to vector<32x128xf32>
      %cst_102 = arith.constant dense<0.000000e+00> : vector<8x128xf32>
      %126 = tpu.matmul %124, %125, %cst_102 {dimension_numbers = #tpu.dot_dimension_numbers<[1], [0], [0], [1], [0, 0, 1, 1], [], []>} : vector<8x32xf32>, vector<32x128xf32>, vector<8x128xf32> -> vector<8x128xf32>
      %127 = arith.addf %122, %126 : vector<8x128xf32>
      %c0_103 = arith.constant 0 : index
      %c0_104 = arith.constant 0 : index
      %128 = vector.load %arg12[%c0_103, %c0_104] : memref<1x128xf32, #tpu.memory_space<vmem>>, vector<1x128xf32>
      %129 = vector.broadcast %128 : vector<1x128xf32> to vector<8x128xf32>
      %130 = arith.addf %127, %129 : vector<8x128xf32>
      %cst_105 = arith.constant 0.000000e+00 : f32
      %131 = vector.broadcast %cst_105 : f32 to vector<8x128xf32>
      %132 = arith.maximumf %130, %131 : vector<8x128xf32>
      %133 = arith.truncf %132 : vector<8x128xf32> to vector<8x128xbf16>
      %c0_106 = arith.constant 0 : index
      %c0_107 = arith.constant 0 : index
      %134 = vector.load %arg14[%c0_106, %c0_107] : memref<128x2304xbf16, #tpu.memory_space<vmem>>, vector<128x2304xbf16>
      %cst_108 = arith.constant dense<0.000000e+00> : vector<8x2304xf32>
      %135 = tpu.matmul %133, %134, %cst_108 {dimension_numbers = #tpu.dot_dimension_numbers<[1], [0], [0], [1], [0, 0, 1, 1], [], []>} : vector<8x128xbf16>, vector<128x2304xbf16>, vector<8x2304xf32> -> vector<8x2304xf32>
      %c0_109 = arith.constant 0 : index
      %c0_110 = arith.constant 0 : index
      %c0_111 = arith.constant 0 : index
      %136 = vector.load %arg13[%c0_109, %c0_110, %c0_111] : memref<9x2x8xf32, #tpu.memory_space<vmem>>, vector<1x2x8xf32>
      %137 = vector.shape_cast %136 : vector<1x2x8xf32> to vector<2x8xf32>
      %138 = vector.extract_strided_slice %135 {offsets = [0, 0], sizes = [8, 256], strides = [1, 1]} : vector<8x2304xf32> to vector<8x256xf32>
      %cst_112 = arith.constant dense<0.000000e+00> : vector<2x256xf32>
      %139 = tpu.matmul %137, %138, %cst_112 {dimension_numbers = #tpu.dot_dimension_numbers<[1], [0], [0], [1], [0, 0, 1, 1], [], []>} : vector<2x8xf32>, vector<8x256xf32>, vector<2x256xf32> -> vector<2x256xf32>
      %c1_113 = arith.constant 1 : index
      %c0_114 = arith.constant 0 : index
      %c0_115 = arith.constant 0 : index
      %140 = vector.load %arg13[%c1_113, %c0_114, %c0_115] : memref<9x2x8xf32, #tpu.memory_space<vmem>>, vector<1x2x8xf32>
      %141 = vector.shape_cast %140 : vector<1x2x8xf32> to vector<2x8xf32>
      %142 = vector.extract_strided_slice %135 {offsets = [0, 256], sizes = [8, 256], strides = [1, 1]} : vector<8x2304xf32> to vector<8x256xf32>
      %cst_116 = arith.constant dense<0.000000e+00> : vector<2x256xf32>
      %143 = tpu.matmul %141, %142, %cst_116 {dimension_numbers = #tpu.dot_dimension_numbers<[1], [0], [0], [1], [0, 0, 1, 1], [], []>} : vector<2x8xf32>, vector<8x256xf32>, vector<2x256xf32> -> vector<2x256xf32>
      %144 = arith.addf %139, %143 : vector<2x256xf32>
      %c2_117 = arith.constant 2 : index
      %c0_118 = arith.constant 0 : index
      %c0_119 = arith.constant 0 : index
      %145 = vector.load %arg13[%c2_117, %c0_118, %c0_119] : memref<9x2x8xf32, #tpu.memory_space<vmem>>, vector<1x2x8xf32>
      %146 = vector.shape_cast %145 : vector<1x2x8xf32> to vector<2x8xf32>
      %147 = vector.extract_strided_slice %135 {offsets = [0, 512], sizes = [8, 256], strides = [1, 1]} : vector<8x2304xf32> to vector<8x256xf32>
      %cst_120 = arith.constant dense<0.000000e+00> : vector<2x256xf32>
      %148 = tpu.matmul %146, %147, %cst_120 {dimension_numbers = #tpu.dot_dimension_numbers<[1], [0], [0], [1], [0, 0, 1, 1], [], []>} : vector<2x8xf32>, vector<8x256xf32>, vector<2x256xf32> -> vector<2x256xf32>
      %149 = arith.addf %144, %148 : vector<2x256xf32>
      %c3_121 = arith.constant 3 : index
      %c0_122 = arith.constant 0 : index
      %c0_123 = arith.constant 0 : index
      %150 = vector.load %arg13[%c3_121, %c0_122, %c0_123] : memref<9x2x8xf32, #tpu.memory_space<vmem>>, vector<1x2x8xf32>
      %151 = vector.shape_cast %150 : vector<1x2x8xf32> to vector<2x8xf32>
      %152 = vector.extract_strided_slice %135 {offsets = [0, 768], sizes = [8, 256], strides = [1, 1]} : vector<8x2304xf32> to vector<8x256xf32>
      %cst_124 = arith.constant dense<0.000000e+00> : vector<2x256xf32>
      %153 = tpu.matmul %151, %152, %cst_124 {dimension_numbers = #tpu.dot_dimension_numbers<[1], [0], [0], [1], [0, 0, 1, 1], [], []>} : vector<2x8xf32>, vector<8x256xf32>, vector<2x256xf32> -> vector<2x256xf32>
      %154 = arith.addf %149, %153 : vector<2x256xf32>
      %c4_125 = arith.constant 4 : index
      %c0_126 = arith.constant 0 : index
      %c0_127 = arith.constant 0 : index
      %155 = vector.load %arg13[%c4_125, %c0_126, %c0_127] : memref<9x2x8xf32, #tpu.memory_space<vmem>>, vector<1x2x8xf32>
      %156 = vector.shape_cast %155 : vector<1x2x8xf32> to vector<2x8xf32>
      %157 = vector.extract_strided_slice %135 {offsets = [0, 1024], sizes = [8, 256], strides = [1, 1]} : vector<8x2304xf32> to vector<8x256xf32>
      %cst_128 = arith.constant dense<0.000000e+00> : vector<2x256xf32>
      %158 = tpu.matmul %156, %157, %cst_128 {dimension_numbers = #tpu.dot_dimension_numbers<[1], [0], [0], [1], [0, 0, 1, 1], [], []>} : vector<2x8xf32>, vector<8x256xf32>, vector<2x256xf32> -> vector<2x256xf32>
      %159 = arith.addf %154, %158 : vector<2x256xf32>
      %c5_129 = arith.constant 5 : index
      %c0_130 = arith.constant 0 : index
      %c0_131 = arith.constant 0 : index
      %160 = vector.load %arg13[%c5_129, %c0_130, %c0_131] : memref<9x2x8xf32, #tpu.memory_space<vmem>>, vector<1x2x8xf32>
      %161 = vector.shape_cast %160 : vector<1x2x8xf32> to vector<2x8xf32>
      %162 = vector.extract_strided_slice %135 {offsets = [0, 1280], sizes = [8, 256], strides = [1, 1]} : vector<8x2304xf32> to vector<8x256xf32>
      %cst_132 = arith.constant dense<0.000000e+00> : vector<2x256xf32>
      %163 = tpu.matmul %161, %162, %cst_132 {dimension_numbers = #tpu.dot_dimension_numbers<[1], [0], [0], [1], [0, 0, 1, 1], [], []>} : vector<2x8xf32>, vector<8x256xf32>, vector<2x256xf32> -> vector<2x256xf32>
      %164 = arith.addf %159, %163 : vector<2x256xf32>
      %c6_133 = arith.constant 6 : index
      %c0_134 = arith.constant 0 : index
      %c0_135 = arith.constant 0 : index
      %165 = vector.load %arg13[%c6_133, %c0_134, %c0_135] : memref<9x2x8xf32, #tpu.memory_space<vmem>>, vector<1x2x8xf32>
      %166 = vector.shape_cast %165 : vector<1x2x8xf32> to vector<2x8xf32>
      %167 = vector.extract_strided_slice %135 {offsets = [0, 1536], sizes = [8, 256], strides = [1, 1]} : vector<8x2304xf32> to vector<8x256xf32>
      %cst_136 = arith.constant dense<0.000000e+00> : vector<2x256xf32>
      %168 = tpu.matmul %166, %167, %cst_136 {dimension_numbers = #tpu.dot_dimension_numbers<[1], [0], [0], [1], [0, 0, 1, 1], [], []>} : vector<2x8xf32>, vector<8x256xf32>, vector<2x256xf32> -> vector<2x256xf32>
      %169 = arith.addf %164, %168 : vector<2x256xf32>
      %c7_137 = arith.constant 7 : index
      %c0_138 = arith.constant 0 : index
      %c0_139 = arith.constant 0 : index
      %170 = vector.load %arg13[%c7_137, %c0_138, %c0_139] : memref<9x2x8xf32, #tpu.memory_space<vmem>>, vector<1x2x8xf32>
      %171 = vector.shape_cast %170 : vector<1x2x8xf32> to vector<2x8xf32>
      %172 = vector.extract_strided_slice %135 {offsets = [0, 1792], sizes = [8, 256], strides = [1, 1]} : vector<8x2304xf32> to vector<8x256xf32>
      %cst_140 = arith.constant dense<0.000000e+00> : vector<2x256xf32>
      %173 = tpu.matmul %171, %172, %cst_140 {dimension_numbers = #tpu.dot_dimension_numbers<[1], [0], [0], [1], [0, 0, 1, 1], [], []>} : vector<2x8xf32>, vector<8x256xf32>, vector<2x256xf32> -> vector<2x256xf32>
      %174 = arith.addf %169, %173 : vector<2x256xf32>
      %c8_141 = arith.constant 8 : index
      %c0_142 = arith.constant 0 : index
      %c0_143 = arith.constant 0 : index
      %175 = vector.load %arg13[%c8_141, %c0_142, %c0_143] : memref<9x2x8xf32, #tpu.memory_space<vmem>>, vector<1x2x8xf32>
      %176 = vector.shape_cast %175 : vector<1x2x8xf32> to vector<2x8xf32>
      %177 = vector.extract_strided_slice %135 {offsets = [0, 2048], sizes = [8, 256], strides = [1, 1]} : vector<8x2304xf32> to vector<8x256xf32>
      %cst_144 = arith.constant dense<0.000000e+00> : vector<2x256xf32>
      %178 = tpu.matmul %176, %177, %cst_144 {dimension_numbers = #tpu.dot_dimension_numbers<[1], [0], [0], [1], [0, 0, 1, 1], [], []>} : vector<2x8xf32>, vector<8x256xf32>, vector<2x256xf32> -> vector<2x256xf32>
      %179 = arith.addf %174, %178 : vector<2x256xf32>
      %c0_145 = arith.constant 0 : index
      %c0_146 = arith.constant 0 : index
      %180 = vector.load %arg15[%c0_145, %c0_146] : memref<1x256xf32, #tpu.memory_space<vmem>>, vector<1x256xf32>
      %181 = vector.broadcast %180 : vector<1x256xf32> to vector<2x256xf32>
      %182 = arith.addf %179, %181 : vector<2x256xf32>
      %cst_147 = arith.constant 0.000000e+00 : f32
      %183 = vector.broadcast %cst_147 : f32 to vector<2x256xf32>
      %184 = arith.maximumf %182, %183 : vector<2x256xf32>
      %c0_148 = arith.constant 0 : index
      %c0_149 = arith.constant 0 : index
      %185 = vector.load %arg16[%c0_148, %c0_149] : memref<2x2xf32, #tpu.memory_space<vmem>>, vector<2x2xf32>
      %cst_150 = arith.constant dense<0.000000e+00> : vector<2x256xf32>
      %186 = tpu.matmul %185, %184, %cst_150 {dimension_numbers = #tpu.dot_dimension_numbers<[1], [0], [0], [1], [0, 0, 1, 1], [], []>} : vector<2x2xf32>, vector<2x256xf32>, vector<2x256xf32> -> vector<2x256xf32>
      %187 = arith.truncf %186 : vector<2x256xf32> to vector<2x256xbf16>
      %c0_151 = arith.constant 0 : index
      %c0_152 = arith.constant 0 : index
      %188 = vector.load %arg17[%c0_151, %c0_152] : memref<256x256xbf16, #tpu.memory_space<vmem>>, vector<256x256xbf16>
      %cst_153 = arith.constant dense<0.000000e+00> : vector<2x256xf32>
      %189 = tpu.matmul %187, %188, %cst_153 {dimension_numbers = #tpu.dot_dimension_numbers<[1], [0], [0], [1], [0, 0, 1, 1], [], []>} : vector<2x256xbf16>, vector<256x256xbf16>, vector<2x256xf32> -> vector<2x256xf32>
      %c0_154 = arith.constant 0 : index
      %c0_155 = arith.constant 0 : index
      %190 = vector.load %arg18[%c0_154, %c0_155] : memref<1x256xf32, #tpu.memory_space<vmem>>, vector<1x256xf32>
      %191 = vector.broadcast %190 : vector<1x256xf32> to vector<2x256xf32>
      %192 = arith.addf %189, %191 : vector<2x256xf32>
      %cst_156 = arith.constant 0.000000e+00 : f32
      %193 = vector.broadcast %cst_156 : f32 to vector<2x256xf32>
      %194 = arith.maximumf %192, %193 : vector<2x256xf32>
      %195 = arith.truncf %194 : vector<2x256xf32> to vector<2x256xbf16>
      %c0_157 = arith.constant 0 : index
      %c0_158 = arith.constant 0 : index
      %196 = vector.load %arg19[%c0_157, %c0_158] : memref<256x512xbf16, #tpu.memory_space<vmem>>, vector<256x512xbf16>
      %cst_159 = arith.constant dense<0.000000e+00> : vector<2x512xf32>
      %197 = tpu.matmul %195, %196, %cst_159 {dimension_numbers = #tpu.dot_dimension_numbers<[1], [0], [0], [1], [0, 0, 1, 1], [], []>} : vector<2x256xbf16>, vector<256x512xbf16>, vector<2x512xf32> -> vector<2x512xf32>
      %c0_160 = arith.constant 0 : index
      %c0_161 = arith.constant 0 : index
      %198 = vector.load %arg20[%c0_160, %c0_161] : memref<1x512xf32, #tpu.memory_space<vmem>>, vector<1x512xf32>
      %199 = vector.broadcast %198 : vector<1x512xf32> to vector<2x512xf32>
      %200 = arith.addf %197, %199 : vector<2x512xf32>
      %cst_162 = arith.constant 0.000000e+00 : f32
      %201 = vector.broadcast %cst_162 : f32 to vector<2x512xf32>
      %202 = arith.maximumf %200, %201 : vector<2x512xf32>
      %c0_163 = arith.constant 0 : index
      %c0_164 = arith.constant 0 : index
      %203 = vector.load %arg21[%c0_163, %c0_164] : memref<1x512xf32, #tpu.memory_space<vmem>>, vector<1x512xf32>
      %204 = vector.broadcast %203 : vector<1x512xf32> to vector<2x512xf32>
      %205 = arith.mulf %202, %204 : vector<2x512xf32>
      %cst_165 = arith.constant dense<0.000000e+00> : vector<2xf32>
      %206 = vector.multi_reduction <add>, %205, %cst_165 [1] : vector<2x512xf32> to vector<2xf32>
      %207 = vector.shape_cast %206 : vector<2xf32> to vector<2x1xf32>
      %c1_166 = arith.constant 1 : index
      %208 = memref.load %arg25[%c1_166] : memref<2xf32, #tpu.memory_space<smem>>
      %209 = vector.broadcast %208 : f32 to vector<2x1xf32>
      %210 = arith.addf %207, %209 : vector<2x1xf32>
      %211 = arith.negf %210 : vector<2x1xf32>
      %212 = math.exp %211 : vector<2x1xf32>
      %cst_167 = arith.constant 1.000000e+00 : f32
      %213 = vector.broadcast %cst_167 : f32 to vector<2x1xf32>
      %214 = arith.addf %213, %212 : vector<2x1xf32>
      %215 = arith.divf %213, %214 : vector<2x1xf32>
      %c0_168 = arith.constant 0 : index
      %c0_169 = arith.constant 0 : index
      %216 = vector.load %arg37[%c0_168, %c0_169] : memref<2x1xf32, #tpu.memory_space<vmem>>, vector<2x1xf32>
      tpu.vector_store %arg37[%c0_168, %c0_169], %215 {strides = array<i32>} : memref<2x1xf32, #tpu.memory_space<vmem>>, vector<2x1xf32>,
      %c0_170 = arith.constant 0 : index
      %c0_171 = arith.constant 0 : index
      %217 = vector.load %arg22[%c0_170, %c0_171] : memref<256x512xbf16, #tpu.memory_space<vmem>>, vector<256x512xbf16>
      %cst_172 = arith.constant dense<0.000000e+00> : vector<2x512xf32>
      %218 = tpu.matmul %195, %217, %cst_172 {dimension_numbers = #tpu.dot_dimension_numbers<[1], [0], [0], [1], [0, 0, 1, 1], [], []>} : vector<2x256xbf16>, vector<256x512xbf16>, vector<2x512xf32> -> vector<2x512xf32>
      %c0_173 = arith.constant 0 : index
      %c0_174 = arith.constant 0 : index
      %219 = vector.load %arg36[%c0_173, %c0_174] : memref<2x512xf32, #tpu.memory_space<vmem>>, vector<2x512xf32>
      tpu.vector_store %arg36[%c0_173, %c0_174], %218 {strides = array<i32>} : memref<2x512xf32, #tpu.memory_space<vmem>>, vector<2x512xf32>,
    } else {
    }
    %c0 = arith.constant 0 : index
    %c0_1 = arith.constant 0 : index
    %3 = vector.load %arg1[%c0, %c0_1] : memref<2x1024xbf16, #tpu.memory_space<vmem>>, vector<2x1024xbf16>
    %c0_2 = arith.constant 0 : index
    %c0_3 = arith.constant 0 : index
    %4 = vector.load %arg34[%c0_2, %c0_3] : memref<2x512xf32, #tpu.memory_space<vmem>>, vector<2x512xf32>
    %c0_4 = arith.constant 0 : index
    %c0_5 = arith.constant 0 : index
    %5 = vector.load %arg2[%c0_4, %c0_5] : memref<1024x512xbf16, #tpu.memory_space<vmem>>, vector<1024x512xbf16>
    %cst = arith.constant dense<0.000000e+00> : vector<2x512xf32>
    %6 = tpu.matmul %3, %5, %cst {dimension_numbers = #tpu.dot_dimension_numbers<[1], [0], [0], [1], [0, 0, 1, 1], [], []>} : vector<2x1024xbf16>, vector<1024x512xbf16>, vector<2x512xf32> -> vector<2x512xf32>
    %7 = arith.addf %4, %6 : vector<2x512xf32>
    %c0_6 = arith.constant 0 : index
    %c0_7 = arith.constant 0 : index
    %8 = vector.load %arg34[%c0_6, %c0_7] : memref<2x512xf32, #tpu.memory_space<vmem>>, vector<2x512xf32>
    tpu.vector_store %arg34[%c0_6, %c0_7], %7 {strides = array<i32>} : memref<2x512xf32, #tpu.memory_space<vmem>>, vector<2x512xf32>,
    %c0_8 = arith.constant 0 : index
    %c0_9 = arith.constant 0 : index
    %9 = vector.load %arg35[%c0_8, %c0_9] : memref<2x512xf32, #tpu.memory_space<vmem>>, vector<2x512xf32>
    %c0_10 = arith.constant 0 : index
    %c0_11 = arith.constant 0 : index
    %10 = vector.load %arg3[%c0_10, %c0_11] : memref<1024x512xbf16, #tpu.memory_space<vmem>>, vector<1024x512xbf16>
    %cst_12 = arith.constant dense<0.000000e+00> : vector<2x512xf32>
    %11 = tpu.matmul %3, %10, %cst_12 {dimension_numbers = #tpu.dot_dimension_numbers<[1], [0], [0], [1], [0, 0, 1, 1], [], []>} : vector<2x1024xbf16>, vector<1024x512xbf16>, vector<2x512xf32> -> vector<2x512xf32>
    %12 = arith.addf %9, %11 : vector<2x512xf32>
    %c0_13 = arith.constant 0 : index
    %c0_14 = arith.constant 0 : index
    %13 = vector.load %arg35[%c0_13, %c0_14] : memref<2x512xf32, #tpu.memory_space<vmem>>, vector<2x512xf32>
    tpu.vector_store %arg35[%c0_13, %c0_14], %12 {strides = array<i32>} : memref<2x512xf32, #tpu.memory_space<vmem>>, vector<2x512xf32>,
    %c1_i32 = arith.constant 1 : i32
    %14 = arith.cmpi eq, %arg0, %c1_i32 : i32
    %15 = arith.extui %14 : i1 to i32
    %c0_i32_15 = arith.constant 0 : i32
    %16 = arith.cmpi ne, %15, %c0_i32_15 : i32
    scf.if %16 {
      %c0_16 = arith.constant 0 : index
      %c0_17 = arith.constant 0 : index
      %17 = vector.load %arg34[%c0_16, %c0_17] : memref<2x512xf32, #tpu.memory_space<vmem>>, vector<2x512xf32>
      %c0_18 = arith.constant 0 : index
      %c0_19 = arith.constant 0 : index
      %18 = vector.load %arg23[%c0_18, %c0_19] : memref<1x512xf32, #tpu.memory_space<vmem>>, vector<1x512xf32>
      %19 = vector.broadcast %18 : vector<1x512xf32> to vector<2x512xf32>
      %20 = arith.addf %17, %19 : vector<2x512xf32>
      %cst_20 = arith.constant 0.000000e+00 : f32
      %21 = vector.broadcast %cst_20 : f32 to vector<2x512xf32>
      %22 = arith.maximumf %20, %21 : vector<2x512xf32>
      %c0_21 = arith.constant 0 : index
      %c0_22 = arith.constant 0 : index
      %23 = vector.load %arg24[%c0_21, %c0_22] : memref<1x512xf32, #tpu.memory_space<vmem>>, vector<1x512xf32>
      %24 = vector.broadcast %23 : vector<1x512xf32> to vector<2x512xf32>
      %25 = arith.mulf %22, %24 : vector<2x512xf32>
      %cst_23 = arith.constant dense<0.000000e+00> : vector<2xf32>
      %26 = vector.multi_reduction <add>, %25, %cst_23 [1] : vector<2x512xf32> to vector<2xf32>
      %27 = vector.shape_cast %26 : vector<2xf32> to vector<2x1xf32>
      %c0_24 = arith.constant 0 : index
      %28 = memref.load %arg25[%c0_24] : memref<2xf32, #tpu.memory_space<smem>>
      %29 = vector.broadcast %28 : f32 to vector<2x1xf32>
      %30 = arith.addf %27, %29 : vector<2x1xf32>
      %31 = arith.negf %30 : vector<2x1xf32>
      %32 = math.exp %31 : vector<2x1xf32>
      %cst_25 = arith.constant 1.000000e+00 : f32
      %33 = vector.broadcast %cst_25 : f32 to vector<2x1xf32>
      %34 = arith.addf %33, %32 : vector<2x1xf32>
      %35 = arith.divf %33, %34 : vector<2x1xf32>
      %c0_26 = arith.constant 0 : index
      %c0_27 = arith.constant 0 : index
      %36 = vector.load %arg37[%c0_26, %c0_27] : memref<2x1xf32, #tpu.memory_space<vmem>>, vector<2x1xf32>
      %37 = arith.addf %35, %36 : vector<2x1xf32>
      %cst_28 = arith.constant 9.99999993E-9 : f32
      %38 = vector.broadcast %cst_28 : f32 to vector<2x1xf32>
      %39 = arith.addf %37, %38 : vector<2x1xf32>
      %40 = arith.divf %35, %39 : vector<2x1xf32>
      %41 = arith.divf %36, %39 : vector<2x1xf32>
      %c0_29 = arith.constant 0 : index
      %c0_30 = arith.constant 0 : index
      %42 = vector.load %arg35[%c0_29, %c0_30] : memref<2x512xf32, #tpu.memory_space<vmem>>, vector<2x512xf32>
      %43 = vector.broadcast %40 : vector<2x1xf32> to vector<2x512xf32>
      %44 = arith.mulf %43, %42 : vector<2x512xf32>
      %c0_31 = arith.constant 0 : index
      %c0_32 = arith.constant 0 : index
      %45 = vector.load %arg36[%c0_31, %c0_32] : memref<2x512xf32, #tpu.memory_space<vmem>>, vector<2x512xf32>
      %46 = vector.broadcast %41 : vector<2x1xf32> to vector<2x512xf32>
      %47 = arith.mulf %46, %45 : vector<2x512xf32>
      %48 = arith.addf %44, %47 : vector<2x512xf32>
      %c0_33 = arith.constant 0 : index
      %c0_34 = arith.constant 0 : index
      %49 = vector.load %arg26[%c0_33, %c0_34] : memref<1x512xf32, #tpu.memory_space<vmem>>, vector<1x512xf32>
      %50 = vector.broadcast %49 : vector<1x512xf32> to vector<2x512xf32>
      %51 = arith.addf %48, %50 : vector<2x512xf32>
      %cst_35 = arith.constant 0.000000e+00 : f32
      %52 = vector.broadcast %cst_35 : f32 to vector<2x512xf32>
      %53 = arith.maximumf %51, %52 : vector<2x512xf32>
      %54 = arith.truncf %53 : vector<2x512xf32> to vector<2x512xbf16>
      %c0_36 = arith.constant 0 : index
      %c0_37 = arith.constant 0 : index
      %55 = vector.load %arg27[%c0_36, %c0_37] : memref<512x512xbf16, #tpu.memory_space<vmem>>, vector<512x512xbf16>
      %cst_38 = arith.constant dense<0.000000e+00> : vector<2x512xf32>
      %56 = tpu.matmul %54, %55, %cst_38 {dimension_numbers = #tpu.dot_dimension_numbers<[1], [0], [0], [1], [0, 0, 1, 1], [], []>} : vector<2x512xbf16>, vector<512x512xbf16>, vector<2x512xf32> -> vector<2x512xf32>
      %c0_39 = arith.constant 0 : index
      %c0_40 = arith.constant 0 : index
      %57 = vector.load %arg28[%c0_39, %c0_40] : memref<1x512xf32, #tpu.memory_space<vmem>>, vector<1x512xf32>
      %58 = vector.broadcast %57 : vector<1x512xf32> to vector<2x512xf32>
      %59 = arith.addf %56, %58 : vector<2x512xf32>
      %60 = arith.truncf %59 : vector<2x512xf32> to vector<2x512xbf16>
      %c0_41 = arith.constant 0 : index
      %c0_42 = arith.constant 0 : index
      %61 = vector.load %arg29[%c0_41, %c0_42] : memref<512x512xbf16, #tpu.memory_space<vmem>>, vector<512x512xbf16>
      %cst_43 = arith.constant dense<0.000000e+00> : vector<2x512xf32>
      %62 = tpu.matmul %60, %61, %cst_43 {dimension_numbers = #tpu.dot_dimension_numbers<[1], [0], [0], [1], [0, 0, 1, 1], [], []>} : vector<2x512xbf16>, vector<512x512xbf16>, vector<2x512xf32> -> vector<2x512xf32>
      %c0_44 = arith.constant 0 : index
      %c0_45 = arith.constant 0 : index
      %63 = vector.load %arg30[%c0_44, %c0_45] : memref<1x512xf32, #tpu.memory_space<vmem>>, vector<1x512xf32>
      %64 = vector.broadcast %63 : vector<1x512xf32> to vector<2x512xf32>
      %65 = arith.addf %62, %64 : vector<2x512xf32>
      %cst_46 = arith.constant 0.000000e+00 : f32
      %66 = vector.broadcast %cst_46 : f32 to vector<2x512xf32>
      %67 = arith.maximumf %65, %66 : vector<2x512xf32>
      %68 = arith.truncf %67 : vector<2x512xf32> to vector<2x512xbf16>
      %c0_47 = arith.constant 0 : index
      %c0_48 = arith.constant 0 : index
      %69 = vector.load %arg31[%c0_47, %c0_48] : memref<512x3xbf16, #tpu.memory_space<vmem>>, vector<512x3xbf16>
      %cst_49 = arith.constant dense<0.000000e+00> : vector<2x3xf32>
      %70 = tpu.matmul %68, %69, %cst_49 {dimension_numbers = #tpu.dot_dimension_numbers<[1], [0], [0], [1], [0, 0, 1, 1], [], []>} : vector<2x512xbf16>, vector<512x3xbf16>, vector<2x3xf32> -> vector<2x3xf32>
      %c0_50 = arith.constant 0 : index
      %c0_51 = arith.constant 0 : index
      %71 = vector.load %arg32[%c0_50, %c0_51] : memref<1x3xf32, #tpu.memory_space<vmem>>, vector<1x3xf32>
      %72 = vector.broadcast %71 : vector<1x3xf32> to vector<2x3xf32>
      %73 = arith.addf %70, %72 : vector<2x3xf32>
      %c0_52 = arith.constant 0 : index
      %c0_53 = arith.constant 0 : index
      %74 = vector.load %arg33[%c0_52, %c0_53] : memref<2x3xf32, #tpu.memory_space<vmem>>, vector<2x3xf32>
      tpu.vector_store %arg33[%c0_52, %c0_53], %73 {strides = array<i32>} : memref<2x3xf32, #tpu.memory_space<vmem>>, vector<2x3xf32>,
    } else {
    }
    return
  }
  func.func @transform_0(%arg0: i32) -> (i32, i32) {
    %c0_i32 = arith.constant 0 : i32
    %c0_i32_0 = arith.constant 0 : i32
    return %c0_i32, %arg0 : i32, i32
  }
  func.func @transform_1(%arg0: i32) -> (i32, i32) {
    %c0_i32 = arith.constant 0 : i32
    %c0_i32_0 = arith.constant 0 : i32
    return %arg0, %c0_i32 : i32, i32
  }
  func.func @transform_2(%arg0: i32) -> (i32, i32) {
    %c0_i32 = arith.constant 0 : i32
    %c0_i32_0 = arith.constant 0 : i32
    return %arg0, %c0_i32 : i32, i32
  }
  func.func @transform_3(%arg0: i32) -> (i32, i32) {
    %c0_i32 = arith.constant 0 : i32
    %c0_i32_0 = arith.constant 0 : i32
    %c0_i32_1 = arith.constant 0 : i32
    return %c0_i32, %c0_i32_0 : i32, i32
  }
  func.func @transform_4(%arg0: i32) -> (i32, i32) {
    %c0_i32 = arith.constant 0 : i32
    %c0_i32_0 = arith.constant 0 : i32
    %c0_i32_1 = arith.constant 0 : i32
    return %c0_i32, %c0_i32_0 : i32, i32
  }
  func.func @transform_5(%arg0: i32) -> (i32, i32) {
    %c0_i32 = arith.constant 0 : i32
    %c0_i32_0 = arith.constant 0 : i32
    %c0_i32_1 = arith.constant 0 : i32
    return %c0_i32, %c0_i32_0 : i32, i32
  }
  func.func @transform_6(%arg0: i32) -> (i32, i32, i32) {
    %c0_i32 = arith.constant 0 : i32
    %c0_i32_0 = arith.constant 0 : i32
    %c0_i32_1 = arith.constant 0 : i32
    %c0_i32_2 = arith.constant 0 : i32
    return %c0_i32, %c0_i32_0, %c0_i32_1 : i32, i32, i32
  }
  func.func @transform_7(%arg0: i32) -> (i32, i32) {
    %c0_i32 = arith.constant 0 : i32
    %c0_i32_0 = arith.constant 0 : i32
    %c0_i32_1 = arith.constant 0 : i32
    return %c0_i32, %c0_i32_0 : i32, i32
  }
  func.func @transform_8(%arg0: i32) -> (i32, i32) {
    %c0_i32 = arith.constant 0 : i32
    %c0_i32_0 = arith.constant 0 : i32
    %c0_i32_1 = arith.constant 0 : i32
    return %c0_i32, %c0_i32_0 : i32, i32
  }
  func.func @transform_9(%arg0: i32) -> (i32, i32, i32) {
    %c0_i32 = arith.constant 0 : i32
    %c0_i32_0 = arith.constant 0 : i32
    %c0_i32_1 = arith.constant 0 : i32
    %c0_i32_2 = arith.constant 0 : i32
    return %c0_i32, %c0_i32_0, %c0_i32_1 : i32, i32, i32
  }
  func.func @transform_10(%arg0: i32) -> (i32, i32) {
    %c0_i32 = arith.constant 0 : i32
    %c0_i32_0 = arith.constant 0 : i32
    %c0_i32_1 = arith.constant 0 : i32
    return %c0_i32, %c0_i32_0 : i32, i32
  }
  func.func @transform_11(%arg0: i32) -> (i32, i32) {
    %c0_i32 = arith.constant 0 : i32
    %c0_i32_0 = arith.constant 0 : i32
    %c0_i32_1 = arith.constant 0 : i32
    return %c0_i32, %c0_i32_0 : i32, i32
  }
  func.func @transform_12(%arg0: i32) -> (i32, i32, i32) {
    %c0_i32 = arith.constant 0 : i32
    %c0_i32_0 = arith.constant 0 : i32
    %c0_i32_1 = arith.constant 0 : i32
    %c0_i32_2 = arith.constant 0 : i32
    return %c0_i32, %c0_i32_0, %c0_i32_1 : i32, i32, i32
  }
  func.func @transform_13(%arg0: i32) -> (i32, i32) {
    %c0_i32 = arith.constant 0 : i32
    %c0_i32_0 = arith.constant 0 : i32
    %c0_i32_1 = arith.constant 0 : i32
    return %c0_i32, %c0_i32_0 : i32, i32
  }
  func.func @transform_14(%arg0: i32) -> (i32, i32) {
    %c0_i32 = arith.constant 0 : i32
    %c0_i32_0 = arith.constant 0 : i32
    %c0_i32_1 = arith.constant 0 : i32
    return %c0_i32, %c0_i32_0 : i32, i32
  }
  func.func @transform_15(%arg0: i32) -> (i32, i32) {
    %c0_i32 = arith.constant 0 : i32
    %c0_i32_0 = arith.constant 0 : i32
    %c0_i32_1 = arith.constant 0 : i32
    return %c0_i32, %c0_i32_0 : i32, i32
  }
  func.func @transform_16(%arg0: i32) -> (i32, i32) {
    %c0_i32 = arith.constant 0 : i32
    %c0_i32_0 = arith.constant 0 : i32
    %c0_i32_1 = arith.constant 0 : i32
    return %c0_i32, %c0_i32_0 : i32, i32
  }
  func.func @transform_17(%arg0: i32) -> (i32, i32) {
    %c0_i32 = arith.constant 0 : i32
    %c0_i32_0 = arith.constant 0 : i32
    %c0_i32_1 = arith.constant 0 : i32
    return %c0_i32, %c0_i32_0 : i32, i32
  }
  func.func @transform_18(%arg0: i32) -> (i32, i32) {
    %c0_i32 = arith.constant 0 : i32
    %c0_i32_0 = arith.constant 0 : i32
    %c0_i32_1 = arith.constant 0 : i32
    return %c0_i32, %c0_i32_0 : i32, i32
  }
  func.func @transform_19(%arg0: i32) -> (i32, i32) {
    %c0_i32 = arith.constant 0 : i32
    %c0_i32_0 = arith.constant 0 : i32
    %c0_i32_1 = arith.constant 0 : i32
    return %c0_i32, %c0_i32_0 : i32, i32
  }
  func.func @transform_20(%arg0: i32) -> (i32, i32) {
    %c0_i32 = arith.constant 0 : i32
    %c0_i32_0 = arith.constant 0 : i32
    %c0_i32_1 = arith.constant 0 : i32
    return %c0_i32, %c0_i32_0 : i32, i32
  }
  func.func @transform_21(%arg0: i32) -> (i32, i32) {
    %c0_i32 = arith.constant 0 : i32
    %c0_i32_0 = arith.constant 0 : i32
    %c0_i32_1 = arith.constant 0 : i32
    return %c0_i32, %c0_i32_0 : i32, i32
  }
  func.func @transform_22(%arg0: i32) -> (i32, i32) {
    %c0_i32 = arith.constant 0 : i32
    %c0_i32_0 = arith.constant 0 : i32
    %c0_i32_1 = arith.constant 0 : i32
    return %c0_i32, %c0_i32_0 : i32, i32
  }
  func.func @transform_23(%arg0: i32) -> (i32, i32) {
    %c0_i32 = arith.constant 0 : i32
    %c0_i32_0 = arith.constant 0 : i32
    %c0_i32_1 = arith.constant 0 : i32
    return %c0_i32, %c0_i32_0 : i32, i32
  }
  func.func @transform_24(%arg0: i32) -> i32 {
    %c0_i32 = arith.constant 0 : i32
    %c0_i32_0 = arith.constant 0 : i32
    return %c0_i32 : i32
  }
  func.func @transform_25(%arg0: i32) -> (i32, i32) {
    %c0_i32 = arith.constant 0 : i32
    %c0_i32_0 = arith.constant 0 : i32
    %c0_i32_1 = arith.constant 0 : i32
    return %c0_i32, %c0_i32_0 : i32, i32
  }
  func.func @transform_26(%arg0: i32) -> (i32, i32) {
    %c0_i32 = arith.constant 0 : i32
    %c0_i32_0 = arith.constant 0 : i32
    %c0_i32_1 = arith.constant 0 : i32
    return %c0_i32, %c0_i32_0 : i32, i32
  }
  func.func @transform_27(%arg0: i32) -> (i32, i32) {
    %c0_i32 = arith.constant 0 : i32
    %c0_i32_0 = arith.constant 0 : i32
    %c0_i32_1 = arith.constant 0 : i32
    return %c0_i32, %c0_i32_0 : i32, i32
  }
  func.func @transform_28(%arg0: i32) -> (i32, i32) {
    %c0_i32 = arith.constant 0 : i32
    %c0_i32_0 = arith.constant 0 : i32
    %c0_i32_1 = arith.constant 0 : i32
    return %c0_i32, %c0_i32_0 : i32, i32
  }
  func.func @transform_29(%arg0: i32) -> (i32, i32) {
    %c0_i32 = arith.constant 0 : i32
    %c0_i32_0 = arith.constant 0 : i32
    %c0_i32_1 = arith.constant 0 : i32
    return %c0_i32, %c0_i32_0 : i32, i32
  }
  func.func @transform_30(%arg0: i32) -> (i32, i32) {
    %c0_i32 = arith.constant 0 : i32
    %c0_i32_0 = arith.constant 0 : i32
    %c0_i32_1 = arith.constant 0 : i32
    return %c0_i32, %c0_i32_0 : i32, i32
  }
  func.func @transform_31(%arg0: i32) -> (i32, i32) {
    %c0_i32 = arith.constant 0 : i32
    %c0_i32_0 = arith.constant 0 : i32
    %c0_i32_1 = arith.constant 0 : i32
    return %c0_i32, %c0_i32_0 : i32, i32
  }
  func.func @transform_32(%arg0: i32) -> (i32, i32) {
    %c0_i32 = arith.constant 0 : i32
    %c0_i32_0 = arith.constant 0 : i32
    %c0_i32_1 = arith.constant 0 : i32
    return %c0_i32, %c0_i32_0 : i32, i32
  }
}

</mosaic_0001>

<bundles_post_ra>
// kernel: dual_input_forward.1
= control target key start
LH: loop header
LB: loop body
LE: loop exit
PB: predicated region body
PF: predicated region fallthrough
CT: control target
= control target key end

     0   :  { %s18282_s6 = smov 1   ;;  %s18283_s10 = smov 2   ;;  %s20598_s0 = inlined_call_operand.smem [shape: u32[33], index: -1, kind: input, shape index: {}] }
   0x1   :  { %s18334_s5 = sld [smem:[%s20598_s0]]   ;;  %s18284_s14 = smov 3  }
   0x2   :  { %s18339_s9 = sld [smem:[%s20598_s0 + %s18282_s6]]   ;;  %s18285_s18 = smov 4  }
   0x3   :  { %s18344_s13 = sld [smem:[%s20598_s0 + %s18283_s10]]   ;;  %s18286_s22 = smov 5  }
   0x4   :  { %s18349_s17 = sld [smem:[%s20598_s0 + %s18284_s14]]   ;;  %s18287_s26 = smov 6  }
   0x5   :  { %s18354_s21 = sld [smem:[%s20598_s0 + %s18285_s18]]   ;;  %s18288_s30 = smov 7  }
   0x6   :  { %s18359_s25 = sld [smem:[%s20598_s0 + %s18286_s22]]   ;;  %s18289_s4 = smov 8  }
   0x7   :  { %s18364_s29 = sld [smem:[%s20598_s0 + %s18287_s26]]   ;;  %s18290_s10 = smov 9  }
   0x8   :  { %s18369_s3 = sld [smem:[%s20598_s0 + %s18288_s30]]   ;;  %s18291_s15 = smov 10  }
   0x9   :  { %s18374_s8 = sld [smem:[%s20598_s0 + %s18289_s4]]   ;;  %s18292_s20 = smov 11  }
   0xa   :  { %s18379_s14 = sld [smem:[%s20598_s0 + %s18290_s10]]   ;;  %s18293_s26 = smov 12  }
   0xb   :  { %s18384_s19 = sld [smem:[%s20598_s0 + %s18291_s15]]   ;;  %s18294_s1 = smov 13  }
   0xc   :  { %s18389_s24 = sld [smem:[%s20598_s0 + %s18292_s20]]   ;;  %s18295_s7 = smov 14  }
   0xd   :  { %s18394_s30 = sld [smem:[%s20598_s0 + %s18293_s26]]   ;;  %s18296_s15 = smov 15  }
   0xe   :  { %s18399_s6 = sld [smem:[%s20598_s0 + %s18294_s1]]   ;;  %s18297_s22 = smov 16  }
   0xf   :  { %s18404_s12 = sld [smem:[%s20598_s0 + %s18295_s7]]   ;;  %s18298_s28 = smov 17  }
  0x10   :  { %s18409_s20 = sld [smem:[%s20598_s0 + %s18296_s15]]   ;;  %s18299_s7 = smov 18  }
  0x11   :  { %s18414_s27 = sld [smem:[%s20598_s0 + %s18297_s22]]   ;;  %s18300_s15 = smov 19  }
  0x12   :  { %s18419_s4 = sld [smem:[%s20598_s0 + %s18298_s28]]   ;;  %s18301_s22 = smov 20  }
  0x13   :  { %20620 = sst [smem:[#allocation12_spill]] %s18394_s30  ;;  %s18302_s28 = smov 21  }
  0x15   :  { %20621 = sst [smem:[#allocation13_spill]] %s18404_s12 }
  0x16   :  { %20622 = sst [smem:[#allocation14_spill]] %s18409_s20 }
  0x17   :  { %20623 = sst [smem:[#allocation15_spill]] %s18414_s27 }
  0x18   :  { %20624 = sst [smem:[#allocation16_spill]] %s18419_s4 }
  0x19   :  { %s18424_s12 = sld [smem:[%s20598_s0 + %s18299_s7]]   ;;  %s18303_s7 = smov 22  }
  0x1a   :  { %s18429_s20 = sld [smem:[%s20598_s0 + %s18300_s15]]   ;;  %s18304_s15 = smov 23  }
  0x1b   :  { %s18434_s27 = sld [smem:[%s20598_s0 + %s18301_s22]]   ;;  %s18305_s22 = smov 24  }
  0x1c   :  { %s18439_s4 = sld [smem:[%s20598_s0 + %s18302_s28]]   ;;  %s18306_s28 = smov 25  }
  0x1f   :  { %20625 = sst [smem:[#allocation17_spill]] %s18424_s12 }
  0x20   :  { %20626 = sst [smem:[#allocation18_spill]] %s18429_s20 }
  0x21   :  { %20627 = sst [smem:[#allocation19_spill]] %s18434_s27 }
  0x22   :  { %20628 = sst [smem:[#allocation20_spill]] %s18439_s4 }
  0x23   :  { %s18444_s12 = sld [smem:[%s20598_s0 + %s18303_s7]]   ;;  %s18307_s7 = smov 26  }
  0x24   :  { %s18449_s20 = sld [smem:[%s20598_s0 + %s18304_s15]]   ;;  %s18308_s15 = smov 27  }
  0x25   :  { %s18454_s27 = sld [smem:[%s20598_s0 + %s18305_s22]]   ;;  %s18309_s22 = smov 28  }
  0x26   :  { %s18459_s4 = sld [smem:[%s20598_s0 + %s18306_s28]]   ;;  %s18310_s28 = smov 29  }
  0x27   :  { %s18474_s30 = sld [smem:[%s20598_s0 + %s18309_s22]]   ;;  %s18313_s22 = smov 32  }
  0x29   :  { %20629 = sst [smem:[#allocation21_spill]] %s18444_s12 }
  0x2a   :  { %20630 = sst [smem:[#allocation22_spill]] %s18449_s20 }
  0x2b   :  { %s18464_s12 = sld [smem:[%s20598_s0 + %s18307_s7]]   ;;  %s18311_s7 = smov 30  }
  0x2c   :  { %20631 = sst [smem:[#allocation23_spill]] %s18459_s4 }
  0x2d   :  { %s18469_s20 = sld [smem:[%s20598_s0 + %s18308_s15]]   ;;  %s18312_s15 = smov 31  }
  0x2e   :  { %20634 = sst [smem:[#allocation26_spill]] %s18474_s30 }
  0x2f   :  { %s18479_s4 = sld [smem:[%s20598_s0 + %s18310_s28]]  }
  0x30   :  { %s18494_s30 = sld [smem:[%s20598_s0 + %s18313_s22]]  }
  0x31   :  { %20632 = sst [smem:[#allocation24_spill]] %s18464_s12 }
  0x32   :  { %s18484_s12 = sld [smem:[%s20598_s0 + %s18311_s7]]  }
  0x33   :  { %20633 = sst [smem:[#allocation25_spill]] %s18469_s20 }
  0x34   :  { %s18489_s20 = sld [smem:[%s20598_s0 + %s18312_s15]]  }
  0x35   :  { %70 = vsyncpa [#allocation8], 0 }
  0x36   :  { %71 = vsyncpa [#allocation7], 0  ;;  %s18496_s28 = smov 0  }
  0x37 LB: > { %s18502_s1 = sadd.s32 4294967295, %s18280_s28   ;;  %p13722_p0 = scmp.ge.s32.totalorder %s18280_s28, 1  ;;  %s18280_s28 = sphi %s18496_s28, %s77_s28  }
  0x38   : > { %p790_p1 = scmp.lt.s32.totalorder %s18280_s28, 3  ;;  %s866_s0 = sshll.u32 %s18454_s27, 4  ;;  %s867_s0 = int_to_ptr.vmem [resolvable:$true] %s866_s0 }
  0x39   : > { %p16278_p4 = scmp.eq.s32.totalorder %s18502_s1, 0  ;;  %s18225_s7 = scalar_lea.vmem %s867_s0, 16 }
  0x3a   : > { %p18508_p3 = pnand %p13722_p0, %p790_p1  ;;  %p18226_p7 = scmp.ne.s32.totalorder %s867_s0, %s18225_s7 }
  0x3b   : > { %p18233_p11 = scmp.lt.s32.totalorder %s867_s0, %s867_s0  ;;  %p18234_p12 = scmp.lt.s32.totalorder %s18225_s7, %s18225_s7 }
  0x3c   : > { %p16274_p5 = pneg %p18508_p3 }
  0x3d   : > { %p18235_p13 = por %p18234_p12, %p18233_p11 }
  0x3e   : > { %p16275_p6 = pnand %p16278_p4, %p16274_p5 }
  0x40   : > { %p18227_p8 = pneg %p16275_p6 }
  0x42   : > { %p18228_p9 = pnand %p18227_p8, %p18226_p7 }
  0x44   : > { %p18229_p10 = pneg %p18228_p9 }
  0x46   : > { %p18236_p2 = pnand %p18235_p13, %p18229_p10 }
  0x48   : > { %18239 = shalt.err (!%p18236_p2)
}
  0x49   : > { %s18314_s10 = smov [#allocation6]   ;;  %928 = sbr.rel (%p18508_p3) target bundleno = 4734 (0x127e), region = 148 }
  0x4a   : > { %16277 = dma.vmem_to_smem (!%p16275_p6), %s867_s0, 16, %s18314_s10, [#allocation8]  }
  0x50   : > { %18271 = dma.done.wait (%p16278_p4), [#allocation8], 16  }
  0x51   : > { %18273 = vsyncadd (%p16278_p4), [#allocation8], 4294967280 }
  0x52   : > { %934 = sfence }
  0x53   : > { %s13727_s11 = sshll.u32 %s18502_s1, 3  ;;  %s13728_s15 = sshll.u32 %s18502_s1, 7 }
  0x54   : > { %p1018_p0 = scmp.lt.s32.totalorder %s13727_s11, 15  ;;  %p1023_p1 = scmp.lt.s32.totalorder %s13728_s15, 255 }
  0x55   : > { %p20636_p2 = scmp.ne.s32.totalorder %s18502_s1, 0 }
  0x56   : > { %s20701_s11 = smov (!%p1018_p0, %s13727_s11), 15  ;;  %s20703_s15 = smov (!%p1023_p1, %s13728_s15), 255 }
  0x57   : > { %s1020_s16 = scalar_lea.vmem %s18334_s5, %s20701_s11  ;;  %s15017_s18 = sshll.u32 %s20703_s15, 4 }
  0x58   : > { %s18530_s22 = scalar_lea.vmem %s18339_s9, %s15017_s18  ;;  %s18533_s23 = scalar_lea.vmem %s18344_s13, %s15017_s18 }
  0x59   : > { %1040 = sbr.rel (%p20636_p2) target bundleno = 3051 (0xbeb), region = 156 }
  0x60   : > { %v16494_v0 = vld [vmem:[%s18354_s21] sm:$0x1f]   ;;  %vm1138_vm0 = vcmask 1043456   ;;  %vm1139_vm1 = vcmask 1044480   ;;  %v18315_v2 = vmov 65535   ;;  %vm1113_vm2 = vcmask 72704  }
  0x61   : > { %v16495_v1 = vld [vmem:[%s18349_s17] sm:$0xff]   ;;  %v1140_v3 = vsel %vm1138_vm0, 4294967295, %v18315_v2  ;;  %v16496_v6 = vld [vmem:[%s18349_s17 + $0x8] sm:$0xff]   ;;  %v16497_v7 = vld [vmem:[%s18349_s17 + $0x10] sm:$0xff]   ;;  %v20605_v21 = vmov 0   ;;  %vm1330_vm3 = vcmask 261120  }
  0x62   : > { %v1141_v4 = vsel %vm1139_vm1, %v1140_v3, 0  ;;  %15315 = vmatprep.mubr.msk.bf16.mxu0 %vm1113_vm2, %v16495_v1  ;;  %v16498_v8 = vld [vmem:[%s18349_s17 + $0x18] sm:$0xff]   ;;  %v16499_v9 = vld [vmem:[%s18349_s17 + $0x20] sm:$0xff]   ;;  %v16500_v10 = vld [vmem:[%s18349_s17 + $0x28] sm:$0xff]   ;;  %1387 = vmatprep.mubr.bf16.mxu1 %v20605_v21  ;;  %s18317_s26 = smov 64   ;;  %vm3012_vm4 = vcmask 523264  }
  0x63   : > { %v1143_v5 = vand.u32 %v16494_v0, %v1141_v4  ;;  %v16501_v11 = vld [vmem:[%s18349_s17 + $0x30] sm:$0xff]   ;;  %v16502_v12 = vld [vmem:[%s18349_s17 + $0x38] sm:$0xff]   ;;  %v16507_v14 = vld [vmem:[%s18369_s3 + $0xc] ss:$20 sps:$4 sm:$0xff]   ;;  %vm18320_vm5 = vmmov 0   ;;  %s20685_s0 = sld [smem:[#allocation12_spill]] }
  0x64   : > { %v16503_v13 = vld [vmem:[%s18369_s3 + $0x4] ss:$20 sps:$4 sm:$0xff]   ;;  %v16505_v15 = vld [vmem:[%s18369_s3 + $0x8] ss:$20 sps:$4 sm:$0xff]   ;;  %v16508_v16 = vld [vmem:[%s18369_s3] ss:$20 sps:$4 sm:$0xff]  }
  0x65   : > { %15313 = vmatprep.subr.bf16.mxu0 %v1143_v5  ;;  %1355 = vmatprep.subr.bf16.mxu1 %v16503_v13  ;;  %v16509_v17 = vld [vmem:[%s18369_s3 + $0x2c] ss:$20 sps:$4 sm:$0xff]   ;;  %v16513_v18 = vld [vmem:[%s18369_s3 + $0x34] ss:$20 sps:$4 sm:$0xff]   ;;  %v16511_v19 = vld [vmem:[%s18369_s3 + $0x30] ss:$20 sps:$4 sm:$0xff]  }
  0x66   : > { %15314 = vmatpush3.bf16.msra.mxu0 %v1143_v5  ;;  %1356 = vmatpush1.bf16.msra.mxu1 %v16508_v16  ;;  %v16514_v20 = vld [vmem:[%s18369_s3 + $0x28] ss:$20 sps:$4 sm:$0xff]   ;;  %v16515_v22 = vld [vmem:[%s18369_s3 + $0x10] ss:$20 sps:$4 sm:$0xff]   ;;  %v18566_v23 = vld [vmem:[%s18359_s25] ss:$0 sm:$0xff] }
  0x67   : > { %1468 = vmatprep.subr.bf16.mxu0 %v16507_v14  ;;  %1357 = vmatprep.subr.bf16.mxu1 %v16509_v17  ;;  %v16516_v41 = vld [vmem:[%s18369_s3 + $0x38] ss:$20 sps:$4 sm:$0xff]   ;;  %v1678_v17 = vld [vmem:[%s18364_s29] sm:$0xff]  ;;  %vm5207_vm6 = vcmask 64512   ;;  %s20686_s2 = sld [smem:[#allocation13_spill]]  ;;  %s20687_s7 = sld [smem:[#allocation15_spill]] }
  0x68   : > { %s20688_s10 = sld [smem:[#allocation14_spill]]  ;;  %vm5923_vm7 = vcmask 1041408   ;;  %vm5919_vm8 = vcmask 15360   ;;  %s20689_s15 = sld [smem:[#allocation17_spill]]  ;;  %vm6788_vm9 = vcmask 1024  }
  0x69   : > { %15316 = vmatmul.mubr.msk.bf16.vlgmr.msra.gmra.mrb[0].mxu0 %vm1113_vm2, %v16496_v6  ;;  %s20690_s18 = sld [smem:[#allocation20_spill]] }
  0x6a   : > { %15319 = vmatprep.mubr.msk.bf16.mxu0 %vm1113_vm2, %v16497_v7  ;;  %1469 = vmatpush1.bf16.msra.mxu0 %v16505_v15 }
  0x6b   : > { %1470 = vmatprep.subr.bf16.mxu0 %v16513_v18  ;;  %1358 = vmatpush1.bf16.msra.mxu1 %v16514_v20 }
  0x6c   : > { %15331 = vmatprep.subr.bf16.mxu1 %v16515_v22 }
  0x6e   : > { %1471 = vmatpush1.bf16.msra.mxu0 %v16511_v19 }
  0x71   : > { %15320 = vmatmul.mubr.msk.bf16.gmra.mrb[4].mxu0 %vm1113_vm2, %v16498_v8 }
  0x72   : > { %15323 = vmatprep.mubr.msk.bf16.mxu0 %vm1113_vm2, %v16499_v9 }
  0x79   : > { %15324 = vmatmul.mubr.msk.bf16.gmra.mrb[8].mxu0 %vm1113_vm2, %v16500_v10 }
  0x7a   : > { %15327 = vmatprep.mubr.msk.bf16.mxu0 %vm1113_vm2, %v16501_v11 }
  0x81   : > { %15328 = vmatmul.mubr.msk.bf16.gmra.mrb[12].mxu0 %vm1113_vm2, %v16502_v12 }
  0x82   : > { %1500 = vmatprep.mubr.bf16.mxu0 %v20605_v21 }
 0x13c   : > { %v15317_v24 = vpop.f32.mrb[0].mxu0 }
 0x13d   : > { %v1188_v25 = vadd.f32 %v15317_v24, %v18566_v23  ;;  %v1179_v26 = vpop.f32.mrb[1].mxu0 }
 0x13e   : > { %v1180_v27 = vadd.f32 %v18566_v23, %v1179_v26  ;;  %v15318_v28 = vpop.f32.mrb[2].mxu0 }
 0x13f   : > { %v1191_v29 = vadd.f32 %v15318_v28, %v18566_v23  ;;  %v1182_v30 = vpop.f32.mrb[3].mxu0  ;;  %v1244_v32 = vmax.f32 %v1188_v25, 0.0 }
 0x140   : > { %v1183_v31 = vadd.f32 %v18566_v23, %v1182_v30  ;;  %v1242_v34 = vmax.f32 %v1180_v27, 0.0 }
 0x141   : > { %v1245_v33 = vmax.f32 %v1191_v29, 0.0 }
 0x142   : > { %v1243_v35 = vmax.f32 %v1183_v31, 0.0 }
 0x143   : > { %v18572_v36 = vpack.c.bf16 %v1245_v33, %v1244_v32 }
 0x144   : > { %v18574_v37 = vpack.c.bf16 %v1243_v35, %v1242_v34  ;;  %v15321_v38 = vpop.f32.mrb[4].mxu0 }
 0x145   : > { %v1204_v39 = vadd.f32 %v15321_v38, %v18566_v23  ;;  %v1195_v40 = vpop.f32.mrb[5].mxu0 }
 0x146   : > { %13763 = vmatmul.mubr.msk.bf16.vlgmr.msra.gmra.mrb[0].mxu1 %vm1330_vm3, %v18574_v37  ;;  %13771 = vmatmul.mubr.msk.bf16.vlgmr.msra.gmra.mrb[16].mxu0 %vm1330_vm3, %v18574_v37  ;;  %v1196_v42 = vadd.f32 %v18566_v23, %v1195_v40  ;;  %v15322_v43 = vpop.f32.mrb[6].mxu0 }
 0x147   : > { %v1248_v44 = vmax.f32 %v1204_v39, 0.0  ;;  %v1207_v45 = vadd.f32 %v15322_v43, %v18566_v23  ;;  %v1198_v46 = vpop.f32.mrb[7].mxu0  ;;  %1397 = vmatprep.mubr.bf16.mxu1 %v20605_v21  ;;  %1510 = vmatprep.mubr.bf16.mxu0 %v20605_v21 }
 0x148   : > { %v1246_v47 = vmax.f32 %v1196_v42, 0.0  ;;  %v1199_v48 = vadd.f32 %v18566_v23, %v1198_v46  ;;  %15332 = vmatpush3.bf16.msra.mxu1 %v16515_v22 }
 0x149   : > { %v1249_v49 = vmax.f32 %v1207_v45, 0.0  ;;  %15333 = vmatprep.subr.bf16.mxu1 %v16516_v41 }
 0x14a   : > { %v1247_v50 = vmax.f32 %v1199_v48, 0.0 }
 0x14b   : > { %v1261_v51 = vpack.c.bf16 %v1249_v49, %v1248_v44 }
 0x14c   : > { %v1260_v52 = vpack.c.bf16 %v1247_v50, %v1246_v47  ;;  %v15325_v53 = vpop.f32.mrb[8].mxu0  ;;  %15334 = vmatpush3.bf16.msra.mxu1 %v16516_v41 }
 0x14d   : > { %v1220_v54 = vadd.f32 %v15325_v53, %v18566_v23  ;;  %v1211_v55 = vpop.f32.mrb[9].mxu0 }
 0x14e   : > { %13764 = vmatmul.mubr.msk.bf16.gmra.mrb[4].mxu1 %vm1330_vm3, %v18572_v36  ;;  %13772 = vmatmul.mubr.msk.bf16.gmra.mrb[20].mxu0 %vm1330_vm3, %v18572_v36  ;;  %v1212_v56 = vadd.f32 %v18566_v23, %v1211_v55  ;;  %v15326_v57 = vpop.f32.mrb[10].mxu0 }
 0x14f   : > { %1407 = vmatprep.mubr.bf16.mxu1 %v20605_v21  ;;  %1520 = vmatprep.mubr.bf16.mxu0 %v20605_v21  ;;  %v1252_v58 = vmax.f32 %v1220_v54, 0.0  ;;  %v1223_v59 = vadd.f32 %v15326_v57, %v18566_v23  ;;  %v1214_v60 = vpop.f32.mrb[11].mxu0 }
 0x150   : > { %v1250_v61 = vmax.f32 %v1212_v56, 0.0  ;;  %v1215_v62 = vadd.f32 %v18566_v23, %v1214_v60 }
 0x151   : > { %v1253_v63 = vmax.f32 %v1223_v59, 0.0 }
 0x152   : > { %v1251_v0 = vmax.f32 %v1215_v62, 0.0 }
 0x153   : > { %v1263_v1 = vpack.c.bf16 %v1253_v63, %v1252_v58 }
 0x154   : > { %v1262_v2 = vpack.c.bf16 %v1251_v0, %v1250_v61  ;;  %v15329_v3 = vpop.f32.mrb[12].mxu0 }
 0x155   : > { %v1236_v4 = vadd.f32 %v15329_v3, %v18566_v23  ;;  %v1227_v5 = vpop.f32.mrb[13].mxu0 }
 0x156   : > { %13765 = vmatmul.mubr.msk.bf16.gmra.mrb[8].mxu1 %vm1330_vm3, %v1260_v52  ;;  %13773 = vmatmul.mubr.msk.bf16.gmra.mrb[24].mxu0 %vm1330_vm3, %v1260_v52  ;;  %v1228_v6 = vadd.f32 %v18566_v23, %v1227_v5  ;;  %v15330_v7 = vpop.f32.mrb[14].mxu0 }
 0x157   : > { %1417 = vmatprep.mubr.bf16.mxu1 %v20605_v21  ;;  %1530 = vmatprep.mubr.bf16.mxu0 %v20605_v21  ;;  %v1256_v8 = vmax.f32 %v1236_v4, 0.0  ;;  %v1239_v9 = vadd.f32 %v15330_v7, %v18566_v23  ;;  %v1230_v10 = vpop.f32.mrb[15].mxu0 }
 0x158   : > { %v1254_v11 = vmax.f32 %v1228_v6, 0.0  ;;  %v1231_v12 = vadd.f32 %v18566_v23, %v1230_v10 }
 0x159   : > { %v1257_v13 = vmax.f32 %v1239_v9, 0.0 }
 0x15a   : > { %v1255_v14 = vmax.f32 %v1231_v12, 0.0 }
 0x15b   : > { %v1265_v15 = vpack.c.bf16 %v1257_v13, %v1256_v8 }
 0x15c   : > { %v1264_v16 = vpack.c.bf16 %v1255_v14, %v1254_v11 }
 0x15e   : > { %13766 = vmatmul.mubr.msk.bf16.gmra.mrb[12].mxu1 %vm1330_vm3, %v1261_v51  ;;  %13774 = vmatmul.mubr.msk.bf16.gmra.mrb[28].mxu0 %vm1330_vm3, %v1261_v51 }
 0x15f   : > { %1427 = vmatprep.mubr.bf16.mxu1 %v20605_v21  ;;  %1540 = vmatprep.mubr.bf16.mxu0 %v20605_v21 }
 0x166   : > { %13767 = vmatmul.mubr.msk.bf16.gmra.mrb[16].mxu1 %vm1330_vm3, %v1262_v2  ;;  %13775 = vmatmul.mubr.msk.bf16.gmra.mrb[32].mxu0 %vm1330_vm3, %v1262_v2 }
 0x167   : > { %1437 = vmatprep.mubr.bf16.mxu1 %v20605_v21  ;;  %1550 = vmatprep.mubr.bf16.mxu0 %v20605_v21 }
 0x16e   : > { %13768 = vmatmul.mubr.msk.bf16.gmra.mrb[20].mxu1 %vm1330_vm3, %v1263_v1  ;;  %13776 = vmatmul.mubr.msk.bf16.gmra.mrb[36].mxu0 %vm1330_vm3, %v1263_v1 }
 0x16f   : > { %1447 = vmatprep.mubr.bf16.mxu1 %v20605_v21  ;;  %1560 = vmatprep.mubr.bf16.mxu0 %v20605_v21 }
 0x176   : > { %13769 = vmatmul.mubr.msk.bf16.gmra.mrb[24].mxu1 %vm1330_vm3, %v1264_v16  ;;  %13777 = vmatmul.mubr.msk.bf16.gmra.mrb[40].mxu0 %vm1330_vm3, %v1264_v16 }
 0x177   : > { %1457 = vmatprep.mubr.bf16.mxu1 %v20605_v21  ;;  %1570 = vmatprep.mubr.bf16.mxu0 %v20605_v21 }
 0x17e   : > { %13770 = vmatmul.mubr.msk.bf16.gmra.mrb[28].mxu1 %vm1330_vm3, %v1265_v15  ;;  %13778 = vmatmul.mubr.msk.bf16.gmra.mrb[44].mxu0 %vm1330_vm3, %v1265_v15 }
 0x17f   : > { %15335 = vmatprep.mubr.msk.bf16.mxu1 %vm1330_vm3, %v18574_v37  ;;  %15421 = vmatprep.mubr.f32.mxu0 %v1678_v17 }
 0x186   : > { %15336 = vmatmul.mubr.msk.bf16.vlgmr.msra.gmra.mrb[32].mxu1 %vm1330_vm3, %v18572_v36 }
 0x187   : > { %15339 = vmatprep.mubr.msk.bf16.mxu1 %vm1330_vm3, %v1260_v52 }
 0x18e   : > { %15340 = vmatmul.mubr.msk.bf16.gmra.mrb[36].mxu1 %vm1330_vm3, %v1261_v51 }
 0x18f   : > { %15343 = vmatprep.mubr.msk.bf16.mxu1 %vm1330_vm3, %v1262_v2 }
 0x196   : > { %15344 = vmatmul.mubr.msk.bf16.gmra.mrb[40].mxu1 %vm1330_vm3, %v1263_v1 }
 0x197   : > { %15347 = vmatprep.mubr.msk.bf16.mxu1 %vm1330_vm3, %v1264_v16 }
 0x19e   : > { %15348 = vmatmul.mubr.msk.bf16.gmra.mrb[44].mxu1 %vm1330_vm3, %v1265_v15 }
 0x219   : > { %v18634_v18 = vpop.f32.mrb[0].mxu1  ;;  %v18636_v19 = vpop.f32.mrb[16].mxu0 }
 0x21a   : > { %v1391_v20 = vpop.f32.mrb[1].mxu1  ;;  %v18638_v22 = vpop.f32.mrb[17].mxu0 }
 0x21b   : > { %v18640_v23 = vpop.f32.mrb[2].mxu1  ;;  %v18642_v24 = vpop.f32.mrb[18].mxu0 }
 0x21c   : > { %v15836_v26 = vpack.c.bf16 %v18640_v23, %v18634_v18  ;;  %v18652_v28 = vpack.c.bf16 %v18642_v24, %v18636_v19  ;;  %v1395_v29 = vpop.f32.mrb[3].mxu1  ;;  %v18654_v30 = vpop.f32.mrb[19].mxu0 }
 0x21d   : > { %v18656_v31 = vpack.c.bf16 %v1395_v29, %v1391_v20  ;;  %v18662_v33 = vpack.c.bf16 %v18654_v30, %v18638_v22  ;;  %v16334_v34 = vpack.i.bf16 %v1395_v29, %v1391_v20 }
 0x21e   : > { %15837 = vmatprep.subr.bf16.mxu0 %v15836_v26 }
 0x21f   : > { %20637 = vst [vmem:[#allocation27_spill] sm:$0xff] %v18662_v33  ;;  %15839 = vmatpush3.bf16.msra.mxu0 %v15836_v26  ;;  %16335 = vrot.lane.b32.xlu0 %v16334_v34, %s18317_s26 }
 0x221   : > { %v18665_v35 = vpop.f32.mrb[4].mxu1  ;;  %v18667_v36 = vpop.f32.mrb[20].mxu0 }
 0x222   : > { %v1401_v37 = vpop.f32.mrb[5].mxu1  ;;  %v18669_v38 = vpop.f32.mrb[21].mxu0 }
 0x223   : > { %v18671_v39 = vpop.f32.mrb[6].mxu1  ;;  %v18673_v40 = vpop.f32.mrb[22].mxu0 }
 0x224   : > { %v15840_v42 = vpack.c.bf16 %v18671_v39, %v18665_v35  ;;  %v18683_v44 = vpack.c.bf16 %v18673_v40, %v18667_v36  ;;  %v1405_v45 = vpop.f32.mrb[7].mxu1  ;;  %v18685_v46 = vpop.f32.mrb[23].mxu0 }
 0x225   : > { %v16339_v47 = vpack.i.bf16 %v1405_v45, %v1401_v37  ;;  %v18687_v48 = vpack.c.bf16 %v1405_v45, %v1401_v37  ;;  %v18693_v50 = vpack.c.bf16 %v18685_v46, %v18669_v38 }
 0x226   : > { %20638 = vst [vmem:[#allocation28_spill] sm:$0xff] %v18683_v44  ;;  %15841 = vmatprep.subr.bf16.mxu0 %v15840_v42 }
 0x227   : > { %20639 = vst [vmem:[#allocation29_spill] sm:$0xff] %v18693_v50  ;;  %15843 = vmatpush3.bf16.msra.mxu0 %v15840_v42  ;;  %16340 = vrot.lane.b32.xlu0 %v16339_v47, %s18317_s26 }
 0x229   : > { %v18696_v51 = vpop.f32.mrb[8].mxu1  ;;  %v18698_v52 = vpop.f32.mrb[24].mxu0 }
 0x22a   : > { %v1411_v53 = vpop.f32.mrb[9].mxu1  ;;  %v18700_v54 = vpop.f32.mrb[25].mxu0 }
 0x22b   : > { %v18702_v55 = vpop.f32.mrb[10].mxu1  ;;  %v18704_v56 = vpop.f32.mrb[26].mxu0 }
 0x22c   : > { %v15844_v58 = vpack.c.bf16 %v18702_v55, %v18696_v51  ;;  %v18714_v60 = vpack.c.bf16 %v18704_v56, %v18698_v52  ;;  %v1415_v61 = vpop.f32.mrb[11].mxu1  ;;  %v18716_v62 = vpop.f32.mrb[27].mxu0 }
 0x22d   : > { %v18718_v63 = vpack.c.bf16 %v1415_v61, %v1411_v53  ;;  %v18724_v1 = vpack.c.bf16 %v18716_v62, %v18700_v54  ;;  %v16344_v2 = vpack.i.bf16 %v1415_v61, %v1411_v53 }
 0x22e   : > { %20640 = vst [vmem:[#allocation30_spill] sm:$0xff] %v18714_v60  ;;  %15845 = vmatprep.subr.bf16.mxu0 %v15844_v58 }
 0x22f   : > { %20641 = vst [vmem:[#allocation31_spill] sm:$0xff] %v18724_v1  ;;  %15847 = vmatpush3.bf16.msra.mxu0 %v15844_v58  ;;  %16345 = vrot.lane.b32.xlu1 %v16344_v2, %s18317_s26 }
 0x231   : > { %v18727_v3 = vpop.f32.mrb[12].mxu1  ;;  %v18729_v4 = vpop.f32.mrb[28].mxu0 }
 0x232   : > { %v1421_v5 = vpop.f32.mrb[13].mxu1  ;;  %v18731_v6 = vpop.f32.mrb[29].mxu0 }
 0x233   : > { %v18733_v7 = vpop.f32.mrb[14].mxu1  ;;  %v18735_v8 = vpop.f32.mrb[30].mxu0 }
 0x234   : > { %v15848_v10 = vpack.c.bf16 %v18733_v7, %v18727_v3  ;;  %v18745_v12 = vpack.c.bf16 %v18735_v8, %v18729_v4  ;;  %v1425_v13 = vpop.f32.mrb[15].mxu1  ;;  %v18747_v14 = vpop.f32.mrb[31].mxu0 }
 0x235   : > { %v16349_v15 = vpack.i.bf16 %v1425_v13, %v1421_v5  ;;  %v18749_v16 = vpack.c.bf16 %v1425_v13, %v1421_v5  ;;  %v18755_v20 = vpack.c.bf16 %v18747_v14, %v18731_v6 }
 0x236   : > { %20642 = vst [vmem:[#allocation32_spill] sm:$0xff] %v18745_v12  ;;  %15849 = vmatprep.subr.bf16.mxu0 %v15848_v10 }
 0x237   : > { %20643 = vst [vmem:[#allocation33_spill] sm:$0xff] %v18755_v20  ;;  %15851 = vmatpush3.bf16.msra.mxu0 %v15848_v10  ;;  %16350 = vrot.lane.b32.xlu1 %v16349_v15, %s18317_s26 }
 0x239   : > { %v18758_v26 = vpop.f32.mrb[16].mxu1  ;;  %v18760_v29 = vpop.f32.mrb[32].mxu0 }
 0x23a   : > { %v1431_v34 = vpop.f32.mrb[17].mxu1  ;;  %v18762_v37 = vpop.f32.mrb[33].mxu0 }
 0x23b   : > { %v18764_v42 = vpop.f32.mrb[18].mxu1  ;;  %v18766_v45 = vpop.f32.mrb[34].mxu0 }
 0x23c   : > { %v15852_v53 = vpack.c.bf16 %v18764_v42, %v18758_v26  ;;  %v18776_v61 = vpack.c.bf16 %v18766_v45, %v18760_v29  ;;  %v1435_v2 = vpop.f32.mrb[19].mxu1  ;;  %v18778_v5 = vpop.f32.mrb[35].mxu0 }
 0x23d   : > { %v16354_v10 = vpack.i.bf16 %v1435_v2, %v1431_v34  ;;  %v18780_v13 = vpack.c.bf16 %v1435_v2, %v1431_v34  ;;  %v18786_v21 = vpack.c.bf16 %v18778_v5, %v18762_v37 }
 0x23e   : > { %20644 = vst [vmem:[#allocation34_spill] sm:$0xff] %v18776_v61  ;;  %15853 = vmatprep.subr.bf16.mxu0 %v15852_v53 }
 0x23f   : > { %20645 = vst [vmem:[#allocation35_spill] sm:$0xff] %v18786_v21  ;;  %15855 = vmatpush3.bf16.msra.mxu0 %v15852_v53  ;;  %16355 = vrot.lane.b32.xlu0 %v16354_v10, %s18317_s26 }
 0x241   : > { %v18789_v9 = vpop.f32.mrb[20].mxu1  ;;  %v18791_v41 = vpop.f32.mrb[36].mxu0 }
 0x242   : > { %v1441_v47 = vpop.f32.mrb[21].mxu1  ;;  %v18793_v57 = vpop.f32.mrb[37].mxu0 }
 0x243   : > { %v18795_v34 = vpop.f32.mrb[22].mxu1  ;;  %v18797_v2 = vpop.f32.mrb[38].mxu0 }
 0x244   : > { %v15856_v17 = vpack.c.bf16 %v18795_v34, %v18789_v9  ;;  %v18807_v10 = vpack.c.bf16 %v18797_v2, %v18791_v41  ;;  %v1445_v49 = vpop.f32.mrb[23].mxu1  ;;  %v18809_v15 = vpop.f32.mrb[39].mxu0 }
 0x245   : > { %v16359_v0 = vpack.i.bf16 %v1445_v49, %v1441_v47  ;;  %v18811_v32 = vpack.c.bf16 %v1445_v49, %v1441_v47  ;;  %v18817_v25 = vpack.c.bf16 %v18809_v15, %v18793_v57 }
 0x246   : > { %20646 = vst [vmem:[#allocation36_spill] sm:$0xff] %v18807_v10  ;;  %15857 = vmatprep.subr.bf16.mxu0 %v15856_v17 }
 0x247   : > { %20647 = vst [vmem:[#allocation37_spill] sm:$0xff] %v18817_v25  ;;  %15859 = vmatpush3.bf16.msra.mxu0 %v15856_v17  ;;  %16360 = vrot.lane.b32.xlu1 %v16359_v0, %s18317_s26 }
 0x249   : > { %v18820_v53 = vpop.f32.mrb[24].mxu1  ;;  %v1562_v43 = vpop.f32.mrb[40].mxu0 }
 0x24a   : > { %v1451_v58 = vpop.f32.mrb[25].mxu1  ;;  %v18822_v59 = vpop.f32.mrb[41].mxu0 }
 0x24b   : > { %v18824_v27 = vpop.f32.mrb[26].mxu1  ;;  %v1566_v49 = vpop.f32.mrb[42].mxu0 }
 0x24c   : > { %v15860_v11 = vpack.c.bf16 %v18824_v27, %v18820_v53  ;;  %v16404_v25 = vpack.i.bf16 %v1566_v49, %v1562_v43  ;;  %v18830_v21 = vpack.c.bf16 %v1566_v49, %v1562_v43  ;;  %v1455_v17 = vpop.f32.mrb[27].mxu1  ;;  %v18832_v0 = vpop.f32.mrb[43].mxu0 }
 0x24d   : > { %v16364_v20 = vpack.i.bf16 %v1455_v17, %v1451_v58  ;;  %v18834_v1 = vpack.c.bf16 %v1455_v17, %v1451_v58  ;;  %v18840_v33 = vpack.c.bf16 %v18832_v0, %v18822_v59  ;;  %v20650_v58 = vpack.i.bf16 %v18642_v24, %v18636_v19 }
 0x24e   : > { %20648 = vst [vmem:[#allocation38_spill] sm:$0xff] %v18830_v21  ;;  %15861 = vmatprep.subr.bf16.mxu0 %v15860_v11 }
 0x24f   : > { %20649 = vst [vmem:[#allocation39_spill] sm:$0xff] %v18840_v33  ;;  %15863 = vmatpush3.bf16.msra.mxu0 %v15860_v11  ;;  %16365 = vrot.lane.b32.xlu0 %v16364_v20, %s18317_s26  ;;  %v20652_v11 = vpack.i.bf16 %v18766_v45, %v18760_v29  ;;  %v13791_v29 = vld [vmem:[%s18364_s29 + $0x40] sm:$0xff]  ;;  %v20655_v45 = vpack.i.bf16 %v18654_v30, %v18638_v22 }
 0x250   : > { %v20657_v22 = vpack.i.bf16 %v18716_v62, %v18700_v54  ;;  %v20659_v54 = vpack.i.bf16 %v18685_v46, %v18669_v38  ;;  %v20661_v38 = vpack.i.bf16 %v18747_v14, %v18731_v6 }
 0x251   : > { %v18843_v47 = vpop.f32.mrb[28].mxu1  ;;  %v1572_v43 = vpop.f32.mrb[44].mxu0 }
 0x252   : > { %v1461_v49 = vpop.f32.mrb[29].mxu1  ;;  %v18845_v21 = vpop.f32.mrb[45].mxu0 }
 0x253   : > { %v1576_v10 = vpop.f32.mrb[46].mxu0  ;;  %16375 = vrot.lane.b32.xlu0 %v20650_v58, %s18317_s26  ;;  %v18851_v17 = vpop.f32.mrb[30].mxu1  ;;  %v1680_v58 = vld [vmem:[%s18364_s29 + $0x10] sm:$0xff] }
 0x254   : > { %v16409_v50 = vpack.i.bf16 %v1576_v10, %v1572_v43  ;;  %v18853_v33 = vpack.c.bf16 %v1576_v10, %v1572_v43  ;;  %v15864_v20 = vpack.c.bf16 %v18851_v17, %v18843_v47  ;;  %v1465_v61 = vpop.f32.mrb[31].mxu1  ;;  %v18859_v12 = vpop.f32.mrb[47].mxu0  ;;  %v20651_v10 = vpack.i.bf16 %v18704_v56, %v18698_v52  ;;  %v1679_v43 = vld [vmem:[%s18364_s29 + $0x8] sm:$0xff]  ;;  %v1681_v56 = vld [vmem:[%s18364_s29 + $0x18] sm:$0xff] }
 0x255   : > { %v16369_v60 = vpack.i.bf16 %v1465_v61, %v1461_v49  ;;  %v18861_v44 = vpack.c.bf16 %v1465_v61, %v1461_v49  ;;  %v16449_v19 = vpack.i.bf16 %v18859_v12, %v18845_v21  ;;  %v18867_v24 = vpack.c.bf16 %v18859_v12, %v18845_v21 }
 0x256   : > { %15865 = vmatprep.subr.bf16.mxu0 %v15864_v20  ;;  %v20667_v21 = vpack.i.bf16 %v18824_v27, %v18820_v53  ;;  %v20669_v12 = vpack.i.bf16 %v18795_v34, %v18789_v9 }
 0x257   : > { %16385 = vrot.lane.b32.xlu0 %v20651_v10, %s18317_s26  ;;  %15867 = vmatpush3.bf16.msra.mxu0 %v15864_v20 }
 0x258   : > { %16370 = vrot.lane.b32.xlu1 %v16369_v60, %s18317_s26  ;;  %15869 = vmatprep.subr.bf16.mxu0 %v18656_v31  ;;  %v20653_v60 = vpack.i.bf16 %v18673_v40, %v18667_v36 }
 0x259   : > { %v15337_v61 = vpop.f32.mrb[32].mxu1 }
 0x25a   : > { %v1615_v49 = vpop.f32.mrb[33].mxu1  ;;  %15422 = vmatmul.mubr.f32.vlgmr.msra.gmra.mrb[48].mxu0 %v1679_v43 }
 0x25b   : > { %16395 = vrot.lane.b32.xlu0 %v20652_v11, %s18317_s26  ;;  %15871 = vmatpush3.bf16.msra.mxu0 %v18656_v31  ;;  %v15338_v52 = vpop.f32.mrb[34].mxu1  ;;  %v20654_v31 = vpack.i.bf16 %v18735_v8, %v18729_v4 }
 0x25c   : > { %16380 = vrot.lane.b32.xlu1 %v20653_v60, %s18317_s26  ;;  %v18887_v20 = vpack.c.bf16 %v15338_v52, %v15337_v61  ;;  %v1618_v10 = vpop.f32.mrb[35].mxu1  ;;  %15873 = vmatprep.subr.bf16.mxu0 %v18687_v48 }
 0x25d   : > { %v18890_v43 = vpack.c.bf16 %v1618_v10, %v1615_v49  ;;  %15424 = vmatprep.mubr.f32.mxu0 %v1680_v58 }
 0x25e   : > { %15425 = vmatmul.mubr.f32.gmra.mrb[50].mxu0 %v1681_v56 }
 0x25f   : > { %16405 = vrot.lane.b32.xlu0 %v16404_v25, %s18317_s26  ;;  %15875 = vmatpush3.bf16.msra.mxu0 %v18687_v48  ;;  %v20656_v48 = vpack.i.bf16 %v18797_v2, %v18791_v41 }
 0x260   : > { %16390 = vrot.lane.b32.xlu1 %v20654_v31, %s18317_s26  ;;  %15877 = vmatprep.subr.bf16.mxu0 %v18718_v63 }
 0x261   : > { %v15341_v36 = vpop.f32.mrb[36].mxu1  ;;  %15459 = vmatprep.mubr.f32.mxu0 %v13791_v29 }
 0x262   : > { %v1631_v40 = vpop.f32.mrb[37].mxu1 }
 0x263   : > { %16415 = vrot.lane.b32.xlu0 %v20655_v45, %s18317_s26  ;;  %15879 = vmatpush3.bf16.msra.mxu0 %v18718_v63  ;;  %v15342_v25 = vpop.f32.mrb[38].mxu1  ;;  %v20658_v63 = vpack.i.bf16 %v18778_v5, %v18762_v37  ;;  %v20660_v37 = vpack.i.bf16 %v18832_v0, %v18822_v59 }
 0x264   : > { %16400 = vrot.lane.b32.xlu1 %v20656_v48, %s18317_s26  ;;  %v18909_v4 = vpack.c.bf16 %v15342_v25, %v15341_v36  ;;  %v1634_v8 = vpop.f32.mrb[39].mxu1  ;;  %15881 = vmatprep.subr.bf16.mxu0 %v18749_v16 }
 0x265   : > { %v18912_v11 = vpack.c.bf16 %v1634_v8, %v1631_v40 }
 0x267   : > { %16425 = vrot.lane.b32.xlu0 %v20657_v22, %s18317_s26  ;;  %15883 = vmatpush3.bf16.msra.mxu0 %v18749_v16 }
 0x268   : > { %16410 = vrot.lane.b32.xlu1 %v16409_v50, %s18317_s26  ;;  %15885 = vmatprep.subr.bf16.mxu0 %v18780_v13 }
 0x269   : > { %v15345_v30 = vpop.f32.mrb[40].mxu1 }
 0x26a   : > { %v1647_v41 = vpop.f32.mrb[41].mxu1 }
 0x26b   : > { %16435 = vrot.lane.b32.xlu0 %v20658_v63, %s18317_s26  ;;  %15887 = vmatpush3.bf16.msra.mxu0 %v18780_v13  ;;  %v15346_v2 = vpop.f32.mrb[42].mxu1  ;;  %v20662_v13 = vpack.i.bf16 %v18640_v23, %v18634_v18  ;;  %v20664_v18 = vpack.i.bf16 %v18702_v55, %v18696_v51  ;;  %v13792_v23 = vld [vmem:[%s18364_s29 + $0x48] sm:$0xff]  ;;  %v20666_v51 = vpack.i.bf16 %v18671_v39, %v18665_v35 }
 0x26c   : > { %16420 = vrot.lane.b32.xlu1 %v20659_v54, %s18317_s26  ;;  %v18930_v62 = vpack.c.bf16 %v15346_v2, %v15345_v30  ;;  %v1650_v50 = vpop.f32.mrb[43].mxu1  ;;  %15889 = vmatprep.subr.bf16.mxu0 %v18811_v32  ;;  %v20668_v55 = vpack.i.bf16 %v18733_v7, %v18727_v3  ;;  %v20670_v35 = vpack.i.bf16 %v18851_v17, %v18843_v47 }
 0x26d   : > { %v18933_v16 = vpack.c.bf16 %v1650_v50, %v1647_v41 }
 0x26f   : > { %16445 = vrot.lane.b32.xlu0 %v20660_v37, %s18317_s26  ;;  %15891 = vmatpush3.bf16.msra.mxu0 %v18811_v32  ;;  %v20663_v32 = vpack.i.bf16 %v18809_v15, %v18793_v57  ;;  %v13793_v57 = vld [vmem:[%s18364_s29 + $0x50] sm:$0xff]  ;;  %v13794_v15 = vld [vmem:[%s18364_s29 + $0x58] sm:$0xff] }
 0x270   : > { %16430 = vrot.lane.b32.xlu1 %v20661_v38, %s18317_s26  ;;  %15893 = vmatprep.subr.bf16.mxu0 %v18834_v1 }
 0x271   : > { %v15349_v46 = vpop.f32.mrb[44].mxu1 }
 0x272   : > { %v1663_v5 = vpop.f32.mrb[45].mxu1 }
 0x273   : > { %16455 = vrot.lane.b32.xlu0 %v20662_v13, %s18317_s26  ;;  %15895 = vmatpush3.bf16.msra.mxu0 %v18834_v1  ;;  %v15350_v59 = vpop.f32.mrb[46].mxu1  ;;  %v20665_v1 = vpack.i.bf16 %v18764_v42, %v18758_v26  ;;  %v13797_v13 = vld [vmem:[%s18364_s29 + $0x70] sm:$0xff] }
 0x274   : > { %16440 = vrot.lane.b32.xlu1 %v20663_v32, %s18317_s26  ;;  %v18954_v6 = vpack.c.bf16 %v15350_v59, %v15349_v46  ;;  %v1666_v14 = vpop.f32.mrb[47].mxu1  ;;  %15897 = vmatprep.subr.bf16.mxu0 %v18861_v44  ;;  %v13796_v46 = vld [vmem:[%s18364_s29 + $0x68] sm:$0xff]  ;;  %v13798_v32 = vld [vmem:[%s18364_s29 + $0x78] sm:$0xff] }
 0x275   : > { %v18957_v0 = vpack.c.bf16 %v1666_v14, %v1663_v5  ;;  %v20671_v14 = vld [vmem:[#allocation28_spill] sm:$0xff] }
 0x277   : > { %16465 = vrot.lane.b32.xlu0 %v20664_v18, %s18317_s26  ;;  %15899 = vmatpush3.bf16.msra.mxu0 %v18861_v44  ;;  %v13795_v44 = vld [vmem:[%s18364_s29 + $0x60] sm:$0xff] }
 0x278   : > { %16450 = vrot.lane.b32.xlu1 %v16449_v19, %s18317_s26 }
 0x27a   : > { %15460 = vmatmul.mubr.f32.vlgmr.msra.gmra.mrb[48].mxu0 %v13792_v23  ;;  %v13799_v23 = vld [vmem:[%s18364_s29 + $0x80] sm:$0xff] }
 0x27b   : > { %16475 = vrot.lane.b32.xlu0 %v20665_v1, %s18317_s26  ;;  %15462 = vmatprep.mubr.f32.mxu0 %v13793_v57  ;;  %v20672_v1 = vld [vmem:[#allocation30_spill] sm:$0xff] }
 0x27c   : > { %16460 = vrot.lane.b32.xlu1 %v20666_v51, %s18317_s26 }
 0x27e   : > { %15463 = vmatmul.mubr.f32.gmra.mrb[50].mxu0 %v13794_v15 }
 0x27f   : > { %16485 = vrot.lane.b32.xlu0 %v20667_v21, %s18317_s26  ;;  %15497 = vmatprep.mubr.f32.mxu0 %v13795_v44 }
 0x280   : > { %16470 = vrot.lane.b32.xlu1 %v20668_v55, %s18317_s26  ;;  %v20674_v55 = vld [vmem:[#allocation34_spill] sm:$0xff] }
 0x284   : > { %16480 = vrot.lane.b32.xlu1 %v20669_v12, %s18317_s26 }
 0x288   : > { %16490 = vrot.lane.b32.xlu1 %v20670_v35, %s18317_s26  ;;  %s20691_s26 = sld [smem:[#allocation16_spill]] }
 0x291   : > { %v16336_v39 = vpop.permute.xlu0 %16335 }
 0x292   : > { %v16338_v26 = vunpack.i.h.bf16 %v16336_v39  ;;  %v16337_v27 = vunpack.i.l.bf16 %v16336_v39  ;;  %v20675_v39 = vld [vmem:[#allocation36_spill] sm:$0xff] }
 0x294   : > { %v15900_v42 = vpack.c.bf16 %v16338_v26, %v16337_v27 }
 0x296   : > { %15901 = vmatprep.subr.bf16.mxu0 %v15900_v42 }
 0x297   : > { %15903 = vmatpush3.bf16.msra.mxu0 %v15900_v42 }
 0x299   : > { %v16341_v53 = vpop.permute.xlu0 %16340 }
 0x29a   : > { %v16343_v19 = vunpack.i.h.bf16 %v16341_v53  ;;  %v16342_v3 = vunpack.i.l.bf16 %v16341_v53 }
 0x29c   : > { %v15904_v7 = vpack.c.bf16 %v16343_v19, %v16342_v3  ;;  %v20676_v3 = vld [vmem:[#allocation38_spill] sm:$0xff] }
 0x29e   : > { %15905 = vmatprep.subr.bf16.mxu0 %v15904_v7 }
 0x29f   : > { %15907 = vmatpush3.bf16.msra.mxu0 %v15904_v7 }
 0x2a1   : > { %v16346_v61 = vpop.permute.xlu1 %16345 }
 0x2a2   : > { %v16348_v9 = vunpack.i.h.bf16 %v16346_v61  ;;  %v16347_v34 = vunpack.i.l.bf16 %v16346_v61 }
 0x2a4   : > { %v15908_v49 = vpack.c.bf16 %v16348_v9, %v16347_v34 }
 0x2a6   : > { %15909 = vmatprep.subr.bf16.mxu0 %v15908_v49 }
 0x2a7   : > { %15911 = vmatpush3.bf16.msra.mxu0 %v15908_v49 }
 0x2a9   : > { %v16351_v47 = vpop.permute.xlu1 %16350 }
 0x2aa   : > { %v16353_v17 = vunpack.i.h.bf16 %v16351_v47  ;;  %v16352_v58 = vunpack.i.l.bf16 %v16351_v47 }
 0x2ac   : > { %v15912_v52 = vpack.c.bf16 %v16353_v17, %v16352_v58 }
 0x2ae   : > { %15913 = vmatprep.subr.bf16.mxu0 %v15912_v52 }
 0x2af   : > { %15915 = vmatpush3.bf16.msra.mxu0 %v15912_v52 }
 0x2b1   : > { %v16356_v56 = vpop.permute.xlu0 %16355 }
 0x2b2   : > { %v16358_v60 = vunpack.i.h.bf16 %v16356_v56  ;;  %v16357_v10 = vunpack.i.l.bf16 %v16356_v56 }
 0x2b4   : > { %v15916_v29 = vpack.c.bf16 %v16358_v60, %v16357_v10 }
 0x2b6   : > { %15917 = vmatprep.subr.bf16.mxu0 %v15916_v29 }
 0x2b7   : > { %15919 = vmatpush3.bf16.msra.mxu0 %v15916_v29  ;;  %v13800_v29 = vld [vmem:[%s18364_s29 + $0x88] sm:$0xff] }
 0x2b9   : > { %v16361_v31 = vpop.permute.xlu1 %16360 }
 0x2ba   : > { %v16363_v36 = vunpack.i.h.bf16 %v16361_v31  ;;  %v16362_v40 = vunpack.i.l.bf16 %v16361_v31  ;;  %v13787_v31 = vld [vmem:[%s18364_s29 + $0x20] sm:$0xff] }
 0x2bb   : > { %15383 = vmatprep.mubr.f32.mxu1 %v13787_v31  ;;  %v13788_v31 = vld [vmem:[%s18364_s29 + $0x28] sm:$0xff] }
 0x2bc   : > { %v15920_v45 = vpack.c.bf16 %v16363_v36, %v16362_v40 }
 0x2be   : > { %15921 = vmatprep.subr.bf16.mxu0 %v15920_v45 }
 0x2bf   : > { %15923 = vmatpush3.bf16.msra.mxu0 %v15920_v45 }
 0x2c1   : > { %v16366_v25 = vpop.permute.xlu0 %16365 }
 0x2c2   : > { %v16368_v48 = vunpack.i.h.bf16 %v16366_v25  ;;  %v16367_v8 = vunpack.i.l.bf16 %v16366_v25 }
 0x2c4   : > { %v15924_v22 = vpack.c.bf16 %v16368_v48, %v16367_v8 }
 0x2c5   : > { %v16376_v30 = vpop.permute.xlu0 %16375 }
 0x2c6   : > { %15925 = vmatprep.subr.bf16.mxu0 %v15924_v22  ;;  %v16378_v7 = vunpack.i.h.bf16 %v16376_v30  ;;  %v16377_v61 = vunpack.i.l.bf16 %v16376_v30 }
 0x2c7   : > { %15927 = vmatpush3.bf16.msra.mxu0 %v15924_v22 }
 0x2c8   : > { %v15964_v49 = vpack.c.bf16 %v16378_v7, %v16377_v61 }
 0x2c9   : > { %v18996_v41 = vpop.permute.xlu0 %16385 }
 0x2ca   : > { %v16371_v63 = vpop.permute.xlu1 %16370  ;;  %v16388_v40 = vunpack.i.h.bf16 %v18996_v41  ;;  %v16387_v45 = vunpack.i.l.bf16 %v18996_v41 }
 0x2cb   : > { %v16373_v2 = vunpack.i.h.bf16 %v16371_v63  ;;  %v16372_v54 = vunpack.i.l.bf16 %v16371_v63  ;;  %v13801_v63 = vld [vmem:[%s18364_s29 + $0x90] sm:$0xff] }
 0x2cd   : > { %v15928_v50 = vpack.c.bf16 %v16373_v2, %v16372_v54  ;;  %v18998_v37 = vpop.permute.xlu0 %16395  ;;  %v13802_v2 = vld [vmem:[%s18364_s29 + $0x98] sm:$0xff]  ;;  %v15972_v54 = vpack.c.bf16 %v16388_v40, %v16387_v45  ;;  %v16517_v40 = vld [vmem:[%s18384_s19] ss:$36 sps:$4 sm:$0xff]   ;;  %v13804_v45 = vld [vmem:[%s18364_s29 + $0xa8] sm:$0xff] }
 0x2ce   : > { %v19000_v38 = vpop.permute.xlu1 %16380 }
 0x2cf   : > { %15929 = vmatprep.subr.bf16.mxu0 %v15928_v50  ;;  %v16383_v47 = vunpack.i.h.bf16 %v19000_v38  ;;  %v16382_v17 = vunpack.i.l.bf16 %v19000_v38 }
 0x2d0   : > { %15931 = vmatpush3.bf16.msra.mxu0 %v15928_v50 }
 0x2d1   : > { %15933 = vmatprep.subr.bf16.mxu0 %v18652_v28  ;;  %v19004_v5 = vpop.permute.xlu0 %16405  ;;  %v15968_v48 = vpack.c.bf16 %v16383_v47, %v16382_v17 }
 0x2d2   : > { %v19007_v59 = vpop.permute.xlu1 %16390 }
 0x2d3   : > { %15498 = vmatmul.mubr.f32.vlgmr.msra.gmra.mrb[48].mxu0 %v13796_v46  ;;  %v16393_v50 = vunpack.i.h.bf16 %v19007_v59  ;;  %v16392_v41 = vunpack.i.l.bf16 %v19007_v59 }
 0x2d4   : > { %15935 = vmatpush3.bf16.msra.mxu0 %v18652_v28  ;;  %15500 = vmatprep.mubr.f32.mxu0 %v13797_v13  ;;  %v20673_v28 = vld [vmem:[#allocation32_spill] sm:$0xff] }
 0x2d5   : > { %15937 = vmatprep.subr.bf16.mxu0 %v20671_v14  ;;  %v19012_v18 = vpop.permute.xlu0 %16415 }
 0x2d6   : > { %v19015_v57 = vpop.permute.xlu1 %16400 }
 0x2d7   : > { %15501 = vmatmul.mubr.f32.gmra.mrb[50].mxu0 %v13798_v32  ;;  %v13803_v32 = vld [vmem:[%s18364_s29 + $0xa0] sm:$0xff] }
 0x2d8   : > { %15939 = vmatpush3.bf16.msra.mxu0 %v20671_v14  ;;  %15535 = vmatprep.mubr.f32.mxu0 %v13799_v23  ;;  %v16398_v23 = vunpack.i.h.bf16 %v18998_v37 }
 0x2d9   : > { %15941 = vmatprep.subr.bf16.mxu0 %v20672_v1  ;;  %v19019_v15 = vpop.permute.xlu0 %16425 }
 0x2da   : > { %v19021_v51 = vpop.permute.xlu1 %16410 }
 0x2dc   : > { %15943 = vmatpush3.bf16.msra.mxu0 %v20672_v1  ;;  %v16397_v1 = vunpack.i.l.bf16 %v18998_v37  ;;  %v16408_v37 = vunpack.i.h.bf16 %v19004_v5 }
 0x2dd   : > { %15945 = vmatprep.subr.bf16.mxu0 %v20673_v28  ;;  %v19025_v44 = vpop.permute.xlu0 %16435 }
 0x2de   : > { %v19027_v21 = vpop.permute.xlu1 %16420 }
 0x2e0   : > { %15947 = vmatpush3.bf16.msra.mxu0 %v20673_v28  ;;  %v15976_v28 = vpack.c.bf16 %v16393_v50, %v16392_v41  ;;  %v20681_v50 = vld [vmem:[#allocation33_spill] sm:$0xff]  ;;  %v20682_v41 = vld [vmem:[#allocation35_spill] sm:$0xff] }
 0x2e1   : > { %15949 = vmatprep.subr.bf16.mxu0 %v20674_v55  ;;  %v19031_v12 = vpop.permute.xlu0 %16445 }
 0x2e2   : > { %v19033_v35 = vpop.permute.xlu1 %16430 }
 0x2e4   : > { %15951 = vmatpush3.bf16.msra.mxu0 %v20674_v55 }
 0x2e5   : > { %15953 = vmatprep.subr.bf16.mxu0 %v20675_v39  ;;  %v16456_v26 = vpop.permute.xlu0 %16455 }
 0x2e6   : > { %v16458_v27 = vunpack.i.h.bf16 %v16456_v26  ;;  %v16457_v42 = vunpack.i.l.bf16 %v16456_v26  ;;  %v19037_v53 = vpop.permute.xlu1 %16440 }
 0x2e8   : > { %v15804_v19 = vpack.c.bf16 %v16458_v27, %v16457_v42  ;;  %15955 = vmatpush3.bf16.msra.mxu0 %v20675_v39  ;;  %v15980_v27 = vpack.c.bf16 %v16398_v23, %v16397_v1  ;;  %v16403_v42 = vunpack.i.h.bf16 %v19015_v57  ;;  %v16423_v23 = vunpack.i.h.bf16 %v19027_v21 }
 0x2e9   : > { %15957 = vmatprep.subr.bf16.mxu0 %v20676_v3  ;;  %v16466_v34 = vpop.permute.xlu0 %16465  ;;  %v16422_v1 = vunpack.i.l.bf16 %v19027_v21  ;;  %v16432_v21 = vunpack.i.l.bf16 %v19033_v35 }
 0x2ea   : > { %v19041_v9 = vpop.permute.xlu1 %16450  ;;  %15805 = vmatprep.subr.bf16.mxu1 %v15804_v19  ;;  %v16468_v52 = vunpack.i.h.bf16 %v16466_v34  ;;  %v16467_v56 = vunpack.i.l.bf16 %v16466_v34 }
 0x2eb   : > { %15807 = vmatpush3.bf16.msra.mxu1 %v15804_v19  ;;  %v16402_v19 = vunpack.i.l.bf16 %v19015_v57 }
 0x2ec   : > { %15959 = vmatpush3.bf16.msra.mxu0 %v20676_v3  ;;  %v15812_v8 = vpack.c.bf16 %v16468_v52, %v16467_v56  ;;  %v16413_v56 = vunpack.i.h.bf16 %v19021_v51 }
 0x2ed   : > { %15961 = vmatprep.subr.bf16.mxu0 %v18853_v33  ;;  %v15984_v47 = vpack.c.bf16 %v16403_v42, %v16402_v19  ;;  %v16433_v19 = vunpack.i.h.bf16 %v19033_v35  ;;  %v16448_v35 = vunpack.i.h.bf16 %v19031_v12 }
 0x2ee   : > { %v16461_v58 = vpop.permute.xlu1 %16460 }
 0x2ef   : > { %v16463_v60 = vunpack.i.h.bf16 %v16461_v58  ;;  %v16462_v10 = vunpack.i.l.bf16 %v16461_v58 }
 0x2f0   : > { %15963 = vmatpush3.bf16.msra.mxu0 %v18853_v33  ;;  %v16476_v33 = vpop.permute.xlu0 %16475 }
 0x2f1   : > { %v15808_v36 = vpack.c.bf16 %v16463_v60, %v16462_v10  ;;  %15965 = vmatprep.subr.bf16.mxu0 %v15964_v49  ;;  %v16478_v38 = vunpack.i.h.bf16 %v16476_v33  ;;  %v16477_v46 = vunpack.i.l.bf16 %v16476_v33  ;;  %v16412_v60 = vunpack.i.l.bf16 %v19021_v51  ;;  %v16522_v51 = vld [vmem:[%s18384_s19 + $0x4c] ss:$36 sps:$4 sm:$0xff]   ;;  %v13807_v33 = vld [vmem:[%s18364_s29 + $0xc0] sm:$0xff] }
 0x2f2   : > { %v16471_v25 = vpop.permute.xlu1 %16470 }
 0x2f3   : > { %v16473_v22 = vunpack.i.h.bf16 %v16471_v25  ;;  %v16472_v30 = vunpack.i.l.bf16 %v16471_v25  ;;  %15809 = vmatprep.subr.bf16.mxu1 %v15808_v36  ;;  %15536 = vmatmul.mubr.f32.vlgmr.msra.gmra.mrb[48].mxu0 %v13800_v29  ;;  %v15820_v55 = vpack.c.bf16 %v16478_v38, %v16477_v46  ;;  %v15992_v29 = vpack.c.bf16 %v16413_v56, %v16412_v60  ;;  %v13790_v25 = vld [vmem:[%s18364_s29 + $0x38] sm:$0xff]  ;;  %v20683_v38 = vld [vmem:[#allocation37_spill] sm:$0xff] }
 0x2f4   : > { %15811 = vmatpush3.bf16.msra.mxu1 %v15808_v36  ;;  %15967 = vmatpush3.bf16.msra.mxu0 %v15964_v49  ;;  %v16486_v59 = vpop.permute.xlu0 %16485  ;;  %v16407_v49 = vunpack.i.l.bf16 %v19004_v5  ;;  %v16519_v5 = vld [vmem:[%s18384_s19 + $0x4] ss:$36 sps:$4 sm:$0xff]   ;;  %v13789_v36 = vld [vmem:[%s18364_s29 + $0x30] sm:$0xff]  ;;  %v20684_v46 = vld [vmem:[#allocation39_spill] sm:$0xff] }
 0x2f5   : > { %15813 = vmatprep.subr.bf16.mxu1 %v15812_v8  ;;  %15969 = vmatprep.subr.bf16.mxu0 %v15968_v48  ;;  %v15816_v13 = vpack.c.bf16 %v16473_v22, %v16472_v30  ;;  %v16488_v3 = vunpack.i.h.bf16 %v16486_v59  ;;  %v16487_v7 = vunpack.i.l.bf16 %v16486_v59  ;;  %v16520_v22 = vld [vmem:[%s18384_s19 + $0x48] ss:$36 sps:$4 sm:$0xff]   ;;  %v13806_v30 = vld [vmem:[%s18364_s29 + $0xb8] sm:$0xff] }
 0x2f6   : > { %15538 = vmatprep.mubr.f32.mxu0 %v13801_v63  ;;  %v16481_v14 = vpop.permute.xlu1 %16480  ;;  %v15988_v57 = vpack.c.bf16 %v16408_v37, %v16407_v49  ;;  %v20678_v63 = vld [vmem:[#allocation29_spill] sm:$0xff]  ;;  %v13810_v59 = vld [vmem:[%s18364_s29 + $0xd8] sm:$0xff]  ;;  %v16447_v37 = vunpack.i.l.bf16 %v19031_v12 }
 0x2f7   : > { %15539 = vmatmul.mubr.f32.gmra.mrb[50].mxu0 %v13802_v2  ;;  %v16483_v39 = vunpack.i.h.bf16 %v16481_v14  ;;  %v16482_v26 = vunpack.i.l.bf16 %v16481_v14  ;;  %v15828_v17 = vpack.c.bf16 %v16488_v3, %v16487_v7  ;;  %v20679_v2 = vmov 0   ;;  %v13813_v12 = vld [vmem:[%s18364_s29 + $0xf0] sm:$0xff] }
 0x2f8   : > { %15815 = vmatpush3.bf16.msra.mxu1 %v15812_v8  ;;  %15971 = vmatpush3.bf16.msra.mxu0 %v15968_v48  ;;  %v20677_v48 = vld [vmem:[#allocation27_spill] sm:$0xff]  ;;  %v13805_v8 = vld [vmem:[%s18364_s29 + $0xb0] sm:$0xff]  ;;  %v16040_v3 = vpack.c.bf16 %v16433_v19, %v16432_v21  ;;  %v16550_v21 = vld [vmem:[%s18384_s19 + $0xe8] ss:$36 sps:$4 sm:$0xff]  }
 0x2f9   : > { %15817 = vmatprep.subr.bf16.mxu1 %v15816_v13  ;;  %15973 = vmatprep.subr.bf16.mxu0 %v15972_v54  ;;  %v15824_v61 = vpack.c.bf16 %v16483_v39, %v16482_v26  ;;  %v16428_v39 = vunpack.i.h.bf16 %v19019_v15  ;;  %v16032_v26 = vpack.c.bf16 %v16423_v23, %v16422_v1  ;;  %v16537_v23 = vld [vmem:[%s18384_s19 + $0x9c] ss:$36 sps:$4 sm:$0xff]   ;;  %v16552_v19 = vld [vmem:[%s18384_s19 + $0xec] ss:$36 sps:$4 sm:$0xff]  }
 0x2fa   : > { %15573 = vmatprep.mubr.f32.mxu0 %v13803_v32  ;;  %v16491_v34 = vpop.permute.xlu1 %16490  ;;  %v16417_v32 = vunpack.i.l.bf16 %v19012_v18  ;;  %v16535_v1 = vld [vmem:[%s18384_s19 + $0x98] ss:$36 sps:$4 sm:$0xff]  }
 0x2fb   : > { %v16493_v58 = vunpack.i.h.bf16 %v16491_v34  ;;  %v16492_v52 = vunpack.i.l.bf16 %v16491_v34  ;;  %v16442_v34 = vunpack.i.l.bf16 %v19037_v53 }
 0x2fc   : > { %15819 = vmatpush3.bf16.msra.mxu1 %v15816_v13  ;;  %15975 = vmatpush3.bf16.msra.mxu0 %v15972_v54  ;;  %v20680_v54 = vld [vmem:[#allocation31_spill] sm:$0xff]  ;;  %v16418_v13 = vunpack.i.h.bf16 %v19012_v18  ;;  %v16427_v18 = vunpack.i.l.bf16 %v19019_v15  ;;  %v16437_v15 = vunpack.i.l.bf16 %v19025_v44 }
 0x2fd   : > { %15821 = vmatprep.subr.bf16.mxu1 %v15820_v55  ;;  %15977 = vmatprep.subr.bf16.mxu0 %v15976_v28  ;;  %v15832_v10 = vpack.c.bf16 %v16493_v58, %v16492_v52  ;;  %v13812_v58 = vld [vmem:[%s18364_s29 + $0xe8] sm:$0xff]  ;;  %v13814_v52 = vld [vmem:[%s18364_s29 + $0xf8] sm:$0xff] }
 0x2fe   : > { %v16028_v14 = vpack.c.bf16 %v16418_v13, %v16417_v32  ;;  %v16036_v42 = vpack.c.bf16 %v16428_v39, %v16427_v18  ;;  %v16532_v32 = vld [vmem:[%s18384_s19 + $0x50] ss:$36 sps:$4 sm:$0xff]  }
 0x2ff   : > { %v16543_v39 = vld [vmem:[%s18384_s19 + $0x14] ss:$36 sps:$4 sm:$0xff]  }
 0x300   : > { %15823 = vmatpush3.bf16.msra.mxu1 %v15820_v55  ;;  %15979 = vmatpush3.bf16.msra.mxu0 %v15976_v28  ;;  %v13808_v28 = vld [vmem:[%s18364_s29 + $0xc8] sm:$0xff]  ;;  %v13809_v55 = vld [vmem:[%s18364_s29 + $0xd0] sm:$0xff] }
 0x301   : > { %15825 = vmatprep.subr.bf16.mxu1 %v15824_v61  ;;  %15981 = vmatprep.subr.bf16.mxu0 %v15980_v27  ;;  %v16541_v18 = vld [vmem:[%s18384_s19 + $0x10] ss:$36 sps:$4 sm:$0xff]  }
 0x304   : > { %15827 = vmatpush3.bf16.msra.mxu1 %v15824_v61  ;;  %15983 = vmatpush3.bf16.msra.mxu0 %v15980_v27  ;;  %v13811_v27 = vld [vmem:[%s18364_s29 + $0xe0] sm:$0xff]  ;;  %v16443_v61 = vunpack.i.h.bf16 %v19037_v53 }
 0x305   : > { %15829 = vmatprep.subr.bf16.mxu1 %v15828_v17  ;;  %15985 = vmatprep.subr.bf16.mxu0 %v15984_v47 }
 0x306   : > { %v16048_v49 = vpack.c.bf16 %v16443_v61, %v16442_v34  ;;  %v16561_v61 = vld [vmem:[%s18384_s19 + $0xac] ss:$36 sps:$4 sm:$0xff]  }
 0x307   : > { %v16559_v34 = vld [vmem:[%s18384_s19 + $0xa8] ss:$36 sps:$4 sm:$0xff]  }
 0x308   : > { %15831 = vmatpush3.bf16.msra.mxu1 %v15828_v17  ;;  %15987 = vmatpush3.bf16.msra.mxu0 %v15984_v47  ;;  %v16453_v47 = vunpack.i.h.bf16 %v19041_v9  ;;  %v16452_v17 = vunpack.i.l.bf16 %v19041_v9  ;;  %v16531_v9 = vld [vmem:[%s18384_s19 + $0xc] ss:$36 sps:$4 sm:$0xff]  }
 0x309   : > { %15833 = vmatprep.subr.bf16.mxu1 %v15832_v10  ;;  %15989 = vmatprep.subr.bf16.mxu0 %v15988_v57 }
 0x30a   : > { %v16056_v53 = vpack.c.bf16 %v16453_v47, %v16452_v17  ;;  %v16567_v47 = vld [vmem:[%s18384_s19 + $0xb0] ss:$36 sps:$4 sm:$0xff]   ;;  %v16568_v17 = vld [vmem:[%s18384_s19 + $0xf8] ss:$36 sps:$4 sm:$0xff]  }
 0x30c   : > { %15835 = vmatpush3.bf16.msra.mxu1 %v15832_v10  ;;  %15991 = vmatpush3.bf16.msra.mxu0 %v15988_v57  ;;  %v13815_v57 = vld [vmem:[%s18364_s29 + $0x100] sm:$0xff] }
 0x30d   : > { %15993 = vmatprep.subr.bf16.mxu0 %v15992_v29  ;;  %3019 = vmatprep.subr.bf16.mxu1 %v16519_v5 }
 0x30f   : > { %15384 = vmatmul.mubr.f32.vlgmr.msra.gmra.mrb[48].mxu1 %v13788_v31 }
 0x310   : > { %15995 = vmatpush3.bf16.msra.mxu0 %v15992_v29  ;;  %15386 = vmatprep.mubr.f32.mxu1 %v13789_v36  ;;  %v13819_v29 = vld [vmem:[%s18374_s8] ss:$0 sm:$0xff] }
 0x311   : > { %15997 = vmatprep.subr.bf16.mxu0 %v20677_v48  ;;  %3020 = vmatpush1.bf16.msra.mxu1 %v16517_v40 }
 0x312   : > { %3021 = vmatprep.subr.bf16.mxu1 %v16522_v51 }
 0x313   : > { %15574 = vmatmul.mubr.f32.vlgmr.msra.gmra.mrb[48].mxu0 %v13804_v45  ;;  %15387 = vmatmul.mubr.f32.gmra.mrb[50].mxu1 %v13790_v25 }
 0x314   : > { %15999 = vmatpush3.bf16.msra.mxu0 %v20677_v48  ;;  %15576 = vmatprep.mubr.f32.mxu0 %v13805_v8 }
 0x315   : > { %16001 = vmatprep.subr.bf16.mxu0 %v20678_v63  ;;  %3022 = vmatpush1.bf16.msra.mxu1 %v16520_v22 }
 0x316   : > { %3051 = vmatprep.mubr.bf16.mxu1 %v20679_v2 }
 0x317   : > { %15577 = vmatmul.mubr.f32.gmra.mrb[50].mxu0 %v13806_v30 }
 0x318   : > { %16003 = vmatpush3.bf16.msra.mxu0 %v20678_v63  ;;  %15611 = vmatprep.mubr.f32.mxu0 %v13807_v33 }
 0x319   : > { %16005 = vmatprep.subr.bf16.mxu0 %v20680_v54 }
 0x31c   : > { %16007 = vmatpush3.bf16.msra.mxu0 %v20680_v54  ;;  %v16529_v54 = vld [vmem:[%s18384_s19 + $0x8] ss:$36 sps:$4 sm:$0xff]  }
 0x31d   : > { %16009 = vmatprep.subr.bf16.mxu0 %v20681_v50 }
 0x320   : > { %16011 = vmatpush3.bf16.msra.mxu0 %v20681_v50 }
 0x321   : > { %16013 = vmatprep.subr.bf16.mxu0 %v20682_v41 }
 0x324   : > { %16015 = vmatpush3.bf16.msra.mxu0 %v20682_v41 }
 0x325   : > { %16017 = vmatprep.subr.bf16.mxu0 %v20683_v38 }
 0x328   : > { %16019 = vmatpush3.bf16.msra.mxu0 %v20683_v38  ;;  %v16534_v38 = vld [vmem:[%s18384_s19 + $0x54] ss:$36 sps:$4 sm:$0xff]  }
 0x329   : > { %16021 = vmatprep.subr.bf16.mxu0 %v20684_v46 }
 0x32c   : > { %16023 = vmatpush3.bf16.msra.mxu0 %v20684_v46 }
 0x32d   : > { %16025 = vmatprep.subr.bf16.mxu0 %v18867_v24 }
 0x330   : > { %16027 = vmatpush3.bf16.msra.mxu0 %v18867_v24  ;;  %v16438_v24 = vunpack.i.h.bf16 %v19025_v44  ;;  %v16052_v44 = vpack.c.bf16 %v16448_v35, %v16447_v37  ;;  %v16564_v35 = vld [vmem:[%s18384_s19 + $0xf4] ss:$36 sps:$4 sm:$0xff]  }
 0x331   : > { %16029 = vmatprep.subr.bf16.mxu0 %v16028_v14  ;;  %v16562_v37 = vld [vmem:[%s18384_s19 + $0xf0] ss:$36 sps:$4 sm:$0xff]  }
 0x332   : > { %v16044_v7 = vpack.c.bf16 %v16438_v24, %v16437_v15  ;;  %v16555_v24 = vld [vmem:[%s18384_s19 + $0x1c] ss:$36 sps:$4 sm:$0xff]  }
 0x333   : > { %15612 = vmatmul.mubr.f32.vlgmr.msra.gmra.mrb[48].mxu0 %v13808_v28  ;;  %v16540_v28 = vld [vmem:[%s18384_s19 + $0xe4] ss:$36 sps:$4 sm:$0xff]   ;;  %v16553_v15 = vld [vmem:[%s18384_s19 + $0x18] ss:$36 sps:$4 sm:$0xff]  }
 0x334   : > { %16031 = vmatpush3.bf16.msra.mxu0 %v16028_v14  ;;  %15614 = vmatprep.mubr.f32.mxu0 %v13809_v55  ;;  %v16538_v55 = vld [vmem:[%s18384_s19 + $0xe0] ss:$36 sps:$4 sm:$0xff]  }
 0x335   : > { %16033 = vmatprep.subr.bf16.mxu0 %v16032_v26 }
 0x337   : > { %15615 = vmatmul.mubr.f32.gmra.mrb[50].mxu0 %v13810_v59  ;;  %v16544_v59 = vld [vmem:[%s18384_s19 + $0x58] ss:$36 sps:$4 sm:$0xff]  }
 0x338   : > { %16035 = vmatpush3.bf16.msra.mxu0 %v16032_v26  ;;  %15649 = vmatprep.mubr.f32.mxu0 %v13811_v27  ;;  %v16546_v26 = vld [vmem:[%s18384_s19 + $0x5c] ss:$36 sps:$4 sm:$0xff]   ;;  %v16549_v27 = vld [vmem:[%s18384_s19 + $0xa4] ss:$36 sps:$4 sm:$0xff]  }
 0x339   : > { %16037 = vmatprep.subr.bf16.mxu0 %v16036_v42 }
 0x33c   : > { %16039 = vmatpush3.bf16.msra.mxu0 %v16036_v42  ;;  %v16547_v42 = vld [vmem:[%s18384_s19 + $0xa0] ss:$36 sps:$4 sm:$0xff]  }
 0x33d   : > { %16041 = vmatprep.subr.bf16.mxu0 %v16040_v3 }
 0x340   : > { %16043 = vmatpush3.bf16.msra.mxu0 %v16040_v3  ;;  %v16558_v3 = vld [vmem:[%s18384_s19 + $0x64] ss:$36 sps:$4 sm:$0xff]  }
 0x341   : > { %16045 = vmatprep.subr.bf16.mxu0 %v16044_v7 }
 0x344   : > { %16047 = vmatpush3.bf16.msra.mxu0 %v16044_v7  ;;  %v16556_v7 = vld [vmem:[%s18384_s19 + $0x60] ss:$36 sps:$4 sm:$0xff]  }
 0x345   : > { %16049 = vmatprep.subr.bf16.mxu0 %v16048_v49 }
 0x348   : > { %16051 = vmatpush3.bf16.msra.mxu0 %v16048_v49  ;;  %v16565_v49 = vld [vmem:[%s18384_s19 + $0x20] ss:$36 sps:$4 sm:$0xff]  }
 0x349   : > { %16053 = vmatprep.subr.bf16.mxu0 %v16052_v44 }
 0x34c   : > { %16055 = vmatpush3.bf16.msra.mxu0 %v16052_v44  ;;  %v16566_v44 = vld [vmem:[%s18384_s19 + $0x68] ss:$36 sps:$4 sm:$0xff]  }
 0x34d   : > { %16057 = vmatprep.subr.bf16.mxu0 %v16056_v53 }
 0x350   : > { %16059 = vmatpush3.bf16.msra.mxu0 %v16056_v53  ;;  %v18318_v53 = vmov 0.0|0.0  }
 0x351   : > { %16061 = vmatprep.subr.bf16.mxu0 %v18890_v43 }
 0x353   : > { %15650 = vmatmul.mubr.f32.vlgmr.msra.gmra.mrb[48].mxu0 %v13812_v58  ;;  %v18319_v58 = vmov 0.0  }
 0x354   : > { %16063 = vmatpush3.bf16.msra.mxu0 %v18890_v43  ;;  %15652 = vmatprep.mubr.f32.mxu0 %v13813_v12  ;;  %v13817_v43 = vld [vmem:[%s18364_s29 + $0x110] sm:$0xff]  ;;  %1041 = vst [vmem:[#allocation2] sm:$0xff] %v18319_v58  ;;  %1042 = vst [vmem:[#allocation3] sm:$0xff] %v18319_v58 }
 0x355   : > { %16065 = vmatprep.subr.bf16.mxu0 %v18887_v20 }
 0x357   : > { %15653 = vmatmul.mubr.f32.gmra.mrb[50].mxu0 %v13814_v52 }
 0x358   : > { %16067 = vmatpush3.bf16.msra.mxu0 %v18887_v20  ;;  %15687 = vmatprep.mubr.f32.mxu0 %v13815_v57  ;;  %v13816_v20 = vld [vmem:[%s18364_s29 + $0x108] sm:$0xff] }
 0x359   : > { %16069 = vmatprep.subr.bf16.mxu0 %v18912_v11 }
 0x35c   : > { %16071 = vmatpush3.bf16.msra.mxu0 %v18912_v11  ;;  %v16525_v11 = vld [vmem:[%s18384_s19 + $0x94] ss:$36 sps:$4 sm:$0xff]  }
 0x35d   : > { %16073 = vmatprep.subr.bf16.mxu0 %v18909_v4  ;;  %3023 = vmatprep.subr.bf16.mxu1 %v16525_v11 }
 0x360   : > { %16075 = vmatpush3.bf16.msra.mxu0 %v18909_v4  ;;  %v13818_v4 = vld [vmem:[%s18364_s29 + $0x118] sm:$0xff] }
 0x361   : > { %16077 = vmatprep.subr.bf16.mxu0 %v18933_v16 }
 0x364   : > { %16079 = vmatpush3.bf16.msra.mxu0 %v18933_v16  ;;  %v16528_v16 = vld [vmem:[%s18384_s19 + $0xdc] ss:$36 sps:$4 sm:$0xff]  }
 0x365   : > { %16081 = vmatprep.subr.bf16.mxu0 %v18930_v62 }
 0x368   : > { %16083 = vmatpush3.bf16.msra.mxu0 %v18930_v62  ;;  %v16523_v62 = vld [vmem:[%s18384_s19 + $0x90] ss:$36 sps:$4 sm:$0xff]  }
 0x369   : > { %16085 = vmatprep.subr.bf16.mxu0 %v18957_v0  ;;  %3024 = vmatpush1.bf16.msra.mxu1 %v16523_v62 }
 0x36a   : > { %3025 = vmatprep.subr.bf16.mxu1 %v16528_v16 }
 0x36c   : > { %16087 = vmatpush3.bf16.msra.mxu0 %v18957_v0  ;;  %v16526_v0 = vld [vmem:[%s18384_s19 + $0xd8] ss:$36 sps:$4 sm:$0xff]  }
 0x36d   : > { %16089 = vmatprep.subr.bf16.mxu0 %v18954_v6  ;;  %3026 = vmatpush1.bf16.msra.mxu1 %v16526_v0 }
 0x36e   : > { %3072 = vmatprep.subr.bf16.mxu1 %v16531_v9 }
 0x370   : > { %16091 = vmatpush3.bf16.msra.mxu0 %v18954_v6 }
 0x373   : > { %15688 = vmatmul.mubr.f32.vlgmr.msra.gmra.mrb[48].mxu0 %v13816_v20 }
 0x374   : > { %15690 = vmatprep.mubr.f32.mxu0 %v13817_v43 }
 0x377   : > { %15691 = vmatmul.mubr.f32.gmra.mrb[50].mxu0 %v13818_v4 }
 0x378   : > { %5031 = vmatprep.mubr.bf16.mxu0 %v20679_v2 }
 0x3e2   : > { %v15385_v6 = vpop.f32.mrb[48].mxu1 }
 0x3e3   : > { %v1817_v56 = vpop.f32.mrb[49].mxu1 }
 0x3e6   : > { %v15388_v60 = vpop.f32.mrb[50].mxu1 }
 0x3e7   : > { %v1827_v10 = vpop.f32.mrb[51].mxu1 }
 0x446   : > { %v15689_v5 = vpop.f32.mrb[48].mxu0 }
 0x447   : > { %v16146_v31 = vadd.f32 %v15689_v5, %v15385_v6  ;;  %v2748_v36 = vpop.f32.mrb[49].mxu0 }
 0x448   : > { %v16147_v40 = vadd.f32 %v2748_v36, %v1817_v56  ;;  %v13866_v56 = vld [vmem:[%s18379_s14 + $0x8] sm:$0xff] }
 0x449   : > { %v2779_v51 = vadd.f32 %v16146_v31, %v13819_v29 }
 0x44a   : > { %v2778_v45 = vadd.f32 %v16147_v40, %v13819_v29  ;;  %v15692_v25 = vpop.f32.mrb[50].mxu0  ;;  %v3280_v40 = vld [vmem:[%s18379_s14] sm:$0xff] }
 0x44b   : > { %v2783_v48 = vmax.f32 %v2779_v51, 0.0  ;;  %v16148_v8 = vadd.f32 %v15692_v25, %v15388_v60  ;;  %v2758_v22 = vpop.f32.mrb[51].mxu0 }
 0x44c   : > { %v2782_v30 = vmax.f32 %v2778_v45, 0.0  ;;  %v16149_v63 = vadd.f32 %v2758_v22, %v1827_v10 }
 0x44d   : > { %v2781_v33 = vadd.f32 %v16148_v8, %v13819_v29 }
 0x44e   : > { %v19144_v50 = vpack.c.bf16 %v2783_v48, %v2782_v30  ;;  %v2780_v41 = vadd.f32 %v16149_v63, %v13819_v29  ;;  %v13869_v30 = vld [vmem:[%s18379_s14 + $0x10] sm:$0xff] }
 0x44f   : > { %v2785_v46 = vmax.f32 %v2781_v33, 0.0 }
 0x450   : > { %v2784_v13 = vmax.f32 %v2780_v41, 0.0  ;;  %13856 = vmatmul.mubr.msk.bf16.vlgmr.msra.gmra.mrb[52].mxu1 %vm3012_vm4, %v19144_v50 }
 0x451   : > { %3073 = vmatpush1.bf16.msra.mxu1 %v16529_v54  ;;  %3061 = vmatprep.mubr.bf16.mxu1 %v20679_v2 }
 0x452   : > { %v19151_v14 = vpack.c.bf16 %v2785_v46, %v2784_v13  ;;  %3074 = vmatprep.subr.bf16.mxu1 %v16534_v38  ;;  %v13871_v46 = vld [vmem:[%s18379_s14 + $0x18] sm:$0xff] }
 0x455   : > { %3075 = vmatpush1.bf16.msra.mxu1 %v16532_v32 }
 0x456   : > { %3076 = vmatprep.subr.bf16.mxu1 %v16537_v23 }
 0x458   : > { %13857 = vmatmul.mubr.msk.bf16.gmra.mrb[56].mxu1 %vm3012_vm4, %v19151_v14 }
 0x459   : > { %3077 = vmatpush1.bf16.msra.mxu1 %v16535_v1  ;;  %3104 = vmatprep.mubr.bf16.mxu1 %v20679_v2 }
 0x45a   : > { %3078 = vmatprep.subr.bf16.mxu1 %v16540_v28 }
 0x45d   : > { %3079 = vmatpush1.bf16.msra.mxu1 %v16538_v55  ;;  %v13873_v55 = vld [vmem:[%s18379_s14 + $0x20] sm:$0xff] }
 0x45e   : > { %3125 = vmatprep.subr.bf16.mxu1 %v16543_v39 }
 0x460   : > { %13858 = vmatmul.mubr.msk.bf16.vlgmr.msra.gmra.mrb[60].mxu1 %vm3012_vm4, %v19144_v50 }
 0x461   : > { %3126 = vmatpush1.bf16.msra.mxu1 %v16541_v18  ;;  %3114 = vmatprep.mubr.bf16.mxu1 %v20679_v2 }
 0x462   : > { %3127 = vmatprep.subr.bf16.mxu1 %v16546_v26 }
 0x465   : > { %3128 = vmatpush1.bf16.msra.mxu1 %v16544_v59 }
 0x466   : > { %3129 = vmatprep.subr.bf16.mxu1 %v16549_v27 }
 0x468   : > { %13859 = vmatmul.mubr.msk.bf16.gmra.mrb[64].mxu1 %vm3012_vm4, %v19151_v14 }
 0x469   : > { %3130 = vmatpush1.bf16.msra.mxu1 %v16547_v42  ;;  %3157 = vmatprep.mubr.bf16.mxu1 %v20679_v2 }
 0x46a   : > { %3131 = vmatprep.subr.bf16.mxu1 %v16552_v19  ;;  %v13875_v19 = vld [vmem:[%s18379_s14 + $0x28] sm:$0xff] }
 0x46d   : > { %3132 = vmatpush1.bf16.msra.mxu1 %v16550_v21 }
 0x46e   : > { %3178 = vmatprep.subr.bf16.mxu1 %v16555_v24 }
 0x470   : > { %13860 = vmatmul.mubr.msk.bf16.vlgmr.msra.gmra.mrb[68].mxu1 %vm3012_vm4, %v19144_v50 }
 0x471   : > { %3179 = vmatpush1.bf16.msra.mxu1 %v16553_v15  ;;  %3167 = vmatprep.mubr.bf16.mxu1 %v20679_v2 }
 0x472   : > { %3180 = vmatprep.subr.bf16.mxu1 %v16558_v3 }
 0x475   : > { %3181 = vmatpush1.bf16.msra.mxu1 %v16556_v7 }
 0x476   : > { %3182 = vmatprep.subr.bf16.mxu1 %v16561_v61 }
 0x478   : > { %13861 = vmatmul.mubr.msk.bf16.gmra.mrb[72].mxu1 %vm3012_vm4, %v19151_v14 }
 0x479   : > { %3183 = vmatpush1.bf16.msra.mxu1 %v16559_v34  ;;  %3210 = vmatprep.mubr.bf16.mxu1 %v20679_v2  ;;  %v13877_v34 = vld [vmem:[%s18379_s14 + $0x30] sm:$0xff] }
 0x47a   : > { %3184 = vmatprep.subr.bf16.mxu1 %v16564_v35 }
 0x47d   : > { %3185 = vmatpush1.bf16.msra.mxu1 %v16562_v37 }
 0x47e   : > { %15693 = vmatprep.subr.bf16.mxu1 %v16565_v49 }
 0x480   : > { %13862 = vmatmul.mubr.msk.bf16.vlgmr.msra.gmra.mrb[76].mxu1 %vm3012_vm4, %v19144_v50 }
 0x481   : > { %15694 = vmatpush3.bf16.msra.mxu1 %v16565_v49  ;;  %3220 = vmatprep.mubr.bf16.mxu1 %v20679_v2 }
 0x482   : > { %15695 = vmatprep.subr.bf16.mxu1 %v16566_v44 }
 0x485   : > { %15696 = vmatpush3.bf16.msra.mxu1 %v16566_v44 }
 0x486   : > { %15697 = vmatprep.subr.bf16.mxu1 %v16567_v47 }
 0x488   : > { %13863 = vmatmul.mubr.msk.bf16.gmra.mrb[80].mxu1 %vm3012_vm4, %v19151_v14 }
 0x489   : > { %15698 = vmatpush3.bf16.msra.mxu1 %v16567_v47  ;;  %15701 = vmatprep.mubr.msk.bf16.mxu1 %vm3012_vm4, %v19144_v50 }
 0x48a   : > { %15699 = vmatprep.subr.bf16.mxu1 %v16568_v17 }
 0x48d   : > { %15700 = vmatpush3.bf16.msra.mxu1 %v16568_v17 }
 0x48e   : > { %16092 = vmatprep.subr.bf16.mxu1 %v18318_v53 }
 0x490   : > { %15702 = vmatmul.mubr.msk.bf16.vlgmr.msra.gmra.mrb[84].mxu1 %vm3012_vm4, %v19151_v14 }
 0x491   : > { %15713 = vmatprep.mubr.msk.f32.mxu1 %vm18320_vm5, %v18319_v58 }
 0x523   : > { %v3053_v12 = vpop.f32.mrb[52].mxu1 }
 0x524   : > { %v3055_v52 = vpop.f32.mrb[53].mxu1 }
 0x525   : > { %v3057_v57 = vpop.f32.mrb[54].mxu1 }
 0x526   : > { %v16099_v20 = vpack.c.bf16 %v3057_v57, %v3053_v12  ;;  %v3059_v43 = vpop.f32.mrb[55].mxu1  ;;  %v13879_v12 = vld [vmem:[%s18379_s14 + $0x38] sm:$0xff]  ;;  %v16571_v57 = vld [vmem:[%s18399_s6 + $0x4] ss:$72 sps:$4 sm:$0xff]  }
 0x527   : > { %v16093_v4 = vpack.c.bf16 %v3059_v43, %v3055_v52  ;;  %v13881_v52 = vld [vmem:[%s18379_s14 + $0x40] sm:$0xff] }
 0x528   : > { %v16569_v43 = vld [vmem:[%s18399_s6] ss:$72 sps:$4 sm:$0xff]  }
 0x529   : > { %16094 = vmatpush3.bf16.msra.mxu1 %v16093_v4  ;;  %v16572_v4 = vld [vmem:[%s18399_s6 + $0x20] ss:$72 sps:$4 sm:$0xff]  }
 0x52a   : > { %16095 = vmatprep.subr.bf16.mxu1 %v18318_v53 }
 0x52b   : > { %v3063_v11 = vpop.f32.mrb[56].mxu1 }
 0x52c   : > { %v3065_v62 = vpop.f32.mrb[57].mxu1 }
 0x52d   : > { %v3067_v16 = vpop.f32.mrb[58].mxu1 }
 0x52e   : > { %v16102_v0 = vpack.c.bf16 %v3067_v16, %v3063_v11  ;;  %v3069_v9 = vpop.f32.mrb[59].mxu1  ;;  %v16577_v11 = vld [vmem:[%s18399_s6 + $0x94] ss:$72 sps:$4 sm:$0xff]  }
 0x52f   : > { %v16096_v6 = vpack.c.bf16 %v3069_v9, %v3065_v62  ;;  %v16578_v62 = vld [vmem:[%s18399_s6 + $0xb0] ss:$72 sps:$4 sm:$0xff]   ;;  %v16580_v16 = vld [vmem:[%s18399_s6 + $0xb4] ss:$72 sps:$4 sm:$0xff]   ;;  %v16586_v9 = vld [vmem:[%s18399_s6 + $0x144] ss:$72 sps:$4 sm:$0xff]  }
 0x531   : > { %16097 = vmatpush3.bf16.msra.mxu1 %v16096_v6  ;;  %v16581_v6 = vld [vmem:[%s18399_s6 + $0x120] ss:$72 sps:$4 sm:$0xff]  }
 0x532   : > { %16098 = vmatprep.subr.bf16.mxu1 %v18318_v53 }
 0x533   : > { %v3106_v60 = vpop.f32.mrb[60].mxu1 }
 0x534   : > { %v3108_v10 = vpop.f32.mrb[61].mxu1  ;;  %15714 = vmatmul.mubr.msk.f32.vlgmr.msra.gmra.mrb[88].mxu1 %vm1330_vm3, %v13866_v56  ;;  %v16584_v56 = vld [vmem:[%s18399_s6 + $0x140] ss:$72 sps:$4 sm:$0xff]  }
 0x535   : > { %v3110_v5 = vpop.f32.mrb[62].mxu1  ;;  %16100 = vmatpush3.bf16.msra.mxu1 %v16099_v20  ;;  %15724 = vmatprep.mubr.msk.f32.mxu1 %vm18320_vm5, %v18319_v58  ;;  %v16574_v20 = vld [vmem:[%s18399_s6 + $0x24] ss:$72 sps:$4 sm:$0xff]  }
 0x536   : > { %v16105_v29 = vpack.c.bf16 %v3110_v5, %v3106_v60  ;;  %v3112_v31 = vpop.f32.mrb[63].mxu1  ;;  %16101 = vmatprep.subr.bf16.mxu1 %v18318_v53  ;;  %4999 = vmatprep.subr.bf16.mxu0 %v16574_v20  ;;  %v16587_v60 = vld [vmem:[%s18399_s6 + $0x1b0] ss:$72 sps:$4 sm:$0xff]  }
 0x537   : > { %v16111_v36 = vpack.c.bf16 %v3112_v31, %v3108_v10  ;;  %5000 = vmatpush1.bf16.msra.mxu0 %v16572_v4  ;;  %v16589_v10 = vld [vmem:[%s18399_s6 + $0x1b4] ss:$72 sps:$4 sm:$0xff]   ;;  %v16590_v5 = vld [vmem:[%s18399_s6 + $0x1d0] ss:$72 sps:$4 sm:$0xff]   ;;  %v16595_v31 = vld [vmem:[%s18399_s6 + $0x244] ss:$72 sps:$4 sm:$0xff]  }
 0x538   : > { %5001 = vmatprep.subr.bf16.mxu0 %v16580_v16  ;;  %v16617_v20 = vld [vmem:[%s18399_s6 + $0x8] ss:$72 sps:$4 sm:$0xff]  }
 0x539   : > { %16103 = vmatpush3.bf16.msra.mxu1 %v16102_v0  ;;  %v16583_v0 = vld [vmem:[%s18399_s6 + $0x124] ss:$72 sps:$4 sm:$0xff]   ;;  %v16626_v16 = vld [vmem:[%s18399_s6 + $0xc0] ss:$72 sps:$4 sm:$0xff]  }
 0x53a   : > { %16104 = vmatprep.subr.bf16.mxu1 %v18318_v53 }
 0x53b   : > { %v3116_v51 = vpop.f32.mrb[64].mxu1  ;;  %5002 = vmatpush1.bf16.msra.mxu0 %v16578_v62  ;;  %v16623_v62 = vld [vmem:[%s18399_s6 + $0x98] ss:$72 sps:$4 sm:$0xff]  }
 0x53c   : > { %v3118_v45 = vpop.f32.mrb[65].mxu1  ;;  %15725 = vmatmul.mubr.msk.f32.vlgmr.msra.gmra.mrb[90].mxu1 %vm1330_vm3, %v3280_v40  ;;  %5003 = vmatprep.subr.bf16.mxu0 %v16586_v9  ;;  %v16593_v40 = vld [vmem:[%s18399_s6 + $0x240] ss:$72 sps:$4 sm:$0xff]   ;;  %v16634_v9 = vld [vmem:[%s18399_s6 + $0x154] ss:$72 sps:$4 sm:$0xff]  }
 0x53d   : > { %v3120_v25 = vpop.f32.mrb[66].mxu1  ;;  %16106 = vmatpush3.bf16.msra.mxu1 %v16105_v29  ;;  %15735 = vmatprep.mubr.msk.f32.mxu1 %vm18320_vm5, %v18319_v58  ;;  %v16592_v29 = vld [vmem:[%s18399_s6 + $0x1d4] ss:$72 sps:$4 sm:$0xff]  }
 0x53e   : > { %v16108_v48 = vpack.c.bf16 %v3120_v25, %v3116_v51  ;;  %v3122_v8 = vpop.f32.mrb[67].mxu1  ;;  %16107 = vmatprep.subr.bf16.mxu1 %v18318_v53  ;;  %v16596_v51 = vld [vmem:[%s18399_s6 + $0x260] ss:$72 sps:$4 sm:$0xff]   ;;  %v16601_v25 = vld [vmem:[%s18399_s6 + $0x2d4] ss:$72 sps:$4 sm:$0xff]  }
 0x53f   : > { %v16114_v22 = vpack.c.bf16 %v3122_v8, %v3118_v45  ;;  %5004 = vmatpush1.bf16.msra.mxu0 %v16584_v56  ;;  %v16599_v45 = vld [vmem:[%s18399_s6 + $0x2d0] ss:$72 sps:$4 sm:$0xff]   ;;  %v16604_v8 = vld [vmem:[%s18399_s6 + $0x2f4] ss:$72 sps:$4 sm:$0xff]  }
 0x540   : > { %5005 = vmatprep.subr.bf16.mxu0 %v16592_v29  ;;  %v16632_v56 = vld [vmem:[%s18399_s6 + $0x150] ss:$72 sps:$4 sm:$0xff]   ;;  %v16638_v29 = vld [vmem:[%s18399_s6 + $0x1e0] ss:$72 sps:$4 sm:$0xff]  }
 0x541   : > { %16109 = vmatpush3.bf16.msra.mxu1 %v16108_v48  ;;  %v16602_v48 = vld [vmem:[%s18399_s6 + $0x2f0] ss:$72 sps:$4 sm:$0xff]  }
 0x542   : > { %16110 = vmatprep.subr.bf16.mxu1 %v18318_v53 }
 0x543   : > { %v3159_v63 = vpop.f32.mrb[68].mxu1  ;;  %5006 = vmatpush1.bf16.msra.mxu0 %v16590_v5  ;;  %v16635_v5 = vld [vmem:[%s18399_s6 + $0x1b8] ss:$72 sps:$4 sm:$0xff]  }
 0x544   : > { %v3161_v33 = vpop.f32.mrb[69].mxu1  ;;  %15736 = vmatmul.mubr.msk.f32.vlgmr.msra.gmra.mrb[92].mxu1 %vm1330_vm3, %v13869_v30  ;;  %v16610_v30 = vld [vmem:[%s18399_s6 + $0x384] ss:$72 sps:$4 sm:$0xff]  }
 0x545   : > { %v3163_v54 = vpop.f32.mrb[70].mxu1  ;;  %16112 = vmatpush3.bf16.msra.mxu1 %v16111_v36  ;;  %15746 = vmatprep.mubr.msk.f32.mxu1 %vm18320_vm5, %v18319_v58  ;;  %v16598_v36 = vld [vmem:[%s18399_s6 + $0x264] ss:$72 sps:$4 sm:$0xff]  }
 0x546   : > { %v16117_v50 = vpack.c.bf16 %v3163_v54, %v3159_v63  ;;  %v3165_v41 = vpop.f32.mrb[71].mxu1  ;;  %16113 = vmatprep.subr.bf16.mxu1 %v18318_v53  ;;  %5007 = vmatprep.subr.bf16.mxu0 %v16598_v36  ;;  %v16605_v63 = vld [vmem:[%s18399_s6 + $0x360] ss:$72 sps:$4 sm:$0xff]   ;;  %v16613_v54 = vld [vmem:[%s18399_s6 + $0x3f4] ss:$72 sps:$4 sm:$0xff]  }
 0x547   : > { %v16123_v38 = vpack.c.bf16 %v3165_v41, %v3161_v33  ;;  %5008 = vmatpush1.bf16.msra.mxu0 %v16596_v51  ;;  %v16608_v33 = vld [vmem:[%s18399_s6 + $0x380] ss:$72 sps:$4 sm:$0xff]   ;;  %v16611_v41 = vld [vmem:[%s18399_s6 + $0x3f0] ss:$72 sps:$4 sm:$0xff]   ;;  %v16646_v36 = vld [vmem:[%s18399_s6 + $0x274] ss:$72 sps:$4 sm:$0xff]  }
 0x548   : > { %5009 = vmatprep.subr.bf16.mxu0 %v16604_v8  ;;  %v16644_v51 = vld [vmem:[%s18399_s6 + $0x270] ss:$72 sps:$4 sm:$0xff]   ;;  %v16650_v8 = vld [vmem:[%s18399_s6 + $0x300] ss:$72 sps:$4 sm:$0xff]  }
 0x549   : > { %16115 = vmatpush3.bf16.msra.mxu1 %v16114_v22  ;;  %v16607_v22 = vld [vmem:[%s18399_s6 + $0x364] ss:$72 sps:$4 sm:$0xff]  }
 0x54a   : > { %16116 = vmatprep.subr.bf16.mxu1 %v18318_v53 }
 0x54b   : > { %v3169_v13 = vpop.f32.mrb[72].mxu1  ;;  %5010 = vmatpush1.bf16.msra.mxu0 %v16602_v48  ;;  %v16647_v48 = vld [vmem:[%s18399_s6 + $0x2d8] ss:$72 sps:$4 sm:$0xff]  }
 0x54c   : > { %v3171_v32 = vpop.f32.mrb[73].mxu1  ;;  %15747 = vmatmul.mubr.msk.f32.vlgmr.msra.gmra.mrb[94].mxu1 %vm1330_vm3, %v13871_v46  ;;  %5011 = vmatprep.subr.bf16.mxu0 %v16610_v30  ;;  %v16619_v46 = vld [vmem:[%s18399_s6 + $0xc] ss:$72 sps:$4 sm:$0xff]  }
 0x54d   : > { %v3173_v14 = vpop.f32.mrb[74].mxu1  ;;  %16118 = vmatpush3.bf16.msra.mxu1 %v16117_v50  ;;  %15757 = vmatprep.mubr.msk.f32.mxu1 %vm18320_vm5, %v18319_v58  ;;  %v16616_v50 = vld [vmem:[%s18399_s6 + $0x414] ss:$72 sps:$4 sm:$0xff]  }
 0x54e   : > { %v16120_v23 = vpack.c.bf16 %v3173_v14, %v3169_v13  ;;  %v3175_v1 = vpop.f32.mrb[75].mxu1  ;;  %16119 = vmatprep.subr.bf16.mxu1 %v18318_v53  ;;  %v16622_v13 = vld [vmem:[%s18399_s6 + $0x34] ss:$72 sps:$4 sm:$0xff]  }
 0x54f   : > { %v16126_v28 = vpack.c.bf16 %v3175_v1, %v3171_v32  ;;  %5012 = vmatpush1.bf16.msra.mxu0 %v16608_v33  ;;  %v16658_v30 = vld [vmem:[%s18399_s6 + $0x394] ss:$72 sps:$4 sm:$0xff]   ;;  %v16656_v33 = vld [vmem:[%s18399_s6 + $0x390] ss:$72 sps:$4 sm:$0xff]  }
 0x550   : > { %5013 = vmatprep.subr.bf16.mxu0 %v16616_v50  ;;  %v16664_v50 = vld [vmem:[%s18399_s6 + $0x424] ss:$72 sps:$4 sm:$0xff]  }
 0x551   : > { %16121 = vmatpush3.bf16.msra.mxu1 %v16120_v23 }
 0x552   : > { %16122 = vmatprep.subr.bf16.mxu1 %v18318_v53 }
 0x553   : > { %v3212_v39 = vpop.f32.mrb[76].mxu1 }
 0x554   : > { %v3214_v18 = vpop.f32.mrb[77].mxu1  ;;  %15758 = vmatmul.mubr.msk.f32.vlgmr.msra.gmra.mrb[96].mxu1 %vm1330_vm3, %v13873_v55 }
 0x555   : > { %v3216_v26 = vpop.f32.mrb[78].mxu1  ;;  %16124 = vmatpush3.bf16.msra.mxu1 %v16123_v38  ;;  %15768 = vmatprep.mubr.msk.f32.mxu1 %vm18320_vm5, %v18319_v58  ;;  %v16614_v38 = vld [vmem:[%s18399_s6 + $0x410] ss:$72 sps:$4 sm:$0xff]  }
 0x556   : > { %v16129_v59 = vpack.c.bf16 %v3216_v26, %v3212_v39  ;;  %v3218_v27 = vpop.f32.mrb[79].mxu1  ;;  %16125 = vmatprep.subr.bf16.mxu1 %v18318_v53  ;;  %5014 = vmatpush1.bf16.msra.mxu0 %v16614_v38  ;;  %v16662_v38 = vld [vmem:[%s18399_s6 + $0x420] ss:$72 sps:$4 sm:$0xff]  }
 0x557   : > { %v16135_v42 = vpack.c.bf16 %v3218_v27, %v3214_v18  ;;  %5081 = vmatprep.subr.bf16.mxu0 %v16622_v13  ;;  %v16670_v13 = vld [vmem:[%s18399_s6 + $0x44] ss:$72 sps:$4 sm:$0xff]  }
 0x559   : > { %16127 = vmatpush3.bf16.msra.mxu1 %v16126_v28 }
 0x55a   : > { %16128 = vmatprep.subr.bf16.mxu1 %v18318_v53 }
 0x55b   : > { %v3222_v21 = vpop.f32.mrb[80].mxu1 }
 0x55c   : > { %v3224_v24 = vpop.f32.mrb[81].mxu1  ;;  %15769 = vmatmul.mubr.msk.f32.vlgmr.msra.gmra.mrb[98].mxu1 %vm1330_vm3, %v13875_v19 }
 0x55d   : > { %v3226_v15 = vpop.f32.mrb[82].mxu1  ;;  %16130 = vmatpush3.bf16.msra.mxu1 %v16129_v59  ;;  %15779 = vmatprep.mubr.msk.f32.mxu1 %vm18320_vm5, %v18319_v58 }
 0x55e   : > { %v16132_v3 = vpack.c.bf16 %v3226_v15, %v3222_v21  ;;  %v3228_v7 = vpop.f32.mrb[83].mxu1  ;;  %16131 = vmatprep.subr.bf16.mxu1 %v18318_v53 }
 0x55f   : > { %v16138_v61 = vpack.c.bf16 %v3228_v7, %v3224_v24 }
 0x561   : > { %16133 = vmatpush3.bf16.msra.mxu1 %v16132_v3 }
 0x562   : > { %16134 = vmatprep.subr.bf16.mxu1 %v18318_v53 }
 0x563   : > { %v15703_v35 = vpop.f32.mrb[84].mxu1 }
 0x564   : > { %v3265_v37 = vpop.f32.mrb[85].mxu1  ;;  %15780 = vmatmul.mubr.msk.f32.vlgmr.msra.gmra.mrb[100].mxu1 %vm1330_vm3, %v13877_v34 }
 0x565   : > { %v15704_v49 = vpop.f32.mrb[86].mxu1  ;;  %16136 = vmatpush3.bf16.msra.mxu1 %v16135_v42  ;;  %15790 = vmatprep.mubr.msk.f32.mxu1 %vm18320_vm5, %v18319_v58 }
 0x566   : > { %v16144_v44 = vpack.c.bf16 %v15704_v49, %v15703_v35  ;;  %v3268_v47 = vpop.f32.mrb[87].mxu1  ;;  %16137 = vmatprep.subr.bf16.mxu1 %v18318_v53 }
 0x567   : > { %v16141_v17 = vpack.c.bf16 %v3268_v47, %v3265_v37  ;;  %v13883_v47 = vld [vmem:[%s18389_s24] ss:$0 sm:$0xff] }
 0x569   : > { %16139 = vmatpush3.bf16.msra.mxu1 %v16138_v61 }
 0x56a   : > { %16140 = vmatprep.subr.bf16.mxu1 %v18318_v53 }
 0x56c   : > { %15791 = vmatmul.mubr.msk.f32.vlgmr.msra.gmra.mrb[102].mxu1 %vm1330_vm3, %v13879_v12 }
 0x56d   : > { %16142 = vmatpush3.bf16.msra.mxu1 %v16141_v17  ;;  %15801 = vmatprep.mubr.msk.f32.mxu1 %vm18320_vm5, %v18319_v58 }
 0x56e   : > { %16143 = vmatprep.subr.bf16.mxu1 %v18318_v53  ;;  %v16575_v53 = vld [vmem:[%s18399_s6 + $0x90] ss:$72 sps:$4 sm:$0xff]  }
 0x571   : > { %16145 = vmatpush3.bf16.msra.mxu1 %v16144_v44 }
 0x572   : > { %4835 = vmatprep.subr.bf16.mxu1 %v16571_v57 }
 0x574   : > { %15802 = vmatmul.mubr.msk.f32.vlgmr.msra.gmra.mrb[104].mxu1 %vm1330_vm3, %v13881_v52 }
 0x575   : > { %4867 = vmatprep.mubr.bf16.mxu1 %v20679_v2  ;;  %4836 = vmatpush1.bf16.msra.mxu1 %v16569_v43  ;;  %v16620_v43 = vld [vmem:[%s18399_s6 + $0x30] ss:$72 sps:$4 sm:$0xff]  }
 0x576   : > { %4837 = vmatprep.subr.bf16.mxu1 %v16577_v11  ;;  %v16628_v11 = vld [vmem:[%s18399_s6 + $0xc4] ss:$72 sps:$4 sm:$0xff]  }
 0x579   : > { %4838 = vmatpush1.bf16.msra.mxu1 %v16575_v53  ;;  %v16625_v53 = vld [vmem:[%s18399_s6 + $0x9c] ss:$72 sps:$4 sm:$0xff]  }
 0x57a   : > { %4839 = vmatprep.subr.bf16.mxu1 %v16583_v0  ;;  %v16631_v0 = vld [vmem:[%s18399_s6 + $0x12c] ss:$72 sps:$4 sm:$0xff]  }
 0x57d   : > { %4840 = vmatpush1.bf16.msra.mxu1 %v16581_v6  ;;  %v16629_v6 = vld [vmem:[%s18399_s6 + $0x128] ss:$72 sps:$4 sm:$0xff]  }
 0x57e   : > { %4841 = vmatprep.subr.bf16.mxu1 %v16589_v10  ;;  %v16640_v10 = vld [vmem:[%s18399_s6 + $0x1e4] ss:$72 sps:$4 sm:$0xff]  }
 0x581   : > { %4842 = vmatpush1.bf16.msra.mxu1 %v16587_v60  ;;  %v16637_v60 = vld [vmem:[%s18399_s6 + $0x1bc] ss:$72 sps:$4 sm:$0xff]  }
 0x582   : > { %4843 = vmatprep.subr.bf16.mxu1 %v16595_v31  ;;  %v16643_v31 = vld [vmem:[%s18399_s6 + $0x24c] ss:$72 sps:$4 sm:$0xff]  }
 0x585   : > { %4844 = vmatpush1.bf16.msra.mxu1 %v16593_v40  ;;  %v16641_v40 = vld [vmem:[%s18399_s6 + $0x248] ss:$72 sps:$4 sm:$0xff]  }
 0x586   : > { %4845 = vmatprep.subr.bf16.mxu1 %v16601_v25  ;;  %v16652_v25 = vld [vmem:[%s18399_s6 + $0x304] ss:$72 sps:$4 sm:$0xff]  }
 0x589   : > { %4846 = vmatpush1.bf16.msra.mxu1 %v16599_v45  ;;  %v16649_v45 = vld [vmem:[%s18399_s6 + $0x2dc] ss:$72 sps:$4 sm:$0xff]  }
 0x58a   : > { %4847 = vmatprep.subr.bf16.mxu1 %v16607_v22  ;;  %v16655_v22 = vld [vmem:[%s18399_s6 + $0x36c] ss:$72 sps:$4 sm:$0xff]  }
 0x58d   : > { %4848 = vmatpush1.bf16.msra.mxu1 %v16605_v63  ;;  %v16653_v63 = vld [vmem:[%s18399_s6 + $0x368] ss:$72 sps:$4 sm:$0xff]  }
 0x58e   : > { %4849 = vmatprep.subr.bf16.mxu1 %v16613_v54  ;;  %v16661_v54 = vld [vmem:[%s18399_s6 + $0x3fc] ss:$72 sps:$4 sm:$0xff]  }
 0x591   : > { %4850 = vmatpush1.bf16.msra.mxu1 %v16611_v41  ;;  %v16659_v41 = vld [vmem:[%s18399_s6 + $0x3f8] ss:$72 sps:$4 sm:$0xff]  }
 0x592   : > { %4876 = vmatprep.subr.bf16.mxu1 %v16619_v46  ;;  %v16667_v46 = vld [vmem:[%s18399_s6 + $0x14] ss:$72 sps:$4 sm:$0xff]  }
 0x607   : > { %v3352_v32 = vpop.f32.mrb[88].mxu1 }
 0x608   : > { %v15715_v14 = vpop.f32.mrb[89].mxu1 }
 0x609   : > { %v16668_v14 = vld [vmem:[%s18399_s6 + $0x40] ss:$72 sps:$4 sm:$0xff]  }
 0x60f   : > { %v3425_v23 = vpop.f32.mrb[90].mxu1 }
 0x610   : > { %v3426_v1 = vadd.f32 %v3425_v23, %v3352_v32  ;;  %v15726_v28 = vpop.f32.mrb[91].mxu1  ;;  %v16665_v32 = vld [vmem:[%s18399_s6 + $0x10] ss:$72 sps:$4 sm:$0xff]   ;;  %v16673_v23 = vld [vmem:[%s18399_s6 + $0xa4] ss:$72 sps:$4 sm:$0xff]  }
 0x611   : > { %v16671_v28 = vld [vmem:[%s18399_s6 + $0xa0] ss:$72 sps:$4 sm:$0xff]  }
 0x617   : > { %v3500_v55 = vpop.f32.mrb[92].mxu1 }
 0x618   : > { %v3504_v39 = vadd.f32 %v3500_v55, %v3426_v1  ;;  %v15737_v18 = vpop.f32.mrb[93].mxu1  ;;  %v16676_v1 = vld [vmem:[%s18399_s6 + $0xd4] ss:$72 sps:$4 sm:$0xff]   ;;  %v16674_v55 = vld [vmem:[%s18399_s6 + $0xd0] ss:$72 sps:$4 sm:$0xff]  }
 0x619   : > { %v16682_v18 = vld [vmem:[%s18399_s6 + $0x164] ss:$72 sps:$4 sm:$0xff]  }
 0x61f   : > { %v3576_v26 = vpop.f32.mrb[94].mxu1 }
 0x620   : > { %v3580_v59 = vadd.f32 %v3576_v26, %v3504_v39  ;;  %v15748_v27 = vpop.f32.mrb[95].mxu1  ;;  %v16679_v39 = vld [vmem:[%s18399_s6 + $0x134] ss:$72 sps:$4 sm:$0xff]   ;;  %v16677_v26 = vld [vmem:[%s18399_s6 + $0x130] ss:$72 sps:$4 sm:$0xff]  }
 0x621   : > { %v16685_v27 = vld [vmem:[%s18399_s6 + $0x1c4] ss:$72 sps:$4 sm:$0xff]  }
 0x627   : > { %v3652_v42 = vpop.f32.mrb[96].mxu1 }
 0x628   : > { %v3656_v19 = vadd.f32 %v3652_v42, %v3580_v59  ;;  %v15759_v21 = vpop.f32.mrb[97].mxu1  ;;  %v16680_v59 = vld [vmem:[%s18399_s6 + $0x160] ss:$72 sps:$4 sm:$0xff]   ;;  %v16688_v42 = vld [vmem:[%s18399_s6 + $0x1f4] ss:$72 sps:$4 sm:$0xff]  }
 0x629   : > { %v16686_v21 = vld [vmem:[%s18399_s6 + $0x1f0] ss:$72 sps:$4 sm:$0xff]  }
 0x62f   : > { %v3728_v24 = vpop.f32.mrb[98].mxu1 }
 0x630   : > { %v3732_v15 = vadd.f32 %v3728_v24, %v3656_v19  ;;  %v15770_v3 = vpop.f32.mrb[99].mxu1  ;;  %v16683_v19 = vld [vmem:[%s18399_s6 + $0x1c0] ss:$72 sps:$4 sm:$0xff]   ;;  %v16691_v24 = vld [vmem:[%s18399_s6 + $0x254] ss:$72 sps:$4 sm:$0xff]  }
 0x631   : > { %v16689_v3 = vld [vmem:[%s18399_s6 + $0x250] ss:$72 sps:$4 sm:$0xff]  }
 0x637   : > { %v3804_v7 = vpop.f32.mrb[100].mxu1 }
 0x638   : > { %v3808_v61 = vadd.f32 %v3804_v7, %v3732_v15  ;;  %v15781_v34 = vpop.f32.mrb[101].mxu1  ;;  %v16694_v15 = vld [vmem:[%s18399_s6 + $0x284] ss:$72 sps:$4 sm:$0xff]   ;;  %v16692_v7 = vld [vmem:[%s18399_s6 + $0x280] ss:$72 sps:$4 sm:$0xff]  }
 0x639   : > { %v16700_v34 = vld [vmem:[%s18399_s6 + $0x314] ss:$72 sps:$4 sm:$0xff]  }
 0x63f   : > { %v3880_v35 = vpop.f32.mrb[102].mxu1 }
 0x640   : > { %v3884_v37 = vadd.f32 %v3880_v35, %v3808_v61  ;;  %v15792_v49 = vpop.f32.mrb[103].mxu1  ;;  %v16697_v61 = vld [vmem:[%s18399_s6 + $0x2e4] ss:$72 sps:$4 sm:$0xff]   ;;  %v16695_v35 = vld [vmem:[%s18399_s6 + $0x2e0] ss:$72 sps:$4 sm:$0xff]  }
 0x641   : > { %v16703_v49 = vld [vmem:[%s18399_s6 + $0x374] ss:$72 sps:$4 sm:$0xff]  }
 0x647   : > { %v3956_v44 = vpop.f32.mrb[104].mxu1 }
 0x648   : > { %v3960_v17 = vadd.f32 %v3956_v44, %v3884_v37  ;;  %v15803_v12 = vpop.f32.mrb[105].mxu1  ;;  %v16698_v37 = vld [vmem:[%s18399_s6 + $0x310] ss:$72 sps:$4 sm:$0xff]   ;;  %v16706_v44 = vld [vmem:[%s18399_s6 + $0x3a4] ss:$72 sps:$4 sm:$0xff]  }
 0x649   : > { %v16709_v12 = vld [vmem:[%s18399_s6 + $0x404] ss:$72 sps:$4 sm:$0xff]  }
 0x64a   : > { %v3968_v52 = vadd.f32 %v13883_v47, %v3960_v17  ;;  %v16701_v47 = vld [vmem:[%s18399_s6 + $0x370] ss:$72 sps:$4 sm:$0xff]   ;;  %v16704_v17 = vld [vmem:[%s18399_s6 + $0x3a0] ss:$72 sps:$4 sm:$0xff]  }
 0x64c   : > { %v3969_v57 = vmax.f32 %v3968_v52, 0.0  ;;  %v16712_v52 = vld [vmem:[%s18399_s6 + $0x434] ss:$72 sps:$4 sm:$0xff]  }
 0x64e   : > { %v19295_v4 = vpack.c.bf16 %v3969_v57, %v3969_v57  ;;  %v16707_v57 = vld [vmem:[%s18399_s6 + $0x400] ss:$72 sps:$4 sm:$0xff]  }
 0x650   : > { %4868 = vmatmul.mubr.bf16.vlgmr.msra.gmra.mrb[108].mxu1 %v19295_v4  ;;  %5032 = vmatmul.mubr.bf16.vlgmr.msra.gmra.mrb[52].mxu0 %v19295_v4 }
 0x651   : > { %4877 = vmatpush1.bf16.msra.mxu1 %v16617_v20  ;;  %5082 = vmatpush1.bf16.msra.mxu0 %v16620_v43  ;;  %v16710_v20 = vld [vmem:[%s18399_s6 + $0x430] ss:$72 sps:$4 sm:$0xff]   ;;  %v16715_v43 = vld [vmem:[%s18399_s6 + $0x1c] ss:$72 sps:$4 sm:$0xff]  }
 0x652   : > { %4878 = vmatprep.subr.bf16.mxu1 %v16625_v53  ;;  %5083 = vmatprep.subr.bf16.mxu0 %v16628_v11  ;;  %v16713_v53 = vld [vmem:[%s18399_s6 + $0x18] ss:$72 sps:$4 sm:$0xff]   ;;  %v16718_v11 = vld [vmem:[%s18399_s6 + $0xac] ss:$72 sps:$4 sm:$0xff]  }
 0x653   : > { %4908 = vmatprep.mubr.bf16.mxu1 %v20679_v2  ;;  %5113 = vmatprep.mubr.bf16.mxu0 %v20679_v2 }
 0x655   : > { %4879 = vmatpush1.bf16.msra.mxu1 %v16623_v62  ;;  %5084 = vmatpush1.bf16.msra.mxu0 %v16626_v16  ;;  %v16716_v62 = vld [vmem:[%s18399_s6 + $0xa8] ss:$72 sps:$4 sm:$0xff]   ;;  %v16721_v16 = vld [vmem:[%s18399_s6 + $0x13c] ss:$72 sps:$4 sm:$0xff]  }
 0x656   : > { %4880 = vmatprep.subr.bf16.mxu1 %v16631_v0  ;;  %5085 = vmatprep.subr.bf16.mxu0 %v16634_v9  ;;  %v16719_v0 = vld [vmem:[%s18399_s6 + $0x138] ss:$72 sps:$4 sm:$0xff]   ;;  %v16724_v9 = vld [vmem:[%s18399_s6 + $0x1cc] ss:$72 sps:$4 sm:$0xff]  }
 0x659   : > { %4881 = vmatpush1.bf16.msra.mxu1 %v16629_v6  ;;  %5086 = vmatpush1.bf16.msra.mxu0 %v16632_v56  ;;  %v16722_v6 = vld [vmem:[%s18399_s6 + $0x1c8] ss:$72 sps:$4 sm:$0xff]   ;;  %v16727_v56 = vld [vmem:[%s18399_s6 + $0x25c] ss:$72 sps:$4 sm:$0xff]  }
 0x65a   : > { %4882 = vmatprep.subr.bf16.mxu1 %v16637_v60  ;;  %5087 = vmatprep.subr.bf16.mxu0 %v16640_v10  ;;  %v16725_v60 = vld [vmem:[%s18399_s6 + $0x258] ss:$72 sps:$4 sm:$0xff]   ;;  %v16730_v10 = vld [vmem:[%s18399_s6 + $0x2ec] ss:$72 sps:$4 sm:$0xff]  }
 0x65d   : > { %4883 = vmatpush1.bf16.msra.mxu1 %v16635_v5  ;;  %5088 = vmatpush1.bf16.msra.mxu0 %v16638_v29  ;;  %v16728_v5 = vld [vmem:[%s18399_s6 + $0x2e8] ss:$72 sps:$4 sm:$0xff]   ;;  %v16733_v29 = vld [vmem:[%s18399_s6 + $0x37c] ss:$72 sps:$4 sm:$0xff]  }
 0x65e   : > { %4884 = vmatprep.subr.bf16.mxu1 %v16643_v31  ;;  %5089 = vmatprep.subr.bf16.mxu0 %v16646_v36  ;;  %v16731_v31 = vld [vmem:[%s18399_s6 + $0x378] ss:$72 sps:$4 sm:$0xff]   ;;  %v16736_v36 = vld [vmem:[%s18399_s6 + $0x40c] ss:$72 sps:$4 sm:$0xff]  }
 0x661   : > { %4885 = vmatpush1.bf16.msra.mxu1 %v16641_v40  ;;  %5090 = vmatpush1.bf16.msra.mxu0 %v16644_v51  ;;  %v16734_v40 = vld [vmem:[%s18399_s6 + $0x408] ss:$72 sps:$4 sm:$0xff]   ;;  %v16739_v51 = vld [vmem:[%s18399_s6 + $0x2c] ss:$72 sps:$4 sm:$0xff]  }
 0x662   : > { %4886 = vmatprep.subr.bf16.mxu1 %v16649_v45  ;;  %5091 = vmatprep.subr.bf16.mxu0 %v16652_v25  ;;  %v16737_v45 = vld [vmem:[%s18399_s6 + $0x28] ss:$72 sps:$4 sm:$0xff]   ;;  %v16742_v25 = vld [vmem:[%s18399_s6 + $0xbc] ss:$72 sps:$4 sm:$0xff]  }
 0x665   : > { %4887 = vmatpush1.bf16.msra.mxu1 %v16647_v48  ;;  %5092 = vmatpush1.bf16.msra.mxu0 %v16650_v8  ;;  %v16740_v48 = vld [vmem:[%s18399_s6 + $0xb8] ss:$72 sps:$4 sm:$0xff]   ;;  %v16745_v8 = vld [vmem:[%s18399_s6 + $0x14c] ss:$72 sps:$4 sm:$0xff]  }
 0x666   : > { %4888 = vmatprep.subr.bf16.mxu1 %v16655_v22  ;;  %5093 = vmatprep.subr.bf16.mxu0 %v16658_v30  ;;  %v16743_v22 = vld [vmem:[%s18399_s6 + $0x148] ss:$72 sps:$4 sm:$0xff]   ;;  %v16748_v30 = vld [vmem:[%s18399_s6 + $0x1dc] ss:$72 sps:$4 sm:$0xff]  }
 0x669   : > { %4889 = vmatpush1.bf16.msra.mxu1 %v16653_v63  ;;  %5094 = vmatpush1.bf16.msra.mxu0 %v16656_v33  ;;  %v16746_v63 = vld [vmem:[%s18399_s6 + $0x1d8] ss:$72 sps:$4 sm:$0xff]   ;;  %v16751_v33 = vld [vmem:[%s18399_s6 + $0x26c] ss:$72 sps:$4 sm:$0xff]  }
 0x66a   : > { %4890 = vmatprep.subr.bf16.mxu1 %v16661_v54  ;;  %5095 = vmatprep.subr.bf16.mxu0 %v16664_v50  ;;  %v16749_v54 = vld [vmem:[%s18399_s6 + $0x268] ss:$72 sps:$4 sm:$0xff]   ;;  %v16754_v50 = vld [vmem:[%s18399_s6 + $0x2fc] ss:$72 sps:$4 sm:$0xff]  }
 0x66d   : > { %4891 = vmatpush1.bf16.msra.mxu1 %v16659_v41  ;;  %5096 = vmatpush1.bf16.msra.mxu0 %v16662_v38  ;;  %v16752_v41 = vld [vmem:[%s18399_s6 + $0x2f8] ss:$72 sps:$4 sm:$0xff]   ;;  %v16757_v38 = vld [vmem:[%s18399_s6 + $0x38c] ss:$72 sps:$4 sm:$0xff]  }
 0x66e   : > { %4917 = vmatprep.subr.bf16.mxu1 %v16667_v46  ;;  %5163 = vmatprep.subr.bf16.mxu0 %v16670_v13  ;;  %v16755_v46 = vld [vmem:[%s18399_s6 + $0x388] ss:$72 sps:$4 sm:$0xff]   ;;  %v16760_v13 = vld [vmem:[%s18399_s6 + $0x41c] ss:$72 sps:$4 sm:$0xff]  }
 0x670   : > { %4909 = vmatmul.mubr.bf16.vlgmr.msra.gmra.mrb[112].mxu1 %v19295_v4  ;;  %5114 = vmatmul.mubr.bf16.vlgmr.msra.gmra.mrb[56].mxu0 %v19295_v4 }
 0x671   : > { %4918 = vmatpush1.bf16.msra.mxu1 %v16665_v32  ;;  %5164 = vmatpush1.bf16.msra.mxu0 %v16668_v14  ;;  %v16758_v32 = vld [vmem:[%s18399_s6 + $0x418] ss:$72 sps:$4 sm:$0xff]   ;;  %v16763_v14 = vld [vmem:[%s18399_s6 + $0x3c] ss:$72 sps:$4 sm:$0xff]  }
 0x672   : > { %4919 = vmatprep.subr.bf16.mxu1 %v16673_v23  ;;  %5165 = vmatprep.subr.bf16.mxu0 %v16676_v1  ;;  %v16761_v23 = vld [vmem:[%s18399_s6 + $0x38] ss:$72 sps:$4 sm:$0xff]   ;;  %v16766_v1 = vld [vmem:[%s18399_s6 + $0xcc] ss:$72 sps:$4 sm:$0xff]  }
 0x673   : > { %4949 = vmatprep.mubr.bf16.mxu1 %v20679_v2  ;;  %5195 = vmatprep.mubr.bf16.mxu0 %v20679_v2 }
 0x675   : > { %4920 = vmatpush1.bf16.msra.mxu1 %v16671_v28  ;;  %5166 = vmatpush1.bf16.msra.mxu0 %v16674_v55  ;;  %v16764_v28 = vld [vmem:[%s18399_s6 + $0xc8] ss:$72 sps:$4 sm:$0xff]   ;;  %v16769_v55 = vld [vmem:[%s18399_s6 + $0x15c] ss:$72 sps:$4 sm:$0xff]  }
 0x676   : > { %4921 = vmatprep.subr.bf16.mxu1 %v16679_v39  ;;  %5167 = vmatprep.subr.bf16.mxu0 %v16682_v18  ;;  %v16767_v39 = vld [vmem:[%s18399_s6 + $0x158] ss:$72 sps:$4 sm:$0xff]   ;;  %v16772_v18 = vld [vmem:[%s18399_s6 + $0x1ec] ss:$72 sps:$4 sm:$0xff]  }
 0x679   : > { %4922 = vmatpush1.bf16.msra.mxu1 %v16677_v26  ;;  %5168 = vmatpush1.bf16.msra.mxu0 %v16680_v59  ;;  %v16770_v26 = vld [vmem:[%s18399_s6 + $0x1e8] ss:$72 sps:$4 sm:$0xff]   ;;  %v16775_v59 = vld [vmem:[%s18399_s6 + $0x27c] ss:$72 sps:$4 sm:$0xff]  }
 0x67a   : > { %4923 = vmatprep.subr.bf16.mxu1 %v16685_v27  ;;  %5169 = vmatprep.subr.bf16.mxu0 %v16688_v42  ;;  %v16773_v27 = vld [vmem:[%s18399_s6 + $0x278] ss:$72 sps:$4 sm:$0xff]   ;;  %v16778_v42 = vld [vmem:[%s18399_s6 + $0x30c] ss:$72 sps:$4 sm:$0xff]  }
 0x67d   : > { %4924 = vmatpush1.bf16.msra.mxu1 %v16683_v19  ;;  %5170 = vmatpush1.bf16.msra.mxu0 %v16686_v21  ;;  %v16781_v19 = vld [vmem:[%s18399_s6 + $0x39c] ss:$72 sps:$4 sm:$0xff]   ;;  %v16779_v21 = vld [vmem:[%s18399_s6 + $0x398] ss:$72 sps:$4 sm:$0xff]  }
 0x67e   : > { %4925 = vmatprep.subr.bf16.mxu1 %v16691_v24  ;;  %5171 = vmatprep.subr.bf16.mxu0 %v16694_v15  ;;  %v16784_v24 = vld [vmem:[%s18399_s6 + $0x42c] ss:$72 sps:$4 sm:$0xff]   ;;  %v16782_v15 = vld [vmem:[%s18399_s6 + $0x428] ss:$72 sps:$4 sm:$0xff]  }
 0x681   : > { %4926 = vmatpush1.bf16.msra.mxu1 %v16689_v3  ;;  %5172 = vmatpush1.bf16.msra.mxu0 %v16692_v7 }
 0x682   : > { %4927 = vmatprep.subr.bf16.mxu1 %v16697_v61  ;;  %5173 = vmatprep.subr.bf16.mxu0 %v16700_v34 }
 0x685   : > { %4928 = vmatpush1.bf16.msra.mxu1 %v16695_v35  ;;  %5174 = vmatpush1.bf16.msra.mxu0 %v16698_v37 }
 0x686   : > { %4929 = vmatprep.subr.bf16.mxu1 %v16703_v49  ;;  %5175 = vmatprep.subr.bf16.mxu0 %v16706_v44 }
 0x689   : > { %4930 = vmatpush1.bf16.msra.mxu1 %v16701_v47  ;;  %5176 = vmatpush1.bf16.msra.mxu0 %v16704_v17 }
 0x68a   : > { %4931 = vmatprep.subr.bf16.mxu1 %v16709_v12  ;;  %5177 = vmatprep.subr.bf16.mxu0 %v16712_v52 }
 0x68d   : > { %4932 = vmatpush1.bf16.msra.mxu1 %v16707_v57  ;;  %5178 = vmatpush1.bf16.msra.mxu0 %v16710_v20  ;;  %v14028_v57 = vld [vmem:[%s20685_s0 + $0x2] sm:$0x3] }
 0x68e   : > { %4958 = vmatprep.subr.bf16.mxu1 %v16715_v43 }
 0x690   : > { %4950 = vmatmul.mubr.bf16.vlgmr.msra.gmra.mrb[116].mxu1 %v19295_v4  ;;  %5196 = vmatmul.mubr.bf16.vlgmr.msra.gmra.mrb[60].mxu0 %v19295_v4 }
 0x691   : > { %4959 = vmatpush1.bf16.msra.mxu1 %v16713_v53  ;;  %4990 = vmatprep.mubr.bf16.mxu1 %v20679_v2 }
 0x692   : > { %4960 = vmatprep.subr.bf16.mxu1 %v16718_v11  ;;  %5994 = vmatprep.mubr.f32.mxu0 %v18319_v58  ;;  %v5204_v11 = vld [vmem:[%s20685_s0] sm:$0x3] }
 0x695   : > { %4961 = vmatpush1.bf16.msra.mxu1 %v16716_v62 }
 0x696   : > { %4962 = vmatprep.subr.bf16.mxu1 %v16721_v16 }
 0x699   : > { %4963 = vmatpush1.bf16.msra.mxu1 %v16719_v0 }
 0x69a   : > { %4964 = vmatprep.subr.bf16.mxu1 %v16724_v9 }
 0x69d   : > { %4965 = vmatpush1.bf16.msra.mxu1 %v16722_v6  ;;  %v14031_v6 = vld [vmem:[%s20685_s0 + $0x4] sm:$0x3] }
 0x69e   : > { %4966 = vmatprep.subr.bf16.mxu1 %v16727_v56 }
 0x6a1   : > { %4967 = vmatpush1.bf16.msra.mxu1 %v16725_v60 }
 0x6a2   : > { %4968 = vmatprep.subr.bf16.mxu1 %v16730_v10 }
 0x6a5   : > { %4969 = vmatpush1.bf16.msra.mxu1 %v16728_v5 }
 0x6a6   : > { %4970 = vmatprep.subr.bf16.mxu1 %v16733_v29 }
 0x6a9   : > { %4971 = vmatpush1.bf16.msra.mxu1 %v16731_v31 }
 0x6aa   : > { %4972 = vmatprep.subr.bf16.mxu1 %v16736_v36  ;;  %v14033_v36 = vld [vmem:[%s20685_s0 + $0x6] sm:$0x3] }
 0x6ad   : > { %4973 = vmatpush1.bf16.msra.mxu1 %v16734_v40 }
 0x6ae   : > { %5040 = vmatprep.subr.bf16.mxu1 %v16739_v51 }
 0x6b0   : > { %4991 = vmatmul.mubr.bf16.vlgmr.msra.gmra.mrb[120].mxu1 %v19295_v4 }
 0x6b1   : > { %5041 = vmatpush1.bf16.msra.mxu1 %v16737_v45  ;;  %5072 = vmatprep.mubr.bf16.mxu1 %v20679_v2  ;;  %v14035_v45 = vld [vmem:[%s20685_s0 + $0x8] sm:$0x3] }
 0x6b2   : > { %5042 = vmatprep.subr.bf16.mxu1 %v16742_v25 }
 0x6b5   : > { %5043 = vmatpush1.bf16.msra.mxu1 %v16740_v48 }
 0x6b6   : > { %5044 = vmatprep.subr.bf16.mxu1 %v16745_v8  ;;  %v14037_v8 = vld [vmem:[%s20685_s0 + $0xa] sm:$0x3] }
 0x6b9   : > { %5045 = vmatpush1.bf16.msra.mxu1 %v16743_v22 }
 0x6ba   : > { %5046 = vmatprep.subr.bf16.mxu1 %v16748_v30 }
 0x6bd   : > { %5047 = vmatpush1.bf16.msra.mxu1 %v16746_v63  ;;  %v17029_v63 = vld [vmem:[#allocation2] sm:$0xff] }
 0x6be   : > { %5048 = vmatprep.subr.bf16.mxu1 %v16751_v33  ;;  %v14039_v33 = vld [vmem:[%s20685_s0 + $0xc] sm:$0x3] }
 0x6c1   : > { %5049 = vmatpush1.bf16.msra.mxu1 %v16749_v54 }
 0x6c2   : > { %5050 = vmatprep.subr.bf16.mxu1 %v16754_v50  ;;  %v14041_v50 = vld [vmem:[%s20685_s0 + $0xe] sm:$0x3] }
 0x6c5   : > { %5051 = vmatpush1.bf16.msra.mxu1 %v16752_v41 }
 0x6c6   : > { %5052 = vmatprep.subr.bf16.mxu1 %v16757_v38 }
 0x6c9   : > { %5053 = vmatpush1.bf16.msra.mxu1 %v16755_v46  ;;  %v14043_v46 = vld [vmem:[%s20685_s0 + $0x10] sm:$0x3] }
 0x6ca   : > { %5054 = vmatprep.subr.bf16.mxu1 %v16760_v13  ;;  %v5904_v13 = vlaneseq }
 0x6cd   : > { %5055 = vmatpush1.bf16.msra.mxu1 %v16758_v32  ;;  %v19446_v32 = vshrl.u32 %v5904_v13, 7  ;;  %v16881_v13 = vld [vmem:[%s20689_s15 + $0x100] ss:$16 sps:$4 sm:$0xff]  }
 0x6ce   : > { %5122 = vmatprep.subr.bf16.mxu1 %v16763_v14 }
 0x6cf   : > { %v19449_v14 = vsub.s32 0, %v19446_v32 }
 0x6d0   : > { %5073 = vmatmul.mubr.bf16.vlgmr.msra.gmra.mrb[124].mxu1 %v19295_v4 }
 0x6d1   : > { %5123 = vmatpush1.bf16.msra.mxu1 %v16761_v23  ;;  %5154 = vmatprep.mubr.bf16.mxu1 %v20679_v2  ;;  %v16776_v2 = vld [vmem:[%s18399_s6 + $0x308] ss:$72 sps:$4 sm:$0xff]   ;;  %v5902_v23 = vld [vmem:[%s20686_s2] sm:$0x3]  ;;  %s20692_s2 = sld [smem:[#allocation18_spill]] }
 0x6d2   : > { %5124 = vmatprep.subr.bf16.mxu1 %v16766_v1  ;;  %v19453_v1 = vsub.s32 1, %v19446_v32 }
 0x6d5   : > { %5125 = vmatpush1.bf16.msra.mxu1 %v16764_v28  ;;  %v5907_v28 = vrot.slane %v5902_v23, %v19449_v14 }
 0x6d6   : > { %5126 = vmatprep.subr.bf16.mxu1 %v16769_v55  ;;  %v5911_v55 = vrot.slane %v5902_v23, %v19453_v1  ;;  %v16889_v23 = vld [vmem:[%s20689_s15 + $0x124] ss:$16 sps:$4 sm:$0xff]  }
 0x6d9   : > { %5127 = vmatpush1.bf16.msra.mxu1 %v16767_v39 }
 0x6da   : > { %5128 = vmatprep.subr.bf16.mxu1 %v16772_v18 }
 0x6dd   : > { %5129 = vmatpush1.bf16.msra.mxu1 %v16770_v26 }
 0x6de   : > { %5130 = vmatprep.subr.bf16.mxu1 %v16775_v59 }
 0x6e1   : > { %5131 = vmatpush1.bf16.msra.mxu1 %v16773_v27 }
 0x6e2   : > { %5132 = vmatprep.subr.bf16.mxu1 %v16778_v42  ;;  %v16787_v42 = vld [vmem:[%s20687_s7 + $0x4] ss:$8 sps:$4 sm:$0xff]  }
 0x6e5   : > { %5133 = vmatpush1.bf16.msra.mxu1 %v16776_v2 }
 0x6e6   : > { %5134 = vmatprep.subr.bf16.mxu1 %v16781_v19  ;;  %v5918_v19 = vld [vmem:[%s20688_s10] sm:$0x3]  ;;  %s20693_s10 = sld [smem:[#allocation19_spill]] }
 0x6e9   : > { %5135 = vmatpush1.bf16.msra.mxu1 %v16779_v21  ;;  %v16785_v21 = vld [vmem:[%s20687_s7] ss:$8 sps:$4 sm:$0xff]  }
 0x6ea   : > { %5136 = vmatprep.subr.bf16.mxu1 %v16784_v24  ;;  %v16790_v24 = vld [vmem:[%s20687_s7 + $0x14] ss:$8 sps:$4 sm:$0xff]  }
 0x6ed   : > { %5137 = vmatpush1.bf16.msra.mxu1 %v16782_v15  ;;  %v16788_v15 = vld [vmem:[%s20687_s7 + $0x10] ss:$8 sps:$4 sm:$0xff]  }
 0x6f0   : > { %5155 = vmatmul.mubr.bf16.vlgmr.msra.gmra.mrb[128].mxu1 %v19295_v4 }
 0x6f1   : > { %5275 = vmatprep.mubr.f32.mxu1 %v18319_v58 }
 0x723   : > { %v4869_v3 = vpop.f32.mrb[108].mxu1  ;;  %v5033_v7 = vpop.f32.mrb[52].mxu0 }
 0x724   : > { %v4871_v61 = vpop.f32.mrb[109].mxu1  ;;  %v5035_v34 = vpop.f32.mrb[53].mxu0 }
 0x725   : > { %v4873_v35 = vpop.f32.mrb[110].mxu1  ;;  %v5037_v37 = vpop.f32.mrb[54].mxu0 }
 0x726   : > { %v4874_v49 = vpop.f32.mrb[111].mxu1  ;;  %v5038_v44 = vpop.f32.mrb[55].mxu0  ;;  %v16799_v35 = vld [vmem:[%s20687_s7 + $0x44] ss:$8 sps:$4 sm:$0xff]   ;;  %v16797_v37 = vld [vmem:[%s20687_s7 + $0x40] ss:$8 sps:$4 sm:$0xff]  }
 0x727   : > { %v16802_v49 = vld [vmem:[%s20687_s7 + $0x54] ss:$8 sps:$4 sm:$0xff]   ;;  %v16800_v44 = vld [vmem:[%s20687_s7 + $0x50] ss:$8 sps:$4 sm:$0xff]  }
 0x743   : > { %v4910_v47 = vpop.f32.mrb[112].mxu1  ;;  %v5115_v17 = vpop.f32.mrb[56].mxu0 }
 0x744   : > { %v4912_v12 = vpop.f32.mrb[113].mxu1  ;;  %v5117_v52 = vpop.f32.mrb[57].mxu0 }
 0x745   : > { %v4914_v20 = vpop.f32.mrb[114].mxu1  ;;  %v5119_v43 = vpop.f32.mrb[58].mxu0  ;;  %5211 = vmatprep.subr.mxu1 %v4912_v12  ;;  %v16808_v12 = vld [vmem:[%s20687_s7 + $0x74] ss:$8 sps:$4 sm:$0xff]  }
 0x746   : > { %v4915_v4 = vpop.f32.mrb[115].mxu1  ;;  %v5120_v53 = vpop.f32.mrb[59].mxu0  ;;  %5212 = vmatpush1.msra.mxu1 %v4910_v47  ;;  %v16805_v47 = vld [vmem:[%s20687_s7 + $0x64] ss:$8 sps:$4 sm:$0xff]   ;;  %v16809_v20 = vld [vmem:[%s20687_s7 + $0x80] ss:$8 sps:$4 sm:$0xff]  }
 0x747   : > { %5285 = vmatprep.subr.mxu1 %v4871_v61  ;;  %14029 = vmatmul.mubr.msk.f32.vlgmr.msra.gmra.mrb[106].mxu1 %vm5207_vm6, %v14028_v57  ;;  %v16796_v61 = vld [vmem:[%s20687_s7 + $0x34] ss:$8 sps:$4 sm:$0xff]   ;;  %v16811_v57 = vld [vmem:[%s20687_s7 + $0x84] ss:$8 sps:$4 sm:$0xff]   ;;  %v16812_v4 = vld [vmem:[%s20687_s7 + $0x90] ss:$8 sps:$4 sm:$0xff]  }
 0x748   : > { %5286 = vmatpush1.msra.mxu1 %v4869_v3  ;;  %5349 = vmatprep.mubr.f32.mxu1 %v18319_v58  ;;  %v16793_v3 = vld [vmem:[%s20687_s7 + $0x24] ss:$8 sps:$4 sm:$0xff]   ;;  %v16814_v43 = vld [vmem:[%s20687_s7 + $0x94] ss:$8 sps:$4 sm:$0xff]  }
 0x749   : > { %v16817_v53 = vld [vmem:[%s20687_s7 + $0xa4] ss:$8 sps:$4 sm:$0xff]  }
 0x74f   : > { %14030 = vmatmul.mubr.msk.f32.vlgmr.msra.gmra.mrb[106].mxu1 %vm5207_vm6, %v5204_v11  ;;  %v16815_v11 = vld [vmem:[%s20687_s7 + $0xa0] ss:$8 sps:$4 sm:$0xff]  }
 0x750   : > { %5425 = vmatprep.mubr.f32.mxu1 %v18319_v58 }
 0x763   : > { %v4951_v62 = vpop.f32.mrb[116].mxu1  ;;  %v5197_v16 = vpop.f32.mrb[60].mxu0 }
 0x764   : > { %v4953_v0 = vpop.f32.mrb[117].mxu1  ;;  %v5199_v9 = vpop.f32.mrb[61].mxu0 }
 0x765   : > { %v4955_v56 = vpop.f32.mrb[118].mxu1  ;;  %v5201_v60 = vpop.f32.mrb[62].mxu0  ;;  %5361 = vmatprep.subr.mxu1 %v4953_v0  ;;  %v16823_v0 = vld [vmem:[%s20687_s7 + $0xc4] ss:$8 sps:$4 sm:$0xff]  }
 0x766   : > { %v4956_v10 = vpop.f32.mrb[119].mxu1  ;;  %v5202_v5 = vpop.f32.mrb[63].mxu0  ;;  %5362 = vmatpush1.msra.mxu1 %v4951_v62  ;;  %v16820_v62 = vld [vmem:[%s20687_s7 + $0xb4] ss:$8 sps:$4 sm:$0xff]   ;;  %v16824_v56 = vld [vmem:[%s20687_s7 + $0xd0] ss:$8 sps:$4 sm:$0xff]  }
 0x767   : > { %14032 = vmatmul.mubr.msk.f32.vlgmr.msra.gmra.mrb[106].mxu1 %vm5207_vm6, %v14031_v6  ;;  %v16826_v6 = vld [vmem:[%s20687_s7 + $0xd4] ss:$8 sps:$4 sm:$0xff]   ;;  %v16829_v60 = vld [vmem:[%s20687_s7 + $0xe4] ss:$8 sps:$4 sm:$0xff]   ;;  %v16827_v10 = vld [vmem:[%s20687_s7 + $0xe0] ss:$8 sps:$4 sm:$0xff]  }
 0x768   : > { %5503 = vmatprep.mubr.f32.mxu1 %v18319_v58  ;;  %v16832_v5 = vld [vmem:[%s20687_s7 + $0xf4] ss:$8 sps:$4 sm:$0xff]  }
 0x783   : > { %v4992_v29 = vpop.f32.mrb[120].mxu1 }
 0x784   : > { %v4994_v31 = vpop.f32.mrb[121].mxu1 }
 0x785   : > { %v4996_v40 = vpop.f32.mrb[122].mxu1  ;;  %5439 = vmatprep.subr.mxu1 %v4994_v31  ;;  %v16833_v31 = vld [vmem:[%s20689_s15] ss:$16 sps:$4 sm:$0xff]  }
 0x786   : > { %v4997_v51 = vpop.f32.mrb[123].mxu1  ;;  %5440 = vmatpush1.msra.mxu1 %v4992_v29  ;;  %v16830_v29 = vld [vmem:[%s20687_s7 + $0xf0] ss:$8 sps:$4 sm:$0xff]   ;;  %v16838_v40 = vld [vmem:[%s20689_s15 + $0xc] ss:$16 sps:$4 sm:$0xff]  }
 0x787   : > { %5517 = vmatprep.subr.mxu1 %v5035_v34  ;;  %14034 = vmatmul.mubr.msk.f32.vlgmr.msra.gmra.mrb[106].mxu1 %vm5207_vm6, %v14033_v36  ;;  %v16794_v34 = vld [vmem:[%s20687_s7 + $0x30] ss:$8 sps:$4 sm:$0xff]   ;;  %v16835_v36 = vld [vmem:[%s20689_s15 + $0x4] ss:$16 sps:$4 sm:$0xff]  }
 0x788   : > { %5518 = vmatpush1.msra.mxu1 %v5033_v7  ;;  %5581 = vmatprep.mubr.f32.mxu1 %v18319_v58  ;;  %v16791_v7 = vld [vmem:[%s20687_s7 + $0x20] ss:$8 sps:$4 sm:$0xff]   ;;  %v16841_v51 = vld [vmem:[%s20689_s15 + $0x24] ss:$16 sps:$4 sm:$0xff]  }
 0x78f   : > { %14036 = vmatmul.mubr.msk.f32.vlgmr.msra.gmra.mrb[106].mxu1 %vm5207_vm6, %v14035_v45  ;;  %v16839_v45 = vld [vmem:[%s20689_s15 + $0x20] ss:$16 sps:$4 sm:$0xff]  }
 0x790   : > { %5659 = vmatprep.mubr.f32.mxu1 %v18319_v58 }
 0x7a3   : > { %v5074_v25 = vpop.f32.mrb[124].mxu1 }
 0x7a4   : > { %v5076_v48 = vpop.f32.mrb[125].mxu1 }
 0x7a5   : > { %v5078_v22 = vpop.f32.mrb[126].mxu1  ;;  %5595 = vmatprep.subr.mxu1 %v5076_v48  ;;  %v16845_v48 = vld [vmem:[%s20689_s15 + $0x40] ss:$16 sps:$4 sm:$0xff]  }
 0x7a6   : > { %v5079_v30 = vpop.f32.mrb[127].mxu1  ;;  %5596 = vmatpush1.msra.mxu1 %v5074_v25  ;;  %v16847_v25 = vld [vmem:[%s20689_s15 + $0x44] ss:$16 sps:$4 sm:$0xff]   ;;  %v16851_v22 = vld [vmem:[%s20689_s15 + $0x60] ss:$16 sps:$4 sm:$0xff]  }
 0x7a7   : > { %5673 = vmatprep.subr.mxu1 %v5117_v52  ;;  %14038 = vmatmul.mubr.msk.f32.vlgmr.msra.gmra.mrb[106].mxu1 %vm5207_vm6, %v14037_v8  ;;  %v16806_v52 = vld [vmem:[%s20687_s7 + $0x70] ss:$8 sps:$4 sm:$0xff]   ;;  %v16853_v8 = vld [vmem:[%s20689_s15 + $0x64] ss:$16 sps:$4 sm:$0xff]  }
 0x7a8   : > { %5674 = vmatpush1.msra.mxu1 %v5115_v17  ;;  %5737 = vmatprep.mubr.f32.mxu1 %v17029_v63  ;;  %v16803_v17 = vld [vmem:[%s20687_s7 + $0x60] ss:$8 sps:$4 sm:$0xff]   ;;  %v16859_v30 = vld [vmem:[%s20689_s15 + $0x84] ss:$16 sps:$4 sm:$0xff]  }
 0x7af   : > { %14040 = vmatmul.mubr.msk.f32.vlgmr.msra.gmra.mrb[106].mxu1 %vm5207_vm6, %v14039_v33  ;;  %v16865_v33 = vld [vmem:[%s20689_s15 + $0xa4] ss:$16 sps:$4 sm:$0xff]  }
 0x7b0   : > { %5815 = vmatprep.mubr.f32.mxu1 %v17029_v63 }
 0x7c3   : > { %v5156_v58 = vpop.f32.mrb[128].mxu1 }
 0x7c4   : > { %v5158_v54 = vpop.f32.mrb[129].mxu1 }
 0x7c5   : > { %v5160_v41 = vpop.f32.mrb[130].mxu1  ;;  %5751 = vmatprep.subr.mxu1 %v5158_v54  ;;  %v16871_v54 = vld [vmem:[%s20689_s15 + $0xc4] ss:$16 sps:$4 sm:$0xff]  }
 0x7c6   : > { %v5161_v38 = vpop.f32.mrb[131].mxu1  ;;  %5752 = vmatpush1.msra.mxu1 %v5156_v58  ;;  %v16863_v58 = vld [vmem:[%s20689_s15 + $0xa0] ss:$16 sps:$4 sm:$0xff]   ;;  %v16877_v41 = vld [vmem:[%s20689_s15 + $0xe4] ss:$16 sps:$4 sm:$0xff]  }
 0x7c7   : > { %14042 = vmatmul.mubr.msk.f32.vlgmr.msra.gmra.mrb[106].mxu1 %vm5207_vm6, %v14041_v50  ;;  %5829 = vmatprep.subr.mxu1 %v5199_v9  ;;  %v16821_v9 = vld [vmem:[%s20687_s7 + $0xc0] ss:$8 sps:$4 sm:$0xff]  }
 0x7c8   : > { %5830 = vmatpush1.msra.mxu1 %v5197_v16  ;;  %5893 = vmatprep.mubr.f32.mxu1 %v17029_v63  ;;  %v16818_v16 = vld [vmem:[%s20687_s7 + $0xb0] ss:$8 sps:$4 sm:$0xff]  }
 0x7c9   : > { %6658 = vmatprep.subr.bf16.mxu1 %v16835_v36  ;;  %v16857_v63 = vld [vmem:[%s20689_s15 + $0x80] ss:$16 sps:$4 sm:$0xff]  }
 0x7ca   : > { %v16869_v50 = vld [vmem:[%s20689_s15 + $0xc0] ss:$16 sps:$4 sm:$0xff]  }
 0x7cb   : > { %v16875_v38 = vld [vmem:[%s20689_s15 + $0xe0] ss:$16 sps:$4 sm:$0xff]  }
 0x7cc   : > { %v16917_v36 = vld [vmem:[%s20689_s15 + $0x1c0] ss:$16 sps:$4 sm:$0xff]  }
 0x7cf   : > { %14044 = vmatmul.mubr.msk.f32.vlgmr.msra.gmra.mrb[106].mxu1 %vm5207_vm6, %v14043_v46  ;;  %v16883_v46 = vld [vmem:[%s20689_s15 + $0x104] ss:$16 sps:$4 sm:$0xff]  }
 0x7d0   : > { %6659 = vmatpush1.bf16.msra.mxu1 %v16833_v31  ;;  %v16922_v31 = vld [vmem:[%s20689_s15 + $0x1cc] ss:$16 sps:$4 sm:$0xff]  }
 0x7d1   : > { %6660 = vmatprep.subr.bf16.mxu1 %v16841_v51  ;;  %v16925_v51 = vld [vmem:[%s20689_s15 + $0x1e4] ss:$16 sps:$4 sm:$0xff]  }
 0x7d4   : > { %6661 = vmatpush1.bf16.msra.mxu1 %v16839_v45  ;;  %v16928_v45 = vld [vmem:[%s20689_s15 + $0x1ec] ss:$16 sps:$4 sm:$0xff]  }
 0x7d5   : > { %6662 = vmatprep.subr.bf16.mxu1 %v16847_v25  ;;  %v16923_v25 = vld [vmem:[%s20689_s15 + $0x1e0] ss:$16 sps:$4 sm:$0xff]  }
 0x7d8   : > { %6663 = vmatpush1.bf16.msra.mxu1 %v16845_v48  ;;  %v16926_v48 = vld [vmem:[%s20689_s15 + $0x1e8] ss:$16 sps:$4 sm:$0xff]  }
 0x7d9   : > { %6664 = vmatprep.subr.bf16.mxu1 %v16853_v8  ;;  %v16931_v8 = vld [vmem:[%s20690_s18 + $0x4] ss:$16 sps:$4 sm:$0xff]  }
 0x7dc   : > { %6665 = vmatpush1.bf16.msra.mxu1 %v16851_v22  ;;  %v16934_v22 = vld [vmem:[%s20690_s18 + $0xc] ss:$16 sps:$4 sm:$0xff]  }
 0x7dd   : > { %6666 = vmatprep.subr.bf16.mxu1 %v16859_v30  ;;  %v6035_v30 = vld [vmem:[%s20691_s26] sm:$0x3]  ;;  %s14144_s26 = sld [smem:[#allocation6 + $0x1]] }
 0x7e0   : > { %6667 = vmatpush1.bf16.msra.mxu1 %v16857_v63  ;;  %v6040_v63 = vrot.slane %v6035_v30, %v19449_v14 }
 0x7e1   : > { %6668 = vmatprep.subr.bf16.mxu1 %v16865_v33  ;;  %v6044_v33 = vrot.slane %v6035_v30, %v19453_v1  ;;  %v17001_v30 = vld [vmem:[%s20690_s18 + $0x180] ss:$16 sps:$4 sm:$0xff]  }
 0x7e4   : > { %6669 = vmatpush1.bf16.msra.mxu1 %v16863_v58 }
 0x7e5   : > { %6670 = vmatprep.subr.bf16.mxu1 %v16871_v54 }
 0x7e8   : > { %6671 = vmatpush1.bf16.msra.mxu1 %v16869_v50 }
 0x7e9   : > { %6672 = vmatprep.subr.bf16.mxu1 %v16877_v41 }
 0x7ec   : > { %6673 = vmatpush1.bf16.msra.mxu1 %v16875_v38 }
 0x7ed   : > { %6674 = vmatprep.subr.bf16.mxu1 %v16883_v46 }
 0x7f0   : > { %6675 = vmatpush1.bf16.msra.mxu1 %v16881_v13 }
 0x7f1   : > { %6676 = vmatprep.subr.bf16.mxu1 %v16889_v23 }
 0x8a2   : > { %v5895_v39 = vpop.f32.mrb[106].mxu1 }
 0x8a3   : > { %v5914_v18 = vadd.f32 %v5907_v28, %v5895_v39  ;;  %v5897_v26 = vpop.f32.mrb[107].mxu1  ;;  %v16887_v28 = vld [vmem:[%s20689_s15 + $0x120] ss:$16 sps:$4 sm:$0xff]  }
 0x8a4   : > { %v5915_v59 = vadd.f32 %v5911_v55, %v5897_v26  ;;  %v16895_v55 = vld [vmem:[%s20689_s15 + $0x144] ss:$16 sps:$4 sm:$0xff]   ;;  %6677 = vmatpush1.bf16.msra.mxu1 %v16887_v28  ;;  %v16893_v39 = vld [vmem:[%s20689_s15 + $0x140] ss:$16 sps:$4 sm:$0xff]  }
 0x8a5   : > { %v5916_v2 = vmax.f32 %v5914_v18, 0.0  ;;  %6678 = vmatprep.subr.bf16.mxu1 %v16895_v55  ;;  %v16901_v18 = vld [vmem:[%s20689_s15 + $0x164] ss:$16 sps:$4 sm:$0xff]   ;;  %v16899_v26 = vld [vmem:[%s20689_s15 + $0x160] ss:$16 sps:$4 sm:$0xff]  }
 0x8a6   : > { %v5917_v27 = vmax.f32 %v5915_v59, 0.0  ;;  %v16907_v59 = vld [vmem:[%s20689_s15 + $0x184] ss:$16 sps:$4 sm:$0xff]   ;;  %v16929_v55 = vld [vmem:[%s20690_s18] ss:$16 sps:$4 sm:$0xff]  }
 0x8a8   : > { %14045 = vmatprep.subr.msk.mxu0 %vm5923_vm7, %v5917_v27  ;;  %6679 = vmatpush1.bf16.msra.mxu1 %v16893_v39  ;;  %v16905_v27 = vld [vmem:[%s20689_s15 + $0x180] ss:$16 sps:$4 sm:$0xff]   ;;  %v16932_v39 = vld [vmem:[%s20690_s18 + $0x8] ss:$16 sps:$4 sm:$0xff]  }
 0x8a9   : > { %14046 = vmatpush1.msk.msra.mxu0 %vm5923_vm7, %v5916_v2  ;;  %6680 = vmatprep.subr.bf16.mxu1 %v16901_v18  ;;  %v16911_v2 = vld [vmem:[%s20689_s15 + $0x1a0] ss:$16 sps:$4 sm:$0xff]  }
 0x8aa   : > { %14047 = vmatmul.mubr.msk.f32.vlgmr.msra.gmra.mrb[64].mxu0 %vm5919_vm8, %v5918_v19  ;;  %6207 = vmatprep.subr.bf16.mxu0 %v16787_v42  ;;  %v16913_v42 = vld [vmem:[%s20689_s15 + $0x1a4] ss:$16 sps:$4 sm:$0xff]  }
 0x8ab   : > { %6208 = vmatpush1.bf16.msra.mxu0 %v16785_v21 }
 0x8ac   : > { %6209 = vmatprep.subr.bf16.mxu0 %v16790_v24  ;;  %6681 = vmatpush1.bf16.msra.mxu1 %v16899_v26  ;;  %v16937_v26 = vld [vmem:[%s20690_s18 + $0x24] ss:$16 sps:$4 sm:$0xff]  }
 0x8ad   : > { %6682 = vmatprep.subr.bf16.mxu1 %v16907_v59  ;;  %v16940_v59 = vld [vmem:[%s20690_s18 + $0x2c] ss:$16 sps:$4 sm:$0xff]  }
 0x8af   : > { %6210 = vmatpush1.bf16.msra.mxu0 %v16788_v15  ;;  %v16836_v15 = vld [vmem:[%s20689_s15 + $0x8] ss:$16 sps:$4 sm:$0xff]  }
 0x8b0   : > { %6211 = vmatprep.subr.bf16.mxu0 %v16793_v3  ;;  %6683 = vmatpush1.bf16.msra.mxu1 %v16905_v27  ;;  %v16935_v27 = vld [vmem:[%s20690_s18 + $0x20] ss:$16 sps:$4 sm:$0xff]  }
 0x8b1   : > { %6684 = vmatprep.subr.bf16.mxu1 %v16913_v42  ;;  %v16938_v42 = vld [vmem:[%s20690_s18 + $0x28] ss:$16 sps:$4 sm:$0xff]  }
 0x8b3   : > { %6212 = vmatpush1.bf16.msra.mxu0 %v16791_v7  ;;  %v16844_v7 = vld [vmem:[%s20689_s15 + $0x2c] ss:$16 sps:$4 sm:$0xff]  }
 0x8b4   : > { %6213 = vmatprep.subr.bf16.mxu0 %v16796_v61  ;;  %6685 = vmatpush1.bf16.msra.mxu1 %v16911_v2  ;;  %v16842_v61 = vld [vmem:[%s20689_s15 + $0x28] ss:$16 sps:$4 sm:$0xff]   ;;  %v16943_v2 = vld [vmem:[%s20690_s18 + $0x44] ss:$16 sps:$4 sm:$0xff]  }
 0x8b7   : > { %6214 = vmatpush1.bf16.msra.mxu0 %v16794_v34  ;;  %v16850_v34 = vld [vmem:[%s20689_s15 + $0x4c] ss:$16 sps:$4 sm:$0xff]  }
 0x8b8   : > { %6215 = vmatprep.subr.bf16.mxu0 %v16799_v35  ;;  %v16848_v35 = vld [vmem:[%s20689_s15 + $0x48] ss:$16 sps:$4 sm:$0xff]  }
 0x8bb   : > { %6216 = vmatpush1.bf16.msra.mxu0 %v16797_v37  ;;  %v16856_v37 = vld [vmem:[%s20689_s15 + $0x6c] ss:$16 sps:$4 sm:$0xff]  }
 0x8bc   : > { %6217 = vmatprep.subr.bf16.mxu0 %v16802_v49  ;;  %v16854_v49 = vld [vmem:[%s20689_s15 + $0x68] ss:$16 sps:$4 sm:$0xff]  }
 0x8bf   : > { %6218 = vmatpush1.bf16.msra.mxu0 %v16800_v44  ;;  %v16862_v44 = vld [vmem:[%s20689_s15 + $0x8c] ss:$16 sps:$4 sm:$0xff]  }
 0x8c0   : > { %6219 = vmatprep.subr.bf16.mxu0 %v16805_v47  ;;  %v16860_v47 = vld [vmem:[%s20689_s15 + $0x88] ss:$16 sps:$4 sm:$0xff]  }
 0x8c3   : > { %6220 = vmatpush1.bf16.msra.mxu0 %v16803_v17  ;;  %v16868_v17 = vld [vmem:[%s20689_s15 + $0xac] ss:$16 sps:$4 sm:$0xff]  }
 0x8c4   : > { %6221 = vmatprep.subr.bf16.mxu0 %v16808_v12  ;;  %v16866_v12 = vld [vmem:[%s20689_s15 + $0xa8] ss:$16 sps:$4 sm:$0xff]  }
 0x8c7   : > { %6222 = vmatpush1.bf16.msra.mxu0 %v16806_v52  ;;  %v16874_v52 = vld [vmem:[%s20689_s15 + $0xcc] ss:$16 sps:$4 sm:$0xff]  }
 0x8c8   : > { %6223 = vmatprep.subr.bf16.mxu0 %v16811_v57  ;;  %v16872_v57 = vld [vmem:[%s20689_s15 + $0xc8] ss:$16 sps:$4 sm:$0xff]  }
 0x8cb   : > { %6224 = vmatpush1.bf16.msra.mxu0 %v16809_v20  ;;  %v16880_v20 = vld [vmem:[%s20689_s15 + $0xec] ss:$16 sps:$4 sm:$0xff]  }
 0x8cc   : > { %6225 = vmatprep.subr.bf16.mxu0 %v16814_v43  ;;  %v16878_v43 = vld [vmem:[%s20689_s15 + $0xe8] ss:$16 sps:$4 sm:$0xff]  }
 0x8cf   : > { %6226 = vmatpush1.bf16.msra.mxu0 %v16812_v4  ;;  %v16886_v4 = vld [vmem:[%s20689_s15 + $0x10c] ss:$16 sps:$4 sm:$0xff]  }
 0x8d0   : > { %6227 = vmatprep.subr.bf16.mxu0 %v16817_v53  ;;  %v16884_v53 = vld [vmem:[%s20689_s15 + $0x108] ss:$16 sps:$4 sm:$0xff]  }
 0x8d3   : > { %6228 = vmatpush1.bf16.msra.mxu0 %v16815_v11  ;;  %v16892_v11 = vld [vmem:[%s20689_s15 + $0x12c] ss:$16 sps:$4 sm:$0xff]  }
 0x8d4   : > { %6229 = vmatprep.subr.bf16.mxu0 %v16820_v62  ;;  %v16890_v62 = vld [vmem:[%s20689_s15 + $0x128] ss:$16 sps:$4 sm:$0xff]  }
 0x8d7   : > { %6230 = vmatpush1.bf16.msra.mxu0 %v16818_v16  ;;  %v16898_v16 = vld [vmem:[%s20689_s15 + $0x14c] ss:$16 sps:$4 sm:$0xff]  }
 0x8d8   : > { %6231 = vmatprep.subr.bf16.mxu0 %v16823_v0  ;;  %v16896_v0 = vld [vmem:[%s20689_s15 + $0x148] ss:$16 sps:$4 sm:$0xff]  }
 0x8db   : > { %6232 = vmatpush1.bf16.msra.mxu0 %v16821_v9  ;;  %v16904_v9 = vld [vmem:[%s20689_s15 + $0x16c] ss:$16 sps:$4 sm:$0xff]  }
 0x8dc   : > { %6233 = vmatprep.subr.bf16.mxu0 %v16826_v6  ;;  %v16902_v6 = vld [vmem:[%s20689_s15 + $0x168] ss:$16 sps:$4 sm:$0xff]  }
 0x8df   : > { %6234 = vmatpush1.bf16.msra.mxu0 %v16824_v56  ;;  %v16910_v56 = vld [vmem:[%s20689_s15 + $0x18c] ss:$16 sps:$4 sm:$0xff]  }
 0x8e0   : > { %6235 = vmatprep.subr.bf16.mxu0 %v16829_v60  ;;  %v16908_v60 = vld [vmem:[%s20689_s15 + $0x188] ss:$16 sps:$4 sm:$0xff]  }
 0x8e3   : > { %6236 = vmatpush1.bf16.msra.mxu0 %v16827_v10  ;;  %v16916_v10 = vld [vmem:[%s20689_s15 + $0x1ac] ss:$16 sps:$4 sm:$0xff]  }
 0x8e4   : > { %6237 = vmatprep.subr.bf16.mxu0 %v16832_v5  ;;  %v16914_v5 = vld [vmem:[%s20689_s15 + $0x1a8] ss:$16 sps:$4 sm:$0xff]  }
 0x8e7   : > { %6238 = vmatpush1.bf16.msra.mxu0 %v16830_v29  ;;  %v16919_v29 = vld [vmem:[%s20689_s15 + $0x1c4] ss:$16 sps:$4 sm:$0xff]  }
 0x8e8   : > { %6699 = vmatprep.subr.bf16.mxu0 %v16838_v40  ;;  %v16920_v40 = vld [vmem:[%s20689_s15 + $0x1c8] ss:$16 sps:$4 sm:$0xff]   ;;  %6686 = vmatprep.subr.bf16.mxu1 %v16919_v29  ;;  %v16991_v29 = vld [vmem:[%s20690_s18 + $0x144] ss:$16 sps:$4 sm:$0xff]  }
 0x8e9   : > { %6687 = vmatpush1.bf16.msra.mxu1 %v16917_v36  ;;  %v16989_v36 = vld [vmem:[%s20690_s18 + $0x140] ss:$16 sps:$4 sm:$0xff]  }
 0x8ea   : > { %6688 = vmatprep.subr.bf16.mxu1 %v16925_v51  ;;  %v16997_v51 = vld [vmem:[%s20690_s18 + $0x164] ss:$16 sps:$4 sm:$0xff]  }
 0x8ed   : > { %6689 = vmatpush1.bf16.msra.mxu1 %v16923_v25  ;;  %v16995_v25 = vld [vmem:[%s20690_s18 + $0x160] ss:$16 sps:$4 sm:$0xff]  }
 0x8ee   : > { %7174 = vmatprep.subr.bf16.mxu1 %v16931_v8  ;;  %v17003_v8 = vld [vmem:[%s20690_s18 + $0x184] ss:$16 sps:$4 sm:$0xff]  }
 0x97d   : > { %v5996_v19 = vpop.f32.mrb[64].mxu0 }
 0x97e   : > { %v5998_v21 = vpop.f32.mrb[65].mxu0  ;;  %v6001_v3 = vpack.c.bf16 %v5996_v19, %v5996_v19  ;;  %v16946_v19 = vld [vmem:[%s20690_s18 + $0x4c] ss:$16 sps:$4 sm:$0xff]  }
 0x97f   : > { %v6002_v24 = vpack.c.bf16 %v5998_v21, %v5998_v21  ;;  %v16941_v21 = vld [vmem:[%s20690_s18 + $0x40] ss:$16 sps:$4 sm:$0xff]  }
 0x981   : > { %6239 = vmatprep.mubr.bf16.mxu0 %v6002_v24  ;;  %v16944_v24 = vld [vmem:[%s20690_s18 + $0x48] ss:$16 sps:$4 sm:$0xff]  }
 0x982   : > { %6240 = vmatmul.mubr.bf16.vlgmr.msra.gmra.mrb[68].mxu0 %v6001_v3  ;;  %v16952_v3 = vld [vmem:[%s20690_s18 + $0x6c] ss:$16 sps:$4 sm:$0xff]  }
 0x983   : > { %6700 = vmatpush1.bf16.msra.mxu0 %v16836_v15  ;;  %v16949_v15 = vld [vmem:[%s20690_s18 + $0x64] ss:$16 sps:$4 sm:$0xff]  }
 0x984   : > { %6701 = vmatprep.subr.bf16.mxu0 %v16844_v7  ;;  %v16947_v7 = vld [vmem:[%s20690_s18 + $0x60] ss:$16 sps:$4 sm:$0xff]  }
 0x987   : > { %6702 = vmatpush1.bf16.msra.mxu0 %v16842_v61  ;;  %v16950_v61 = vld [vmem:[%s20690_s18 + $0x68] ss:$16 sps:$4 sm:$0xff]  }
 0x988   : > { %6703 = vmatprep.subr.bf16.mxu0 %v16850_v34  ;;  %v16955_v34 = vld [vmem:[%s20690_s18 + $0x84] ss:$16 sps:$4 sm:$0xff]  }
 0x98b   : > { %6704 = vmatpush1.bf16.msra.mxu0 %v16848_v35  ;;  %v16958_v35 = vld [vmem:[%s20690_s18 + $0x8c] ss:$16 sps:$4 sm:$0xff]  }
 0x98c   : > { %6705 = vmatprep.subr.bf16.mxu0 %v16856_v37  ;;  %v16953_v37 = vld [vmem:[%s20690_s18 + $0x80] ss:$16 sps:$4 sm:$0xff]  }
 0x98f   : > { %6706 = vmatpush1.bf16.msra.mxu0 %v16854_v49  ;;  %v16956_v49 = vld [vmem:[%s20690_s18 + $0x88] ss:$16 sps:$4 sm:$0xff]  }
 0x990   : > { %6707 = vmatprep.subr.bf16.mxu0 %v16862_v44  ;;  %v16961_v44 = vld [vmem:[%s20690_s18 + $0xa4] ss:$16 sps:$4 sm:$0xff]  }
 0x993   : > { %6708 = vmatpush1.bf16.msra.mxu0 %v16860_v47  ;;  %v16964_v47 = vld [vmem:[%s20690_s18 + $0xac] ss:$16 sps:$4 sm:$0xff]  }
 0x994   : > { %6709 = vmatprep.subr.bf16.mxu0 %v16868_v17  ;;  %v16959_v17 = vld [vmem:[%s20690_s18 + $0xa0] ss:$16 sps:$4 sm:$0xff]  }
 0x997   : > { %6710 = vmatpush1.bf16.msra.mxu0 %v16866_v12  ;;  %v16962_v12 = vld [vmem:[%s20690_s18 + $0xa8] ss:$16 sps:$4 sm:$0xff]  }
 0x998   : > { %6711 = vmatprep.subr.bf16.mxu0 %v16874_v52  ;;  %v16967_v52 = vld [vmem:[%s20690_s18 + $0xc4] ss:$16 sps:$4 sm:$0xff]  }
 0x99b   : > { %6712 = vmatpush1.bf16.msra.mxu0 %v16872_v57  ;;  %v16970_v57 = vld [vmem:[%s20690_s18 + $0xcc] ss:$16 sps:$4 sm:$0xff]  }
 0x99c   : > { %6713 = vmatprep.subr.bf16.mxu0 %v16880_v20  ;;  %v16965_v20 = vld [vmem:[%s20690_s18 + $0xc0] ss:$16 sps:$4 sm:$0xff]  }
 0x99f   : > { %6714 = vmatpush1.bf16.msra.mxu0 %v16878_v43  ;;  %v16968_v43 = vld [vmem:[%s20690_s18 + $0xc8] ss:$16 sps:$4 sm:$0xff]  }
 0x9a0   : > { %6715 = vmatprep.subr.bf16.mxu0 %v16886_v4  ;;  %v16973_v4 = vld [vmem:[%s20690_s18 + $0xe4] ss:$16 sps:$4 sm:$0xff]  }
 0x9a3   : > { %6716 = vmatpush1.bf16.msra.mxu0 %v16884_v53  ;;  %v16976_v53 = vld [vmem:[%s20690_s18 + $0xec] ss:$16 sps:$4 sm:$0xff]  }
 0x9a4   : > { %6717 = vmatprep.subr.bf16.mxu0 %v16892_v11  ;;  %v16971_v11 = vld [vmem:[%s20690_s18 + $0xe0] ss:$16 sps:$4 sm:$0xff]  }
 0x9a7   : > { %6718 = vmatpush1.bf16.msra.mxu0 %v16890_v62  ;;  %v16974_v62 = vld [vmem:[%s20690_s18 + $0xe8] ss:$16 sps:$4 sm:$0xff]  }
 0x9a8   : > { %6719 = vmatprep.subr.bf16.mxu0 %v16898_v16  ;;  %v16979_v16 = vld [vmem:[%s20690_s18 + $0x104] ss:$16 sps:$4 sm:$0xff]  }
 0x9ab   : > { %6720 = vmatpush1.bf16.msra.mxu0 %v16896_v0  ;;  %v16982_v0 = vld [vmem:[%s20690_s18 + $0x10c] ss:$16 sps:$4 sm:$0xff]  }
 0x9ac   : > { %6721 = vmatprep.subr.bf16.mxu0 %v16904_v9  ;;  %v16977_v9 = vld [vmem:[%s20690_s18 + $0x100] ss:$16 sps:$4 sm:$0xff]  }
 0x9af   : > { %6722 = vmatpush1.bf16.msra.mxu0 %v16902_v6  ;;  %v16980_v6 = vld [vmem:[%s20690_s18 + $0x108] ss:$16 sps:$4 sm:$0xff]  }
 0x9b0   : > { %6723 = vmatprep.subr.bf16.mxu0 %v16910_v56  ;;  %v16985_v56 = vld [vmem:[%s20690_s18 + $0x124] ss:$16 sps:$4 sm:$0xff]  }
 0x9b3   : > { %6724 = vmatpush1.bf16.msra.mxu0 %v16908_v60  ;;  %v16988_v60 = vld [vmem:[%s20690_s18 + $0x12c] ss:$16 sps:$4 sm:$0xff]  }
 0x9b4   : > { %6725 = vmatprep.subr.bf16.mxu0 %v16916_v10  ;;  %v16983_v10 = vld [vmem:[%s20690_s18 + $0x120] ss:$16 sps:$4 sm:$0xff]  }
 0x9b7   : > { %6726 = vmatpush1.bf16.msra.mxu0 %v16914_v5  ;;  %v16986_v5 = vld [vmem:[%s20690_s18 + $0x128] ss:$16 sps:$4 sm:$0xff]  }
 0x9b8   : > { %6727 = vmatprep.subr.bf16.mxu0 %v16922_v31  ;;  %v16994_v31 = vld [vmem:[%s20690_s18 + $0x14c] ss:$16 sps:$4 sm:$0xff]  }
 0x9bb   : > { %6728 = vmatpush1.bf16.msra.mxu0 %v16920_v40  ;;  %v16992_v40 = vld [vmem:[%s20690_s18 + $0x148] ss:$16 sps:$4 sm:$0xff]  }
 0x9bc   : > { %6729 = vmatprep.subr.bf16.mxu0 %v16928_v45  ;;  %v17000_v45 = vld [vmem:[%s20690_s18 + $0x16c] ss:$16 sps:$4 sm:$0xff]  }
 0x9bf   : > { %6730 = vmatpush1.bf16.msra.mxu0 %v16926_v48  ;;  %v16998_v48 = vld [vmem:[%s20690_s18 + $0x168] ss:$16 sps:$4 sm:$0xff]  }
 0x9c0   : > { %7215 = vmatprep.subr.bf16.mxu0 %v16934_v22  ;;  %v17006_v22 = vld [vmem:[%s20690_s18 + $0x18c] ss:$16 sps:$4 sm:$0xff]  }
 0xa55   : > { %v6241_v58 = vpop.f32.mrb[68].mxu0 }
 0xa56   : > { %v6242_v54 = vadd.f32 %v6241_v58, %v6040_v63  ;;  %v6243_v50 = vpop.f32.mrb[69].mxu0  ;;  %v17004_v63 = vld [vmem:[%s20690_s18 + $0x188] ss:$16 sps:$4 sm:$0xff]   ;;  %v17012_v58 = vld [vmem:[%s20690_s18 + $0x1ac] ss:$16 sps:$4 sm:$0xff]  }
 0xa57   : > { %v6244_v41 = vadd.f32 %v6243_v50, %v6044_v33  ;;  %v6245_v38 = vpop.f32.mrb[70].mxu0  ;;  %v17009_v33 = vld [vmem:[%s20690_s18 + $0x1a4] ss:$16 sps:$4 sm:$0xff]   ;;  %v17010_v50 = vld [vmem:[%s20690_s18 + $0x1a8] ss:$16 sps:$4 sm:$0xff]  }
 0xa58   : > { %v6248_v46 = vmax.f32 %v6242_v54, 0.0  ;;  %v6246_v13 = vpop.f32.mrb[71].mxu0  ;;  %v17007_v54 = vld [vmem:[%s20690_s18 + $0x1a0] ss:$16 sps:$4 sm:$0xff]   ;;  %v17018_v38 = vld [vmem:[%s20690_s18 + $0x1cc] ss:$16 sps:$4 sm:$0xff]  }
 0xa59   : > { %v6249_v23 = vmax.f32 %v6244_v41, 0.0  ;;  %v17015_v41 = vld [vmem:[%s20690_s18 + $0x1c4] ss:$16 sps:$4 sm:$0xff]   ;;  %v17016_v13 = vld [vmem:[%s20690_s18 + $0x1c8] ss:$16 sps:$4 sm:$0xff]  }
 0xa5a   : > { %v19563_v18 = vpack.c.bf16 %v6248_v46, %v6248_v46  ;;  %v17013_v46 = vld [vmem:[%s20690_s18 + $0x1c0] ss:$16 sps:$4 sm:$0xff]  }
 0xa5b   : > { %v6251_v28 = vpack.c.bf16 %v6249_v23, %v6249_v23  ;;  %v17021_v23 = vld [vmem:[%s20690_s18 + $0x1e4] ss:$16 sps:$4 sm:$0xff]  }
 0xa5d   : > { %6690 = vmatprep.mubr.bf16.mxu1 %v6251_v28  ;;  %6731 = vmatprep.mubr.bf16.mxu0 %v6251_v28 }
 0xa5e   : > { %6691 = vmatmul.mubr.bf16.vlgmr.msra.gmra.mrb[132].mxu1 %v19563_v18  ;;  %6732 = vmatmul.mubr.bf16.vlgmr.msra.gmra.mrb[72].mxu0 %v19563_v18 }
 0xa5f   : > { %7175 = vmatpush1.bf16.msra.mxu1 %v16929_v55  ;;  %7216 = vmatpush1.bf16.msra.mxu0 %v16932_v39  ;;  %v17019_v55 = vld [vmem:[%s20690_s18 + $0x1e0] ss:$16 sps:$4 sm:$0xff]   ;;  %v17022_v39 = vld [vmem:[%s20690_s18 + $0x1e8] ss:$16 sps:$4 sm:$0xff]  }
 0xa60   : > { %7176 = vmatprep.subr.bf16.mxu1 %v16937_v26  ;;  %7206 = vmatprep.mubr.bf16.mxu1 %v6251_v28  ;;  %v6328_v26 = vsub.s32 2, %v19446_v32 }
 0xa61   : > { %7217 = vmatprep.subr.bf16.mxu0 %v16940_v59  ;;  %7247 = vmatprep.mubr.bf16.mxu0 %v6251_v28  ;;  %v17024_v28 = vld [vmem:[%s20690_s18 + $0x1ec] ss:$16 sps:$4 sm:$0xff]   ;;  %v6316_v59 = vld [vmem:[%s20692_s2] sm:$0xf] }
 0xa63   : > { %7177 = vmatpush1.bf16.msra.mxu1 %v16935_v27  ;;  %7218 = vmatpush1.bf16.msra.mxu0 %v16938_v42  ;;  %v6332_v27 = vsub.s32 3, %v19446_v32  ;;  %v6321_v42 = vrot.slane %v6316_v59, %v19449_v14 }
 0xa64   : > { %7178 = vmatprep.subr.bf16.mxu1 %v16943_v2  ;;  %7219 = vmatprep.subr.bf16.mxu0 %v16946_v19  ;;  %v6329_v2 = vrot.slane %v6316_v59, %v6328_v26  ;;  %v6744_v19 = vld [vmem:[%s20693_s10] sm:$0xf] }
 0xa67   : > { %7179 = vmatpush1.bf16.msra.mxu1 %v16941_v21  ;;  %7220 = vmatpush1.bf16.msra.mxu0 %v16944_v24  ;;  %v6325_v21 = vrot.slane %v6316_v59, %v19453_v1  ;;  %v6333_v24 = vrot.slane %v6316_v59, %v6332_v27 }
 0xa68   : > { %7180 = vmatprep.subr.bf16.mxu1 %v16949_v15  ;;  %7221 = vmatprep.subr.bf16.mxu0 %v16952_v3 }
 0xa6b   : > { %7181 = vmatpush1.bf16.msra.mxu1 %v16947_v7  ;;  %7222 = vmatpush1.bf16.msra.mxu0 %v16950_v61  ;;  %v6749_v61 = vrot.slane %v6744_v19, %v19449_v14 }
 0xa6c   : > { %7182 = vmatprep.subr.bf16.mxu1 %v16955_v34  ;;  %7223 = vmatprep.subr.bf16.mxu0 %v16958_v35 }
 0xa6f   : > { %7183 = vmatpush1.bf16.msra.mxu1 %v16953_v37  ;;  %7224 = vmatpush1.bf16.msra.mxu0 %v16956_v49  ;;  %v6757_v37 = vrot.slane %v6744_v19, %v6328_v26 }
 0xa70   : > { %7184 = vmatprep.subr.bf16.mxu1 %v16961_v44  ;;  %7225 = vmatprep.subr.bf16.mxu0 %v16964_v47  ;;  %v6753_v44 = vrot.slane %v6744_v19, %v19453_v1 }
 0xa73   : > { %7185 = vmatpush1.bf16.msra.mxu1 %v16959_v17  ;;  %7226 = vmatpush1.bf16.msra.mxu0 %v16962_v12 }
 0xa74   : > { %7186 = vmatprep.subr.bf16.mxu1 %v16967_v52  ;;  %7227 = vmatprep.subr.bf16.mxu0 %v16970_v57 }
 0xa77   : > { %7187 = vmatpush1.bf16.msra.mxu1 %v16965_v20  ;;  %7228 = vmatpush1.bf16.msra.mxu0 %v16968_v43 }
 0xa78   : > { %7188 = vmatprep.subr.bf16.mxu1 %v16973_v4  ;;  %7229 = vmatprep.subr.bf16.mxu0 %v16976_v53 }
 0xa7b   : > { %7189 = vmatpush1.bf16.msra.mxu1 %v16971_v11  ;;  %7230 = vmatpush1.bf16.msra.mxu0 %v16974_v62  ;;  %v6761_v11 = vrot.slane %v6744_v19, %v6332_v27 }
 0xa7c   : > { %7190 = vmatprep.subr.bf16.mxu1 %v16979_v16  ;;  %7231 = vmatprep.subr.bf16.mxu0 %v16982_v0 }
 0xa7f   : > { %7191 = vmatpush1.bf16.msra.mxu1 %v16977_v9  ;;  %7232 = vmatpush1.bf16.msra.mxu0 %v16980_v6 }
 0xa80   : > { %7192 = vmatprep.subr.bf16.mxu1 %v16985_v56  ;;  %7233 = vmatprep.subr.bf16.mxu0 %v16988_v60 }
 0xa83   : > { %7193 = vmatpush1.bf16.msra.mxu1 %v16983_v10  ;;  %7234 = vmatpush1.bf16.msra.mxu0 %v16986_v5 }
 0xa84   : > { %7194 = vmatprep.subr.bf16.mxu1 %v16991_v29  ;;  %7235 = vmatprep.subr.bf16.mxu0 %v16994_v31  ;;  %v18321_v29 = vmov 1983009808  }
 0xa85   : > { %v7263_v31 = vunpack.c.l.s4 %v18321_v29 }
 0xa87   : > { %7195 = vmatpush1.bf16.msra.mxu1 %v16989_v36  ;;  %7236 = vmatpush1.bf16.msra.mxu0 %v16992_v40  ;;  %v7264_v36 = vunpack.c.0.s8 %v7263_v31 }
 0xa88   : > { %7196 = vmatprep.subr.bf16.mxu1 %v16997_v51  ;;  %7237 = vmatprep.subr.bf16.mxu0 %v17000_v45 }
 0xa89   : > { %v7267_v45 = vsub.s32 %v7264_v36, %v19446_v32 }
 0xa8b   : > { %7197 = vmatpush1.bf16.msra.mxu1 %v16995_v25  ;;  %7238 = vmatpush1.bf16.msra.mxu0 %v16998_v48 }
 0xa8c   : > { %7198 = vmatprep.subr.bf16.mxu1 %v17003_v8  ;;  %7239 = vmatprep.subr.bf16.mxu0 %v17006_v22 }
 0xa8f   : > { %7199 = vmatpush1.bf16.msra.mxu1 %v17001_v30  ;;  %7240 = vmatpush1.bf16.msra.mxu0 %v17004_v63 }
 0xa90   : > { %7200 = vmatprep.subr.bf16.mxu1 %v17009_v33  ;;  %7241 = vmatprep.subr.bf16.mxu0 %v17012_v58 }
 0xa93   : > { %7201 = vmatpush1.bf16.msra.mxu1 %v17007_v54  ;;  %7242 = vmatpush1.bf16.msra.mxu0 %v17010_v50 }
 0xa94   : > { %7202 = vmatprep.subr.bf16.mxu1 %v17015_v41  ;;  %7243 = vmatprep.subr.bf16.mxu0 %v17018_v38  ;;  %v6780_v38 = vstv %s14144_s26 }
 0xa97   : > { %7203 = vmatpush1.bf16.msra.mxu1 %v17013_v46  ;;  %7244 = vmatpush1.bf16.msra.mxu0 %v17016_v13 }
 0xa98   : > { %7204 = vmatprep.subr.bf16.mxu1 %v17021_v23  ;;  %7245 = vmatprep.subr.bf16.mxu0 %v17024_v28 }
 0xa9b   : > { %7205 = vmatpush1.bf16.msra.mxu1 %v17019_v55  ;;  %7246 = vmatpush1.bf16.msra.mxu0 %v17022_v39 }
 0xa9e   : > { %7207 = vmatmul.mubr.bf16.vlgmr.msra.gmra.mrb[136].mxu1 %v19563_v18  ;;  %7248 = vmatmul.mubr.bf16.vlgmr.msra.gmra.mrb[76].mxu0 %v19563_v18 }
 0xb31   : > { %v6692_v15 = vpop.f32.mrb[132].mxu1  ;;  %v6733_v3 = vpop.f32.mrb[72].mxu0 }
 0xb32   : > { %v6693_v7 = vadd.f32 %v6692_v15, %v6321_v42  ;;  %v6734_v34 = vadd.f32 %v6733_v3, %v6329_v2  ;;  %v6694_v35 = vpop.f32.mrb[133].mxu1  ;;  %v6735_v18 = vpop.f32.mrb[73].mxu0 }
 0xb33   : > { %v6695_v49 = vadd.f32 %v6694_v35, %v6325_v21  ;;  %v6736_v47 = vadd.f32 %v6735_v18, %v6333_v24  ;;  %v6696_v17 = vpop.f32.mrb[134].mxu1  ;;  %v6737_v12 = vpop.f32.mrb[74].mxu0 }
 0xb34   : > { %v6740_v52 = vmax.f32 %v6693_v7, 0.0  ;;  %v6742_v57 = vmax.f32 %v6734_v34, 0.0  ;;  %v6697_v20 = vpop.f32.mrb[135].mxu1  ;;  %v6738_v43 = vpop.f32.mrb[75].mxu0 }
 0xb35   : > { %v6741_v4 = vmax.f32 %v6695_v49, 0.0  ;;  %v6743_v53 = vmax.f32 %v6736_v47, 0.0 }
 0xb36   : > { %v6766_v62 = vmul.f32 %v6749_v61, %v6740_v52  ;;  %v6768_v16 = vmul.f32 %v6757_v37, %v6742_v57 }
 0xb37   : > { %v6767_v14 = vmul.f32 %v6753_v44, %v6741_v4  ;;  %v6769_v6 = vmul.f32 %v6761_v11, %v6743_v53 }
 0xb38   : > { %v6770_v0 = vsel %vm5923_vm7, %v6766_v62, 0.0  ;;  %v6773_v1 = vsel %vm5923_vm7, %v6768_v16, 0.0 }
 0xb39   : > { %v6771_v9 = vsel %vm5923_vm7, %v6767_v14, 0.0  ;;  %v6775_v10 = vsel %vm5923_vm7, %v6769_v6, 0.0 }
 0xb3a   : > { %v6772_v56 = vadd.f32 %v6771_v9, %v6770_v0 }
 0xb3c   : > { %v6774_v60 = vadd.f32 %v6773_v1, %v6772_v56 }
 0xb3e   : > { %v6776_v5 = vadd.f32 %v6775_v10, %v6774_v60 }
 0xb40   : > { %6777 = vadd.xlane.f32.xlu0 %v6776_v5 }
 0xb71   : > { %v7208_v40 = vpop.f32.mrb[136].mxu1  ;;  %v7249_v51 = vpop.f32.mrb[76].mxu0 }
 0xb72   : > { %v7210_v25 = vpop.f32.mrb[137].mxu1  ;;  %v7251_v48 = vpop.f32.mrb[77].mxu0 }
 0xb73   : > { %v7260_v8 = vcombine.low %v7208_v40, %v7210_v25  ;;  %v7261_v22 = vcombine.low %v7249_v51, %v7251_v48  ;;  %v7212_v30 = vpop.f32.mrb[138].mxu1  ;;  %v7253_v63 = vpop.f32.mrb[78].mxu0 }
 0xb74   : > { %v7213_v33 = vpop.f32.mrb[139].mxu1  ;;  %v7254_v58 = vpop.f32.mrb[79].mxu0 }
 0xb75   : > { %v7268_v54 = vrot.slane %v7260_v8, %v7267_v45  ;;  %v7275_v50 = vrot.slane %v7261_v22, %v7267_v45 }
 0xb77   : > { %v7276_v41 = vcombine.low %v7268_v54, %v7275_v50 }
 0xb79   : > { %7278 = vst [vmem:[#allocation4] sm:$0xff] %v7276_v41 }
 0xbcd   : > { %v6778_v46 = vpop.xlane.xlu0 %6777 }
 0xbce   : > { %v6781_v13 = vadd.f32 %v6780_v38, %v6778_v46 }
 0xbd0   : > { %v14145_v23 = vmul.f32 -1.442695, %v6781_v13 }
 0xbd2   : > { %17025 = vpow2.f32 %v14145_v23 }
 0xbdc   : > { %v17026_v28 = vpop.eup %17025 }
 0xbdd   : > { %v6785_v32 = vadd.f32 1.0, %v17026_v28 }
 0xbdf   : > { %17027 = vrcp.f32 %v6785_v32 }
 0xbe9   : > { %v17028_v55 = vpop.eup %17027 }
 0xbea   : > { %6789 = vst.msk [vmem:[#allocation5] sm:$0x3] %vm6788_vm9, %v17028_v55 }
 0xbeb PF: > { %v17030_v39 = vld [vmem:[%s18530_s22 + $0x4] ss:$16 sps:$4 sm:$0xff]   ;;  %v17032_v26 = vld [vmem:[%s18530_s22 + $0xc] ss:$16 sps:$4 sm:$0xff]   ;;  %v17034_v59 = vld [vmem:[%s18530_s22] ss:$16 sps:$4 sm:$0xff]   ;;  %v7542_v10 = vlaneseq }
 0xbec   : > { %8875 = vmatprep.subr.bf16.mxu0 %v17030_v39  ;;  %v17035_v27 = vld [vmem:[%s18530_s22 + $0x8] ss:$16 sps:$4 sm:$0xff]   ;;  %9039 = vmatprep.subr.bf16.mxu1 %v17032_v26  ;;  %v17036_v42 = vld [vmem:[%s18530_s22 + $0x24] ss:$16 sps:$4 sm:$0xff]   ;;  %v17038_v2 = vld [vmem:[%s18530_s22 + $0x2c] ss:$16 sps:$4 sm:$0xff]  }
 0xbed   : > { %8876 = vmatpush1.bf16.msra.mxu0 %v17034_v59  ;;  %9040 = vmatpush1.bf16.msra.mxu1 %v17035_v27  ;;  %v17040_v19 = vld [vmem:[%s18530_s22 + $0x20] ss:$16 sps:$4 sm:$0xff]   ;;  %v17041_v21 = vld [vmem:[%s18530_s22 + $0x28] ss:$16 sps:$4 sm:$0xff]   ;;  %v17042_v24 = vld [vmem:[%s18530_s22 + $0x44] ss:$16 sps:$4 sm:$0xff]  }
 0xbee   : > { %8877 = vmatprep.subr.bf16.mxu0 %v17036_v42  ;;  %9041 = vmatprep.subr.bf16.mxu1 %v17038_v2  ;;  %v17044_v15 = vld [vmem:[%s18530_s22 + $0x4c] ss:$16 sps:$4 sm:$0xff]   ;;  %v17046_v3 = vld [vmem:[%s18530_s22 + $0x40] ss:$16 sps:$4 sm:$0xff]   ;;  %v17047_v7 = vld [vmem:[%s18530_s22 + $0x48] ss:$16 sps:$4 sm:$0xff]  }
 0xbef   : > { %v17048_v61 = vld [vmem:[%s18530_s22 + $0x64] ss:$16 sps:$4 sm:$0xff]   ;;  %v17050_v34 = vld [vmem:[%s18530_s22 + $0x6c] ss:$16 sps:$4 sm:$0xff]   ;;  %v17052_v35 = vld [vmem:[%s18530_s22 + $0x60] ss:$16 sps:$4 sm:$0xff]  }
 0xbf0   : > { %v17053_v18 = vld [vmem:[%s18530_s22 + $0x68] ss:$16 sps:$4 sm:$0xff]   ;;  %v17054_v37 = vld [vmem:[%s18530_s22 + $0x84] ss:$16 sps:$4 sm:$0xff]   ;;  %v17056_v49 = vld [vmem:[%s18530_s22 + $0x8c] ss:$16 sps:$4 sm:$0xff]  }
 0xbf1   : > { %8878 = vmatpush1.bf16.msra.mxu0 %v17040_v19  ;;  %9042 = vmatpush1.bf16.msra.mxu1 %v17041_v21  ;;  %v17058_v44 = vld [vmem:[%s18530_s22 + $0x80] ss:$16 sps:$4 sm:$0xff]   ;;  %v17059_v47 = vld [vmem:[%s18530_s22 + $0x88] ss:$16 sps:$4 sm:$0xff]   ;;  %v17060_v17 = vld [vmem:[%s18530_s22 + $0xa4] ss:$16 sps:$4 sm:$0xff]  }
 0xbf2   : > { %8879 = vmatprep.subr.bf16.mxu0 %v17042_v24  ;;  %9043 = vmatprep.subr.bf16.mxu1 %v17044_v15  ;;  %v17062_v12 = vld [vmem:[%s18530_s22 + $0xac] ss:$16 sps:$4 sm:$0xff]   ;;  %v17064_v52 = vld [vmem:[%s18530_s22 + $0xa0] ss:$16 sps:$4 sm:$0xff]   ;;  %v17065_v57 = vld [vmem:[%s18530_s22 + $0xa8] ss:$16 sps:$4 sm:$0xff]  }
 0xbf3   : > { %v17066_v20 = vld [vmem:[%s18530_s22 + $0xc4] ss:$16 sps:$4 sm:$0xff]   ;;  %v17068_v43 = vld [vmem:[%s18530_s22 + $0xcc] ss:$16 sps:$4 sm:$0xff]   ;;  %v17070_v4 = vld [vmem:[%s18530_s22 + $0xc0] ss:$16 sps:$4 sm:$0xff]  }
 0xbf4   : > { %v17071_v53 = vld [vmem:[%s18530_s22 + $0xc8] ss:$16 sps:$4 sm:$0xff]   ;;  %v17072_v11 = vld [vmem:[%s18530_s22 + $0xe4] ss:$16 sps:$4 sm:$0xff]   ;;  %v17074_v62 = vld [vmem:[%s18530_s22 + $0xec] ss:$16 sps:$4 sm:$0xff]  }
 0xbf5   : > { %8880 = vmatpush1.bf16.msra.mxu0 %v17046_v3  ;;  %9044 = vmatpush1.bf16.msra.mxu1 %v17047_v7  ;;  %v17076_v16 = vld [vmem:[%s18530_s22 + $0xe0] ss:$16 sps:$4 sm:$0xff]   ;;  %v17077_v14 = vld [vmem:[%s18530_s22 + $0xe8] ss:$16 sps:$4 sm:$0xff]   ;;  %v17078_v0 = vld [vmem:[%s18530_s22 + $0x104] ss:$16 sps:$4 sm:$0xff]  }
 0xbf6   : > { %8881 = vmatprep.subr.bf16.mxu0 %v17048_v61  ;;  %9045 = vmatprep.subr.bf16.mxu1 %v17050_v34  ;;  %v17080_v9 = vld [vmem:[%s18530_s22 + $0x10c] ss:$16 sps:$4 sm:$0xff]   ;;  %v17082_v6 = vld [vmem:[%s18530_s22 + $0x100] ss:$16 sps:$4 sm:$0xff]   ;;  %v17083_v56 = vld [vmem:[%s18530_s22 + $0x108] ss:$16 sps:$4 sm:$0xff]  }
 0xbf7   : > { %v18322_v1 = vmov 1966171168   ;;  %v17084_v5 = vld [vmem:[%s18530_s22 + $0x124] ss:$16 sps:$4 sm:$0xff]   ;;  %v17086_v29 = vld [vmem:[%s18530_s22 + $0x12c] ss:$16 sps:$4 sm:$0xff]  }
 0xbf8   : > { %v7540_v60 = vunpack.c.l.s4 %v18322_v1  ;;  %v17088_v31 = vld [vmem:[%s18530_s22 + $0x120] ss:$16 sps:$4 sm:$0xff]   ;;  %v19681_v40 = vshrl.u32 %v7542_v10, 7  ;;  %v17089_v51 = vld [vmem:[%s18530_s22 + $0x128] ss:$16 sps:$4 sm:$0xff]   ;;  %p14722_p3 = scmp.ne.s32.totalorder %s18502_s1, 1 }
 0xbf9   : > { %8882 = vmatpush1.bf16.msra.mxu0 %v17052_v35  ;;  %9046 = vmatpush1.bf16.msra.mxu1 %v17053_v18  ;;  %v17090_v45 = vld [vmem:[%s18530_s22 + $0x144] ss:$16 sps:$4 sm:$0xff]   ;;  %v17092_v25 = vld [vmem:[%s18530_s22 + $0x14c] ss:$16 sps:$4 sm:$0xff]   ;;  %v17094_v48 = vld [vmem:[%s18530_s22 + $0x140] ss:$16 sps:$4 sm:$0xff]  }
 0xbfa   : > { %8883 = vmatprep.subr.bf16.mxu0 %v17054_v37  ;;  %9047 = vmatprep.subr.bf16.mxu1 %v17056_v49  ;;  %v7541_v36 = vunpack.c.0.s8 %v7540_v60  ;;  %v17095_v8 = vld [vmem:[%s18530_s22 + $0x148] ss:$16 sps:$4 sm:$0xff]   ;;  %v17096_v30 = vld [vmem:[%s18530_s22 + $0x164] ss:$16 sps:$4 sm:$0xff]   ;;  %v17098_v63 = vld [vmem:[%s18530_s22 + $0x16c] ss:$16 sps:$4 sm:$0xff]  }
 0xbfb   : > { %v7279_v33 = vld [vmem:[%s1020_s16] sm:$0xff]  ;;  %v17101_v50 = vld [vmem:[%s18530_s22 + $0x168] ss:$16 sps:$4 sm:$0xff]   ;;  %v17104_v38 = vld [vmem:[%s18530_s22 + $0x18c] ss:$16 sps:$4 sm:$0xff]   ;;  %s20694_s11 = sld [smem:[#allocation21_spill]] (!%p14722_p3) }
 0xbfc   : > { %v19689_v22 = vsub.s32 %v7541_v36, %v19681_v40  ;;  %v17100_v58 = vld [vmem:[%s18530_s22 + $0x160] ss:$16 sps:$4 sm:$0xff]   ;;  %v17102_v41 = vld [vmem:[%s18530_s22 + $0x184] ss:$16 sps:$4 sm:$0xff]   ;;  %v17107_v28 = vld [vmem:[%s18530_s22 + $0x188] ss:$16 sps:$4 sm:$0xff]   ;;  %v7538_v15 = vcombine.high %v7279_v33, %v7279_v33 }
 0xbfd   : > { %8884 = vmatpush1.bf16.msra.mxu0 %v17058_v44  ;;  %9048 = vmatpush1.bf16.msra.mxu1 %v17059_v47  ;;  %v17106_v13 = vld [vmem:[%s18530_s22 + $0x180] ss:$16 sps:$4 sm:$0xff]   ;;  %v17108_v32 = vld [vmem:[%s18530_s22 + $0x1a4] ss:$16 sps:$4 sm:$0xff]   ;;  %v17110_v55 = vld [vmem:[%s18530_s22 + $0x1ac] ss:$16 sps:$4 sm:$0xff]  }
 0xbfe   : > { %8885 = vmatprep.subr.bf16.mxu0 %v17060_v17  ;;  %9049 = vmatprep.subr.bf16.mxu1 %v17062_v12  ;;  %v7545_v54 = vrot.slane %v7279_v33, %v19689_v22  ;;  %v17112_v39 = vld [vmem:[%s18530_s22 + $0x1a0] ss:$16 sps:$4 sm:$0xff]   ;;  %v17113_v26 = vld [vmem:[%s18530_s22 + $0x1a8] ss:$16 sps:$4 sm:$0xff]   ;;  %v17114_v59 = vld [vmem:[%s18530_s22 + $0x1c4] ss:$16 sps:$4 sm:$0xff]   ;;  %v7552_v34 = vrot.slane %v7538_v15, %v19689_v22 }
 0xbff   : > { %v17116_v27 = vld [vmem:[%s18530_s22 + $0x1cc] ss:$16 sps:$4 sm:$0xff]   ;;  %v17118_v42 = vld [vmem:[%s18530_s22 + $0x1c0] ss:$16 sps:$4 sm:$0xff]   ;;  %v17119_v2 = vld [vmem:[%s18530_s22 + $0x1c8] ss:$16 sps:$4 sm:$0xff]  }
 0xc00   : > { %v7553_v46 = vcombine.high %v7545_v54, %v7545_v54  ;;  %v17120_v19 = vld [vmem:[%s18530_s22 + $0x1e4] ss:$16 sps:$4 sm:$0xff]   ;;  %v17122_v21 = vld [vmem:[%s18530_s22 + $0x1ec] ss:$16 sps:$4 sm:$0xff]   ;;  %v17124_v24 = vld [vmem:[%s18530_s22 + $0x1e0] ss:$16 sps:$4 sm:$0xff]   ;;  %v19725_v18 = vrot.slane %v7545_v54, %v19689_v22  ;;  %v7554_v37 = vcombine.high %v7552_v34, %v7552_v34  ;;  %v19734_v12 = vrot.slane %v7552_v34, %v19689_v22 }
 0xc01   : > { %8886 = vmatpush1.bf16.msra.mxu0 %v17064_v52  ;;  %9050 = vmatpush1.bf16.msra.mxu1 %v17065_v57  ;;  %v17125_v3 = vld [vmem:[%s18530_s22 + $0x1e8] ss:$16 sps:$4 sm:$0xff]   ;;  %v17128_v7 = vld [vmem:[%s18530_s22 + $0x204] ss:$16 sps:$4 sm:$0xff]   ;;  %v17131_v61 = vld [vmem:[%s18530_s22 + $0x20c] ss:$16 sps:$4 sm:$0xff]  }
 0xc02   : > { %8887 = vmatprep.subr.bf16.mxu0 %v17066_v20  ;;  %9051 = vmatprep.subr.bf16.mxu1 %v17068_v43  ;;  %v19703_v23 = vrot.slane %v7553_v46, %v19689_v22  ;;  %v17126_v35 = vld [vmem:[%s18530_s22 + $0x200] ss:$16 sps:$4 sm:$0xff]   ;;  %v17129_v49 = vld [vmem:[%s18530_s22 + $0x208] ss:$16 sps:$4 sm:$0xff]   ;;  %v17134_v44 = vld [vmem:[%s18530_s22 + $0x224] ss:$16 sps:$4 sm:$0xff]   ;;  %v19731_v17 = vrot.slane %v7554_v37, %v19689_v22 }
 0xc03   : > { %v17137_v47 = vld [vmem:[%s18530_s22 + $0x22c] ss:$16 sps:$4 sm:$0xff]   ;;  %v17132_v57 = vld [vmem:[%s18530_s22 + $0x220] ss:$16 sps:$4 sm:$0xff]   ;;  %v17135_v20 = vld [vmem:[%s18530_s22 + $0x228] ss:$16 sps:$4 sm:$0xff]  }
 0xc04   : > { %8907 = vmatprep.mubr.bf16.mxu0 %v19703_v23  ;;  %9071 = vmatprep.mubr.bf16.mxu1 %v19703_v23  ;;  %v19738_v52 = vcombine.high %v19703_v23, %v19703_v23  ;;  %v17140_v43 = vld [vmem:[%s18530_s22 + $0x244] ss:$16 sps:$4 sm:$0xff]   ;;  %v17153_v1 = vld [vmem:[%s18530_s22 + $0x288] ss:$16 sps:$4 sm:$0xff]   ;;  %v17161_v10 = vld [vmem:[%s18530_s22 + $0x2ac] ss:$16 sps:$4 sm:$0xff]  }
 0xc05   : > { %8888 = vmatpush1.bf16.msra.mxu0 %v17070_v4  ;;  %9052 = vmatpush1.bf16.msra.mxu1 %v17071_v53  ;;  %v17143_v4 = vld [vmem:[%s18530_s22 + $0x24c] ss:$16 sps:$4 sm:$0xff]   ;;  %v17138_v53 = vld [vmem:[%s18530_s22 + $0x240] ss:$16 sps:$4 sm:$0xff]   ;;  %v17158_v60 = vld [vmem:[%s18530_s22 + $0x2a4] ss:$16 sps:$4 sm:$0xff]  }
 0xc06   : > { %8889 = vmatprep.subr.bf16.mxu0 %v17072_v11  ;;  %9053 = vmatprep.subr.bf16.mxu1 %v17074_v62  ;;  %v17141_v11 = vld [vmem:[%s18530_s22 + $0x248] ss:$16 sps:$4 sm:$0xff]   ;;  %v17146_v62 = vld [vmem:[%s18530_s22 + $0x264] ss:$16 sps:$4 sm:$0xff]   ;;  %v17167_v36 = vld [vmem:[%s18530_s22 + $0x2cc] ss:$16 sps:$4 sm:$0xff]  }
 0xc07   : > { %v17171_v22 = vld [vmem:[%s18530_s22 + $0x2e8] ss:$16 sps:$4 sm:$0xff]   ;;  %v17174_v33 = vld [vmem:[%s18530_s22 + $0x300] ss:$16 sps:$4 sm:$0xff]   ;;  %v17182_v54 = vld [vmem:[%s18530_s22 + $0x324] ss:$16 sps:$4 sm:$0xff]  }
 0xc08   : > { %v17188_v46 = vld [vmem:[%s18530_s22 + $0x344] ss:$16 sps:$4 sm:$0xff]   ;;  %v17204_v15 = vld [vmem:[%s18530_s22 + $0x3a0] ss:$16 sps:$4 sm:$0xff]   ;;  %s20695_s16 = sld [smem:[#allocation22_spill]] (!%p14722_p3)  ;;  %vm11218_vm10 = vcmask (!%p14722_p3), 1041408  }
 0xc09   : > { %8890 = vmatpush1.bf16.msra.mxu0 %v17076_v16  ;;  %9054 = vmatpush1.bf16.msra.mxu1 %v17077_v14  ;;  %v17149_v16 = vld [vmem:[%s18530_s22 + $0x26c] ss:$16 sps:$4 sm:$0xff]   ;;  %v17144_v14 = vld [vmem:[%s18530_s22 + $0x260] ss:$16 sps:$4 sm:$0xff]   ;;  %v17218_v37 = vld [vmem:[%s18530_s22 + $0x3e4] ss:$16 sps:$4 sm:$0xff]  }
 0xc0a   : > { %8891 = vmatprep.subr.bf16.mxu0 %v17078_v0  ;;  %9055 = vmatprep.subr.bf16.mxu1 %v17080_v9  ;;  %v17147_v0 = vld [vmem:[%s18530_s22 + $0x268] ss:$16 sps:$4 sm:$0xff]   ;;  %v17152_v9 = vld [vmem:[%s18530_s22 + $0x284] ss:$16 sps:$4 sm:$0xff]   ;;  %v17210_v34 = vld [vmem:[%s18530_s22 + $0x3c0] ss:$16 sps:$4 sm:$0xff]  }
 0xc0b   : > { %s20697_s2 = sld [smem:[#allocation23_spill]] (!%p14722_p3)  ;;  %s20698_s10 = sld [smem:[#allocation26_spill]] (!%p14722_p3)  ;;  %vm13608_vm11 = vcmask (!%p14722_p3), 17408  }
 0xc0c   : > { %s20699_s26 = sld [smem:[#allocation25_spill]] (!%p14722_p3) }
 0xc0d   : > { %8892 = vmatpush1.bf16.msra.mxu0 %v17082_v6  ;;  %9056 = vmatpush1.bf16.msra.mxu1 %v17083_v56  ;;  %v17155_v6 = vld [vmem:[%s18530_s22 + $0x28c] ss:$16 sps:$4 sm:$0xff]   ;;  %v17150_v56 = vld [vmem:[%s18530_s22 + $0x280] ss:$16 sps:$4 sm:$0xff]  }
 0xc0e   : > { %8893 = vmatprep.subr.bf16.mxu0 %v17084_v5  ;;  %9057 = vmatprep.subr.bf16.mxu1 %v17086_v29  ;;  %v17156_v5 = vld [vmem:[%s18530_s22 + $0x2a0] ss:$16 sps:$4 sm:$0xff]   ;;  %v17159_v29 = vld [vmem:[%s18530_s22 + $0x2a8] ss:$16 sps:$4 sm:$0xff]  }
 0xc11   : > { %8894 = vmatpush1.bf16.msra.mxu0 %v17088_v31  ;;  %9058 = vmatpush1.bf16.msra.mxu1 %v17089_v51  ;;  %v17164_v31 = vld [vmem:[%s18530_s22 + $0x2c4] ss:$16 sps:$4 sm:$0xff]   ;;  %v17162_v51 = vld [vmem:[%s18530_s22 + $0x2c0] ss:$16 sps:$4 sm:$0xff]  }
 0xc12   : > { %8895 = vmatprep.subr.bf16.mxu0 %v17090_v45  ;;  %9059 = vmatprep.subr.bf16.mxu1 %v17092_v25  ;;  %v17165_v45 = vld [vmem:[%s18530_s22 + $0x2c8] ss:$16 sps:$4 sm:$0xff]   ;;  %v17170_v25 = vld [vmem:[%s18530_s22 + $0x2e4] ss:$16 sps:$4 sm:$0xff]  }
 0xc15   : > { %8896 = vmatpush1.bf16.msra.mxu0 %v17094_v48  ;;  %9060 = vmatpush1.bf16.msra.mxu1 %v17095_v8  ;;  %v17173_v48 = vld [vmem:[%s18530_s22 + $0x2ec] ss:$16 sps:$4 sm:$0xff]   ;;  %v17168_v8 = vld [vmem:[%s18530_s22 + $0x2e0] ss:$16 sps:$4 sm:$0xff]  }
 0xc16   : > { %8897 = vmatprep.subr.bf16.mxu0 %v17096_v30  ;;  %9061 = vmatprep.subr.bf16.mxu1 %v17098_v63  ;;  %v17176_v30 = vld [vmem:[%s18530_s22 + $0x304] ss:$16 sps:$4 sm:$0xff]   ;;  %v17179_v63 = vld [vmem:[%s18530_s22 + $0x30c] ss:$16 sps:$4 sm:$0xff]  }
 0xc19   : > { %8898 = vmatpush1.bf16.msra.mxu0 %v17100_v58  ;;  %9062 = vmatpush1.bf16.msra.mxu1 %v17101_v50  ;;  %v17177_v58 = vld [vmem:[%s18530_s22 + $0x308] ss:$16 sps:$4 sm:$0xff]   ;;  %v17185_v50 = vld [vmem:[%s18530_s22 + $0x32c] ss:$16 sps:$4 sm:$0xff]  }
 0xc1a   : > { %8899 = vmatprep.subr.bf16.mxu0 %v17102_v41  ;;  %9063 = vmatprep.subr.bf16.mxu1 %v17104_v38  ;;  %v17180_v41 = vld [vmem:[%s18530_s22 + $0x320] ss:$16 sps:$4 sm:$0xff]   ;;  %v17183_v38 = vld [vmem:[%s18530_s22 + $0x328] ss:$16 sps:$4 sm:$0xff]  }
 0xc1d   : > { %8900 = vmatpush1.bf16.msra.mxu0 %v17106_v13  ;;  %9064 = vmatpush1.bf16.msra.mxu1 %v17107_v28  ;;  %v17191_v13 = vld [vmem:[%s18530_s22 + $0x34c] ss:$16 sps:$4 sm:$0xff]   ;;  %v17186_v28 = vld [vmem:[%s18530_s22 + $0x340] ss:$16 sps:$4 sm:$0xff]  }
 0xc1e   : > { %8901 = vmatprep.subr.bf16.mxu0 %v17108_v32  ;;  %9065 = vmatprep.subr.bf16.mxu1 %v17110_v55  ;;  %v17189_v32 = vld [vmem:[%s18530_s22 + $0x348] ss:$16 sps:$4 sm:$0xff]   ;;  %v17194_v55 = vld [vmem:[%s18530_s22 + $0x364] ss:$16 sps:$4 sm:$0xff]  }
 0xc21   : > { %8902 = vmatpush1.bf16.msra.mxu0 %v17112_v39  ;;  %9066 = vmatpush1.bf16.msra.mxu1 %v17113_v26  ;;  %v17197_v39 = vld [vmem:[%s18530_s22 + $0x36c] ss:$16 sps:$4 sm:$0xff]   ;;  %v17192_v26 = vld [vmem:[%s18530_s22 + $0x360] ss:$16 sps:$4 sm:$0xff]  }
 0xc22   : > { %8903 = vmatprep.subr.bf16.mxu0 %v17114_v59  ;;  %9067 = vmatprep.subr.bf16.mxu1 %v17116_v27  ;;  %v17195_v59 = vld [vmem:[%s18530_s22 + $0x368] ss:$16 sps:$4 sm:$0xff]   ;;  %v17200_v27 = vld [vmem:[%s18530_s22 + $0x384] ss:$16 sps:$4 sm:$0xff]  }
 0xc25   : > { %8904 = vmatpush1.bf16.msra.mxu0 %v17118_v42  ;;  %9068 = vmatpush1.bf16.msra.mxu1 %v17119_v2  ;;  %v17203_v42 = vld [vmem:[%s18530_s22 + $0x38c] ss:$16 sps:$4 sm:$0xff]   ;;  %v17198_v2 = vld [vmem:[%s18530_s22 + $0x380] ss:$16 sps:$4 sm:$0xff]  }
 0xc26   : > { %8905 = vmatprep.subr.bf16.mxu0 %v17120_v19  ;;  %9069 = vmatprep.subr.bf16.mxu1 %v17122_v21  ;;  %v17201_v19 = vld [vmem:[%s18530_s22 + $0x388] ss:$16 sps:$4 sm:$0xff]   ;;  %v17206_v21 = vld [vmem:[%s18530_s22 + $0x3a4] ss:$16 sps:$4 sm:$0xff]  }
 0xc29   : > { %8906 = vmatpush1.bf16.msra.mxu0 %v17124_v24  ;;  %9070 = vmatpush1.bf16.msra.mxu1 %v17125_v3  ;;  %v17209_v24 = vld [vmem:[%s18530_s22 + $0x3ac] ss:$16 sps:$4 sm:$0xff]   ;;  %v17207_v3 = vld [vmem:[%s18530_s22 + $0x3a8] ss:$16 sps:$4 sm:$0xff]  }
 0xc2a   : > { %8916 = vmatprep.subr.bf16.mxu0 %v17128_v7  ;;  %9080 = vmatprep.subr.bf16.mxu1 %v17131_v61  ;;  %v17212_v7 = vld [vmem:[%s18530_s22 + $0x3c4] ss:$16 sps:$4 sm:$0xff]   ;;  %v17215_v61 = vld [vmem:[%s18530_s22 + $0x3cc] ss:$16 sps:$4 sm:$0xff]  }
 0xc2c   : > { %8908 = vmatmul.mubr.bf16.vlgmr.msra.gmra.mrb[0].mxu0 %v19725_v18  ;;  %9072 = vmatmul.mubr.bf16.vlgmr.msra.gmra.mrb[0].mxu1 %v19725_v18 }
 0xc2d   : > { %8917 = vmatpush1.bf16.msra.mxu0 %v17126_v35  ;;  %9081 = vmatpush1.bf16.msra.mxu1 %v17129_v49  ;;  %v17213_v35 = vld [vmem:[%s18530_s22 + $0x3c8] ss:$16 sps:$4 sm:$0xff]   ;;  %v17221_v49 = vld [vmem:[%s18530_s22 + $0x3ec] ss:$16 sps:$4 sm:$0xff]  }
 0xc2e   : > { %8918 = vmatprep.subr.bf16.mxu0 %v17134_v44  ;;  %9082 = vmatprep.subr.bf16.mxu1 %v17137_v47  ;;  %v17216_v44 = vld [vmem:[%s18530_s22 + $0x3e0] ss:$16 sps:$4 sm:$0xff]   ;;  %v17219_v47 = vld [vmem:[%s18530_s22 + $0x3e8] ss:$16 sps:$4 sm:$0xff]  }
 0xc2f   : > { %8948 = vmatprep.mubr.bf16.mxu0 %v19738_v52  ;;  %9112 = vmatprep.mubr.bf16.mxu1 %v19738_v52 }
 0xc31   : > { %8919 = vmatpush1.bf16.msra.mxu0 %v17132_v57  ;;  %9083 = vmatpush1.bf16.msra.mxu1 %v17135_v20  ;;  %v17224_v57 = vld [vmem:[%s18530_s22 + $0x404] ss:$16 sps:$4 sm:$0xff]   ;;  %v17227_v20 = vld [vmem:[%s18530_s22 + $0x40c] ss:$16 sps:$4 sm:$0xff]  }
 0xc32   : > { %8920 = vmatprep.subr.bf16.mxu0 %v17140_v43  ;;  %9084 = vmatprep.subr.bf16.mxu1 %v17143_v4  ;;  %v17222_v43 = vld [vmem:[%s18530_s22 + $0x400] ss:$16 sps:$4 sm:$0xff]   ;;  %v19807_v4 = vcombine.high %v19725_v18, %v19725_v18 }
 0xc35   : > { %8921 = vmatpush1.bf16.msra.mxu0 %v17138_v53  ;;  %9085 = vmatpush1.bf16.msra.mxu1 %v17141_v11  ;;  %v17225_v53 = vld [vmem:[%s18530_s22 + $0x408] ss:$16 sps:$4 sm:$0xff]   ;;  %v17230_v11 = vld [vmem:[%s18530_s22 + $0x424] ss:$16 sps:$4 sm:$0xff]  }
 0xc36   : > { %8922 = vmatprep.subr.bf16.mxu0 %v17146_v62  ;;  %9086 = vmatprep.subr.bf16.mxu1 %v17149_v16  ;;  %v17233_v62 = vld [vmem:[%s18530_s22 + $0x42c] ss:$16 sps:$4 sm:$0xff]   ;;  %v17228_v16 = vld [vmem:[%s18530_s22 + $0x420] ss:$16 sps:$4 sm:$0xff]  }
 0xc39   : > { %8923 = vmatpush1.bf16.msra.mxu0 %v17144_v14  ;;  %9087 = vmatpush1.bf16.msra.mxu1 %v17147_v0  ;;  %v17231_v14 = vld [vmem:[%s18530_s22 + $0x428] ss:$16 sps:$4 sm:$0xff]   ;;  %v17236_v0 = vld [vmem:[%s18530_s22 + $0x444] ss:$16 sps:$4 sm:$0xff]  }
 0xc3a   : > { %8924 = vmatprep.subr.bf16.mxu0 %v17152_v9  ;;  %9088 = vmatprep.subr.bf16.mxu1 %v17155_v6  ;;  %v17239_v9 = vld [vmem:[%s18530_s22 + $0x44c] ss:$16 sps:$4 sm:$0xff]   ;;  %v17234_v6 = vld [vmem:[%s18530_s22 + $0x440] ss:$16 sps:$4 sm:$0xff]  }
 0xc3d   : > { %8925 = vmatpush1.bf16.msra.mxu0 %v17150_v56  ;;  %9089 = vmatpush1.bf16.msra.mxu1 %v17153_v1  ;;  %v17237_v56 = vld [vmem:[%s18530_s22 + $0x448] ss:$16 sps:$4 sm:$0xff]   ;;  %v17242_v1 = vld [vmem:[%s18530_s22 + $0x464] ss:$16 sps:$4 sm:$0xff]  }
 0xc3e   : > { %8926 = vmatprep.subr.bf16.mxu0 %v17158_v60  ;;  %9090 = vmatprep.subr.bf16.mxu1 %v17161_v10  ;;  %v17245_v60 = vld [vmem:[%s18530_s22 + $0x46c] ss:$16 sps:$4 sm:$0xff]   ;;  %v17240_v10 = vld [vmem:[%s18530_s22 + $0x460] ss:$16 sps:$4 sm:$0xff]  }
 0xc41   : > { %8927 = vmatpush1.bf16.msra.mxu0 %v17156_v5  ;;  %9091 = vmatpush1.bf16.msra.mxu1 %v17159_v29  ;;  %v17243_v5 = vld [vmem:[%s18530_s22 + $0x468] ss:$16 sps:$4 sm:$0xff]   ;;  %v17248_v29 = vld [vmem:[%s18530_s22 + $0x484] ss:$16 sps:$4 sm:$0xff]  }
 0xc42   : > { %8928 = vmatprep.subr.bf16.mxu0 %v17164_v31  ;;  %9092 = vmatprep.subr.bf16.mxu1 %v17167_v36  ;;  %v17251_v31 = vld [vmem:[%s18530_s22 + $0x48c] ss:$16 sps:$4 sm:$0xff]   ;;  %v17246_v36 = vld [vmem:[%s18530_s22 + $0x480] ss:$16 sps:$4 sm:$0xff]  }
 0xc45   : > { %8929 = vmatpush1.bf16.msra.mxu0 %v17162_v51  ;;  %9093 = vmatpush1.bf16.msra.mxu1 %v17165_v45  ;;  %v17249_v51 = vld [vmem:[%s18530_s22 + $0x488] ss:$16 sps:$4 sm:$0xff]   ;;  %v17254_v45 = vld [vmem:[%s18530_s22 + $0x4a4] ss:$16 sps:$4 sm:$0xff]  }
 0xc46   : > { %8930 = vmatprep.subr.bf16.mxu0 %v17170_v25  ;;  %9094 = vmatprep.subr.bf16.mxu1 %v17173_v48  ;;  %v17257_v25 = vld [vmem:[%s18530_s22 + $0x4ac] ss:$16 sps:$4 sm:$0xff]   ;;  %v17252_v48 = vld [vmem:[%s18530_s22 + $0x4a0] ss:$16 sps:$4 sm:$0xff]  }
 0xc49   : > { %8931 = vmatpush1.bf16.msra.mxu0 %v17168_v8  ;;  %9095 = vmatpush1.bf16.msra.mxu1 %v17171_v22  ;;  %v17255_v8 = vld [vmem:[%s18530_s22 + $0x4a8] ss:$16 sps:$4 sm:$0xff]   ;;  %v17260_v22 = vld [vmem:[%s18530_s22 + $0x4c4] ss:$16 sps:$4 sm:$0xff]  }
 0xc4a   : > { %8932 = vmatprep.subr.bf16.mxu0 %v17176_v30  ;;  %9096 = vmatprep.subr.bf16.mxu1 %v17179_v63  ;;  %v17263_v30 = vld [vmem:[%s18530_s22 + $0x4cc] ss:$16 sps:$4 sm:$0xff]   ;;  %v17258_v63 = vld [vmem:[%s18530_s22 + $0x4c0] ss:$16 sps:$4 sm:$0xff]  }
 0xc4d   : > { %8933 = vmatpush1.bf16.msra.mxu0 %v17174_v33  ;;  %9097 = vmatpush1.bf16.msra.mxu1 %v17177_v58  ;;  %v17261_v33 = vld [vmem:[%s18530_s22 + $0x4c8] ss:$16 sps:$4 sm:$0xff]   ;;  %v17266_v58 = vld [vmem:[%s18530_s22 + $0x4e4] ss:$16 sps:$4 sm:$0xff]  }
 0xc4e   : > { %8934 = vmatprep.subr.bf16.mxu0 %v17182_v54  ;;  %9098 = vmatprep.subr.bf16.mxu1 %v17185_v50  ;;  %v17269_v54 = vld [vmem:[%s18530_s22 + $0x4ec] ss:$16 sps:$4 sm:$0xff]   ;;  %v17264_v50 = vld [vmem:[%s18530_s22 + $0x4e0] ss:$16 sps:$4 sm:$0xff]  }
 0xc51   : > { %8935 = vmatpush1.bf16.msra.mxu0 %v17180_v41  ;;  %9099 = vmatpush1.bf16.msra.mxu1 %v17183_v38  ;;  %v17267_v41 = vld [vmem:[%s18530_s22 + $0x4e8] ss:$16 sps:$4 sm:$0xff]   ;;  %v17272_v38 = vld [vmem:[%s18530_s22 + $0x504] ss:$16 sps:$4 sm:$0xff]  }
 0xc52   : > { %8936 = vmatprep.subr.bf16.mxu0 %v17188_v46  ;;  %9100 = vmatprep.subr.bf16.mxu1 %v17191_v13  ;;  %v17275_v46 = vld [vmem:[%s18530_s22 + $0x50c] ss:$16 sps:$4 sm:$0xff]   ;;  %v17270_v13 = vld [vmem:[%s18530_s22 + $0x500] ss:$16 sps:$4 sm:$0xff]  }
 0xc55   : > { %8937 = vmatpush1.bf16.msra.mxu0 %v17186_v28  ;;  %9101 = vmatpush1.bf16.msra.mxu1 %v17189_v32  ;;  %v17273_v28 = vld [vmem:[%s18530_s22 + $0x508] ss:$16 sps:$4 sm:$0xff]   ;;  %v17278_v32 = vld [vmem:[%s18530_s22 + $0x524] ss:$16 sps:$4 sm:$0xff]  }
 0xc56   : > { %8938 = vmatprep.subr.bf16.mxu0 %v17194_v55  ;;  %9102 = vmatprep.subr.bf16.mxu1 %v17197_v39  ;;  %v17281_v55 = vld [vmem:[%s18530_s22 + $0x52c] ss:$16 sps:$4 sm:$0xff]   ;;  %v17276_v39 = vld [vmem:[%s18530_s22 + $0x520] ss:$16 sps:$4 sm:$0xff]  }
 0xc59   : > { %8939 = vmatpush1.bf16.msra.mxu0 %v17192_v26  ;;  %9103 = vmatpush1.bf16.msra.mxu1 %v17195_v59  ;;  %v17279_v26 = vld [vmem:[%s18530_s22 + $0x528] ss:$16 sps:$4 sm:$0xff]   ;;  %v17284_v59 = vld [vmem:[%s18530_s22 + $0x544] ss:$16 sps:$4 sm:$0xff]  }
 0xc5a   : > { %8940 = vmatprep.subr.bf16.mxu0 %v17200_v27  ;;  %9104 = vmatprep.subr.bf16.mxu1 %v17203_v42  ;;  %v17287_v27 = vld [vmem:[%s18530_s22 + $0x54c] ss:$16 sps:$4 sm:$0xff]   ;;  %v17282_v42 = vld [vmem:[%s18530_s22 + $0x540] ss:$16 sps:$4 sm:$0xff]  }
 0xc5d   : > { %8941 = vmatpush1.bf16.msra.mxu0 %v17198_v2  ;;  %9105 = vmatpush1.bf16.msra.mxu1 %v17201_v19  ;;  %v17285_v2 = vld [vmem:[%s18530_s22 + $0x548] ss:$16 sps:$4 sm:$0xff]   ;;  %v17290_v19 = vld [vmem:[%s18530_s22 + $0x564] ss:$16 sps:$4 sm:$0xff]  }
 0xc5e   : > { %8942 = vmatprep.subr.bf16.mxu0 %v17206_v21  ;;  %9106 = vmatprep.subr.bf16.mxu1 %v17209_v24  ;;  %v17293_v21 = vld [vmem:[%s18530_s22 + $0x56c] ss:$16 sps:$4 sm:$0xff]   ;;  %v17288_v24 = vld [vmem:[%s18530_s22 + $0x560] ss:$16 sps:$4 sm:$0xff]  }
 0xc61   : > { %8943 = vmatpush1.bf16.msra.mxu0 %v17204_v15  ;;  %9107 = vmatpush1.bf16.msra.mxu1 %v17207_v3  ;;  %v17291_v15 = vld [vmem:[%s18530_s22 + $0x568] ss:$16 sps:$4 sm:$0xff]   ;;  %v17296_v3 = vld [vmem:[%s18530_s22 + $0x584] ss:$16 sps:$4 sm:$0xff]  }
 0xc62   : > { %8944 = vmatprep.subr.bf16.mxu0 %v17212_v7  ;;  %9108 = vmatprep.subr.bf16.mxu1 %v17215_v61  ;;  %v17299_v7 = vld [vmem:[%s18530_s22 + $0x58c] ss:$16 sps:$4 sm:$0xff]   ;;  %v17294_v61 = vld [vmem:[%s18530_s22 + $0x580] ss:$16 sps:$4 sm:$0xff]  }
 0xc65   : > { %8945 = vmatpush1.bf16.msra.mxu0 %v17210_v34  ;;  %9109 = vmatpush1.bf16.msra.mxu1 %v17213_v35  ;;  %v17297_v34 = vld [vmem:[%s18530_s22 + $0x588] ss:$16 sps:$4 sm:$0xff]   ;;  %v17302_v35 = vld [vmem:[%s18530_s22 + $0x5a4] ss:$16 sps:$4 sm:$0xff]  }
 0xc66   : > { %8946 = vmatprep.subr.bf16.mxu0 %v17218_v37  ;;  %9110 = vmatprep.subr.bf16.mxu1 %v17221_v49  ;;  %v17305_v37 = vld [vmem:[%s18530_s22 + $0x5ac] ss:$16 sps:$4 sm:$0xff]   ;;  %v17300_v49 = vld [vmem:[%s18530_s22 + $0x5a0] ss:$16 sps:$4 sm:$0xff]  }
 0xc69   : > { %8947 = vmatpush1.bf16.msra.mxu0 %v17216_v44  ;;  %9111 = vmatpush1.bf16.msra.mxu1 %v17219_v47  ;;  %v17303_v44 = vld [vmem:[%s18530_s22 + $0x5a8] ss:$16 sps:$4 sm:$0xff]   ;;  %v17308_v47 = vld [vmem:[%s18530_s22 + $0x5c4] ss:$16 sps:$4 sm:$0xff]  }
 0xc6a   : > { %8957 = vmatprep.subr.bf16.mxu0 %v17224_v57  ;;  %9121 = vmatprep.subr.bf16.mxu1 %v17227_v20  ;;  %v17311_v57 = vld [vmem:[%s18530_s22 + $0x5cc] ss:$16 sps:$4 sm:$0xff]   ;;  %v17306_v20 = vld [vmem:[%s18530_s22 + $0x5c0] ss:$16 sps:$4 sm:$0xff]  }
 0xc6c   : > { %8949 = vmatmul.mubr.bf16.vlgmr.msra.gmra.mrb[0].mxu0 %v19807_v4  ;;  %9113 = vmatmul.mubr.bf16.vlgmr.msra.gmra.mrb[0].mxu1 %v19807_v4 }
 0xc6d   : > { %8958 = vmatpush1.bf16.msra.mxu0 %v17222_v43  ;;  %9122 = vmatpush1.bf16.msra.mxu1 %v17225_v53  ;;  %v17309_v43 = vld [vmem:[%s18530_s22 + $0x5c8] ss:$16 sps:$4 sm:$0xff]   ;;  %v17314_v53 = vld [vmem:[%s18530_s22 + $0x5e4] ss:$16 sps:$4 sm:$0xff]  }
 0xc6e   : > { %8959 = vmatprep.subr.bf16.mxu0 %v17230_v11  ;;  %9123 = vmatprep.subr.bf16.mxu1 %v17233_v62  ;;  %v17317_v11 = vld [vmem:[%s18530_s22 + $0x5ec] ss:$16 sps:$4 sm:$0xff]   ;;  %v17312_v62 = vld [vmem:[%s18530_s22 + $0x5e0] ss:$16 sps:$4 sm:$0xff]  }
 0xc6f   : > { %8989 = vmatprep.mubr.bf16.mxu0 %v19731_v17  ;;  %9153 = vmatprep.mubr.bf16.mxu1 %v19731_v17 }
 0xc71   : > { %8960 = vmatpush1.bf16.msra.mxu0 %v17228_v16  ;;  %9124 = vmatpush1.bf16.msra.mxu1 %v17231_v14  ;;  %v17315_v16 = vld [vmem:[%s18530_s22 + $0x5e8] ss:$16 sps:$4 sm:$0xff]   ;;  %v17321_v14 = vld [vmem:[%s18530_s22 + $0x604] ss:$16 sps:$4 sm:$0xff]  }
 0xc72   : > { %8961 = vmatprep.subr.bf16.mxu0 %v17236_v0  ;;  %9125 = vmatprep.subr.bf16.mxu1 %v17239_v9  ;;  %v17324_v0 = vld [vmem:[%s18530_s22 + $0x60c] ss:$16 sps:$4 sm:$0xff]   ;;  %v17319_v9 = vld [vmem:[%s18530_s22 + $0x600] ss:$16 sps:$4 sm:$0xff]  }
 0xc75   : > { %8962 = vmatpush1.bf16.msra.mxu0 %v17234_v6  ;;  %9126 = vmatpush1.bf16.msra.mxu1 %v17237_v56  ;;  %v17322_v6 = vld [vmem:[%s18530_s22 + $0x608] ss:$16 sps:$4 sm:$0xff]   ;;  %v17327_v56 = vld [vmem:[%s18530_s22 + $0x624] ss:$16 sps:$4 sm:$0xff]  }
 0xc76   : > { %8963 = vmatprep.subr.bf16.mxu0 %v17242_v1  ;;  %9127 = vmatprep.subr.bf16.mxu1 %v17245_v60  ;;  %v17330_v1 = vld [vmem:[%s18530_s22 + $0x62c] ss:$16 sps:$4 sm:$0xff]   ;;  %v19882_v60 = vcombine.high %v19731_v17, %v19731_v17 }
 0xc79   : > { %8964 = vmatpush1.bf16.msra.mxu0 %v17240_v10  ;;  %9128 = vmatpush1.bf16.msra.mxu1 %v17243_v5  ;;  %v17325_v10 = vld [vmem:[%s18530_s22 + $0x620] ss:$16 sps:$4 sm:$0xff]   ;;  %v17328_v5 = vld [vmem:[%s18530_s22 + $0x628] ss:$16 sps:$4 sm:$0xff]  }
 0xc7a   : > { %8965 = vmatprep.subr.bf16.mxu0 %v17248_v29  ;;  %9129 = vmatprep.subr.bf16.mxu1 %v17251_v31  ;;  %v17333_v29 = vld [vmem:[%s18530_s22 + $0x644] ss:$16 sps:$4 sm:$0xff]   ;;  %v17336_v31 = vld [vmem:[%s18530_s22 + $0x64c] ss:$16 sps:$4 sm:$0xff]  }
 0xc7d   : > { %8966 = vmatpush1.bf16.msra.mxu0 %v17246_v36  ;;  %9130 = vmatpush1.bf16.msra.mxu1 %v17249_v51  ;;  %v17331_v36 = vld [vmem:[%s18530_s22 + $0x640] ss:$16 sps:$4 sm:$0xff]   ;;  %v17334_v51 = vld [vmem:[%s18530_s22 + $0x648] ss:$16 sps:$4 sm:$0xff]  }
 0xc7e   : > { %8967 = vmatprep.subr.bf16.mxu0 %v17254_v45  ;;  %9131 = vmatprep.subr.bf16.mxu1 %v17257_v25  ;;  %v17339_v45 = vld [vmem:[%s18530_s22 + $0x664] ss:$16 sps:$4 sm:$0xff]   ;;  %v17342_v25 = vld [vmem:[%s18530_s22 + $0x66c] ss:$16 sps:$4 sm:$0xff]  }
 0xc81   : > { %8968 = vmatpush1.bf16.msra.mxu0 %v17252_v48  ;;  %9132 = vmatpush1.bf16.msra.mxu1 %v17255_v8  ;;  %v17337_v48 = vld [vmem:[%s18530_s22 + $0x660] ss:$16 sps:$4 sm:$0xff]   ;;  %v17340_v8 = vld [vmem:[%s18530_s22 + $0x668] ss:$16 sps:$4 sm:$0xff]  }
 0xc82   : > { %8969 = vmatprep.subr.bf16.mxu0 %v17260_v22  ;;  %9133 = vmatprep.subr.bf16.mxu1 %v17263_v30  ;;  %v17345_v22 = vld [vmem:[%s18530_s22 + $0x684] ss:$16 sps:$4 sm:$0xff]   ;;  %v17348_v30 = vld [vmem:[%s18530_s22 + $0x68c] ss:$16 sps:$4 sm:$0xff]  }
 0xc85   : > { %8970 = vmatpush1.bf16.msra.mxu0 %v17258_v63  ;;  %9134 = vmatpush1.bf16.msra.mxu1 %v17261_v33  ;;  %v17343_v63 = vld [vmem:[%s18530_s22 + $0x680] ss:$16 sps:$4 sm:$0xff]   ;;  %v17346_v33 = vld [vmem:[%s18530_s22 + $0x688] ss:$16 sps:$4 sm:$0xff]  }
 0xc86   : > { %8971 = vmatprep.subr.bf16.mxu0 %v17266_v58  ;;  %9135 = vmatprep.subr.bf16.mxu1 %v17269_v54  ;;  %v17351_v58 = vld [vmem:[%s18530_s22 + $0x6a4] ss:$16 sps:$4 sm:$0xff]   ;;  %v17354_v54 = vld [vmem:[%s18530_s22 + $0x6ac] ss:$16 sps:$4 sm:$0xff]  }
 0xc89   : > { %8972 = vmatpush1.bf16.msra.mxu0 %v17264_v50  ;;  %9136 = vmatpush1.bf16.msra.mxu1 %v17267_v41  ;;  %v17349_v50 = vld [vmem:[%s18530_s22 + $0x6a0] ss:$16 sps:$4 sm:$0xff]   ;;  %v17352_v41 = vld [vmem:[%s18530_s22 + $0x6a8] ss:$16 sps:$4 sm:$0xff]  }
 0xc8a   : > { %8973 = vmatprep.subr.bf16.mxu0 %v17272_v38  ;;  %9137 = vmatprep.subr.bf16.mxu1 %v17275_v46  ;;  %v17357_v38 = vld [vmem:[%s18530_s22 + $0x6c4] ss:$16 sps:$4 sm:$0xff]   ;;  %v17360_v46 = vld [vmem:[%s18530_s22 + $0x6cc] ss:$16 sps:$4 sm:$0xff]  }
 0xc8d   : > { %8974 = vmatpush1.bf16.msra.mxu0 %v17270_v13  ;;  %9138 = vmatpush1.bf16.msra.mxu1 %v17273_v28  ;;  %v17355_v13 = vld [vmem:[%s18530_s22 + $0x6c0] ss:$16 sps:$4 sm:$0xff]   ;;  %v17358_v28 = vld [vmem:[%s18530_s22 + $0x6c8] ss:$16 sps:$4 sm:$0xff]  }
 0xc8e   : > { %8975 = vmatprep.subr.bf16.mxu0 %v17278_v32  ;;  %9139 = vmatprep.subr.bf16.mxu1 %v17281_v55  ;;  %v17363_v32 = vld [vmem:[%s18530_s22 + $0x6e4] ss:$16 sps:$4 sm:$0xff]   ;;  %v17366_v55 = vld [vmem:[%s18530_s22 + $0x6ec] ss:$16 sps:$4 sm:$0xff]  }
 0xc91   : > { %8976 = vmatpush1.bf16.msra.mxu0 %v17276_v39  ;;  %9140 = vmatpush1.bf16.msra.mxu1 %v17279_v26  ;;  %v17361_v39 = vld [vmem:[%s18530_s22 + $0x6e0] ss:$16 sps:$4 sm:$0xff]   ;;  %v17364_v26 = vld [vmem:[%s18530_s22 + $0x6e8] ss:$16 sps:$4 sm:$0xff]  }
 0xc92   : > { %8977 = vmatprep.subr.bf16.mxu0 %v17284_v59  ;;  %9141 = vmatprep.subr.bf16.mxu1 %v17287_v27  ;;  %v17369_v59 = vld [vmem:[%s18530_s22 + $0x704] ss:$16 sps:$4 sm:$0xff]   ;;  %v17372_v27 = vld [vmem:[%s18530_s22 + $0x70c] ss:$16 sps:$4 sm:$0xff]  }
 0xc95   : > { %8978 = vmatpush1.bf16.msra.mxu0 %v17282_v42  ;;  %9142 = vmatpush1.bf16.msra.mxu1 %v17285_v2  ;;  %v17367_v42 = vld [vmem:[%s18530_s22 + $0x700] ss:$16 sps:$4 sm:$0xff]   ;;  %v17370_v2 = vld [vmem:[%s18530_s22 + $0x708] ss:$16 sps:$4 sm:$0xff]  }
 0xc96   : > { %8979 = vmatprep.subr.bf16.mxu0 %v17290_v19  ;;  %9143 = vmatprep.subr.bf16.mxu1 %v17293_v21  ;;  %v17375_v19 = vld [vmem:[%s18530_s22 + $0x724] ss:$16 sps:$4 sm:$0xff]   ;;  %v17378_v21 = vld [vmem:[%s18530_s22 + $0x72c] ss:$16 sps:$4 sm:$0xff]  }
 0xc99   : > { %8980 = vmatpush1.bf16.msra.mxu0 %v17288_v24  ;;  %9144 = vmatpush1.bf16.msra.mxu1 %v17291_v15  ;;  %v17373_v24 = vld [vmem:[%s18530_s22 + $0x720] ss:$16 sps:$4 sm:$0xff]   ;;  %v17376_v15 = vld [vmem:[%s18530_s22 + $0x728] ss:$16 sps:$4 sm:$0xff]  }
 0xc9a   : > { %8981 = vmatprep.subr.bf16.mxu0 %v17296_v3  ;;  %9145 = vmatprep.subr.bf16.mxu1 %v17299_v7  ;;  %v17381_v3 = vld [vmem:[%s18530_s22 + $0x744] ss:$16 sps:$4 sm:$0xff]   ;;  %v17384_v7 = vld [vmem:[%s18530_s22 + $0x74c] ss:$16 sps:$4 sm:$0xff]  }
 0xc9d   : > { %8982 = vmatpush1.bf16.msra.mxu0 %v17294_v61  ;;  %9146 = vmatpush1.bf16.msra.mxu1 %v17297_v34  ;;  %v17379_v61 = vld [vmem:[%s18530_s22 + $0x740] ss:$16 sps:$4 sm:$0xff]   ;;  %v17382_v34 = vld [vmem:[%s18530_s22 + $0x748] ss:$16 sps:$4 sm:$0xff]  }
 0xc9e   : > { %8983 = vmatprep.subr.bf16.mxu0 %v17302_v35  ;;  %9147 = vmatprep.subr.bf16.mxu1 %v17305_v37  ;;  %v17387_v35 = vld [vmem:[%s18530_s22 + $0x764] ss:$16 sps:$4 sm:$0xff]   ;;  %v17390_v37 = vld [vmem:[%s18530_s22 + $0x76c] ss:$16 sps:$4 sm:$0xff]  }
 0xca1   : > { %8984 = vmatpush1.bf16.msra.mxu0 %v17300_v49  ;;  %9148 = vmatpush1.bf16.msra.mxu1 %v17303_v44  ;;  %v17385_v49 = vld [vmem:[%s18530_s22 + $0x760] ss:$16 sps:$4 sm:$0xff]   ;;  %v17388_v44 = vld [vmem:[%s18530_s22 + $0x768] ss:$16 sps:$4 sm:$0xff]  }
 0xca2   : > { %8985 = vmatprep.subr.bf16.mxu0 %v17308_v47  ;;  %9149 = vmatprep.subr.bf16.mxu1 %v17311_v57  ;;  %v17393_v47 = vld [vmem:[%s18530_s22 + $0x784] ss:$16 sps:$4 sm:$0xff]   ;;  %v17396_v57 = vld [vmem:[%s18530_s22 + $0x78c] ss:$16 sps:$4 sm:$0xff]  }
 0xca5   : > { %8986 = vmatpush1.bf16.msra.mxu0 %v17306_v20  ;;  %9150 = vmatpush1.bf16.msra.mxu1 %v17309_v43  ;;  %v17391_v20 = vld [vmem:[%s18530_s22 + $0x780] ss:$16 sps:$4 sm:$0xff]   ;;  %v17394_v43 = vld [vmem:[%s18530_s22 + $0x788] ss:$16 sps:$4 sm:$0xff]  }
 0xca6   : > { %8987 = vmatprep.subr.bf16.mxu0 %v17314_v53  ;;  %9151 = vmatprep.subr.bf16.mxu1 %v17317_v11  ;;  %v17399_v53 = vld [vmem:[%s18530_s22 + $0x7a4] ss:$16 sps:$4 sm:$0xff]   ;;  %v17402_v11 = vld [vmem:[%s18530_s22 + $0x7ac] ss:$16 sps:$4 sm:$0xff]  }
 0xca9   : > { %8988 = vmatpush1.bf16.msra.mxu0 %v17312_v62  ;;  %9152 = vmatpush1.bf16.msra.mxu1 %v17315_v16  ;;  %v17397_v62 = vld [vmem:[%s18530_s22 + $0x7a0] ss:$16 sps:$4 sm:$0xff]   ;;  %v17400_v16 = vld [vmem:[%s18530_s22 + $0x7a8] ss:$16 sps:$4 sm:$0xff]  }
 0xcaa   : > { %8998 = vmatprep.subr.bf16.mxu0 %v17321_v14  ;;  %9162 = vmatprep.subr.bf16.mxu1 %v17324_v0  ;;  %v17405_v14 = vld [vmem:[%s18530_s22 + $0x7c4] ss:$16 sps:$4 sm:$0xff]   ;;  %v17408_v0 = vld [vmem:[%s18530_s22 + $0x7cc] ss:$16 sps:$4 sm:$0xff]  }
 0xcac   : > { %8990 = vmatmul.mubr.bf16.vlgmr.msra.gmra.mrb[0].mxu0 %v19734_v12  ;;  %9154 = vmatmul.mubr.bf16.vlgmr.msra.gmra.mrb[0].mxu1 %v19734_v12 }
 0xcad   : > { %8999 = vmatpush1.bf16.msra.mxu0 %v17319_v9  ;;  %9163 = vmatpush1.bf16.msra.mxu1 %v17322_v6  ;;  %v17403_v9 = vld [vmem:[%s18530_s22 + $0x7c0] ss:$16 sps:$4 sm:$0xff]   ;;  %v17406_v6 = vld [vmem:[%s18530_s22 + $0x7c8] ss:$16 sps:$4 sm:$0xff]  }
 0xcae   : > { %9000 = vmatprep.subr.bf16.mxu0 %v17327_v56  ;;  %9164 = vmatprep.subr.bf16.mxu1 %v17330_v1  ;;  %v17411_v56 = vld [vmem:[%s18530_s22 + $0x7e4] ss:$16 sps:$4 sm:$0xff]   ;;  %v17414_v1 = vld [vmem:[%s18530_s22 + $0x7ec] ss:$16 sps:$4 sm:$0xff]  }
 0xcaf   : > { %9030 = vmatprep.mubr.bf16.mxu0 %v19882_v60  ;;  %9194 = vmatprep.mubr.bf16.mxu1 %v19882_v60 }
 0xcb1   : > { %9001 = vmatpush1.bf16.msra.mxu0 %v17325_v10  ;;  %9165 = vmatpush1.bf16.msra.mxu1 %v17328_v5  ;;  %v17409_v10 = vld [vmem:[%s18530_s22 + $0x7e0] ss:$16 sps:$4 sm:$0xff]   ;;  %v17412_v5 = vld [vmem:[%s18530_s22 + $0x7e8] ss:$16 sps:$4 sm:$0xff]   ;;  %s20696_s22 = sld [smem:[#allocation24_spill]] (!%p14722_p3) }
 0xcb2   : > { %9002 = vmatprep.subr.bf16.mxu0 %v17333_v29  ;;  %9166 = vmatprep.subr.bf16.mxu1 %v17336_v31  ;;  %v17417_v29 = vld [vmem:[%s18533_s23 + $0x4] ss:$16 sps:$4 sm:$0xff]   ;;  %v17420_v31 = vld [vmem:[%s18533_s23 + $0xc] ss:$16 sps:$4 sm:$0xff]  }
 0xcb5   : > { %9003 = vmatpush1.bf16.msra.mxu0 %v17331_v36  ;;  %9167 = vmatpush1.bf16.msra.mxu1 %v17334_v51  ;;  %v19950_v36 = vcombine.high %v19734_v12, %v19734_v12  ;;  %v17415_v51 = vld [vmem:[%s18533_s23] ss:$16 sps:$4 sm:$0xff]  }
 0xcb6   : > { %9004 = vmatprep.subr.bf16.mxu0 %v17339_v45  ;;  %9168 = vmatprep.subr.bf16.mxu1 %v17342_v25  ;;  %v17418_v45 = vld [vmem:[%s18533_s23 + $0x8] ss:$16 sps:$4 sm:$0xff]   ;;  %v17423_v25 = vld [vmem:[%s18533_s23 + $0x24] ss:$16 sps:$4 sm:$0xff]  }
 0xcb9   : > { %9005 = vmatpush1.bf16.msra.mxu0 %v17337_v48  ;;  %9169 = vmatpush1.bf16.msra.mxu1 %v17340_v8  ;;  %v17426_v48 = vld [vmem:[%s18533_s23 + $0x2c] ss:$16 sps:$4 sm:$0xff]   ;;  %v17421_v8 = vld [vmem:[%s18533_s23 + $0x20] ss:$16 sps:$4 sm:$0xff]  }
 0xcba   : > { %9006 = vmatprep.subr.bf16.mxu0 %v17345_v22  ;;  %9170 = vmatprep.subr.bf16.mxu1 %v17348_v30  ;;  %v17424_v22 = vld [vmem:[%s18533_s23 + $0x28] ss:$16 sps:$4 sm:$0xff]   ;;  %v17429_v30 = vld [vmem:[%s18533_s23 + $0x44] ss:$16 sps:$4 sm:$0xff]  }
 0xcbd   : > { %9007 = vmatpush1.bf16.msra.mxu0 %v17343_v63  ;;  %9171 = vmatpush1.bf16.msra.mxu1 %v17346_v33  ;;  %v17432_v63 = vld [vmem:[%s18533_s23 + $0x4c] ss:$16 sps:$4 sm:$0xff]   ;;  %v17427_v33 = vld [vmem:[%s18533_s23 + $0x40] ss:$16 sps:$4 sm:$0xff]  }
 0xcbe   : > { %9008 = vmatprep.subr.bf16.mxu0 %v17351_v58  ;;  %9172 = vmatprep.subr.bf16.mxu1 %v17354_v54  ;;  %v17430_v58 = vld [vmem:[%s18533_s23 + $0x48] ss:$16 sps:$4 sm:$0xff]   ;;  %v17435_v54 = vld [vmem:[%s18533_s23 + $0x64] ss:$16 sps:$4 sm:$0xff]  }
 0xcc1   : > { %9009 = vmatpush1.bf16.msra.mxu0 %v17349_v50  ;;  %9173 = vmatpush1.bf16.msra.mxu1 %v17352_v41  ;;  %v17438_v50 = vld [vmem:[%s18533_s23 + $0x6c] ss:$16 sps:$4 sm:$0xff]   ;;  %v17433_v41 = vld [vmem:[%s18533_s23 + $0x60] ss:$16 sps:$4 sm:$0xff]  }
 0xcc2   : > { %9010 = vmatprep.subr.bf16.mxu0 %v17357_v38  ;;  %9174 = vmatprep.subr.bf16.mxu1 %v17360_v46  ;;  %v17436_v38 = vld [vmem:[%s18533_s23 + $0x68] ss:$16 sps:$4 sm:$0xff]   ;;  %v17444_v46 = vld [vmem:[%s18533_s23 + $0x8c] ss:$16 sps:$4 sm:$0xff]  }
 0xcc5   : > { %9011 = vmatpush1.bf16.msra.mxu0 %v17355_v13  ;;  %9175 = vmatpush1.bf16.msra.mxu1 %v17358_v28  ;;  %v17439_v13 = vld [vmem:[%s18533_s23 + $0x80] ss:$16 sps:$4 sm:$0xff]   ;;  %v17442_v28 = vld [vmem:[%s18533_s23 + $0x88] ss:$16 sps:$4 sm:$0xff]  }
 0xcc6   : > { %9012 = vmatprep.subr.bf16.mxu0 %v17363_v32  ;;  %9176 = vmatprep.subr.bf16.mxu1 %v17366_v55  ;;  %v17447_v32 = vld [vmem:[%s18533_s23 + $0xa4] ss:$16 sps:$4 sm:$0xff]   ;;  %v17450_v55 = vld [vmem:[%s18533_s23 + $0xac] ss:$16 sps:$4 sm:$0xff]  }
 0xcc9   : > { %9013 = vmatpush1.bf16.msra.mxu0 %v17361_v39  ;;  %9177 = vmatpush1.bf16.msra.mxu1 %v17364_v26  ;;  %v17445_v39 = vld [vmem:[%s18533_s23 + $0xa0] ss:$16 sps:$4 sm:$0xff]   ;;  %v17448_v26 = vld [vmem:[%s18533_s23 + $0xa8] ss:$16 sps:$4 sm:$0xff]  }
 0xcca   : > { %9014 = vmatprep.subr.bf16.mxu0 %v17369_v59  ;;  %9178 = vmatprep.subr.bf16.mxu1 %v17372_v27  ;;  %v17453_v59 = vld [vmem:[%s18533_s23 + $0xc4] ss:$16 sps:$4 sm:$0xff]   ;;  %v17456_v27 = vld [vmem:[%s18533_s23 + $0xcc] ss:$16 sps:$4 sm:$0xff]  }
 0xccd   : > { %9015 = vmatpush1.bf16.msra.mxu0 %v17367_v42  ;;  %9179 = vmatpush1.bf16.msra.mxu1 %v17370_v2  ;;  %v17451_v42 = vld [vmem:[%s18533_s23 + $0xc0] ss:$16 sps:$4 sm:$0xff]   ;;  %v17454_v2 = vld [vmem:[%s18533_s23 + $0xc8] ss:$16 sps:$4 sm:$0xff]  }
 0xcce   : > { %9016 = vmatprep.subr.bf16.mxu0 %v17375_v19  ;;  %9180 = vmatprep.subr.bf16.mxu1 %v17378_v21  ;;  %v17459_v19 = vld [vmem:[%s18533_s23 + $0xe4] ss:$16 sps:$4 sm:$0xff]   ;;  %v17462_v21 = vld [vmem:[%s18533_s23 + $0xec] ss:$16 sps:$4 sm:$0xff]  }
 0xcd1   : > { %9017 = vmatpush1.bf16.msra.mxu0 %v17373_v24  ;;  %9181 = vmatpush1.bf16.msra.mxu1 %v17376_v15  ;;  %v17457_v24 = vld [vmem:[%s18533_s23 + $0xe0] ss:$16 sps:$4 sm:$0xff]   ;;  %v17460_v15 = vld [vmem:[%s18533_s23 + $0xe8] ss:$16 sps:$4 sm:$0xff]  }
 0xcd2   : > { %9018 = vmatprep.subr.bf16.mxu0 %v17381_v3  ;;  %9182 = vmatprep.subr.bf16.mxu1 %v17384_v7  ;;  %v17465_v3 = vld [vmem:[%s18533_s23 + $0x104] ss:$16 sps:$4 sm:$0xff]   ;;  %v17468_v7 = vld [vmem:[%s18533_s23 + $0x10c] ss:$16 sps:$4 sm:$0xff]  }
 0xcd5   : > { %9019 = vmatpush1.bf16.msra.mxu0 %v17379_v61  ;;  %9183 = vmatpush1.bf16.msra.mxu1 %v17382_v34  ;;  %v17463_v61 = vld [vmem:[%s18533_s23 + $0x100] ss:$16 sps:$4 sm:$0xff]   ;;  %v17466_v34 = vld [vmem:[%s18533_s23 + $0x108] ss:$16 sps:$4 sm:$0xff]  }
 0xcd6   : > { %9020 = vmatprep.subr.bf16.mxu0 %v17387_v35  ;;  %9184 = vmatprep.subr.bf16.mxu1 %v17390_v37  ;;  %v17471_v35 = vld [vmem:[%s18533_s23 + $0x124] ss:$16 sps:$4 sm:$0xff]   ;;  %v17474_v37 = vld [vmem:[%s18533_s23 + $0x12c] ss:$16 sps:$4 sm:$0xff]  }
 0xcd9   : > { %9021 = vmatpush1.bf16.msra.mxu0 %v17385_v49  ;;  %9185 = vmatpush1.bf16.msra.mxu1 %v17388_v44  ;;  %v17469_v49 = vld [vmem:[%s18533_s23 + $0x120] ss:$16 sps:$4 sm:$0xff]   ;;  %v17472_v44 = vld [vmem:[%s18533_s23 + $0x128] ss:$16 sps:$4 sm:$0xff]  }
 0xcda   : > { %9022 = vmatprep.subr.bf16.mxu0 %v17393_v47  ;;  %9186 = vmatprep.subr.bf16.mxu1 %v17396_v57  ;;  %v17477_v47 = vld [vmem:[%s18533_s23 + $0x144] ss:$16 sps:$4 sm:$0xff]   ;;  %v17480_v57 = vld [vmem:[%s18533_s23 + $0x14c] ss:$16 sps:$4 sm:$0xff]  }
 0xcdd   : > { %9023 = vmatpush1.bf16.msra.mxu0 %v17391_v20  ;;  %9187 = vmatpush1.bf16.msra.mxu1 %v17394_v43  ;;  %v17475_v20 = vld [vmem:[%s18533_s23 + $0x140] ss:$16 sps:$4 sm:$0xff]   ;;  %v17478_v43 = vld [vmem:[%s18533_s23 + $0x148] ss:$16 sps:$4 sm:$0xff]  }
 0xcde   : > { %9024 = vmatprep.subr.bf16.mxu0 %v17399_v53  ;;  %9188 = vmatprep.subr.bf16.mxu1 %v17402_v11  ;;  %v17483_v53 = vld [vmem:[%s18533_s23 + $0x164] ss:$16 sps:$4 sm:$0xff]   ;;  %v17486_v11 = vld [vmem:[%s18533_s23 + $0x16c] ss:$16 sps:$4 sm:$0xff]  }
 0xce1   : > { %9025 = vmatpush1.bf16.msra.mxu0 %v17397_v62  ;;  %9189 = vmatpush1.bf16.msra.mxu1 %v17400_v16  ;;  %v17481_v62 = vld [vmem:[%s18533_s23 + $0x160] ss:$16 sps:$4 sm:$0xff]   ;;  %v17484_v16 = vld [vmem:[%s18533_s23 + $0x168] ss:$16 sps:$4 sm:$0xff]  }
 0xce2   : > { %9026 = vmatprep.subr.bf16.mxu0 %v17405_v14  ;;  %9190 = vmatprep.subr.bf16.mxu1 %v17408_v0  ;;  %v17489_v14 = vld [vmem:[%s18533_s23 + $0x184] ss:$16 sps:$4 sm:$0xff]   ;;  %v17492_v0 = vld [vmem:[%s18533_s23 + $0x18c] ss:$16 sps:$4 sm:$0xff]  }
 0xce5   : > { %9027 = vmatpush1.bf16.msra.mxu0 %v17403_v9  ;;  %9191 = vmatpush1.bf16.msra.mxu1 %v17406_v6  ;;  %v17487_v9 = vld [vmem:[%s18533_s23 + $0x180] ss:$16 sps:$4 sm:$0xff]   ;;  %v17490_v6 = vld [vmem:[%s18533_s23 + $0x188] ss:$16 sps:$4 sm:$0xff]  }
 0xce6   : > { %9028 = vmatprep.subr.bf16.mxu0 %v17411_v56  ;;  %9192 = vmatprep.subr.bf16.mxu1 %v17414_v1  ;;  %v17495_v56 = vld [vmem:[%s18533_s23 + $0x1a4] ss:$16 sps:$4 sm:$0xff]   ;;  %v17498_v1 = vld [vmem:[%s18533_s23 + $0x1ac] ss:$16 sps:$4 sm:$0xff]  }
 0xce9   : > { %9029 = vmatpush1.bf16.msra.mxu0 %v17409_v10  ;;  %9193 = vmatpush1.bf16.msra.mxu1 %v17412_v5  ;;  %v17493_v10 = vld [vmem:[%s18533_s23 + $0x1a0] ss:$16 sps:$4 sm:$0xff]   ;;  %v17496_v5 = vld [vmem:[%s18533_s23 + $0x1a8] ss:$16 sps:$4 sm:$0xff]  }
 0xcea   : > { %10764 = vmatprep.subr.bf16.mxu0 %v17417_v29  ;;  %10928 = vmatprep.subr.bf16.mxu1 %v17420_v31  ;;  %v17501_v29 = vld [vmem:[%s18533_s23 + $0x1c4] ss:$16 sps:$4 sm:$0xff]   ;;  %v17504_v31 = vld [vmem:[%s18533_s23 + $0x1cc] ss:$16 sps:$4 sm:$0xff]  }
 0xcec   : > { %9031 = vmatmul.mubr.bf16.vlgmr.msra.gmra.mrb[0].mxu0 %v19950_v36  ;;  %9195 = vmatmul.mubr.bf16.vlgmr.msra.gmra.mrb[0].mxu1 %v19950_v36 }
 0xced   : > { %10765 = vmatpush1.bf16.msra.mxu0 %v17415_v51  ;;  %10929 = vmatpush1.bf16.msra.mxu1 %v17418_v45  ;;  %v17499_v51 = vld [vmem:[%s18533_s23 + $0x1c0] ss:$16 sps:$4 sm:$0xff]   ;;  %v17502_v45 = vld [vmem:[%s18533_s23 + $0x1c8] ss:$16 sps:$4 sm:$0xff]  }
 0xcee   : > { %10766 = vmatprep.subr.bf16.mxu0 %v17423_v25  ;;  %10930 = vmatprep.subr.bf16.mxu1 %v17426_v48  ;;  %v17507_v25 = vld [vmem:[%s18533_s23 + $0x1e4] ss:$16 sps:$4 sm:$0xff]   ;;  %v17510_v48 = vld [vmem:[%s18533_s23 + $0x1ec] ss:$16 sps:$4 sm:$0xff]  }
 0xcef   : > { %10796 = vmatprep.mubr.bf16.mxu0 %v19703_v23  ;;  %10960 = vmatprep.mubr.bf16.mxu1 %v19703_v23  ;;  %v17441_v23 = vld [vmem:[%s18533_s23 + $0x84] ss:$16 sps:$4 sm:$0xff]  }
 0xcf1   : > { %10767 = vmatpush1.bf16.msra.mxu0 %v17421_v8  ;;  %10931 = vmatpush1.bf16.msra.mxu1 %v17424_v22  ;;  %v17505_v8 = vld [vmem:[%s18533_s23 + $0x1e0] ss:$16 sps:$4 sm:$0xff]   ;;  %v17508_v22 = vld [vmem:[%s18533_s23 + $0x1e8] ss:$16 sps:$4 sm:$0xff]  }
 0xcf2   : > { %10768 = vmatprep.subr.bf16.mxu0 %v17429_v30  ;;  %10932 = vmatprep.subr.bf16.mxu1 %v17432_v63  ;;  %v17513_v30 = vld [vmem:[%s18533_s23 + $0x204] ss:$16 sps:$4 sm:$0xff]   ;;  %v17516_v63 = vld [vmem:[%s18533_s23 + $0x20c] ss:$16 sps:$4 sm:$0xff]  }
 0xcf5   : > { %10769 = vmatpush1.bf16.msra.mxu0 %v17427_v33  ;;  %10933 = vmatpush1.bf16.msra.mxu1 %v17430_v58  ;;  %v17511_v33 = vld [vmem:[%s18533_s23 + $0x200] ss:$16 sps:$4 sm:$0xff]   ;;  %v17514_v58 = vld [vmem:[%s18533_s23 + $0x208] ss:$16 sps:$4 sm:$0xff]  }
 0xcf6   : > { %10770 = vmatprep.subr.bf16.mxu0 %v17435_v54  ;;  %10934 = vmatprep.subr.bf16.mxu1 %v17438_v50  ;;  %v17519_v54 = vld [vmem:[%s18533_s23 + $0x224] ss:$16 sps:$4 sm:$0xff]   ;;  %v17522_v50 = vld [vmem:[%s18533_s23 + $0x22c] ss:$16 sps:$4 sm:$0xff]  }
 0xcf9   : > { %10771 = vmatpush1.bf16.msra.mxu0 %v17433_v41  ;;  %10935 = vmatpush1.bf16.msra.mxu1 %v17436_v38  ;;  %v17517_v41 = vld [vmem:[%s18533_s23 + $0x220] ss:$16 sps:$4 sm:$0xff]   ;;  %v17520_v38 = vld [vmem:[%s18533_s23 + $0x228] ss:$16 sps:$4 sm:$0xff]  }
 0xcfa   : > { %10772 = vmatprep.subr.bf16.mxu0 %v17441_v23  ;;  %10936 = vmatprep.subr.bf16.mxu1 %v17444_v46  ;;  %v17525_v23 = vld [vmem:[%s18533_s23 + $0x244] ss:$16 sps:$4 sm:$0xff]   ;;  %v17528_v46 = vld [vmem:[%s18533_s23 + $0x24c] ss:$16 sps:$4 sm:$0xff]  }
 0xcfd   : > { %10773 = vmatpush1.bf16.msra.mxu0 %v17439_v13  ;;  %10937 = vmatpush1.bf16.msra.mxu1 %v17442_v28  ;;  %v17526_v13 = vld [vmem:[%s18533_s23 + $0x248] ss:$16 sps:$4 sm:$0xff]   ;;  %v17531_v28 = vld [vmem:[%s18533_s23 + $0x264] ss:$16 sps:$4 sm:$0xff]  }
 0xcfe   : > { %10774 = vmatprep.subr.bf16.mxu0 %v17447_v32  ;;  %10938 = vmatprep.subr.bf16.mxu1 %v17450_v55  ;;  %v17534_v32 = vld [vmem:[%s18533_s23 + $0x26c] ss:$16 sps:$4 sm:$0xff]   ;;  %v17529_v55 = vld [vmem:[%s18533_s23 + $0x260] ss:$16 sps:$4 sm:$0xff]  }
 0xd01   : > { %10775 = vmatpush1.bf16.msra.mxu0 %v17445_v39  ;;  %10939 = vmatpush1.bf16.msra.mxu1 %v17448_v26  ;;  %v17532_v39 = vld [vmem:[%s18533_s23 + $0x268] ss:$16 sps:$4 sm:$0xff]   ;;  %v17540_v26 = vld [vmem:[%s18533_s23 + $0x28c] ss:$16 sps:$4 sm:$0xff]  }
 0xd02   : > { %10776 = vmatprep.subr.bf16.mxu0 %v17453_v59  ;;  %10940 = vmatprep.subr.bf16.mxu1 %v17456_v27  ;;  %v17535_v59 = vld [vmem:[%s18533_s23 + $0x280] ss:$16 sps:$4 sm:$0xff]   ;;  %v17538_v27 = vld [vmem:[%s18533_s23 + $0x288] ss:$16 sps:$4 sm:$0xff]  }
 0xd05   : > { %10777 = vmatpush1.bf16.msra.mxu0 %v17451_v42  ;;  %10941 = vmatpush1.bf16.msra.mxu1 %v17454_v2  ;;  %v17543_v42 = vld [vmem:[%s18533_s23 + $0x2a4] ss:$16 sps:$4 sm:$0xff]   ;;  %v17546_v2 = vld [vmem:[%s18533_s23 + $0x2ac] ss:$16 sps:$4 sm:$0xff]  }
 0xd06   : > { %10778 = vmatprep.subr.bf16.mxu0 %v17459_v19  ;;  %10942 = vmatprep.subr.bf16.mxu1 %v17462_v21  ;;  %v17541_v19 = vld [vmem:[%s18533_s23 + $0x2a0] ss:$16 sps:$4 sm:$0xff]   ;;  %v17544_v21 = vld [vmem:[%s18533_s23 + $0x2a8] ss:$16 sps:$4 sm:$0xff]  }
 0xd09   : > { %10779 = vmatpush1.bf16.msra.mxu0 %v17457_v24  ;;  %10943 = vmatpush1.bf16.msra.mxu1 %v17460_v15  ;;  %v17549_v24 = vld [vmem:[%s18533_s23 + $0x2c4] ss:$16 sps:$4 sm:$0xff]   ;;  %v17552_v15 = vld [vmem:[%s18533_s23 + $0x2cc] ss:$16 sps:$4 sm:$0xff]  }
 0xd0a   : > { %10780 = vmatprep.subr.bf16.mxu0 %v17465_v3  ;;  %10944 = vmatprep.subr.bf16.mxu1 %v17468_v7  ;;  %v17547_v3 = vld [vmem:[%s18533_s23 + $0x2c0] ss:$16 sps:$4 sm:$0xff]   ;;  %v17550_v7 = vld [vmem:[%s18533_s23 + $0x2c8] ss:$16 sps:$4 sm:$0xff]  }
 0xd0d   : > { %10781 = vmatpush1.bf16.msra.mxu0 %v17463_v61  ;;  %10945 = vmatpush1.bf16.msra.mxu1 %v17466_v34  ;;  %v17555_v61 = vld [vmem:[%s18533_s23 + $0x2e4] ss:$16 sps:$4 sm:$0xff]   ;;  %v17558_v34 = vld [vmem:[%s18533_s23 + $0x2ec] ss:$16 sps:$4 sm:$0xff]  }
 0xd0e   : > { %10782 = vmatprep.subr.bf16.mxu0 %v17471_v35  ;;  %10946 = vmatprep.subr.bf16.mxu1 %v17474_v37  ;;  %v17553_v35 = vld [vmem:[%s18533_s23 + $0x2e0] ss:$16 sps:$4 sm:$0xff]   ;;  %v17556_v37 = vld [vmem:[%s18533_s23 + $0x2e8] ss:$16 sps:$4 sm:$0xff]  }
 0xd11   : > { %10783 = vmatpush1.bf16.msra.mxu0 %v17469_v49  ;;  %10947 = vmatpush1.bf16.msra.mxu1 %v17472_v44  ;;  %v17561_v49 = vld [vmem:[%s18533_s23 + $0x304] ss:$16 sps:$4 sm:$0xff]   ;;  %v17564_v44 = vld [vmem:[%s18533_s23 + $0x30c] ss:$16 sps:$4 sm:$0xff]  }
 0xd12   : > { %10784 = vmatprep.subr.bf16.mxu0 %v17477_v47  ;;  %10948 = vmatprep.subr.bf16.mxu1 %v17480_v57  ;;  %v17559_v47 = vld [vmem:[%s18533_s23 + $0x300] ss:$16 sps:$4 sm:$0xff]   ;;  %v17562_v57 = vld [vmem:[%s18533_s23 + $0x308] ss:$16 sps:$4 sm:$0xff]  }
 0xd15   : > { %10785 = vmatpush1.bf16.msra.mxu0 %v17475_v20  ;;  %10949 = vmatpush1.bf16.msra.mxu1 %v17478_v43  ;;  %v17567_v20 = vld [vmem:[%s18533_s23 + $0x324] ss:$16 sps:$4 sm:$0xff]   ;;  %v17570_v43 = vld [vmem:[%s18533_s23 + $0x32c] ss:$16 sps:$4 sm:$0xff]  }
 0xd16   : > { %10786 = vmatprep.subr.bf16.mxu0 %v17483_v53  ;;  %10950 = vmatprep.subr.bf16.mxu1 %v17486_v11  ;;  %v17565_v53 = vld [vmem:[%s18533_s23 + $0x320] ss:$16 sps:$4 sm:$0xff]   ;;  %v17568_v11 = vld [vmem:[%s18533_s23 + $0x328] ss:$16 sps:$4 sm:$0xff]  }
 0xd19   : > { %10787 = vmatpush1.bf16.msra.mxu0 %v17481_v62  ;;  %10951 = vmatpush1.bf16.msra.mxu1 %v17484_v16  ;;  %v17573_v62 = vld [vmem:[%s18533_s23 + $0x344] ss:$16 sps:$4 sm:$0xff]   ;;  %v17576_v16 = vld [vmem:[%s18533_s23 + $0x34c] ss:$16 sps:$4 sm:$0xff]  }
 0xd1a   : > { %10788 = vmatprep.subr.bf16.mxu0 %v17489_v14  ;;  %10952 = vmatprep.subr.bf16.mxu1 %v17492_v0  ;;  %v17571_v14 = vld [vmem:[%s18533_s23 + $0x340] ss:$16 sps:$4 sm:$0xff]   ;;  %v17574_v0 = vld [vmem:[%s18533_s23 + $0x348] ss:$16 sps:$4 sm:$0xff]  }
 0xd1d   : > { %10789 = vmatpush1.bf16.msra.mxu0 %v17487_v9  ;;  %10953 = vmatpush1.bf16.msra.mxu1 %v17490_v6  ;;  %v17579_v9 = vld [vmem:[%s18533_s23 + $0x364] ss:$16 sps:$4 sm:$0xff]   ;;  %v17582_v6 = vld [vmem:[%s18533_s23 + $0x36c] ss:$16 sps:$4 sm:$0xff]  }
 0xd1e   : > { %10790 = vmatprep.subr.bf16.mxu0 %v17495_v56  ;;  %10954 = vmatprep.subr.bf16.mxu1 %v17498_v1  ;;  %v17577_v56 = vld [vmem:[%s18533_s23 + $0x360] ss:$16 sps:$4 sm:$0xff]   ;;  %v17580_v1 = vld [vmem:[%s18533_s23 + $0x368] ss:$16 sps:$4 sm:$0xff]  }
 0xd21   : > { %10791 = vmatpush1.bf16.msra.mxu0 %v17493_v10  ;;  %10955 = vmatpush1.bf16.msra.mxu1 %v17496_v5  ;;  %v17585_v10 = vld [vmem:[%s18533_s23 + $0x384] ss:$16 sps:$4 sm:$0xff]   ;;  %v17588_v5 = vld [vmem:[%s18533_s23 + $0x38c] ss:$16 sps:$4 sm:$0xff]  }
 0xd22   : > { %10792 = vmatprep.subr.bf16.mxu0 %v17501_v29  ;;  %10956 = vmatprep.subr.bf16.mxu1 %v17504_v31  ;;  %v17583_v29 = vld [vmem:[%s18533_s23 + $0x380] ss:$16 sps:$4 sm:$0xff]   ;;  %v17586_v31 = vld [vmem:[%s18533_s23 + $0x388] ss:$16 sps:$4 sm:$0xff]  }
 0xd25   : > { %10793 = vmatpush1.bf16.msra.mxu0 %v17499_v51  ;;  %10957 = vmatpush1.bf16.msra.mxu1 %v17502_v45  ;;  %v17591_v51 = vld [vmem:[%s18533_s23 + $0x3a4] ss:$16 sps:$4 sm:$0xff]   ;;  %v17594_v45 = vld [vmem:[%s18533_s23 + $0x3ac] ss:$16 sps:$4 sm:$0xff]  }
 0xd26   : > { %10794 = vmatprep.subr.bf16.mxu0 %v17507_v25  ;;  %10958 = vmatprep.subr.bf16.mxu1 %v17510_v48  ;;  %v17589_v25 = vld [vmem:[%s18533_s23 + $0x3a0] ss:$16 sps:$4 sm:$0xff]   ;;  %v17592_v48 = vld [vmem:[%s18533_s23 + $0x3a8] ss:$16 sps:$4 sm:$0xff]  }
 0xd29   : > { %10795 = vmatpush1.bf16.msra.mxu0 %v17505_v8  ;;  %10959 = vmatpush1.bf16.msra.mxu1 %v17508_v22  ;;  %v17597_v8 = vld [vmem:[%s18533_s23 + $0x3c4] ss:$16 sps:$4 sm:$0xff]   ;;  %v17600_v22 = vld [vmem:[%s18533_s23 + $0x3cc] ss:$16 sps:$4 sm:$0xff]  }
 0xd2a   : > { %10805 = vmatprep.subr.bf16.mxu0 %v17513_v30  ;;  %10969 = vmatprep.subr.bf16.mxu1 %v17516_v63  ;;  %v17595_v30 = vld [vmem:[%s18533_s23 + $0x3c0] ss:$16 sps:$4 sm:$0xff]   ;;  %v17598_v63 = vld [vmem:[%s18533_s23 + $0x3c8] ss:$16 sps:$4 sm:$0xff]  }
 0xd2c   : > { %10797 = vmatmul.mubr.bf16.vlgmr.msra.gmra.mrb[4].mxu0 %v19725_v18  ;;  %10961 = vmatmul.mubr.bf16.vlgmr.msra.gmra.mrb[4].mxu1 %v19725_v18  ;;  %v17523_v18 = vld [vmem:[%s18533_s23 + $0x240] ss:$16 sps:$4 sm:$0xff]  }
 0xd2d   : > { %10806 = vmatpush1.bf16.msra.mxu0 %v17511_v33  ;;  %10970 = vmatpush1.bf16.msra.mxu1 %v17514_v58  ;;  %v17603_v33 = vld [vmem:[%s18533_s23 + $0x3e4] ss:$16 sps:$4 sm:$0xff]   ;;  %v17606_v58 = vld [vmem:[%s18533_s23 + $0x3ec] ss:$16 sps:$4 sm:$0xff]  }
 0xd2e   : > { %10807 = vmatprep.subr.bf16.mxu0 %v17519_v54  ;;  %10971 = vmatprep.subr.bf16.mxu1 %v17522_v50  ;;  %v17601_v54 = vld [vmem:[%s18533_s23 + $0x3e0] ss:$16 sps:$4 sm:$0xff]   ;;  %v17604_v50 = vld [vmem:[%s18533_s23 + $0x3e8] ss:$16 sps:$4 sm:$0xff]  }
 0xd2f   : > { %10837 = vmatprep.mubr.bf16.mxu0 %v19738_v52  ;;  %11001 = vmatprep.mubr.bf16.mxu1 %v19738_v52  ;;  %v17537_v52 = vld [vmem:[%s18533_s23 + $0x284] ss:$16 sps:$4 sm:$0xff]  }
 0xd31   : > { %10808 = vmatpush1.bf16.msra.mxu0 %v17517_v41  ;;  %10972 = vmatpush1.bf16.msra.mxu1 %v17520_v38  ;;  %v17609_v41 = vld [vmem:[%s18533_s23 + $0x404] ss:$16 sps:$4 sm:$0xff]   ;;  %v17612_v38 = vld [vmem:[%s18533_s23 + $0x40c] ss:$16 sps:$4 sm:$0xff]  }
 0xd32   : > { %10809 = vmatprep.subr.bf16.mxu0 %v17525_v23  ;;  %10973 = vmatprep.subr.bf16.mxu1 %v17528_v46  ;;  %v17607_v23 = vld [vmem:[%s18533_s23 + $0x400] ss:$16 sps:$4 sm:$0xff]   ;;  %v17610_v46 = vld [vmem:[%s18533_s23 + $0x408] ss:$16 sps:$4 sm:$0xff]  }
 0xd35   : > { %10810 = vmatpush1.bf16.msra.mxu0 %v17523_v18  ;;  %10974 = vmatpush1.bf16.msra.mxu1 %v17526_v13  ;;  %v17615_v18 = vld [vmem:[%s18533_s23 + $0x424] ss:$16 sps:$4 sm:$0xff]   ;;  %v17618_v13 = vld [vmem:[%s18533_s23 + $0x42c] ss:$16 sps:$4 sm:$0xff]  }
 0xd36   : > { %10811 = vmatprep.subr.bf16.mxu0 %v17531_v28  ;;  %10975 = vmatprep.subr.bf16.mxu1 %v17534_v32  ;;  %v17613_v28 = vld [vmem:[%s18533_s23 + $0x420] ss:$16 sps:$4 sm:$0xff]   ;;  %v17616_v32 = vld [vmem:[%s18533_s23 + $0x428] ss:$16 sps:$4 sm:$0xff]  }
 0xd39   : > { %10812 = vmatpush1.bf16.msra.mxu0 %v17529_v55  ;;  %10976 = vmatpush1.bf16.msra.mxu1 %v17532_v39  ;;  %v17621_v55 = vld [vmem:[%s18533_s23 + $0x444] ss:$16 sps:$4 sm:$0xff]   ;;  %v17624_v39 = vld [vmem:[%s18533_s23 + $0x44c] ss:$16 sps:$4 sm:$0xff]  }
 0xd3a   : > { %10813 = vmatprep.subr.bf16.mxu0 %v17537_v52  ;;  %10977 = vmatprep.subr.bf16.mxu1 %v17540_v26  ;;  %v17622_v52 = vld [vmem:[%s18533_s23 + $0x448] ss:$16 sps:$4 sm:$0xff]   ;;  %v17627_v26 = vld [vmem:[%s18533_s23 + $0x464] ss:$16 sps:$4 sm:$0xff]  }
 0xd3d   : > { %10814 = vmatpush1.bf16.msra.mxu0 %v17535_v59  ;;  %10978 = vmatpush1.bf16.msra.mxu1 %v17538_v27  ;;  %v17630_v59 = vld [vmem:[%s18533_s23 + $0x46c] ss:$16 sps:$4 sm:$0xff]   ;;  %v17625_v27 = vld [vmem:[%s18533_s23 + $0x460] ss:$16 sps:$4 sm:$0xff]  }
 0xd3e   : > { %10815 = vmatprep.subr.bf16.mxu0 %v17543_v42  ;;  %10979 = vmatprep.subr.bf16.mxu1 %v17546_v2  ;;  %v17628_v42 = vld [vmem:[%s18533_s23 + $0x468] ss:$16 sps:$4 sm:$0xff]   ;;  %v17636_v2 = vld [vmem:[%s18533_s23 + $0x48c] ss:$16 sps:$4 sm:$0xff]  }
 0xd41   : > { %10816 = vmatpush1.bf16.msra.mxu0 %v17541_v19  ;;  %10980 = vmatpush1.bf16.msra.mxu1 %v17544_v21  ;;  %v17631_v19 = vld [vmem:[%s18533_s23 + $0x480] ss:$16 sps:$4 sm:$0xff]   ;;  %v17634_v21 = vld [vmem:[%s18533_s23 + $0x488] ss:$16 sps:$4 sm:$0xff]  }
 0xd42   : > { %10817 = vmatprep.subr.bf16.mxu0 %v17549_v24  ;;  %10981 = vmatprep.subr.bf16.mxu1 %v17552_v15  ;;  %v17639_v24 = vld [vmem:[%s18533_s23 + $0x4a4] ss:$16 sps:$4 sm:$0xff]   ;;  %v17642_v15 = vld [vmem:[%s18533_s23 + $0x4ac] ss:$16 sps:$4 sm:$0xff]  }
 0xd45   : > { %10818 = vmatpush1.bf16.msra.mxu0 %v17547_v3  ;;  %10982 = vmatpush1.bf16.msra.mxu1 %v17550_v7  ;;  %v17637_v3 = vld [vmem:[%s18533_s23 + $0x4a0] ss:$16 sps:$4 sm:$0xff]   ;;  %v17640_v7 = vld [vmem:[%s18533_s23 + $0x4a8] ss:$16 sps:$4 sm:$0xff]  }
 0xd46   : > { %10819 = vmatprep.subr.bf16.mxu0 %v17555_v61  ;;  %10983 = vmatprep.subr.bf16.mxu1 %v17558_v34  ;;  %v17645_v61 = vld [vmem:[%s18533_s23 + $0x4c4] ss:$16 sps:$4 sm:$0xff]   ;;  %v17648_v34 = vld [vmem:[%s18533_s23 + $0x4cc] ss:$16 sps:$4 sm:$0xff]  }
 0xd49   : > { %10820 = vmatpush1.bf16.msra.mxu0 %v17553_v35  ;;  %10984 = vmatpush1.bf16.msra.mxu1 %v17556_v37  ;;  %v17643_v35 = vld [vmem:[%s18533_s23 + $0x4c0] ss:$16 sps:$4 sm:$0xff]   ;;  %v17646_v37 = vld [vmem:[%s18533_s23 + $0x4c8] ss:$16 sps:$4 sm:$0xff]  }
 0xd4a   : > { %10821 = vmatprep.subr.bf16.mxu0 %v17561_v49  ;;  %10985 = vmatprep.subr.bf16.mxu1 %v17564_v44  ;;  %v17651_v49 = vld [vmem:[%s18533_s23 + $0x4e4] ss:$16 sps:$4 sm:$0xff]   ;;  %v17654_v44 = vld [vmem:[%s18533_s23 + $0x4ec] ss:$16 sps:$4 sm:$0xff]  }
 0xd4d   : > { %10822 = vmatpush1.bf16.msra.mxu0 %v17559_v47  ;;  %10986 = vmatpush1.bf16.msra.mxu1 %v17562_v57  ;;  %v17649_v47 = vld [vmem:[%s18533_s23 + $0x4e0] ss:$16 sps:$4 sm:$0xff]   ;;  %v17652_v57 = vld [vmem:[%s18533_s23 + $0x4e8] ss:$16 sps:$4 sm:$0xff]  }
 0xd4e   : > { %10823 = vmatprep.subr.bf16.mxu0 %v17567_v20  ;;  %10987 = vmatprep.subr.bf16.mxu1 %v17570_v43  ;;  %v17657_v20 = vld [vmem:[%s18533_s23 + $0x504] ss:$16 sps:$4 sm:$0xff]   ;;  %v17660_v43 = vld [vmem:[%s18533_s23 + $0x50c] ss:$16 sps:$4 sm:$0xff]  }
 0xd51   : > { %10824 = vmatpush1.bf16.msra.mxu0 %v17565_v53  ;;  %10988 = vmatpush1.bf16.msra.mxu1 %v17568_v11  ;;  %v17655_v53 = vld [vmem:[%s18533_s23 + $0x500] ss:$16 sps:$4 sm:$0xff]   ;;  %v17658_v11 = vld [vmem:[%s18533_s23 + $0x508] ss:$16 sps:$4 sm:$0xff]  }
 0xd52   : > { %10825 = vmatprep.subr.bf16.mxu0 %v17573_v62  ;;  %10989 = vmatprep.subr.bf16.mxu1 %v17576_v16  ;;  %v17663_v62 = vld [vmem:[%s18533_s23 + $0x524] ss:$16 sps:$4 sm:$0xff]   ;;  %v17666_v16 = vld [vmem:[%s18533_s23 + $0x52c] ss:$16 sps:$4 sm:$0xff]  }
 0xd55   : > { %10826 = vmatpush1.bf16.msra.mxu0 %v17571_v14  ;;  %10990 = vmatpush1.bf16.msra.mxu1 %v17574_v0  ;;  %v17661_v14 = vld [vmem:[%s18533_s23 + $0x520] ss:$16 sps:$4 sm:$0xff]   ;;  %v17664_v0 = vld [vmem:[%s18533_s23 + $0x528] ss:$16 sps:$4 sm:$0xff]  }
 0xd56   : > { %10827 = vmatprep.subr.bf16.mxu0 %v17579_v9  ;;  %10991 = vmatprep.subr.bf16.mxu1 %v17582_v6  ;;  %v17669_v9 = vld [vmem:[%s18533_s23 + $0x544] ss:$16 sps:$4 sm:$0xff]   ;;  %v17672_v6 = vld [vmem:[%s18533_s23 + $0x54c] ss:$16 sps:$4 sm:$0xff]  }
 0xd59   : > { %10828 = vmatpush1.bf16.msra.mxu0 %v17577_v56  ;;  %10992 = vmatpush1.bf16.msra.mxu1 %v17580_v1  ;;  %v17667_v56 = vld [vmem:[%s18533_s23 + $0x540] ss:$16 sps:$4 sm:$0xff]   ;;  %v17670_v1 = vld [vmem:[%s18533_s23 + $0x548] ss:$16 sps:$4 sm:$0xff]  }
 0xd5a   : > { %10829 = vmatprep.subr.bf16.mxu0 %v17585_v10  ;;  %10993 = vmatprep.subr.bf16.mxu1 %v17588_v5  ;;  %v17675_v10 = vld [vmem:[%s18533_s23 + $0x564] ss:$16 sps:$4 sm:$0xff]   ;;  %v17678_v5 = vld [vmem:[%s18533_s23 + $0x56c] ss:$16 sps:$4 sm:$0xff]  }
 0xd5d   : > { %10830 = vmatpush1.bf16.msra.mxu0 %v17583_v29  ;;  %10994 = vmatpush1.bf16.msra.mxu1 %v17586_v31  ;;  %v17673_v29 = vld [vmem:[%s18533_s23 + $0x560] ss:$16 sps:$4 sm:$0xff]   ;;  %v17676_v31 = vld [vmem:[%s18533_s23 + $0x568] ss:$16 sps:$4 sm:$0xff]  }
 0xd5e   : > { %10831 = vmatprep.subr.bf16.mxu0 %v17591_v51  ;;  %10995 = vmatprep.subr.bf16.mxu1 %v17594_v45  ;;  %v17681_v51 = vld [vmem:[%s18533_s23 + $0x584] ss:$16 sps:$4 sm:$0xff]   ;;  %v17684_v45 = vld [vmem:[%s18533_s23 + $0x58c] ss:$16 sps:$4 sm:$0xff]  }
 0xd61   : > { %10832 = vmatpush1.bf16.msra.mxu0 %v17589_v25  ;;  %10996 = vmatpush1.bf16.msra.mxu1 %v17592_v48  ;;  %v17679_v25 = vld [vmem:[%s18533_s23 + $0x580] ss:$16 sps:$4 sm:$0xff]   ;;  %v17682_v48 = vld [vmem:[%s18533_s23 + $0x588] ss:$16 sps:$4 sm:$0xff]  }
 0xd62   : > { %10833 = vmatprep.subr.bf16.mxu0 %v17597_v8  ;;  %10997 = vmatprep.subr.bf16.mxu1 %v17600_v22  ;;  %v17687_v8 = vld [vmem:[%s18533_s23 + $0x5a4] ss:$16 sps:$4 sm:$0xff]   ;;  %v17690_v22 = vld [vmem:[%s18533_s23 + $0x5ac] ss:$16 sps:$4 sm:$0xff]  }
 0xd65   : > { %10834 = vmatpush1.bf16.msra.mxu0 %v17595_v30  ;;  %10998 = vmatpush1.bf16.msra.mxu1 %v17598_v63  ;;  %v17685_v30 = vld [vmem:[%s18533_s23 + $0x5a0] ss:$16 sps:$4 sm:$0xff]   ;;  %v17688_v63 = vld [vmem:[%s18533_s23 + $0x5a8] ss:$16 sps:$4 sm:$0xff]  }
 0xd66   : > { %10835 = vmatprep.subr.bf16.mxu0 %v17603_v33  ;;  %10999 = vmatprep.subr.bf16.mxu1 %v17606_v58  ;;  %v17693_v33 = vld [vmem:[%s18533_s23 + $0x5c4] ss:$16 sps:$4 sm:$0xff]   ;;  %v17696_v58 = vld [vmem:[%s18533_s23 + $0x5cc] ss:$16 sps:$4 sm:$0xff]  }
 0xd69   : > { %10836 = vmatpush1.bf16.msra.mxu0 %v17601_v54  ;;  %11000 = vmatpush1.bf16.msra.mxu1 %v17604_v50  ;;  %v17691_v54 = vld [vmem:[%s18533_s23 + $0x5c0] ss:$16 sps:$4 sm:$0xff]   ;;  %v17694_v50 = vld [vmem:[%s18533_s23 + $0x5c8] ss:$16 sps:$4 sm:$0xff]  }
 0xd6a   : > { %10846 = vmatprep.subr.bf16.mxu0 %v17609_v41  ;;  %11010 = vmatprep.subr.bf16.mxu1 %v17612_v38  ;;  %v17699_v41 = vld [vmem:[%s18533_s23 + $0x5e4] ss:$16 sps:$4 sm:$0xff]   ;;  %v17702_v38 = vld [vmem:[%s18533_s23 + $0x5ec] ss:$16 sps:$4 sm:$0xff]  }
 0xd6c   : > { %10838 = vmatmul.mubr.bf16.vlgmr.msra.gmra.mrb[4].mxu0 %v19807_v4  ;;  %11002 = vmatmul.mubr.bf16.vlgmr.msra.gmra.mrb[4].mxu1 %v19807_v4  ;;  %v17619_v4 = vld [vmem:[%s18533_s23 + $0x440] ss:$16 sps:$4 sm:$0xff]  }
 0xd6d   : > { %10847 = vmatpush1.bf16.msra.mxu0 %v17607_v23  ;;  %11011 = vmatpush1.bf16.msra.mxu1 %v17610_v46  ;;  %v17697_v23 = vld [vmem:[%s18533_s23 + $0x5e0] ss:$16 sps:$4 sm:$0xff]   ;;  %v17700_v46 = vld [vmem:[%s18533_s23 + $0x5e8] ss:$16 sps:$4 sm:$0xff]  }
 0xd6e   : > { %10848 = vmatprep.subr.bf16.mxu0 %v17615_v18  ;;  %11012 = vmatprep.subr.bf16.mxu1 %v17618_v13  ;;  %v17705_v18 = vld [vmem:[%s18533_s23 + $0x604] ss:$16 sps:$4 sm:$0xff]   ;;  %v17708_v13 = vld [vmem:[%s18533_s23 + $0x60c] ss:$16 sps:$4 sm:$0xff]  }
 0xd6f   : > { %10878 = vmatprep.mubr.bf16.mxu0 %v19731_v17  ;;  %11042 = vmatprep.mubr.bf16.mxu1 %v19731_v17  ;;  %v17633_v17 = vld [vmem:[%s18533_s23 + $0x484] ss:$16 sps:$4 sm:$0xff]  }
 0xd71   : > { %10849 = vmatpush1.bf16.msra.mxu0 %v17613_v28  ;;  %11013 = vmatpush1.bf16.msra.mxu1 %v17616_v32  ;;  %v17703_v28 = vld [vmem:[%s18533_s23 + $0x600] ss:$16 sps:$4 sm:$0xff]   ;;  %v17706_v32 = vld [vmem:[%s18533_s23 + $0x608] ss:$16 sps:$4 sm:$0xff]  }
 0xd72   : > { %10850 = vmatprep.subr.bf16.mxu0 %v17621_v55  ;;  %11014 = vmatprep.subr.bf16.mxu1 %v17624_v39  ;;  %v17711_v55 = vld [vmem:[%s18533_s23 + $0x624] ss:$16 sps:$4 sm:$0xff]   ;;  %v17714_v39 = vld [vmem:[%s18533_s23 + $0x62c] ss:$16 sps:$4 sm:$0xff]  }
 0xd75   : > { %10851 = vmatpush1.bf16.msra.mxu0 %v17619_v4  ;;  %11015 = vmatpush1.bf16.msra.mxu1 %v17622_v52  ;;  %v17709_v4 = vld [vmem:[%s18533_s23 + $0x620] ss:$16 sps:$4 sm:$0xff]   ;;  %v17712_v52 = vld [vmem:[%s18533_s23 + $0x628] ss:$16 sps:$4 sm:$0xff]  }
 0xd76   : > { %10852 = vmatprep.subr.bf16.mxu0 %v17627_v26  ;;  %11016 = vmatprep.subr.bf16.mxu1 %v17630_v59  ;;  %v17717_v26 = vld [vmem:[%s18533_s23 + $0x644] ss:$16 sps:$4 sm:$0xff]   ;;  %v17720_v59 = vld [vmem:[%s18533_s23 + $0x64c] ss:$16 sps:$4 sm:$0xff]  }
 0xd79   : > { %10853 = vmatpush1.bf16.msra.mxu0 %v17625_v27  ;;  %11017 = vmatpush1.bf16.msra.mxu1 %v17628_v42  ;;  %v17718_v27 = vld [vmem:[%s18533_s23 + $0x648] ss:$16 sps:$4 sm:$0xff]   ;;  %v17723_v42 = vld [vmem:[%s18533_s23 + $0x664] ss:$16 sps:$4 sm:$0xff]  }
 0xd7a   : > { %10854 = vmatprep.subr.bf16.mxu0 %v17633_v17  ;;  %11018 = vmatprep.subr.bf16.mxu1 %v17636_v2  ;;  %v17726_v17 = vld [vmem:[%s18533_s23 + $0x66c] ss:$16 sps:$4 sm:$0xff]   ;;  %v17721_v2 = vld [vmem:[%s18533_s23 + $0x660] ss:$16 sps:$4 sm:$0xff]  }
 0xd7d   : > { %10855 = vmatpush1.bf16.msra.mxu0 %v17631_v19  ;;  %11019 = vmatpush1.bf16.msra.mxu1 %v17634_v21  ;;  %v17724_v19 = vld [vmem:[%s18533_s23 + $0x668] ss:$16 sps:$4 sm:$0xff]   ;;  %v17732_v21 = vld [vmem:[%s18533_s23 + $0x68c] ss:$16 sps:$4 sm:$0xff]  }
 0xd7e   : > { %10856 = vmatprep.subr.bf16.mxu0 %v17639_v24  ;;  %11020 = vmatprep.subr.bf16.mxu1 %v17642_v15  ;;  %v18323_v24 = vmov 1983009808  }
 0xd7f   : > { %v9210_v15 = vunpack.c.l.s4 %v18323_v24  ;;  %v17798_v24 = vld [vmem:[%s18533_s23 + $0x7ec] ss:$16 sps:$4 sm:$0xff]  }
 0xd81   : > { %10857 = vmatpush1.bf16.msra.mxu0 %v17637_v3  ;;  %11021 = vmatpush1.bf16.msra.mxu1 %v17640_v7  ;;  %v17727_v3 = vld [vmem:[%s18533_s23 + $0x680] ss:$16 sps:$4 sm:$0xff]   ;;  %v17730_v7 = vld [vmem:[%s18533_s23 + $0x688] ss:$16 sps:$4 sm:$0xff]  }
 0xd82   : > { %10858 = vmatprep.subr.bf16.mxu0 %v17645_v61  ;;  %11022 = vmatprep.subr.bf16.mxu1 %v17648_v34  ;;  %v17735_v61 = vld [vmem:[%s18533_s23 + $0x6a4] ss:$16 sps:$4 sm:$0xff]   ;;  %v17738_v34 = vld [vmem:[%s18533_s23 + $0x6ac] ss:$16 sps:$4 sm:$0xff]  }
 0xd85   : > { %10859 = vmatpush1.bf16.msra.mxu0 %v17643_v35  ;;  %11023 = vmatpush1.bf16.msra.mxu1 %v17646_v37  ;;  %v9211_v35 = vunpack.c.0.s8 %v9210_v15  ;;  %v17733_v37 = vld [vmem:[%s18533_s23 + $0x6a0] ss:$16 sps:$4 sm:$0xff]  }
 0xd86   : > { %10860 = vmatprep.subr.bf16.mxu0 %v17651_v49  ;;  %11024 = vmatprep.subr.bf16.mxu1 %v17654_v44  ;;  %v17736_v49 = vld [vmem:[%s18533_s23 + $0x6a8] ss:$16 sps:$4 sm:$0xff]   ;;  %v17741_v44 = vld [vmem:[%s18533_s23 + $0x6c4] ss:$16 sps:$4 sm:$0xff]   ;;  %v17793_v15 = vld [vmem:[%s18533_s23 + $0x7e0] ss:$16 sps:$4 sm:$0xff]  }
 0xd89   : > { %10861 = vmatpush1.bf16.msra.mxu0 %v17649_v47  ;;  %11025 = vmatpush1.bf16.msra.mxu1 %v17652_v57  ;;  %v17744_v47 = vld [vmem:[%s18533_s23 + $0x6cc] ss:$16 sps:$4 sm:$0xff]  }
 0xd8a   : > { %10862 = vmatprep.subr.bf16.mxu0 %v17657_v20  ;;  %11026 = vmatprep.subr.bf16.mxu1 %v17660_v43  ;;  %v20185_v43 = vsub.s32 %v9211_v35, %v19681_v40 }
 0xd8d   : > { %10863 = vmatpush1.bf16.msra.mxu0 %v17655_v53  ;;  %11027 = vmatpush1.bf16.msra.mxu1 %v17658_v11 }
 0xd8e   : > { %10864 = vmatprep.subr.bf16.mxu0 %v17663_v62  ;;  %11028 = vmatprep.subr.bf16.mxu1 %v17666_v16 }
 0xd91   : > { %10865 = vmatpush1.bf16.msra.mxu0 %v17661_v14  ;;  %11029 = vmatpush1.bf16.msra.mxu1 %v17664_v0 }
 0xd92   : > { %10866 = vmatprep.subr.bf16.mxu0 %v17669_v9  ;;  %11030 = vmatprep.subr.bf16.mxu1 %v17672_v6  ;;  %v17739_v9 = vld [vmem:[%s18533_s23 + $0x6c0] ss:$16 sps:$4 sm:$0xff]   ;;  %v17742_v6 = vld [vmem:[%s18533_s23 + $0x6c8] ss:$16 sps:$4 sm:$0xff]  }
 0xd95   : > { %10867 = vmatpush1.bf16.msra.mxu0 %v17667_v56  ;;  %11031 = vmatpush1.bf16.msra.mxu1 %v17670_v1 }
 0xd96   : > { %10868 = vmatprep.subr.bf16.mxu0 %v17675_v10  ;;  %11032 = vmatprep.subr.bf16.mxu1 %v17678_v5  ;;  %v17747_v10 = vld [vmem:[%s18533_s23 + $0x6e4] ss:$16 sps:$4 sm:$0xff]   ;;  %v17750_v5 = vld [vmem:[%s18533_s23 + $0x6ec] ss:$16 sps:$4 sm:$0xff]  }
 0xd99   : > { %10869 = vmatpush1.bf16.msra.mxu0 %v17673_v29  ;;  %11033 = vmatpush1.bf16.msra.mxu1 %v17676_v31 }
 0xd9a   : > { %10870 = vmatprep.subr.bf16.mxu0 %v17681_v51  ;;  %11034 = vmatprep.subr.bf16.mxu1 %v17684_v45  ;;  %v7280_v51 = vld [vmem:[#allocation2] sm:$0xff] }
 0xd9d   : > { %10871 = vmatpush1.bf16.msra.mxu0 %v17679_v25  ;;  %11035 = vmatpush1.bf16.msra.mxu1 %v17682_v48  ;;  %v17745_v25 = vld [vmem:[%s18533_s23 + $0x6e0] ss:$16 sps:$4 sm:$0xff]   ;;  %v17748_v48 = vld [vmem:[%s18533_s23 + $0x6e8] ss:$16 sps:$4 sm:$0xff]  }
 0xd9e   : > { %10872 = vmatprep.subr.bf16.mxu0 %v17687_v8  ;;  %11036 = vmatprep.subr.bf16.mxu1 %v17690_v22  ;;  %v17753_v8 = vld [vmem:[%s18533_s23 + $0x704] ss:$16 sps:$4 sm:$0xff]   ;;  %v17756_v22 = vld [vmem:[%s18533_s23 + $0x70c] ss:$16 sps:$4 sm:$0xff]  }
 0xda1   : > { %10873 = vmatpush1.bf16.msra.mxu0 %v17685_v30  ;;  %11037 = vmatpush1.bf16.msra.mxu1 %v17688_v63  ;;  %v17751_v63 = vld [vmem:[%s18533_s23 + $0x700] ss:$16 sps:$4 sm:$0xff]  }
 0xda2   : > { %10874 = vmatprep.subr.bf16.mxu0 %v17693_v33  ;;  %11038 = vmatprep.subr.bf16.mxu1 %v17696_v58  ;;  %v17754_v33 = vld [vmem:[%s18533_s23 + $0x708] ss:$16 sps:$4 sm:$0xff]   ;;  %v17759_v58 = vld [vmem:[%s18533_s23 + $0x724] ss:$16 sps:$4 sm:$0xff]  }
 0xda5   : > { %10875 = vmatpush1.bf16.msra.mxu0 %v17691_v54  ;;  %11039 = vmatpush1.bf16.msra.mxu1 %v17694_v50  ;;  %v17762_v54 = vld [vmem:[%s18533_s23 + $0x72c] ss:$16 sps:$4 sm:$0xff]   ;;  %v17757_v50 = vld [vmem:[%s18533_s23 + $0x720] ss:$16 sps:$4 sm:$0xff]  }
 0xda6   : > { %10876 = vmatprep.subr.bf16.mxu0 %v17699_v41  ;;  %11040 = vmatprep.subr.bf16.mxu1 %v17702_v38  ;;  %v17760_v41 = vld [vmem:[%s18533_s23 + $0x728] ss:$16 sps:$4 sm:$0xff]   ;;  %v17765_v38 = vld [vmem:[%s18533_s23 + $0x744] ss:$16 sps:$4 sm:$0xff]  }
 0xda9   : > { %10877 = vmatpush1.bf16.msra.mxu0 %v17697_v23  ;;  %11041 = vmatpush1.bf16.msra.mxu1 %v17700_v46  ;;  %v17768_v23 = vld [vmem:[%s18533_s23 + $0x74c] ss:$16 sps:$4 sm:$0xff]   ;;  %v17763_v46 = vld [vmem:[%s18533_s23 + $0x740] ss:$16 sps:$4 sm:$0xff]  }
 0xdaa   : > { %10887 = vmatprep.subr.bf16.mxu0 %v17705_v18  ;;  %11051 = vmatprep.subr.bf16.mxu1 %v17708_v13  ;;  %v17766_v18 = vld [vmem:[%s18533_s23 + $0x748] ss:$16 sps:$4 sm:$0xff]   ;;  %v17771_v13 = vld [vmem:[%s18533_s23 + $0x764] ss:$16 sps:$4 sm:$0xff]  }
 0xdac   : > { %10879 = vmatmul.mubr.bf16.vlgmr.msra.gmra.mrb[4].mxu0 %v19734_v12  ;;  %11043 = vmatmul.mubr.bf16.vlgmr.msra.gmra.mrb[4].mxu1 %v19734_v12  ;;  %v17715_v12 = vld [vmem:[%s18533_s23 + $0x640] ss:$16 sps:$4 sm:$0xff]  }
 0xdad   : > { %10888 = vmatpush1.bf16.msra.mxu0 %v17703_v28  ;;  %11052 = vmatpush1.bf16.msra.mxu1 %v17706_v32  ;;  %v17774_v28 = vld [vmem:[%s18533_s23 + $0x76c] ss:$16 sps:$4 sm:$0xff]   ;;  %v17769_v32 = vld [vmem:[%s18533_s23 + $0x760] ss:$16 sps:$4 sm:$0xff]  }
 0xdae   : > { %10889 = vmatprep.subr.bf16.mxu0 %v17711_v55  ;;  %11053 = vmatprep.subr.bf16.mxu1 %v17714_v39  ;;  %v17772_v55 = vld [vmem:[%s18533_s23 + $0x768] ss:$16 sps:$4 sm:$0xff]   ;;  %v17777_v39 = vld [vmem:[%s18533_s23 + $0x784] ss:$16 sps:$4 sm:$0xff]  }
 0xdaf   : > { %10919 = vmatprep.mubr.bf16.mxu0 %v19882_v60  ;;  %11083 = vmatprep.mubr.bf16.mxu1 %v19882_v60  ;;  %v17729_v60 = vld [vmem:[%s18533_s23 + $0x684] ss:$16 sps:$4 sm:$0xff]  }
 0xdb1   : > { %10890 = vmatpush1.bf16.msra.mxu0 %v17709_v4  ;;  %11054 = vmatpush1.bf16.msra.mxu1 %v17712_v52  ;;  %v17780_v4 = vld [vmem:[%s18533_s23 + $0x78c] ss:$16 sps:$4 sm:$0xff]   ;;  %v17775_v52 = vld [vmem:[%s18533_s23 + $0x780] ss:$16 sps:$4 sm:$0xff]  }
 0xdb2   : > { %10891 = vmatprep.subr.bf16.mxu0 %v17717_v26  ;;  %11055 = vmatprep.subr.bf16.mxu1 %v17720_v59  ;;  %v17778_v26 = vld [vmem:[%s18533_s23 + $0x788] ss:$16 sps:$4 sm:$0xff]   ;;  %v17783_v59 = vld [vmem:[%s18533_s23 + $0x7a4] ss:$16 sps:$4 sm:$0xff]  }
 0xdb5   : > { %10892 = vmatpush1.bf16.msra.mxu0 %v17715_v12  ;;  %11056 = vmatpush1.bf16.msra.mxu1 %v17718_v27  ;;  %v17786_v12 = vld [vmem:[%s18533_s23 + $0x7ac] ss:$16 sps:$4 sm:$0xff]   ;;  %v17781_v27 = vld [vmem:[%s18533_s23 + $0x7a0] ss:$16 sps:$4 sm:$0xff]  }
 0xdb6   : > { %10893 = vmatprep.subr.bf16.mxu0 %v17723_v42  ;;  %11057 = vmatprep.subr.bf16.mxu1 %v17726_v17  ;;  %v17784_v42 = vld [vmem:[%s18533_s23 + $0x7a8] ss:$16 sps:$4 sm:$0xff]   ;;  %v17789_v17 = vld [vmem:[%s18533_s23 + $0x7c4] ss:$16 sps:$4 sm:$0xff]  }
 0xdb9   : > { %10894 = vmatpush1.bf16.msra.mxu0 %v17721_v2  ;;  %11058 = vmatpush1.bf16.msra.mxu1 %v17724_v19  ;;  %v17792_v2 = vld [vmem:[%s18533_s23 + $0x7cc] ss:$16 sps:$4 sm:$0xff]   ;;  %v17787_v19 = vld [vmem:[%s18533_s23 + $0x7c0] ss:$16 sps:$4 sm:$0xff]  }
 0xdba   : > { %10895 = vmatprep.subr.bf16.mxu0 %v17729_v60  ;;  %11059 = vmatprep.subr.bf16.mxu1 %v17732_v21  ;;  %v17790_v60 = vld [vmem:[%s18533_s23 + $0x7c8] ss:$16 sps:$4 sm:$0xff]   ;;  %v17795_v21 = vld [vmem:[%s18533_s23 + $0x7e4] ss:$16 sps:$4 sm:$0xff]  }
 0xdbd   : > { %10896 = vmatpush1.bf16.msra.mxu0 %v17727_v3  ;;  %11060 = vmatpush1.bf16.msra.mxu1 %v17730_v7  ;;  %v17796_v3 = vld [vmem:[%s18533_s23 + $0x7e8] ss:$16 sps:$4 sm:$0xff]   ;;  %s11228_s23 = sld [smem:[#allocation6]] (!%p14722_p3) }
 0xdbe   : > { %10897 = vmatprep.subr.bf16.mxu0 %v17735_v61  ;;  %11061 = vmatprep.subr.bf16.mxu1 %v17738_v34 }
 0xdbf   : > { %v9032_v57 = vpop.f32.mrb[0].mxu0  ;;  %v9196_v20 = vpop.f32.mrb[0].mxu1 }
 0xdc0   : > { %v9034_v53 = vpop.f32.mrb[1].mxu0  ;;  %v9198_v11 = vpop.f32.mrb[1].mxu1 }
 0xdc1   : > { %v9207_v62 = vcombine.low %v9032_v57, %v9034_v53  ;;  %v9208_v16 = vcombine.low %v9196_v20, %v9198_v11  ;;  %v9036_v14 = vpop.f32.mrb[2].mxu0  ;;  %v9200_v0 = vpop.f32.mrb[2].mxu1  ;;  %10898 = vmatpush1.bf16.msra.mxu0 %v17733_v37  ;;  %11062 = vmatpush1.bf16.msra.mxu1 %v17736_v49 }
 0xdc2   : > { %v9037_v56 = vpop.f32.mrb[3].mxu0  ;;  %v9201_v1 = vpop.f32.mrb[3].mxu1  ;;  %10899 = vmatprep.subr.bf16.mxu0 %v17741_v44  ;;  %11063 = vmatprep.subr.bf16.mxu1 %v17744_v47  ;;  %v20234_v0 = vsub.s32 (!%p14722_p3), 0, %v19681_v40 }
 0xdc3   : > { %v9215_v29 = vrot.slane %v9207_v62, %v20185_v43  ;;  %v9222_v31 = vrot.slane %v9208_v16, %v20185_v43  ;;  %v9227_v62 = vld [vmem:[#allocation3] sm:$0xff]  ;;  %v20243_v56 = vsub.s32 (!%p14722_p3), 3, %v19681_v40  ;;  %v11159_v1 = vld [vmem:[%s20695_s16] sm:$0xf] (!%p14722_p3) }
 0xdc5   : > { %v9223_v45 = vcombine.low %v9215_v29, %v9222_v31  ;;  %10900 = vmatpush1.bf16.msra.mxu0 %v17739_v9  ;;  %11064 = vmatpush1.bf16.msra.mxu1 %v17742_v6  ;;  %v20237_v9 = vsub.s32 (!%p14722_p3), 1, %v19681_v40  ;;  %v20240_v6 = vsub.s32 (!%p14722_p3), 2, %v19681_v40  ;;  %v11164_v31 = vrot.slane (!%p14722_p3), %v11159_v1, %v20234_v0 }
 0xdc6   : > { %10901 = vmatprep.subr.bf16.mxu0 %v17747_v10  ;;  %11065 = vmatprep.subr.bf16.mxu1 %v17750_v5 }
 0xdc7   : > { %v9225_v30 = vadd.f32 %v9223_v45, %v7280_v51  ;;  %v11168_v45 = vrot.slane (!%p14722_p3), %v11159_v1, %v20237_v9 }
 0xdc9   : > { %9226 = vst [vmem:[#allocation2] sm:$0xff] %v9225_v30  ;;  %10902 = vmatpush1.bf16.msra.mxu0 %v17745_v25  ;;  %11066 = vmatpush1.bf16.msra.mxu1 %v17748_v48  ;;  %v11172_v25 = vrot.slane (!%p14722_p3), %v11159_v1, %v20240_v6  ;;  %v11176_v48 = vrot.slane (!%p14722_p3), %v11159_v1, %v20243_v56  ;;  %v17836_v1 = vld [vmem:[%s20696_s22 + $0xa8] ss:$16 sps:$4 sm:$0xff] (!%p14722_p3)  }
 0xdca   : > { %10903 = vmatprep.subr.bf16.mxu0 %v17753_v8  ;;  %11067 = vmatprep.subr.bf16.mxu1 %v17756_v22  ;;  %v11177_v22 = vcombine.low (!%p14722_p3), %v11164_v31, %v11168_v45  ;;  %v17842_v31 = vld [vmem:[%s20696_s22 + $0xc8] ss:$16 sps:$4 sm:$0xff] (!%p14722_p3)   ;;  %v17845_v45 = vld [vmem:[%s20696_s22 + $0xec] ss:$16 sps:$4 sm:$0xff] (!%p14722_p3)  }
 0xdcb   : > { %v11178_v30 = vcombine.low (!%p14722_p3), %v11172_v25, %v11176_v48  ;;  %v17847_v25 = vld [vmem:[%s20696_s22 + $0xe0] ss:$16 sps:$4 sm:$0xff] (!%p14722_p3)   ;;  %v17848_v48 = vld [vmem:[%s20696_s22 + $0xe8] ss:$16 sps:$4 sm:$0xff] (!%p14722_p3)  }
 0xdcd   : > { %10904 = vmatpush1.bf16.msra.mxu0 %v17751_v63  ;;  %11068 = vmatpush1.bf16.msra.mxu1 %v17754_v33 }
 0xdce   : > { %10905 = vmatprep.subr.bf16.mxu0 %v17759_v58  ;;  %11069 = vmatprep.subr.bf16.mxu1 %v17762_v54  ;;  %v11185_v54 = vrot.slane (!%p14722_p3), %v11177_v22, %v20185_v43  ;;  %v17853_v22 = vld [vmem:[%s20696_s22 + $0x100] ss:$16 sps:$4 sm:$0xff] (!%p14722_p3)  }
 0xdd0   : > { %v11120_v63 = vld [vmem:[#allocation2] sm:$0xff] (!%p14722_p3) }
 0xdd1   : > { %10906 = vmatpush1.bf16.msra.mxu0 %v17757_v50  ;;  %11070 = vmatpush1.bf16.msra.mxu1 %v17760_v41  ;;  %v11192_v50 = vrot.slane (!%p14722_p3), %v11178_v30, %v20185_v43  ;;  %v17854_v30 = vld [vmem:[%s20696_s22 + $0x108] ss:$16 sps:$4 sm:$0xff] (!%p14722_p3)  }
 0xdd2   : > { %10907 = vmatprep.subr.bf16.mxu0 %v17765_v38  ;;  %11071 = vmatprep.subr.bf16.mxu1 %v17768_v23 }
 0xdd3   : > { %v11193_v23 = vcombine.low (!%p14722_p3), %v11185_v54, %v11192_v50  ;;  %v17860_v54 = vld [vmem:[%s20696_s22 + $0x128] ss:$16 sps:$4 sm:$0xff] (!%p14722_p3)   ;;  %v17861_v50 = vld [vmem:[%s20696_s22 + $0x144] ss:$16 sps:$4 sm:$0xff] (!%p14722_p3)  }
 0xdd5   : > { %10908 = vmatpush1.bf16.msra.mxu0 %v17763_v46  ;;  %11072 = vmatpush1.bf16.msra.mxu1 %v17766_v18 }
 0xdd6   : > { %10909 = vmatprep.subr.bf16.mxu0 %v17771_v13  ;;  %11073 = vmatprep.subr.bf16.mxu1 %v17774_v28 }
 0xdd9   : > { %10910 = vmatpush1.bf16.msra.mxu0 %v17769_v32  ;;  %11074 = vmatpush1.bf16.msra.mxu1 %v17772_v55 }
 0xdda   : > { %10911 = vmatprep.subr.bf16.mxu0 %v17777_v39  ;;  %11075 = vmatprep.subr.bf16.mxu1 %v17780_v4 }
 0xddd   : > { %10912 = vmatpush1.bf16.msra.mxu0 %v17775_v52  ;;  %11076 = vmatpush1.bf16.msra.mxu1 %v17778_v26 }
 0xdde   : > { %10913 = vmatprep.subr.bf16.mxu0 %v17783_v59  ;;  %11077 = vmatprep.subr.bf16.mxu1 %v17786_v12 }
 0xde1   : > { %10914 = vmatpush1.bf16.msra.mxu0 %v17781_v27  ;;  %11078 = vmatpush1.bf16.msra.mxu1 %v17784_v42 }
 0xde2   : > { %10915 = vmatprep.subr.bf16.mxu0 %v17789_v17  ;;  %11079 = vmatprep.subr.bf16.mxu1 %v17792_v2  ;;  %v18324_v17 = vmov (!%p14722_p3), 0   ;;  %v17801_v2 = vld [vmem:[%s20696_s22 + $0x4] ss:$16 sps:$4 sm:$0xff] (!%p14722_p3)  }
 0xde3   : > { %17800 = vset.pattern.permute.xlu1 (!%p14722_p3), %v18324_v17  ;;  %17799 = vset.pattern.permute.xlu0 (!%p14722_p3), %v18324_v17 }
 0xde5   : > { %10916 = vmatpush1.bf16.msra.mxu0 %v17787_v19  ;;  %11080 = vmatpush1.bf16.msra.mxu1 %v17790_v60  ;;  %v17803_v19 = vld [vmem:[%s20696_s22 + $0xc] ss:$16 sps:$4 sm:$0xff] (!%p14722_p3)   ;;  %v17805_v60 = vld [vmem:[%s20696_s22] ss:$16 sps:$4 sm:$0xff] (!%p14722_p3)  }
 0xde6   : > { %10917 = vmatprep.subr.bf16.mxu0 %v17795_v21  ;;  %11081 = vmatprep.subr.bf16.mxu1 %v17798_v24  ;;  %v17806_v21 = vld [vmem:[%s20696_s22 + $0x8] ss:$16 sps:$4 sm:$0xff] (!%p14722_p3)   ;;  %v17807_v24 = vld [vmem:[%s20696_s22 + $0x24] ss:$16 sps:$4 sm:$0xff] (!%p14722_p3)  }
 0xde9   : > { %10918 = vmatpush1.bf16.msra.mxu0 %v17793_v15  ;;  %11082 = vmatpush1.bf16.msra.mxu1 %v17796_v3  ;;  %v17809_v15 = vld [vmem:[%s20696_s22 + $0x2c] ss:$16 sps:$4 sm:$0xff] (!%p14722_p3)   ;;  %v17811_v3 = vld [vmem:[%s20696_s22 + $0x20] ss:$16 sps:$4 sm:$0xff] (!%p14722_p3)  }
 0xdea   : > { %12135 = vmatprep.subr.bf16.mxu0 (!%p14722_p3), %v17801_v2  ;;  %12217 = vmatprep.subr.bf16.mxu1 (!%p14722_p3), %v17803_v19 }
 0xdec   : > { %10920 = vmatmul.mubr.bf16.vlgmr.msra.gmra.mrb[4].mxu0 %v19950_v36  ;;  %11084 = vmatmul.mubr.bf16.vlgmr.msra.gmra.mrb[4].mxu1 %v19950_v36  ;;  %v11121_v36 = vld [vmem:[%s20694_s11] sm:$0xf] (!%p14722_p3) }
 0xded   : > { %v11126_v10 = vrot.slane (!%p14722_p3), %v11121_v36, %v20234_v0  ;;  %v11130_v5 = vrot.slane (!%p14722_p3), %v11121_v36, %v20237_v9  ;;  %v11134_v29 = vrot.slane (!%p14722_p3), %v11121_v36, %v20240_v6  ;;  %v11138_v51 = vrot.slane (!%p14722_p3), %v11121_v36, %v20243_v56  ;;  %12136 = vmatpush1.bf16.msra.mxu0 (!%p14722_p3), %v17805_v60  ;;  %v17835_v36 = vld [vmem:[%s20696_s22 + $0xa0] ss:$16 sps:$4 sm:$0xff] (!%p14722_p3)  }
 0xdee   : > { %12218 = vmatpush1.bf16.msra.mxu1 (!%p14722_p3), %v17806_v21  ;;  %12137 = vmatprep.subr.bf16.mxu0 (!%p14722_p3), %v17807_v24  ;;  %v11237_v21 = vld [vmem:[#allocation5] sm:$0x3] (!%p14722_p3) }
 0xdef   : > { %v11139_v8 = vcombine.low (!%p14722_p3), %v11126_v10, %v11130_v5  ;;  %v11140_v40 = vcombine.low (!%p14722_p3), %v11134_v29, %v11138_v51  ;;  %12219 = vmatprep.subr.bf16.mxu1 (!%p14722_p3), %v17809_v15  ;;  %v17837_v10 = vld [vmem:[%s20696_s22 + $0xc4] ss:$16 sps:$4 sm:$0xff] (!%p14722_p3)   ;;  %v17839_v5 = vld [vmem:[%s20696_s22 + $0xcc] ss:$16 sps:$4 sm:$0xff] (!%p14722_p3)   ;;  %v17841_v29 = vld [vmem:[%s20696_s22 + $0xc0] ss:$16 sps:$4 sm:$0xff] (!%p14722_p3)  }
 0xdf0   : > { %v17843_v51 = vld [vmem:[%s20696_s22 + $0xe4] ss:$16 sps:$4 sm:$0xff] (!%p14722_p3)  }
 0xdf1   : > { %v11147_v33 = vrot.slane (!%p14722_p3), %v11139_v8, %v20185_v43  ;;  %v11154_v58 = vrot.slane (!%p14722_p3), %v11140_v40, %v20185_v43  ;;  %12138 = vmatpush1.bf16.msra.mxu0 (!%p14722_p3), %v17811_v3  ;;  %v17849_v8 = vld [vmem:[%s20696_s22 + $0x104] ss:$16 sps:$4 sm:$0xff] (!%p14722_p3)   ;;  %v17851_v40 = vld [vmem:[%s20696_s22 + $0x10c] ss:$16 sps:$4 sm:$0xff] (!%p14722_p3)  }
 0xdf3   : > { %v11155_v41 = vcombine.low (!%p14722_p3), %v11147_v33, %v11154_v58  ;;  %v17857_v33 = vld [vmem:[%s20696_s22 + $0x12c] ss:$16 sps:$4 sm:$0xff] (!%p14722_p3)   ;;  %v17859_v58 = vld [vmem:[%s20696_s22 + $0x120] ss:$16 sps:$4 sm:$0xff] (!%p14722_p3)  }
 0xdf5   : > { %v11157_v38 = vadd.f32 (!%p14722_p3), %v11155_v41, %v11120_v63  ;;  %v17855_v63 = vld [vmem:[%s20696_s22 + $0x124] ss:$16 sps:$4 sm:$0xff] (!%p14722_p3)   ;;  %v17863_v41 = vld [vmem:[%s20696_s22 + $0x14c] ss:$16 sps:$4 sm:$0xff] (!%p14722_p3)  }
 0xdf7   : > { %v11158_v46 = vmax.f32 (!%p14722_p3), %v11157_v38, 0.0  ;;  %v17865_v38 = vld [vmem:[%s20696_s22 + $0x140] ss:$16 sps:$4 sm:$0xff] (!%p14722_p3)  }
 0xdf9   : > { %v11195_v18 = vmul.f32 (!%p14722_p3), %v11193_v23, %v11158_v46  ;;  %v17866_v23 = vld [vmem:[%s20696_s22 + $0x148] ss:$16 sps:$4 sm:$0xff] (!%p14722_p3)   ;;  %v17867_v46 = vld [vmem:[%s20696_s22 + $0x164] ss:$16 sps:$4 sm:$0xff] (!%p14722_p3)  }
 0xdfb   : > { %v11197_v13 = vcombine.high (!%p14722_p3), %v11195_v18, %v11195_v18  ;;  %v11204_v28 = vrot.slane (!%p14722_p3), %v11195_v18, %v20185_v43  ;;  %v17869_v18 = vld [vmem:[%s20696_s22 + $0x16c] ss:$16 sps:$4 sm:$0xff] (!%p14722_p3)  }
 0xdfd   : > { %v11211_v32 = vrot.slane (!%p14722_p3), %v11197_v13, %v20185_v43  ;;  %v11212_v55 = vcombine.high (!%p14722_p3), %v11204_v28, %v11204_v28  ;;  %v11219_v39 = vsel (!%p14722_p3), %vm11218_vm10, %v11204_v28, 0.0  ;;  %v17871_v13 = vld [vmem:[%s20696_s22 + $0x160] ss:$16 sps:$4 sm:$0xff] (!%p14722_p3)   ;;  %v17872_v28 = vld [vmem:[%s20696_s22 + $0x168] ss:$16 sps:$4 sm:$0xff] (!%p14722_p3)  }
 0xdff   : > { %v11213_v4 = vcombine.high (!%p14722_p3), %v11211_v32, %v11211_v32  ;;  %v11220_v52 = vsel (!%p14722_p3), %vm11218_vm10, %v11212_v55, 0.0  ;;  %v11222_v26 = vsel (!%p14722_p3), %vm11218_vm10, %v11211_v32, 0.0  ;;  %v17873_v32 = vld [vmem:[%s20696_s22 + $0x184] ss:$16 sps:$4 sm:$0xff] (!%p14722_p3)   ;;  %v17875_v55 = vld [vmem:[%s20696_s22 + $0x18c] ss:$16 sps:$4 sm:$0xff] (!%p14722_p3)  }
 0xe00   : > { %v11221_v59 = vadd.f32 (!%p14722_p3), %v11220_v52, %v11219_v39  ;;  %v17877_v39 = vld [vmem:[%s20696_s22 + $0x180] ss:$16 sps:$4 sm:$0xff] (!%p14722_p3)   ;;  %v17879_v52 = vld [vmem:[%s20696_s22 + $0x1a4] ss:$16 sps:$4 sm:$0xff] (!%p14722_p3)  }
 0xe01   : > { %v11224_v12 = vsel (!%p14722_p3), %vm11218_vm10, %v11213_v4, 0.0  ;;  %v17878_v4 = vld [vmem:[%s20696_s22 + $0x188] ss:$16 sps:$4 sm:$0xff] (!%p14722_p3)  }
 0xe02   : > { %v11223_v27 = vadd.f32 (!%p14722_p3), %v11222_v26, %v11221_v59  ;;  %v17881_v26 = vld [vmem:[%s20696_s22 + $0x1ac] ss:$16 sps:$4 sm:$0xff] (!%p14722_p3)   ;;  %v17883_v59 = vld [vmem:[%s20696_s22 + $0x1a0] ss:$16 sps:$4 sm:$0xff] (!%p14722_p3)  }
 0xe04   : > { %v11225_v42 = vadd.f32 (!%p14722_p3), %v11224_v12, %v11223_v27  ;;  %v17884_v12 = vld [vmem:[%s20696_s22 + $0x1a8] ss:$16 sps:$4 sm:$0xff] (!%p14722_p3)   ;;  %v11229_v27 = vstv (!%p14722_p3), %s11228_s23 }
 0xe06   : > { %11226 = vadd.xlane.f32.xlu0 (!%p14722_p3), %v11225_v42 }
 0xe93   : > { %v11227_v42 = vpop.xlane.xlu0 (!%p14722_p3), %11226 }
 0xe94   : > { %v11230_v17 = vadd.f32 (!%p14722_p3), %v11229_v27, %v11227_v42 }
 0xe96   : > { %v14723_v2 = vmul.f32 (!%p14722_p3), -1.442695, %v11230_v17  ;;  %v17899_v17 = vld [vmem:[%s20696_s22 + $0x200] ss:$16 sps:$4 sm:$0xff] (!%p14722_p3)  }
 0xe98   : > { %18219 = vpow2.f32 (!%p14722_p3), %v14723_v2  ;;  %v17902_v2 = vld [vmem:[%s20696_s22 + $0x208] ss:$16 sps:$4 sm:$0xff] (!%p14722_p3)  }
 0xea2   : > { %v18220_v19 = vpop.eup (!%p14722_p3), %18219 }
 0xea3   : > { %v11234_v60 = vadd.f32 (!%p14722_p3), 1.0, %v18220_v19 }
 0xea5   : > { %18221 = vrcp.f32 (!%p14722_p3), %v11234_v60  ;;  %v17907_v60 = vld [vmem:[%s20696_s22 + $0x224] ss:$16 sps:$4 sm:$0xff] (!%p14722_p3)  }
 0xeaf   : > { %v18222_v24 = vpop.eup (!%p14722_p3), %18221 }
 0xeb0   : > { %v11238_v15 = vadd.f32 (!%p14722_p3), %v18222_v24, %v11237_v21 }
 0xeb2   : > { %v11239_v3 = vadd.f32 (!%p14722_p3), 1e-08, %v11238_v15  ;;  %v17905_v15 = vld [vmem:[%s20696_s22 + $0x220] ss:$16 sps:$4 sm:$0xff] (!%p14722_p3)  }
 0xeb4   : > { %18223 = vrcp.f32 (!%p14722_p3), %v11239_v3  ;;  %v17908_v3 = vld [vmem:[%s20696_s22 + $0x228] ss:$16 sps:$4 sm:$0xff] (!%p14722_p3)  }
 0xebf   : > { %v10921_v7 = vpop.f32.mrb[4].mxu0  ;;  %v11085_v61 = vpop.f32.mrb[4].mxu1 }
 0xec0   : > { %v10923_v34 = vpop.f32.mrb[5].mxu0  ;;  %v11087_v35 = vpop.f32.mrb[5].mxu1 }
 0xec1   : > { %v11096_v37 = vcombine.low %v10921_v7, %v10923_v34  ;;  %v11097_v49 = vcombine.low %v11085_v61, %v11087_v35  ;;  %v10925_v44 = vpop.f32.mrb[6].mxu0  ;;  %v11089_v47 = vpop.f32.mrb[6].mxu1  ;;  %v17812_v7 = vld [vmem:[%s20696_s22 + $0x28] ss:$16 sps:$4 sm:$0xff] (!%p14722_p3)   ;;  %v17813_v61 = vld [vmem:[%s20696_s22 + $0x44] ss:$16 sps:$4 sm:$0xff] (!%p14722_p3)  }
 0xec2   : > { %v10926_v57 = vpop.f32.mrb[7].mxu0  ;;  %v11090_v20 = vpop.f32.mrb[7].mxu1  ;;  %v17815_v34 = vld [vmem:[%s20696_s22 + $0x4c] ss:$16 sps:$4 sm:$0xff] (!%p14722_p3)   ;;  %12220 = vmatpush1.bf16.msra.mxu1 (!%p14722_p3), %v17812_v7  ;;  %v17817_v35 = vld [vmem:[%s20696_s22 + $0x40] ss:$16 sps:$4 sm:$0xff] (!%p14722_p3)   ;;  %12139 = vmatprep.subr.bf16.mxu0 (!%p14722_p3), %v17813_v61 }
 0xec3   : > { %v11104_v53 = vrot.slane %v11096_v37, %v20185_v43  ;;  %v11111_v11 = vrot.slane %v11097_v49, %v20185_v43  ;;  %11119 = sbr.rel (%p14722_p3) target bundleno = 4709 (0x1265), region = 160  ;;  %v17818_v37 = vld [vmem:[%s20696_s22 + $0x48] ss:$16 sps:$4 sm:$0xff] (!%p14722_p3)   ;;  %12221 = vmatprep.subr.bf16.mxu1 (!%p14722_p3), %v17815_v34  ;;  %v17819_v49 = vld [vmem:[%s20696_s22 + $0x64] ss:$16 sps:$4 sm:$0xff] (!%p14722_p3)   ;;  %12140 = vmatpush1.bf16.msra.mxu0 (!%p14722_p3), %v17817_v35  ;;  %v18224_v7 = vpop.eup (!%p14722_p3), %18223 }
 0xec4   : > { %v17821_v44 = vld [vmem:[%s20696_s22 + $0x6c] ss:$16 sps:$4 sm:$0xff] (!%p14722_p3)   ;;  %v17823_v47 = vld [vmem:[%s20696_s22 + $0x60] ss:$16 sps:$4 sm:$0xff] (!%p14722_p3)   ;;  %v17824_v57 = vld [vmem:[%s20696_s22 + $0x68] ss:$16 sps:$4 sm:$0xff] (!%p14722_p3)   ;;  %12141 = vmatprep.subr.bf16.mxu0 (!%p14722_p3), %v17819_v49  ;;  %v11242_v61 = vmul.f32 (!%p14722_p3), %v18224_v7, %v11237_v21  ;;  %v11241_v34 = vmul.f32 (!%p14722_p3), %v18224_v7, %v18222_v24 }
 0xec5   : > { %v11112_v16 = vcombine.low %v11104_v53, %v11111_v11  ;;  %v17825_v20 = vld [vmem:[%s20696_s22 + $0x84] ss:$16 sps:$4 sm:$0xff] (!%p14722_p3)   ;;  %v17827_v53 = vld [vmem:[%s20696_s22 + $0x8c] ss:$16 sps:$4 sm:$0xff] (!%p14722_p3)   ;;  %v17829_v11 = vld [vmem:[%s20696_s22 + $0x80] ss:$16 sps:$4 sm:$0xff] (!%p14722_p3)  }
 0xec6   : > { %12222 = vmatpush1.bf16.msra.mxu1 (!%p14722_p3), %v17818_v37  ;;  %11278 = vperm.xlu1 (!%p14722_p3), %17800, %v11242_v61   ;;  %v17887_v35 = vld [vmem:[%s20696_s22 + $0x1c4] ss:$16 sps:$4 sm:$0xff] (!%p14722_p3)   ;;  %v17889_v37 = vld [vmem:[%s20696_s22 + $0x1cc] ss:$16 sps:$4 sm:$0xff] (!%p14722_p3)   ;;  %v17891_v49 = vld [vmem:[%s20696_s22 + $0x1c0] ss:$16 sps:$4 sm:$0xff] (!%p14722_p3)  }
 0xec7   : > { %v11114_v14 = vadd.f32 %v11112_v16, %v9227_v62  ;;  %12223 = vmatprep.subr.bf16.mxu1 (!%p14722_p3), %v17821_v44  ;;  %12142 = vmatpush1.bf16.msra.mxu0 (!%p14722_p3), %v17823_v47  ;;  %v17830_v62 = vld [vmem:[%s20696_s22 + $0x88] ss:$16 sps:$4 sm:$0xff] (!%p14722_p3)   ;;  %v17831_v16 = vld [vmem:[%s20696_s22 + $0xa4] ss:$16 sps:$4 sm:$0xff] (!%p14722_p3)   ;;  %v17910_v21 = vld [vmem:[%s20696_s22 + $0x22c] ss:$16 sps:$4 sm:$0xff] (!%p14722_p3)  }
 0xec8   : > { %12143 = vmatprep.subr.bf16.mxu0 (!%p14722_p3), %v17825_v20  ;;  %11246 = vperm.xlu0 (!%p14722_p3), %17799, %v11241_v34   ;;  %v17892_v44 = vld [vmem:[%s20696_s22 + $0x1c8] ss:$16 sps:$4 sm:$0xff] (!%p14722_p3)   ;;  %v17893_v47 = vld [vmem:[%s20696_s22 + $0x1e4] ss:$16 sps:$4 sm:$0xff] (!%p14722_p3)   ;;  %v17897_v20 = vld [vmem:[%s20696_s22 + $0x1e0] ss:$16 sps:$4 sm:$0xff] (!%p14722_p3)  }
 0xec9   : > { %11115 = vst [vmem:[#allocation3] sm:$0xff] %v11114_v14  ;;  %v17833_v14 = vld [vmem:[%s20696_s22 + $0xac] ss:$16 sps:$4 sm:$0xff] (!%p14722_p3)   ;;  %v17913_v7 = vld [vmem:[%s20696_s22 + $0x244] ss:$16 sps:$4 sm:$0xff] (!%p14722_p3)  }
 0xeca   : > { %12224 = vmatpush1.bf16.msra.mxu1 %v17824_v57  ;;  %v17895_v57 = vld [vmem:[%s20696_s22 + $0x1ec] ss:$16 sps:$4 sm:$0xff]   ;;  %v17911_v34 = vld [vmem:[%s20696_s22 + $0x240] ss:$16 sps:$4 sm:$0xff]  }
 0xecb   : > { %12225 = vmatprep.subr.bf16.mxu1 %v17827_v53  ;;  %12144 = vmatpush1.bf16.msra.mxu0 %v17829_v11  ;;  %v17898_v53 = vld [vmem:[%s20696_s22 + $0x1e8] ss:$16 sps:$4 sm:$0xff]   ;;  %v17901_v11 = vld [vmem:[%s20696_s22 + $0x204] ss:$16 sps:$4 sm:$0xff]   ;;  %v17916_v61 = vld [vmem:[%s20696_s22 + $0x24c] ss:$16 sps:$4 sm:$0xff]  }
 0xecc   : > { %12145 = vmatprep.subr.bf16.mxu0 %v17831_v16  ;;  %v11275_v16 = vld [vmem:[#allocation4] sm:$0xff] }
 0xece   : > { %12226 = vmatpush1.bf16.msra.mxu1 %v17830_v62  ;;  %v17904_v62 = vld [vmem:[%s20696_s22 + $0x20c] ss:$16 sps:$4 sm:$0xff]  }
 0xecf   : > { %12227 = vmatprep.subr.bf16.mxu1 %v17833_v14  ;;  %12146 = vmatpush1.bf16.msra.mxu0 %v17835_v36  ;;  %v11282_v36 = vcombine.high %v11275_v16, %v11275_v16 }
 0xed0   : > { %12147 = vmatprep.subr.bf16.mxu0 %v17837_v10  ;;  %v11243_v14 = vld [vmem:[#allocation3] sm:$0xff]  ;;  %v11289_v10 = vrot.slane %v11275_v16, %v20185_v43 }
 0xed1   : > { %v17934_v16 = vld [vmem:[%s20696_s22 + $0x2ac] ss:$16 sps:$4 sm:$0xff]  }
 0xed2   : > { %12228 = vmatpush1.bf16.msra.mxu1 %v17836_v1  ;;  %v11250_v1 = vcombine.high %v11243_v14, %v11243_v14 }
 0xed3   : > { %12229 = vmatprep.subr.bf16.mxu1 %v17839_v5  ;;  %12148 = vmatpush1.bf16.msra.mxu0 %v17841_v29  ;;  %v11296_v5 = vrot.slane %v11282_v36, %v20185_v43  ;;  %v11257_v29 = vrot.slane %v11243_v14, %v20185_v43  ;;  %v17929_v14 = vld [vmem:[%s20696_s22 + $0x2a0] ss:$16 sps:$4 sm:$0xff]   ;;  %v17932_v36 = vld [vmem:[%s20696_s22 + $0x2a8] ss:$16 sps:$4 sm:$0xff]  }
 0xed4   : > { %12149 = vmatprep.subr.bf16.mxu0 %v17843_v51  ;;  %v11297_v51 = vcombine.high %v11289_v10, %v11289_v10 }
 0xed6   : > { %12230 = vmatpush1.bf16.msra.mxu1 %v17842_v31  ;;  %v11264_v31 = vrot.slane %v11250_v1, %v20185_v43  ;;  %v17937_v1 = vld [vmem:[%s20696_s22 + $0x2c4] ss:$16 sps:$4 sm:$0xff]  }
 0xed7   : > { %12231 = vmatprep.subr.bf16.mxu1 %v17845_v45  ;;  %12150 = vmatpush1.bf16.msra.mxu0 %v17847_v25  ;;  %v11298_v45 = vcombine.high %v11296_v5, %v11296_v5  ;;  %v11311_v25 = vld [vmem:[%s20697_s2] sm:$0xf] }
 0xed8   : > { %12151 = vmatprep.subr.bf16.mxu0 %v17849_v8  ;;  %v11266_v8 = vcombine.high %v11264_v31, %v11264_v31 }
 0xeda   : > { %12232 = vmatpush1.bf16.msra.mxu1 %v17848_v48  ;;  %v11265_v48 = vcombine.high %v11257_v29, %v11257_v29 }
 0xedb   : > { %12233 = vmatprep.subr.bf16.mxu1 %v17851_v40  ;;  %12152 = vmatpush1.bf16.msra.mxu0 %v17853_v22  ;;  %v11324_v22 = vrot.slane %v11311_v25, %v20240_v6 }
 0xedc   : > { %12153 = vmatprep.subr.bf16.mxu0 %v17855_v63  ;;  %v11320_v63 = vrot.slane %v11311_v25, %v20237_v9 }
 0xede   : > { %12234 = vmatpush1.bf16.msra.mxu1 %v17854_v30 }
 0xedf   : > { %12235 = vmatprep.subr.bf16.mxu1 %v17857_v33  ;;  %12154 = vmatpush1.bf16.msra.mxu0 %v17859_v58  ;;  %v11316_v33 = vrot.slane %v11311_v25, %v20234_v0  ;;  %v11328_v58 = vrot.slane %v11311_v25, %v20243_v56  ;;  %v17944_v25 = vld [vmem:[%s20696_s22 + $0x2e8] ss:$16 sps:$4 sm:$0xff]  }
 0xee0   : > { %12155 = vmatprep.subr.bf16.mxu0 %v17861_v50 }
 0xee2   : > { %12236 = vmatpush1.bf16.msra.mxu1 %v17860_v54 }
 0xee3   : > { %12237 = vmatprep.subr.bf16.mxu1 %v17863_v41  ;;  %12156 = vmatpush1.bf16.msra.mxu0 %v17865_v38 }
 0xee4   : > { %12157 = vmatprep.subr.bf16.mxu0 %v17867_v46 }
 0xee6   : > { %12238 = vmatpush1.bf16.msra.mxu1 %v17866_v23 }
 0xee7   : > { %12239 = vmatprep.subr.bf16.mxu1 %v17869_v18  ;;  %12158 = vmatpush1.bf16.msra.mxu0 %v17871_v13 }
 0xee8   : > { %12159 = vmatprep.subr.bf16.mxu0 %v17873_v32 }
 0xeea   : > { %12240 = vmatpush1.bf16.msra.mxu1 %v17872_v28 }
 0xeeb   : > { %12241 = vmatprep.subr.bf16.mxu1 %v17875_v55  ;;  %12160 = vmatpush1.bf16.msra.mxu0 %v17877_v39 }
 0xeec   : > { %12161 = vmatprep.subr.bf16.mxu0 %v17879_v52 }
 0xeee   : > { %12242 = vmatpush1.bf16.msra.mxu1 %v17878_v4 }
 0xeef   : > { %12243 = vmatprep.subr.bf16.mxu1 %v17881_v26  ;;  %12162 = vmatpush1.bf16.msra.mxu0 %v17883_v59 }
 0xef0   : > { %12163 = vmatprep.subr.bf16.mxu0 %v17887_v35  ;;  %v17914_v35 = vld [vmem:[%s20696_s22 + $0x248] ss:$16 sps:$4 sm:$0xff]  }
 0xef2   : > { %12244 = vmatpush1.bf16.msra.mxu1 %v17884_v12 }
 0xef3   : > { %12245 = vmatprep.subr.bf16.mxu1 %v17889_v37  ;;  %12164 = vmatpush1.bf16.msra.mxu0 %v17891_v49  ;;  %v17919_v37 = vld [vmem:[%s20696_s22 + $0x264] ss:$16 sps:$4 sm:$0xff]   ;;  %v17922_v49 = vld [vmem:[%s20696_s22 + $0x26c] ss:$16 sps:$4 sm:$0xff]  }
 0xef4   : > { %12165 = vmatprep.subr.bf16.mxu0 %v17893_v47  ;;  %v17920_v47 = vld [vmem:[%s20696_s22 + $0x268] ss:$16 sps:$4 sm:$0xff]  }
 0xef6   : > { %12246 = vmatpush1.bf16.msra.mxu1 %v17892_v44  ;;  %v17917_v44 = vld [vmem:[%s20696_s22 + $0x260] ss:$16 sps:$4 sm:$0xff]  }
 0xef7   : > { %12247 = vmatprep.subr.bf16.mxu1 %v17895_v57  ;;  %12166 = vmatpush1.bf16.msra.mxu0 %v17897_v20  ;;  %v17925_v57 = vld [vmem:[%s20696_s22 + $0x284] ss:$16 sps:$4 sm:$0xff]   ;;  %v17928_v20 = vld [vmem:[%s20696_s22 + $0x28c] ss:$16 sps:$4 sm:$0xff]  }
 0xef8   : > { %12176 = vmatprep.subr.bf16.mxu0 %v17901_v11  ;;  %v17926_v11 = vld [vmem:[%s20696_s22 + $0x288] ss:$16 sps:$4 sm:$0xff]  }
 0xefa   : > { %12248 = vmatpush1.bf16.msra.mxu1 %v17898_v53  ;;  %v17923_v53 = vld [vmem:[%s20696_s22 + $0x280] ss:$16 sps:$4 sm:$0xff]  }
 0xefb   : > { %12258 = vmatprep.subr.bf16.mxu1 %v17904_v62  ;;  %v17931_v62 = vld [vmem:[%s20696_s22 + $0x2a4] ss:$16 sps:$4 sm:$0xff]  }
 0xf45   : > { %v11279_v40 = vpop.permute.xlu1 %11278 }
 0xf46   : > { %v11303_v54 = vmul.f32 %v11289_v10, %v11279_v40  ;;  %v11304_v50 = vmul.f32 %v11297_v51, %v11279_v40  ;;  %v11305_v41 = vmul.f32 %v11296_v5, %v11279_v40  ;;  %v11306_v38 = vmul.f32 %v11298_v45, %v11279_v40  ;;  %v17940_v10 = vld [vmem:[%s20696_s22 + $0x2cc] ss:$16 sps:$4 sm:$0xff]   ;;  %v17935_v5 = vld [vmem:[%s20696_s22 + $0x2c0] ss:$16 sps:$4 sm:$0xff]  }
 0xf47   : > { %v11247_v30 = vpop.permute.xlu0 %11246  ;;  %v17946_v51 = vld [vmem:[%s20696_s22 + $0x2ec] ss:$16 sps:$4 sm:$0xff]   ;;  %v17941_v45 = vld [vmem:[%s20696_s22 + $0x2e0] ss:$16 sps:$4 sm:$0xff]  }
 0xf48   : > { %v11271_v43 = vmul.f32 %v11257_v29, %v11247_v30  ;;  %v11272_v23 = vmul.f32 %v11265_v48, %v11247_v30  ;;  %v11273_v46 = vmul.f32 %v11264_v31, %v11247_v30  ;;  %v11274_v18 = vmul.f32 %v11266_v8, %v11247_v30  ;;  %v17938_v29 = vld [vmem:[%s20696_s22 + $0x2c8] ss:$16 sps:$4 sm:$0xff]   ;;  %v17943_v31 = vld [vmem:[%s20696_s22 + $0x2e4] ss:$16 sps:$4 sm:$0xff]   ;;  %v17952_v8 = vld [vmem:[%s20696_s22 + $0x30c] ss:$16 sps:$4 sm:$0xff]  }
 0xf49   : > { %v17949_v48 = vld [vmem:[%s20696_s22 + $0x304] ss:$16 sps:$4 sm:$0xff]   ;;  %v17947_v40 = vld [vmem:[%s20696_s22 + $0x300] ss:$16 sps:$4 sm:$0xff]  }
 0xf4a   : > { %v11307_v13 = vadd.f32 %v11303_v54, %v11271_v43  ;;  %v11309_v28 = vadd.f32 %v11305_v41, %v11273_v46  ;;  %v11310_v32 = vadd.f32 %v11306_v38, %v11274_v18  ;;  %v11308_v55 = vadd.f32 %v11304_v50, %v11272_v23  ;;  %v17955_v30 = vld [vmem:[%s20696_s22 + $0x324] ss:$16 sps:$4 sm:$0xff]   ;;  %v17964_v50 = vld [vmem:[%s20696_s22 + $0x34c] ss:$16 sps:$4 sm:$0xff]   ;;  %v17959_v41 = vld [vmem:[%s20696_s22 + $0x340] ss:$16 sps:$4 sm:$0xff]  }
 0xf4b   : > { %v17961_v54 = vld [vmem:[%s20696_s22 + $0x344] ss:$16 sps:$4 sm:$0xff]   ;;  %v17962_v38 = vld [vmem:[%s20696_s22 + $0x348] ss:$16 sps:$4 sm:$0xff]   ;;  %v17970_v23 = vld [vmem:[%s20696_s22 + $0x36c] ss:$16 sps:$4 sm:$0xff]  }
 0xf4c   : > { %v20335_v39 = vadd.f32 %v11324_v22, %v11309_v28  ;;  %v11334_v4 = vadd.f32 %v11320_v63, %v11308_v55  ;;  %v11333_v52 = vadd.f32 %v11316_v33, %v11307_v13  ;;  %v11336_v26 = vadd.f32 %v11328_v58, %v11310_v32  ;;  %v17950_v22 = vld [vmem:[%s20696_s22 + $0x308] ss:$16 sps:$4 sm:$0xff]   ;;  %v17958_v63 = vld [vmem:[%s20696_s22 + $0x32c] ss:$16 sps:$4 sm:$0xff]   ;;  %v17953_v33 = vld [vmem:[%s20696_s22 + $0x320] ss:$16 sps:$4 sm:$0xff]  }
 0xf4d   : > { %v17956_v58 = vld [vmem:[%s20696_s22 + $0x328] ss:$16 sps:$4 sm:$0xff]   ;;  %v17967_v43 = vld [vmem:[%s20696_s22 + $0x364] ss:$16 sps:$4 sm:$0xff]   ;;  %v17965_v46 = vld [vmem:[%s20696_s22 + $0x360] ss:$16 sps:$4 sm:$0xff]  }
 0xf4e   : > { %v11338_v59 = vmax.f32 %v11334_v4, 0.0  ;;  %v11337_v12 = vmax.f32 %v11333_v52, 0.0  ;;  %v11340_v27 = vmax.f32 %v11336_v26, 0.0  ;;  %v17968_v18 = vld [vmem:[%s20696_s22 + $0x368] ss:$16 sps:$4 sm:$0xff]  }
 0xf4f   : > { %v17973_v13 = vld [vmem:[%s20696_s22 + $0x384] ss:$16 sps:$4 sm:$0xff]   ;;  %v17976_v28 = vld [vmem:[%s20696_s22 + $0x38c] ss:$16 sps:$4 sm:$0xff]   ;;  %v17971_v32 = vld [vmem:[%s20696_s22 + $0x380] ss:$16 sps:$4 sm:$0xff]  }
 0xf50   : > { %v11342_v42 = vpack.c.bf16 %v11338_v59, %v11338_v59  ;;  %v11341_v19 = vpack.c.bf16 %v11337_v12, %v11337_v12  ;;  %v11344_v24 = vpack.c.bf16 %v11340_v27, %v11340_v27  ;;  %v17974_v55 = vld [vmem:[%s20696_s22 + $0x388] ss:$16 sps:$4 sm:$0xff]   ;;  %v17979_v4 = vld [vmem:[%s20696_s22 + $0x3a4] ss:$16 sps:$4 sm:$0xff]   ;;  %v17982_v52 = vld [vmem:[%s20696_s22 + $0x3ac] ss:$16 sps:$4 sm:$0xff]  }
 0xf51   : > { %v17977_v26 = vld [vmem:[%s20696_s22 + $0x3a0] ss:$16 sps:$4 sm:$0xff]   ;;  %v17980_v59 = vld [vmem:[%s20696_s22 + $0x3a8] ss:$16 sps:$4 sm:$0xff]   ;;  %v17985_v12 = vld [vmem:[%s20696_s22 + $0x3c4] ss:$16 sps:$4 sm:$0xff]  }
 0xf52   : > { %12167 = vmatprep.mubr.bf16.mxu0 %v11342_v42  ;;  %12249 = vmatprep.mubr.bf16.mxu1 %v11342_v42  ;;  %v17988_v27 = vld [vmem:[%s20696_s22 + $0x3cc] ss:$16 sps:$4 sm:$0xff]   ;;  %v17983_v42 = vld [vmem:[%s20696_s22 + $0x3c0] ss:$16 sps:$4 sm:$0xff]  }
 0xf53   : > { %12168 = vmatmul.mubr.bf16.vlgmr.msra.gmra.mrb[0].mxu0 %v11341_v19  ;;  %12250 = vmatmul.mubr.bf16.vlgmr.msra.gmra.mrb[0].mxu1 %v11341_v19  ;;  %v17994_v19 = vld [vmem:[%s20696_s22 + $0x3ec] ss:$16 sps:$4 sm:$0xff]  }
 0xf54   : > { %12177 = vmatpush1.bf16.msra.mxu0 %v17899_v17  ;;  %12259 = vmatpush1.bf16.msra.mxu1 %v17902_v2  ;;  %v17986_v17 = vld [vmem:[%s20696_s22 + $0x3c8] ss:$16 sps:$4 sm:$0xff]   ;;  %v17991_v2 = vld [vmem:[%s20696_s22 + $0x3e4] ss:$16 sps:$4 sm:$0xff]  }
 0xf55   : > { %12208 = vmatprep.mubr.bf16.mxu0 %v11344_v24  ;;  %12290 = vmatprep.mubr.bf16.mxu1 %v11344_v24  ;;  %v11339_v24 = vmax.f32 %v20335_v39, 0.0  ;;  %v18001_v39 = vld [vmem:[%s20698_s10 + $0x20] ss:$16 sps:$4 sm:$0xff]  }
 0xf56   : > { %12178 = vmatprep.subr.bf16.mxu0 %v17907_v60  ;;  %12260 = vmatprep.subr.bf16.mxu1 %v17910_v21  ;;  %v17989_v60 = vld [vmem:[%s20696_s22 + $0x3e0] ss:$16 sps:$4 sm:$0xff]   ;;  %v17992_v21 = vld [vmem:[%s20696_s22 + $0x3e8] ss:$16 sps:$4 sm:$0xff]  }
 0xf58   : > { %12179 = vmatpush1.bf16.msra.mxu0 %v17905_v15  ;;  %12261 = vmatpush1.bf16.msra.mxu1 %v17908_v3  ;;  %v17997_v15 = vld [vmem:[%s20698_s10 + $0x4] ss:$16 sps:$4 sm:$0xff]   ;;  %v18000_v3 = vld [vmem:[%s20698_s10 + $0xc] ss:$16 sps:$4 sm:$0xff]  }
 0xf59   : > { %12180 = vmatprep.subr.bf16.mxu0 %v17913_v7  ;;  %12262 = vmatprep.subr.bf16.mxu1 %v17916_v61  ;;  %v17995_v7 = vld [vmem:[%s20698_s10] ss:$16 sps:$4 sm:$0xff]   ;;  %v17998_v61 = vld [vmem:[%s20698_s10 + $0x8] ss:$16 sps:$4 sm:$0xff]  }
 0xf5c   : > { %12181 = vmatpush1.bf16.msra.mxu0 %v17911_v34  ;;  %12263 = vmatpush1.bf16.msra.mxu1 %v17914_v35  ;;  %v11343_v34 = vpack.c.bf16 %v11339_v24, %v11339_v24  ;;  %v18003_v35 = vld [vmem:[%s20698_s10 + $0x24] ss:$16 sps:$4 sm:$0xff]   ;;  %v18079_v24 = vld [vmem:[%s20698_s10 + $0x1c0] ss:$16 sps:$4 sm:$0xff]  }
 0xf5d   : > { %12182 = vmatprep.subr.bf16.mxu0 %v17919_v37  ;;  %12264 = vmatprep.subr.bf16.mxu1 %v17922_v49  ;;  %v18006_v37 = vld [vmem:[%s20698_s10 + $0x2c] ss:$16 sps:$4 sm:$0xff]   ;;  %v18004_v49 = vld [vmem:[%s20698_s10 + $0x28] ss:$16 sps:$4 sm:$0xff]  }
 0xf60   : > { %12183 = vmatpush1.bf16.msra.mxu0 %v17917_v44  ;;  %12265 = vmatpush1.bf16.msra.mxu1 %v17920_v47  ;;  %v18009_v44 = vld [vmem:[%s20698_s10 + $0x44] ss:$16 sps:$4 sm:$0xff]   ;;  %v18012_v47 = vld [vmem:[%s20698_s10 + $0x4c] ss:$16 sps:$4 sm:$0xff]  }
 0xf61   : > { %12184 = vmatprep.subr.bf16.mxu0 %v17925_v57  ;;  %12266 = vmatprep.subr.bf16.mxu1 %v17928_v20  ;;  %v18007_v57 = vld [vmem:[%s20698_s10 + $0x40] ss:$16 sps:$4 sm:$0xff]   ;;  %v18010_v20 = vld [vmem:[%s20698_s10 + $0x48] ss:$16 sps:$4 sm:$0xff]  }
 0xf64   : > { %12185 = vmatpush1.bf16.msra.mxu0 %v17923_v53  ;;  %12267 = vmatpush1.bf16.msra.mxu1 %v17926_v11  ;;  %v18015_v53 = vld [vmem:[%s20698_s10 + $0x64] ss:$16 sps:$4 sm:$0xff]   ;;  %v18018_v11 = vld [vmem:[%s20698_s10 + $0x6c] ss:$16 sps:$4 sm:$0xff]  }
 0xf65   : > { %12186 = vmatprep.subr.bf16.mxu0 %v17931_v62  ;;  %12268 = vmatprep.subr.bf16.mxu1 %v17934_v16  ;;  %v18013_v62 = vld [vmem:[%s20698_s10 + $0x60] ss:$16 sps:$4 sm:$0xff]   ;;  %v18016_v16 = vld [vmem:[%s20698_s10 + $0x68] ss:$16 sps:$4 sm:$0xff]  }
 0xf68   : > { %12187 = vmatpush1.bf16.msra.mxu0 %v17929_v14  ;;  %12269 = vmatpush1.bf16.msra.mxu1 %v17932_v36  ;;  %v18021_v14 = vld [vmem:[%s20698_s10 + $0x84] ss:$16 sps:$4 sm:$0xff]   ;;  %v18024_v36 = vld [vmem:[%s20698_s10 + $0x8c] ss:$16 sps:$4 sm:$0xff]  }
 0xf69   : > { %12188 = vmatprep.subr.bf16.mxu0 %v17937_v1  ;;  %12270 = vmatprep.subr.bf16.mxu1 %v17940_v10  ;;  %v18019_v1 = vld [vmem:[%s20698_s10 + $0x80] ss:$16 sps:$4 sm:$0xff]   ;;  %v18022_v10 = vld [vmem:[%s20698_s10 + $0x88] ss:$16 sps:$4 sm:$0xff]  }
 0xf6c   : > { %12189 = vmatpush1.bf16.msra.mxu0 %v17935_v5  ;;  %12271 = vmatpush1.bf16.msra.mxu1 %v17938_v29  ;;  %v18027_v5 = vld [vmem:[%s20698_s10 + $0xa4] ss:$16 sps:$4 sm:$0xff]   ;;  %v18030_v29 = vld [vmem:[%s20698_s10 + $0xac] ss:$16 sps:$4 sm:$0xff]  }
 0xf6d   : > { %12190 = vmatprep.subr.bf16.mxu0 %v17943_v31  ;;  %12272 = vmatprep.subr.bf16.mxu1 %v17946_v51  ;;  %v18025_v31 = vld [vmem:[%s20698_s10 + $0xa0] ss:$16 sps:$4 sm:$0xff]   ;;  %v18028_v51 = vld [vmem:[%s20698_s10 + $0xa8] ss:$16 sps:$4 sm:$0xff]  }
 0xf70   : > { %12191 = vmatpush1.bf16.msra.mxu0 %v17941_v45  ;;  %12273 = vmatpush1.bf16.msra.mxu1 %v17944_v25  ;;  %v18033_v45 = vld [vmem:[%s20698_s10 + $0xc4] ss:$16 sps:$4 sm:$0xff]   ;;  %v18036_v25 = vld [vmem:[%s20698_s10 + $0xcc] ss:$16 sps:$4 sm:$0xff]  }
 0xf71   : > { %12192 = vmatprep.subr.bf16.mxu0 %v17949_v48  ;;  %12274 = vmatprep.subr.bf16.mxu1 %v17952_v8  ;;  %v18031_v48 = vld [vmem:[%s20698_s10 + $0xc0] ss:$16 sps:$4 sm:$0xff]   ;;  %v18034_v8 = vld [vmem:[%s20698_s10 + $0xc8] ss:$16 sps:$4 sm:$0xff]  }
 0xf74   : > { %12193 = vmatpush1.bf16.msra.mxu0 %v17947_v40  ;;  %12275 = vmatpush1.bf16.msra.mxu1 %v17950_v22  ;;  %v18039_v40 = vld [vmem:[%s20698_s10 + $0xe4] ss:$16 sps:$4 sm:$0xff]   ;;  %v18042_v22 = vld [vmem:[%s20698_s10 + $0xec] ss:$16 sps:$4 sm:$0xff]  }
 0xf75   : > { %12194 = vmatprep.subr.bf16.mxu0 %v17955_v30  ;;  %12276 = vmatprep.subr.bf16.mxu1 %v17958_v63  ;;  %v18037_v30 = vld [vmem:[%s20698_s10 + $0xe0] ss:$16 sps:$4 sm:$0xff]   ;;  %v18040_v63 = vld [vmem:[%s20698_s10 + $0xe8] ss:$16 sps:$4 sm:$0xff]  }
 0xf78   : > { %12195 = vmatpush1.bf16.msra.mxu0 %v17953_v33  ;;  %12277 = vmatpush1.bf16.msra.mxu1 %v17956_v58  ;;  %v18045_v33 = vld [vmem:[%s20698_s10 + $0x104] ss:$16 sps:$4 sm:$0xff]   ;;  %v18048_v58 = vld [vmem:[%s20698_s10 + $0x10c] ss:$16 sps:$4 sm:$0xff]  }
 0xf79   : > { %12196 = vmatprep.subr.bf16.mxu0 %v17961_v54  ;;  %12278 = vmatprep.subr.bf16.mxu1 %v17964_v50  ;;  %v18043_v54 = vld [vmem:[%s20698_s10 + $0x100] ss:$16 sps:$4 sm:$0xff]   ;;  %v18046_v50 = vld [vmem:[%s20698_s10 + $0x108] ss:$16 sps:$4 sm:$0xff]  }
 0xf7c   : > { %12197 = vmatpush1.bf16.msra.mxu0 %v17959_v41  ;;  %12279 = vmatpush1.bf16.msra.mxu1 %v17962_v38  ;;  %v18051_v41 = vld [vmem:[%s20698_s10 + $0x124] ss:$16 sps:$4 sm:$0xff]   ;;  %v18054_v38 = vld [vmem:[%s20698_s10 + $0x12c] ss:$16 sps:$4 sm:$0xff]  }
 0xf7d   : > { %12198 = vmatprep.subr.bf16.mxu0 %v17967_v43  ;;  %12280 = vmatprep.subr.bf16.mxu1 %v17970_v23  ;;  %v18049_v43 = vld [vmem:[%s20698_s10 + $0x120] ss:$16 sps:$4 sm:$0xff]   ;;  %v18052_v23 = vld [vmem:[%s20698_s10 + $0x128] ss:$16 sps:$4 sm:$0xff]  }
 0xf80   : > { %12199 = vmatpush1.bf16.msra.mxu0 %v17965_v46  ;;  %12281 = vmatpush1.bf16.msra.mxu1 %v17968_v18  ;;  %v18057_v46 = vld [vmem:[%s20698_s10 + $0x144] ss:$16 sps:$4 sm:$0xff]   ;;  %v18060_v18 = vld [vmem:[%s20698_s10 + $0x14c] ss:$16 sps:$4 sm:$0xff]  }
 0xf81   : > { %12200 = vmatprep.subr.bf16.mxu0 %v17973_v13  ;;  %12282 = vmatprep.subr.bf16.mxu1 %v17976_v28  ;;  %v18055_v13 = vld [vmem:[%s20698_s10 + $0x140] ss:$16 sps:$4 sm:$0xff]   ;;  %v18058_v28 = vld [vmem:[%s20698_s10 + $0x148] ss:$16 sps:$4 sm:$0xff]  }
 0xf84   : > { %12201 = vmatpush1.bf16.msra.mxu0 %v17971_v32  ;;  %12283 = vmatpush1.bf16.msra.mxu1 %v17974_v55  ;;  %v18063_v32 = vld [vmem:[%s20698_s10 + $0x164] ss:$16 sps:$4 sm:$0xff]   ;;  %v18066_v55 = vld [vmem:[%s20698_s10 + $0x16c] ss:$16 sps:$4 sm:$0xff]  }
 0xf85   : > { %12202 = vmatprep.subr.bf16.mxu0 %v17979_v4  ;;  %12284 = vmatprep.subr.bf16.mxu1 %v17982_v52  ;;  %v18061_v4 = vld [vmem:[%s20698_s10 + $0x160] ss:$16 sps:$4 sm:$0xff]   ;;  %v18064_v52 = vld [vmem:[%s20698_s10 + $0x168] ss:$16 sps:$4 sm:$0xff]  }
 0xf88   : > { %12203 = vmatpush1.bf16.msra.mxu0 %v17977_v26  ;;  %12285 = vmatpush1.bf16.msra.mxu1 %v17980_v59  ;;  %v18069_v26 = vld [vmem:[%s20698_s10 + $0x184] ss:$16 sps:$4 sm:$0xff]   ;;  %v18072_v59 = vld [vmem:[%s20698_s10 + $0x18c] ss:$16 sps:$4 sm:$0xff]  }
 0xf89   : > { %12204 = vmatprep.subr.bf16.mxu0 %v17985_v12  ;;  %12286 = vmatprep.subr.bf16.mxu1 %v17988_v27  ;;  %v18067_v12 = vld [vmem:[%s20698_s10 + $0x180] ss:$16 sps:$4 sm:$0xff]   ;;  %v18070_v27 = vld [vmem:[%s20698_s10 + $0x188] ss:$16 sps:$4 sm:$0xff]  }
 0xf8c   : > { %12205 = vmatpush1.bf16.msra.mxu0 %v17983_v42  ;;  %12287 = vmatpush1.bf16.msra.mxu1 %v17986_v17  ;;  %v18075_v42 = vld [vmem:[%s20698_s10 + $0x1a4] ss:$16 sps:$4 sm:$0xff]   ;;  %v18078_v17 = vld [vmem:[%s20698_s10 + $0x1ac] ss:$16 sps:$4 sm:$0xff]  }
 0xf8d   : > { %12206 = vmatprep.subr.bf16.mxu0 %v17991_v2  ;;  %12288 = vmatprep.subr.bf16.mxu1 %v17994_v19  ;;  %v18073_v2 = vld [vmem:[%s20698_s10 + $0x1a0] ss:$16 sps:$4 sm:$0xff]   ;;  %v18076_v19 = vld [vmem:[%s20698_s10 + $0x1a8] ss:$16 sps:$4 sm:$0xff]  }
 0xf90   : > { %12207 = vmatpush1.bf16.msra.mxu0 %v17989_v60  ;;  %12289 = vmatpush1.bf16.msra.mxu1 %v17992_v21  ;;  %v18081_v60 = vld [vmem:[%s20698_s10 + $0x1c4] ss:$16 sps:$4 sm:$0xff]   ;;  %v18084_v21 = vld [vmem:[%s20698_s10 + $0x1cc] ss:$16 sps:$4 sm:$0xff]  }
 0xf91   : > { %13093 = vmatprep.subr.bf16.mxu0 %v17997_v15  ;;  %13175 = vmatprep.subr.bf16.mxu1 %v18000_v3  ;;  %v18082_v15 = vld [vmem:[%s20698_s10 + $0x1c8] ss:$16 sps:$4 sm:$0xff]   ;;  %v18087_v3 = vld [vmem:[%s20698_s10 + $0x1e4] ss:$16 sps:$4 sm:$0xff]  }
 0xf93   : > { %12209 = vmatmul.mubr.bf16.vlgmr.msra.gmra.mrb[0].mxu0 %v11343_v34  ;;  %12291 = vmatmul.mubr.bf16.vlgmr.msra.gmra.mrb[0].mxu1 %v11343_v34  ;;  %v18088_v34 = vld [vmem:[%s20698_s10 + $0x1e8] ss:$16 sps:$4 sm:$0xff]  }
 0xf94   : > { %13094 = vmatpush1.bf16.msra.mxu0 %v17995_v7  ;;  %13176 = vmatpush1.bf16.msra.mxu1 %v17998_v61  ;;  %v18090_v7 = vld [vmem:[%s20698_s10 + $0x1ec] ss:$16 sps:$4 sm:$0xff]   ;;  %v18085_v61 = vld [vmem:[%s20698_s10 + $0x1e0] ss:$16 sps:$4 sm:$0xff]  }
 0xf95   : > { %13095 = vmatprep.subr.bf16.mxu0 %v18003_v35  ;;  %13177 = vmatprep.subr.bf16.mxu1 %v18006_v37  ;;  %v18093_v35 = vld [vmem:[%s20698_s10 + $0x204] ss:$16 sps:$4 sm:$0xff]   ;;  %v18096_v37 = vld [vmem:[%s20698_s10 + $0x20c] ss:$16 sps:$4 sm:$0xff]  }
 0xf98   : > { %13096 = vmatpush1.bf16.msra.mxu0 %v18001_v39  ;;  %13178 = vmatpush1.bf16.msra.mxu1 %v18004_v49  ;;  %v20467_v39 = vld [vmem:[%s20699_s26] sm:$0xf] }
 0xf99   : > { %13097 = vmatprep.subr.bf16.mxu0 %v18009_v44  ;;  %13179 = vmatprep.subr.bf16.mxu1 %v18012_v47  ;;  %v11478_v49 = vrot.slane %v20467_v39, %v20234_v0  ;;  %v11482_v44 = vrot.slane %v20467_v39, %v20237_v9  ;;  %v11490_v47 = vrot.slane %v20467_v39, %v20243_v56 }
 0xf9c   : > { %13098 = vmatpush1.bf16.msra.mxu0 %v18007_v57  ;;  %13180 = vmatpush1.bf16.msra.mxu1 %v18010_v20 }
 0xf9d   : > { %13099 = vmatprep.subr.bf16.mxu0 %v18015_v53  ;;  %13181 = vmatprep.subr.bf16.mxu1 %v18018_v11 }
 0xfa0   : > { %13100 = vmatpush1.bf16.msra.mxu0 %v18013_v62  ;;  %13182 = vmatpush1.bf16.msra.mxu1 %v18016_v16 }
 0xfa1   : > { %13101 = vmatprep.subr.bf16.mxu0 %v18021_v14  ;;  %13183 = vmatprep.subr.bf16.mxu1 %v18024_v36 }
 0xfa4   : > { %13102 = vmatpush1.bf16.msra.mxu0 %v18019_v1  ;;  %13184 = vmatpush1.bf16.msra.mxu1 %v18022_v10 }
 0xfa5   : > { %13103 = vmatprep.subr.bf16.mxu0 %v18027_v5  ;;  %13185 = vmatprep.subr.bf16.mxu1 %v18030_v29 }
 0xfa8   : > { %13104 = vmatpush1.bf16.msra.mxu0 %v18025_v31  ;;  %13186 = vmatpush1.bf16.msra.mxu1 %v18028_v51  ;;  %v18091_v31 = vld [vmem:[%s20698_s10 + $0x200] ss:$16 sps:$4 sm:$0xff]   ;;  %v18094_v51 = vld [vmem:[%s20698_s10 + $0x208] ss:$16 sps:$4 sm:$0xff]  }
 0xfa9   : > { %13105 = vmatprep.subr.bf16.mxu0 %v18033_v45  ;;  %13187 = vmatprep.subr.bf16.mxu1 %v18036_v25  ;;  %v18099_v25 = vld [vmem:[%s20698_s10 + $0x224] ss:$16 sps:$4 sm:$0xff]  }
 0xfac   : > { %13106 = vmatpush1.bf16.msra.mxu0 %v18031_v48  ;;  %13188 = vmatpush1.bf16.msra.mxu1 %v18034_v8  ;;  %v18102_v48 = vld [vmem:[%s20698_s10 + $0x22c] ss:$16 sps:$4 sm:$0xff]  }
 0xfad   : > { %13107 = vmatprep.subr.bf16.mxu0 %v18039_v40  ;;  %13189 = vmatprep.subr.bf16.mxu1 %v18042_v22  ;;  %v18097_v40 = vld [vmem:[%s20698_s10 + $0x220] ss:$16 sps:$4 sm:$0xff]   ;;  %v18100_v22 = vld [vmem:[%s20698_s10 + $0x228] ss:$16 sps:$4 sm:$0xff]  }
 0xfb0   : > { %13108 = vmatpush1.bf16.msra.mxu0 %v18037_v30  ;;  %13190 = vmatpush1.bf16.msra.mxu1 %v18040_v63  ;;  %v18105_v30 = vld [vmem:[%s20698_s10 + $0x244] ss:$16 sps:$4 sm:$0xff]   ;;  %v18108_v63 = vld [vmem:[%s20698_s10 + $0x24c] ss:$16 sps:$4 sm:$0xff]  }
 0xfb1   : > { %13109 = vmatprep.subr.bf16.mxu0 %v18045_v33  ;;  %13191 = vmatprep.subr.bf16.mxu1 %v18048_v58  ;;  %v18103_v33 = vld [vmem:[%s20698_s10 + $0x240] ss:$16 sps:$4 sm:$0xff]   ;;  %v18106_v58 = vld [vmem:[%s20698_s10 + $0x248] ss:$16 sps:$4 sm:$0xff]  }
 0xfb4   : > { %13110 = vmatpush1.bf16.msra.mxu0 %v18043_v54  ;;  %13192 = vmatpush1.bf16.msra.mxu1 %v18046_v50  ;;  %v18111_v54 = vld [vmem:[%s20698_s10 + $0x264] ss:$16 sps:$4 sm:$0xff]   ;;  %v18114_v50 = vld [vmem:[%s20698_s10 + $0x26c] ss:$16 sps:$4 sm:$0xff]  }
 0xfb5   : > { %13111 = vmatprep.subr.bf16.mxu0 %v18051_v41  ;;  %13193 = vmatprep.subr.bf16.mxu1 %v18054_v38  ;;  %v18109_v41 = vld [vmem:[%s20698_s10 + $0x260] ss:$16 sps:$4 sm:$0xff]   ;;  %v18112_v38 = vld [vmem:[%s20698_s10 + $0x268] ss:$16 sps:$4 sm:$0xff]  }
 0xfb8   : > { %13112 = vmatpush1.bf16.msra.mxu0 %v18049_v43  ;;  %13194 = vmatpush1.bf16.msra.mxu1 %v18052_v23  ;;  %v18117_v43 = vld [vmem:[%s20698_s10 + $0x284] ss:$16 sps:$4 sm:$0xff]   ;;  %v18120_v23 = vld [vmem:[%s20698_s10 + $0x28c] ss:$16 sps:$4 sm:$0xff]  }
 0xfb9   : > { %13113 = vmatprep.subr.bf16.mxu0 %v18057_v46  ;;  %13195 = vmatprep.subr.bf16.mxu1 %v18060_v18  ;;  %v18115_v46 = vld [vmem:[%s20698_s10 + $0x280] ss:$16 sps:$4 sm:$0xff]   ;;  %v18118_v18 = vld [vmem:[%s20698_s10 + $0x288] ss:$16 sps:$4 sm:$0xff]  }
 0xfbc   : > { %13114 = vmatpush1.bf16.msra.mxu0 %v18055_v13  ;;  %13196 = vmatpush1.bf16.msra.mxu1 %v18058_v28  ;;  %v18123_v13 = vld [vmem:[%s20698_s10 + $0x2a4] ss:$16 sps:$4 sm:$0xff]   ;;  %v18126_v28 = vld [vmem:[%s20698_s10 + $0x2ac] ss:$16 sps:$4 sm:$0xff]  }
 0xfbd   : > { %13115 = vmatprep.subr.bf16.mxu0 %v18063_v32  ;;  %13197 = vmatprep.subr.bf16.mxu1 %v18066_v55  ;;  %v18121_v32 = vld [vmem:[%s20698_s10 + $0x2a0] ss:$16 sps:$4 sm:$0xff]   ;;  %v18124_v55 = vld [vmem:[%s20698_s10 + $0x2a8] ss:$16 sps:$4 sm:$0xff]  }
 0xfc0   : > { %13116 = vmatpush1.bf16.msra.mxu0 %v18061_v4  ;;  %13198 = vmatpush1.bf16.msra.mxu1 %v18064_v52  ;;  %v18129_v4 = vld [vmem:[%s20698_s10 + $0x2c4] ss:$16 sps:$4 sm:$0xff]   ;;  %v18132_v52 = vld [vmem:[%s20698_s10 + $0x2cc] ss:$16 sps:$4 sm:$0xff]  }
 0xfc1   : > { %13117 = vmatprep.subr.bf16.mxu0 %v18069_v26  ;;  %13199 = vmatprep.subr.bf16.mxu1 %v18072_v59  ;;  %v18127_v26 = vld [vmem:[%s20698_s10 + $0x2c0] ss:$16 sps:$4 sm:$0xff]   ;;  %v18130_v59 = vld [vmem:[%s20698_s10 + $0x2c8] ss:$16 sps:$4 sm:$0xff]  }
 0xfc4   : > { %13118 = vmatpush1.bf16.msra.mxu0 %v18067_v12  ;;  %13200 = vmatpush1.bf16.msra.mxu1 %v18070_v27  ;;  %v18135_v12 = vld [vmem:[%s20698_s10 + $0x2e4] ss:$16 sps:$4 sm:$0xff]   ;;  %v18138_v27 = vld [vmem:[%s20698_s10 + $0x2ec] ss:$16 sps:$4 sm:$0xff]  }
 0xfc5   : > { %13119 = vmatprep.subr.bf16.mxu0 %v18075_v42  ;;  %13201 = vmatprep.subr.bf16.mxu1 %v18078_v17  ;;  %v18133_v42 = vld [vmem:[%s20698_s10 + $0x2e0] ss:$16 sps:$4 sm:$0xff]   ;;  %v18136_v17 = vld [vmem:[%s20698_s10 + $0x2e8] ss:$16 sps:$4 sm:$0xff]  }
 0xfc8   : > { %13120 = vmatpush1.bf16.msra.mxu0 %v18073_v2  ;;  %13202 = vmatpush1.bf16.msra.mxu1 %v18076_v19  ;;  %v18141_v2 = vld [vmem:[%s20698_s10 + $0x304] ss:$16 sps:$4 sm:$0xff]   ;;  %v18144_v19 = vld [vmem:[%s20698_s10 + $0x30c] ss:$16 sps:$4 sm:$0xff]  }
 0xfc9   : > { %13121 = vmatprep.subr.bf16.mxu0 %v18081_v60  ;;  %13203 = vmatprep.subr.bf16.mxu1 %v18084_v21  ;;  %v18139_v60 = vld [vmem:[%s20698_s10 + $0x300] ss:$16 sps:$4 sm:$0xff]   ;;  %v18142_v21 = vld [vmem:[%s20698_s10 + $0x308] ss:$16 sps:$4 sm:$0xff]  }
 0xfcc   : > { %13122 = vmatpush1.bf16.msra.mxu0 %v18079_v24  ;;  %13204 = vmatpush1.bf16.msra.mxu1 %v18082_v15  ;;  %v18147_v24 = vld [vmem:[%s20698_s10 + $0x324] ss:$16 sps:$4 sm:$0xff]   ;;  %v18150_v15 = vld [vmem:[%s20698_s10 + $0x32c] ss:$16 sps:$4 sm:$0xff]  }
 0xfcd   : > { %13123 = vmatprep.subr.bf16.mxu0 %v18087_v3  ;;  %13205 = vmatprep.subr.bf16.mxu1 %v18090_v7  ;;  %v18145_v3 = vld [vmem:[%s20698_s10 + $0x320] ss:$16 sps:$4 sm:$0xff]   ;;  %v18148_v7 = vld [vmem:[%s20698_s10 + $0x328] ss:$16 sps:$4 sm:$0xff]  }
 0xfd0   : > { %13124 = vmatpush1.bf16.msra.mxu0 %v18085_v61  ;;  %13206 = vmatpush1.bf16.msra.mxu1 %v18088_v34  ;;  %v18153_v61 = vld [vmem:[%s20698_s10 + $0x344] ss:$16 sps:$4 sm:$0xff]   ;;  %v18156_v34 = vld [vmem:[%s20698_s10 + $0x34c] ss:$16 sps:$4 sm:$0xff]  }
 0xfd1   : > { %13134 = vmatprep.subr.bf16.mxu0 %v18093_v35  ;;  %13216 = vmatprep.subr.bf16.mxu1 %v18096_v37  ;;  %v18151_v35 = vld [vmem:[%s20698_s10 + $0x340] ss:$16 sps:$4 sm:$0xff]   ;;  %v18154_v37 = vld [vmem:[%s20698_s10 + $0x348] ss:$16 sps:$4 sm:$0xff]  }
0x1066   : > { %v12210_v57 = vpop.f32.mrb[0].mxu0  ;;  %v20475_v20 = vpop.f32.mrb[0].mxu1 }
0x1067   : > { %v16242_v53 = vadd.f32 %v12210_v57, %v11478_v49  ;;  %v12212_v11 = vpop.f32.mrb[1].mxu0  ;;  %v12294_v62 = vpop.f32.mrb[1].mxu1  ;;  %v18159_v49 = vld [vmem:[%s20698_s10 + $0x364] ss:$16 sps:$4 sm:$0xff]   ;;  %v18160_v57 = vld [vmem:[%s20698_s10 + $0x368] ss:$16 sps:$4 sm:$0xff]  }
0x1068   : > { %v16243_v16 = vadd.f32 %v12212_v11, %v11482_v44  ;;  %v12214_v14 = vpop.f32.mrb[2].mxu0  ;;  %v12296_v36 = vpop.f32.mrb[2].mxu1  ;;  %v16245_v1 = vadd.f32 %v12294_v62, %v11490_v47  ;;  %v18162_v44 = vld [vmem:[%s20698_s10 + $0x36c] ss:$16 sps:$4 sm:$0xff]   ;;  %v18157_v47 = vld [vmem:[%s20698_s10 + $0x360] ss:$16 sps:$4 sm:$0xff]  }
0x1069   : > { %v12215_v10 = vpop.f32.mrb[3].mxu0  ;;  %v12297_v5 = vpop.f32.mrb[3].mxu1  ;;  %v12299_v45 = vpack.c.bf16 %v16242_v53, %v16242_v53  ;;  %v18165_v53 = vld [vmem:[%s20698_s10 + $0x384] ss:$16 sps:$4 sm:$0xff]   ;;  %v18168_v11 = vld [vmem:[%s20698_s10 + $0x38c] ss:$16 sps:$4 sm:$0xff]  }
0x106a   : > { %v12300_v29 = vpack.c.bf16 %v16243_v16, %v16243_v16  ;;  %v12302_v8 = vpack.c.bf16 %v16245_v1, %v16245_v1  ;;  %v18163_v62 = vld [vmem:[%s20698_s10 + $0x380] ss:$16 sps:$4 sm:$0xff]   ;;  %v18166_v16 = vld [vmem:[%s20698_s10 + $0x388] ss:$16 sps:$4 sm:$0xff]   ;;  %v18171_v14 = vld [vmem:[%s20698_s10 + $0x3a4] ss:$16 sps:$4 sm:$0xff]  }
0x106b   : > { %v18174_v36 = vld [vmem:[%s20698_s10 + $0x3ac] ss:$16 sps:$4 sm:$0xff]   ;;  %v18169_v1 = vld [vmem:[%s20698_s10 + $0x3a0] ss:$16 sps:$4 sm:$0xff]   ;;  %v18172_v10 = vld [vmem:[%s20698_s10 + $0x3a8] ss:$16 sps:$4 sm:$0xff]  }
0x106c   : > { %13125 = vmatprep.mubr.bf16.mxu0 %v12300_v29  ;;  %13207 = vmatprep.mubr.bf16.mxu1 %v12300_v29  ;;  %v18177_v5 = vld [vmem:[%s20698_s10 + $0x3c4] ss:$16 sps:$4 sm:$0xff]   ;;  %v18180_v29 = vld [vmem:[%s20698_s10 + $0x3cc] ss:$16 sps:$4 sm:$0xff]  }
0x106d   : > { %13126 = vmatmul.mubr.bf16.vlgmr.msra.gmra.mrb[4].mxu0 %v12299_v45  ;;  %13208 = vmatmul.mubr.bf16.vlgmr.msra.gmra.mrb[4].mxu1 %v12299_v45  ;;  %v11486_v45 = vrot.slane %v20467_v39, %v20240_v6  ;;  %v18188_v39 = vld [vmem:[%s18484_s12 + $0xc0] sm:$0xff]  }
0x106e   : > { %13135 = vmatpush1.bf16.msra.mxu0 %v18091_v31  ;;  %13217 = vmatpush1.bf16.msra.mxu1 %v18094_v51  ;;  %v18175_v31 = vld [vmem:[%s20698_s10 + $0x3c0] ss:$16 sps:$4 sm:$0xff]   ;;  %v18178_v51 = vld [vmem:[%s20698_s10 + $0x3c8] ss:$16 sps:$4 sm:$0xff]  }
0x106f   : > { %13166 = vmatprep.mubr.bf16.mxu0 %v12302_v8  ;;  %13248 = vmatprep.mubr.bf16.mxu1 %v12302_v8  ;;  %v18181_v8 = vld [vmem:[%s20698_s10 + $0x3e0] ss:$16 sps:$4 sm:$0xff]  }
0x1070   : > { %13136 = vmatprep.subr.bf16.mxu0 %v18099_v25  ;;  %13218 = vmatprep.subr.bf16.mxu1 %v18102_v48  ;;  %v18183_v25 = vld [vmem:[%s20698_s10 + $0x3e4] ss:$16 sps:$4 sm:$0xff]   ;;  %v18186_v48 = vld [vmem:[%s20698_s10 + $0x3ec] ss:$16 sps:$4 sm:$0xff]  }
0x1072   : > { %13137 = vmatpush1.bf16.msra.mxu0 %v18097_v40  ;;  %13219 = vmatpush1.bf16.msra.mxu1 %v18100_v22  ;;  %v18184_v40 = vld [vmem:[%s20698_s10 + $0x3e8] ss:$16 sps:$4 sm:$0xff]   ;;  %v16244_v22 = vadd.f32 %v20475_v20, %v11486_v45 }
0x1073   : > { %13138 = vmatprep.subr.bf16.mxu0 %v18105_v30  ;;  %13220 = vmatprep.subr.bf16.mxu1 %v18108_v63  ;;  %v18187_v30 = vld [vmem:[%s18484_s12 + $0x40] sm:$0xff]   ;;  %v18193_v20 = vld [vmem:[%s18484_s12 + $0x8] sm:$0xff]  }
0x1074   : > { %v18189_v63 = vld [vmem:[%s18484_s12] sm:$0xff]  }
0x1076   : > { %13139 = vmatpush1.bf16.msra.mxu0 %v18103_v33  ;;  %13221 = vmatpush1.bf16.msra.mxu1 %v18106_v58  ;;  %v18190_v33 = vld [vmem:[%s18484_s12 + $0x80] sm:$0xff]   ;;  %v12301_v58 = vpack.c.bf16 %v16244_v22, %v16244_v22 }
0x1077   : > { %13140 = vmatprep.subr.bf16.mxu0 %v18111_v54  ;;  %13222 = vmatprep.subr.bf16.mxu1 %v18114_v50  ;;  %v18191_v54 = vld [vmem:[%s18484_s12 + $0x48] sm:$0xff]  }
0x1078   : > { %v18192_v50 = vld [vmem:[%s18484_s12 + $0xc8] sm:$0xff]  }
0x107a   : > { %13141 = vmatpush1.bf16.msra.mxu0 %v18109_v41  ;;  %13223 = vmatpush1.bf16.msra.mxu1 %v18112_v38  ;;  %v18194_v41 = vld [vmem:[%s18484_s12 + $0x88] sm:$0xff]   ;;  %v18195_v38 = vld [vmem:[%s18484_s12 + $0x50] sm:$0xff]  }
0x107b   : > { %13142 = vmatprep.subr.bf16.mxu0 %v18117_v43  ;;  %13224 = vmatprep.subr.bf16.mxu1 %v18120_v23  ;;  %v18196_v43 = vld [vmem:[%s18484_s12 + $0xd0] sm:$0xff]  }
0x107c   : > { %v18197_v23 = vld [vmem:[%s18484_s12 + $0x10] sm:$0xff]  }
0x107e   : > { %13143 = vmatpush1.bf16.msra.mxu0 %v18115_v46  ;;  %13225 = vmatpush1.bf16.msra.mxu1 %v18118_v18  ;;  %v18198_v46 = vld [vmem:[%s18484_s12 + $0x90] sm:$0xff]   ;;  %v18199_v18 = vld [vmem:[%s18484_s12 + $0x58] sm:$0xff]  }
0x107f   : > { %13144 = vmatprep.subr.bf16.mxu0 %v18123_v13  ;;  %13226 = vmatprep.subr.bf16.mxu1 %v18126_v28  ;;  %v18200_v13 = vld [vmem:[%s18484_s12 + $0xd8] sm:$0xff]  }
0x1080   : > { %v18201_v28 = vld [vmem:[%s18484_s12 + $0x18] sm:$0xff]  }
0x1082   : > { %13145 = vmatpush1.bf16.msra.mxu0 %v18121_v32  ;;  %13227 = vmatpush1.bf16.msra.mxu1 %v18124_v55  ;;  %v18202_v32 = vld [vmem:[%s18484_s12 + $0x98] sm:$0xff]   ;;  %v18203_v55 = vld [vmem:[%s18484_s12 + $0x60] sm:$0xff]  }
0x1083   : > { %13146 = vmatprep.subr.bf16.mxu0 %v18129_v4  ;;  %13228 = vmatprep.subr.bf16.mxu1 %v18132_v52  ;;  %v18204_v4 = vld [vmem:[%s18484_s12 + $0xe0] sm:$0xff]  }
0x1084   : > { %v18205_v52 = vld [vmem:[%s18484_s12 + $0x20] sm:$0xff]  }
0x1086   : > { %13147 = vmatpush1.bf16.msra.mxu0 %v18127_v26  ;;  %13229 = vmatpush1.bf16.msra.mxu1 %v18130_v59  ;;  %v18206_v26 = vld [vmem:[%s18484_s12 + $0xa0] sm:$0xff]   ;;  %v18207_v59 = vld [vmem:[%s18484_s12 + $0x68] sm:$0xff]  }
0x1087   : > { %13148 = vmatprep.subr.bf16.mxu0 %v18135_v12  ;;  %13230 = vmatprep.subr.bf16.mxu1 %v18138_v27  ;;  %v18208_v12 = vld [vmem:[%s18484_s12 + $0xe8] sm:$0xff]  }
0x1088   : > { %v18209_v27 = vld [vmem:[%s18484_s12 + $0x28] sm:$0xff]  }
0x108a   : > { %13149 = vmatpush1.bf16.msra.mxu0 %v18133_v42  ;;  %13231 = vmatpush1.bf16.msra.mxu1 %v18136_v17  ;;  %v18210_v42 = vld [vmem:[%s18484_s12 + $0xa8] sm:$0xff]   ;;  %v18211_v17 = vld [vmem:[%s18484_s12 + $0x70] sm:$0xff]  }
0x108b   : > { %13150 = vmatprep.subr.bf16.mxu0 %v18141_v2  ;;  %13232 = vmatprep.subr.bf16.mxu1 %v18144_v19  ;;  %v18212_v2 = vld [vmem:[%s18484_s12 + $0xf0] sm:$0xff]  }
0x108c   : > { %v18213_v19 = vld [vmem:[%s18484_s12 + $0x30] sm:$0xff]  }
0x108e   : > { %13151 = vmatpush1.bf16.msra.mxu0 %v18139_v60  ;;  %13233 = vmatpush1.bf16.msra.mxu1 %v18142_v21  ;;  %v18214_v60 = vld [vmem:[%s18484_s12 + $0xb0] sm:$0xff]   ;;  %v18215_v21 = vld [vmem:[%s18484_s12 + $0x78] sm:$0xff]  }
0x108f   : > { %13152 = vmatprep.subr.bf16.mxu0 %v18147_v24  ;;  %13234 = vmatprep.subr.bf16.mxu1 %v18150_v15  ;;  %v18216_v24 = vld [vmem:[%s18484_s12 + $0xf8] sm:$0xff]  }
0x1090   : > { %v18217_v15 = vld [vmem:[%s18484_s12 + $0x38] sm:$0xff]  }
0x1092   : > { %13153 = vmatpush1.bf16.msra.mxu0 %v18145_v3  ;;  %13235 = vmatpush1.bf16.msra.mxu1 %v18148_v7  ;;  %v18218_v3 = vld [vmem:[%s18484_s12 + $0xb8] sm:$0xff]   ;;  %v12431_v7 = vld [vmem:[%s18479_s4] sm:$0xf] }
0x1093   : > { %13154 = vmatprep.subr.bf16.mxu0 %v18153_v61  ;;  %13236 = vmatprep.subr.bf16.mxu1 %v18156_v34  ;;  %v12436_v61 = vrot.slane %v12431_v7, %v20234_v0  ;;  %v12444_v34 = vrot.slane %v12431_v7, %v20240_v6 }
0x1096   : > { %13155 = vmatpush1.bf16.msra.mxu0 %v18151_v35  ;;  %13237 = vmatpush1.bf16.msra.mxu1 %v18154_v37  ;;  %v12440_v35 = vrot.slane %v12431_v7, %v20237_v9  ;;  %v12448_v37 = vrot.slane %v12431_v7, %v20243_v56 }
0x1097   : > { %13156 = vmatprep.subr.bf16.mxu0 %v18159_v49  ;;  %13238 = vmatprep.subr.bf16.mxu1 %v18162_v44 }
0x109a   : > { %13157 = vmatpush1.bf16.msra.mxu0 %v18157_v47  ;;  %13239 = vmatpush1.bf16.msra.mxu1 %v18160_v57 }
0x109b   : > { %13158 = vmatprep.subr.bf16.mxu0 %v18165_v53  ;;  %13240 = vmatprep.subr.bf16.mxu1 %v18168_v11 }
0x109e   : > { %13159 = vmatpush1.bf16.msra.mxu0 %v18163_v62  ;;  %13241 = vmatpush1.bf16.msra.mxu1 %v18166_v16 }
0x109f   : > { %13160 = vmatprep.subr.bf16.mxu0 %v18171_v14  ;;  %13242 = vmatprep.subr.bf16.mxu1 %v18174_v36 }
0x10a2   : > { %13161 = vmatpush1.bf16.msra.mxu0 %v18169_v1  ;;  %13243 = vmatpush1.bf16.msra.mxu1 %v18172_v10 }
0x10a3   : > { %13162 = vmatprep.subr.bf16.mxu0 %v18177_v5  ;;  %13244 = vmatprep.subr.bf16.mxu1 %v18180_v29 }
0x10a6   : > { %13163 = vmatpush1.bf16.msra.mxu0 %v18175_v31  ;;  %13245 = vmatpush1.bf16.msra.mxu1 %v18178_v51 }
0x10a7   : > { %13164 = vmatprep.subr.bf16.mxu0 %v18183_v25  ;;  %13246 = vmatprep.subr.bf16.mxu1 %v18186_v48  ;;  %v14980_v48 = vld [vmem:[%s18489_s20] ss:$0 sm:$0xff] }
0x10aa   : > { %13165 = vmatpush1.bf16.msra.mxu0 %v18181_v8  ;;  %13247 = vmatpush1.bf16.msra.mxu1 %v18184_v40 }
0x10ab   : > { %15269 = vmatprep.subr.bf16.mxu0 %v18187_v30  ;;  %15291 = vmatprep.subr.bf16.mxu1 %v18188_v39 }
0x10ad   : > { %13167 = vmatmul.mubr.bf16.vlgmr.msra.gmra.mrb[4].mxu0 %v12301_v58  ;;  %13249 = vmatmul.mubr.bf16.vlgmr.msra.gmra.mrb[4].mxu1 %v12301_v58 }
0x10ae   : > { %15270 = vmatpush3.bf16.msra.mxu0 %v18189_v63  ;;  %15292 = vmatpush3.bf16.msra.mxu1 %v18190_v33 }
0x10af   : > { %15271 = vmatprep.subr.bf16.mxu0 %v18191_v54  ;;  %15293 = vmatprep.subr.bf16.mxu1 %v18192_v50 }
0x10b2   : > { %15272 = vmatpush3.bf16.msra.mxu0 %v18193_v20  ;;  %15294 = vmatpush3.bf16.msra.mxu1 %v18194_v41 }
0x10b3   : > { %15273 = vmatprep.subr.bf16.mxu0 %v18195_v38  ;;  %15295 = vmatprep.subr.bf16.mxu1 %v18196_v43 }
0x10b6   : > { %15274 = vmatpush3.bf16.msra.mxu0 %v18197_v23  ;;  %15296 = vmatpush3.bf16.msra.mxu1 %v18198_v46 }
0x10b7   : > { %15275 = vmatprep.subr.bf16.mxu0 %v18199_v18  ;;  %15297 = vmatprep.subr.bf16.mxu1 %v18200_v13 }
0x10ba   : > { %15276 = vmatpush3.bf16.msra.mxu0 %v18201_v28  ;;  %15298 = vmatpush3.bf16.msra.mxu1 %v18202_v32 }
0x10bb   : > { %15277 = vmatprep.subr.bf16.mxu0 %v18203_v55  ;;  %15299 = vmatprep.subr.bf16.mxu1 %v18204_v4 }
0x10be   : > { %15278 = vmatpush3.bf16.msra.mxu0 %v18205_v52  ;;  %15300 = vmatpush3.bf16.msra.mxu1 %v18206_v26 }
0x10bf   : > { %15279 = vmatprep.subr.bf16.mxu0 %v18207_v59  ;;  %15301 = vmatprep.subr.bf16.mxu1 %v18208_v12 }
0x10c2   : > { %15280 = vmatpush3.bf16.msra.mxu0 %v18209_v27  ;;  %15302 = vmatpush3.bf16.msra.mxu1 %v18210_v42 }
0x10c3   : > { %15281 = vmatprep.subr.bf16.mxu0 %v18211_v17  ;;  %15303 = vmatprep.subr.bf16.mxu1 %v18212_v2 }
0x10c6   : > { %15282 = vmatpush3.bf16.msra.mxu0 %v18213_v19  ;;  %15304 = vmatpush3.bf16.msra.mxu1 %v18214_v60 }
0x10c7   : > { %15283 = vmatprep.subr.bf16.mxu0 %v18215_v21  ;;  %15305 = vmatprep.subr.bf16.mxu1 %v18216_v24 }
0x10ca   : > { %15284 = vmatpush3.bf16.msra.mxu0 %v18217_v15  ;;  %15306 = vmatpush3.bf16.msra.mxu1 %v18218_v3 }
0x1180   : > { %v13168_v49 = vpop.f32.mrb[4].mxu0  ;;  %v13250_v44 = vpop.f32.mrb[4].mxu1 }
0x1181   : > { %v16246_v47 = vadd.f32 %v13168_v49, %v12436_v61  ;;  %v16248_v57 = vadd.f32 %v13250_v44, %v12444_v34  ;;  %v13170_v53 = vpop.f32.mrb[5].mxu0  ;;  %v13252_v11 = vpop.f32.mrb[5].mxu1 }
0x1182   : > { %v16247_v62 = vadd.f32 %v13170_v53, %v12440_v35  ;;  %v16249_v16 = vadd.f32 %v13252_v11, %v12448_v37  ;;  %v13172_v14 = vpop.f32.mrb[6].mxu0  ;;  %v13254_v36 = vpop.f32.mrb[6].mxu1 }
0x1183   : > { %v13257_v1 = vmax.f32 %v16246_v47, 0.0  ;;  %v13259_v10 = vmax.f32 %v16248_v57, 0.0  ;;  %v13173_v0 = vpop.f32.mrb[7].mxu0  ;;  %v13255_v5 = vpop.f32.mrb[7].mxu1 }
0x1184   : > { %v13258_v6 = vmax.f32 %v16247_v62, 0.0  ;;  %v13260_v29 = vmax.f32 %v16249_v16, 0.0 }
0x1185   : > { %v13261_v56 = vpack.c.bf16 %v13257_v1, %v13257_v1  ;;  %v13263_v51 = vpack.c.bf16 %v13259_v10, %v13259_v10 }
0x1186   : > { %v13262_v9 = vpack.c.bf16 %v13258_v6, %v13258_v6  ;;  %v13264_v31 = vpack.c.bf16 %v13260_v29, %v13260_v29 }
0x1188   : > { %13560 = vmatprep.mubr.bf16.mxu0 %v13262_v9  ;;  %13600 = vmatprep.mubr.bf16.mxu1 %v13264_v31 }
0x1189   : > { %13561 = vmatmul.mubr.bf16.vlgmr.msra.gmra.mrb[8].mxu0 %v13261_v56  ;;  %13601 = vmatmul.mubr.bf16.vlgmr.msra.gmra.mrb[8].mxu1 %v13263_v51 }
0x125c   : > { %v15285_v45 = vpop.f32.mrb[8].mxu0  ;;  %v15307_v25 = vpop.f32.mrb[8].mxu1 }
0x125d   : > { %v15286_v8 = vpop.f32.mrb[9].mxu0  ;;  %v15308_v40 = vpop.f32.mrb[9].mxu1 }
0x125e   : > { %v15287_v22 = vadd.f32 %v15286_v8, %v15285_v45  ;;  %v15309_v30 = vadd.f32 %v15308_v40, %v15307_v25  ;;  %v15288_v39 = vpop.f32.mrb[10].mxu0  ;;  %v15310_v63 = vpop.f32.mrb[10].mxu1 }
0x125f   : > { %v15289_v33 = vpop.f32.mrb[11].mxu0  ;;  %v15311_v58 = vpop.f32.mrb[11].mxu1 }
0x1260   : > { %v13563_v54 = vadd.f32 %v15287_v22, %v14980_v48 }
0x1262   : > { %v13603_v50 = vadd.f32 %v15309_v30, %v13563_v54 }
0x1264   : > { %13609 = vst.msk [vmem:[#allocation9] sm:$0x3] %vm13608_vm11, %v13603_v50 }
0x1265 PF: > { %p16280_p4 = scmp.eq.s32.totalorder %s18502_s1, 1  ;;  %s18325_s11 = smov [#allocation9]  }
0x1266   : > { %s13617_s16 = sshll.u32 %s18325_s11, 4  ;;  %s13618_s16 = int_to_ptr.vmem [resolvable:$true] %s13617_s16 }
0x1267   : > { %s18240_s23 = scalar_lea.vmem %s13618_s16, 32  ;;  %p18247_p8 = scmp.lt.s32.totalorder %s13618_s16, %s13618_s16 }
0x1268   : > { %p18241_p5 = scmp.ne.s32.totalorder %s13618_s16, %s18240_s23  ;;  %p18248_p9 = scmp.lt.s32.totalorder %s18240_s23, %s18240_s23 }
0x126a   : > { %p18242_p6 = pnand %p18241_p5, %p16280_p4  ;;  %p18249_p10 = por %p18248_p9, %p18247_p8 }
0x126c   : > { %p18243_p7 = pneg %p18242_p6 }
0x126e   : > { %p18250_p11 = pnand %p18249_p10, %p18243_p7 }
0x1270   : > { %18253 = shalt.err (!%p18250_p11)
}
0x1271   : > { %s18254_s2 = scalar_lea.hbm %s18494_s30, 32 }
0x1272   : > { %p18255_p12 = scmp.ne.s32.totalorder %s18494_s30, %s18254_s2  ;;  %p18260_p1 = scmp.lt.u32.totalorder %s18254_s2, %s18494_s30 }
0x1274   : > { %p18256_p13 = pnand %p18255_p12, %p16280_p4 }
0x1276   : > { %p18257_p0 = pneg %p18256_p13 }
0x1278   : > { %p18262_p2 = pnand %p18260_p1, %p18257_p0 }
0x127a   : > { %18265 = shalt.err (!%p18262_p2)
}
0x127b   : > { %16271 = dma.vmem_to_hbm [thread:$0]  (%p16280_p4), %s13618_s16, 32, %s18494_s30, [#allocation7]  }
0x127c   : > { %18275 = dma.done.wait (%p16280_p4), [#allocation7], 32  }
0x127d   : > { %18277 = vsyncadd (%p16280_p4), [#allocation7], 4294967264 }
0x127e PF: > { %s77_s28 = sadd.s32 1, %s18280_s28  }
0x127f   : > { %p74_p3 = scmp.ge.s32.totalorder %s77_s28, 4  }
0x1281   :  { %76 = sbr.rel (!%p74_p3) target bundleno = 55 (0x37), region = 250 }
0x1288   :  { %13630 = vsyncpa [#allocation7], 1 }
0x1289   :  { %13632 = vsyncpa [#allocation7 + $0x1], 1 }
0x128a   :  { %13633 = vsyncpa [#allocation8], 1 }
0x128b   :  { %13635 = vsyncpa [#allocation8 + $0x1], 1 }

</bundles_post_ra>
